<compile_context>
chip_gen: v6e
topology: v6e:2x2x1
jax: 0.10.0
libtpu: 0.0.40
codegen_flags: <defaults>
</compile_context>

<pallas_src>
import jax
import jax.numpy as jnp
from jax.experimental import pallas as pl
from jax.experimental.pallas import tpu as pltpu


_CAND_CHUNK = 128   # candidate chunk = one lane group
_DIM_CHUNK = 128    # box-dim chunk -> (128, 128) f32 = 16 vregs per intermediate


def _ivr_kernel(men_z_ref, men_Z_ref, men_c_ref, en_z_ref, en_Z_ref, out_ref):
    # men_*_ref: (1, D, MG)   box dim on sublanes, mention-in-group on lanes
    # en_*_ref:  (D, TN)      box dim on sublanes, candidates on lanes
    # out_ref:   (1, MG, TN)  candidates on lanes (lane-dense stores)
    D, TN = en_z_ref.shape
    MG = men_z_ref.shape[2]
    for k in range(MG):                         # static unroll: mentions in group
        for c in range(TN // _CAND_CHUNK):      # static unroll: candidate chunks
            csl = slice(c * _CAND_CHUNK, (c + 1) * _CAND_CHUNK)
            acc = jnp.zeros((1, _CAND_CHUNK), jnp.float32)
            for d0 in range(0, D, _DIM_CHUNK):  # static unroll: box-dim chunks
                dl = min(_DIM_CHUNK, D - d0)
                dsl = slice(d0, d0 + dl)
                mz = men_z_ref[0, dsl, k:k + 1]        # (dl, 1)
                mZ = men_Z_ref[0, dsl, k:k + 1]        # (dl, 1)
                mc = men_c_ref[0, dsl, k:k + 1]        # (dl, 1) log softplus(side_men)
                ez = en_z_ref[dsl, csl]                # (dl, CH)
                eZ = en_Z_ref[dsl, csl]                # (dl, CH)
                # soft intersection side length; fold the mention log-volume in
                # per dimension so the reduced row is already log(ratio).
                side = jnp.minimum(mZ, eZ) - jnp.maximum(mz, ez)
                acc = acc + jnp.sum(
                    jnp.log(jax.nn.softplus(side)) - mc,
                    axis=0, keepdims=True)             # (1, CH) sublane reduce
            out_ref[0, k:k + 1, csl] = jnp.exp(acc)


def _pick_tn(n_cands, pref):
    tn = min(pref, n_cands)
    tn -= tn % 128
    tn = max(tn, 128)
    while n_cands % tn != 0:
        tn -= 128
    # keep >= 2 candidate tiles when possible (megacore sharding on v7x)
    if n_cands // tn < 2 and tn % 256 == 0:
        tn //= 2
    return tn


def intersectional_volume_ratio(men_embeds, all_en_embeds, *, tn=1024, mg=8):
    """men_embeds: (n_mens, 2*D), all_en_embeds: (n_cands, 2*D) -> (n_mens, n_cands)."""
    n_mens, two_d = men_embeds.shape
    n_cands, two_d2 = all_en_embeds.shape
    assert two_d == two_d2 and two_d % 2 == 0
    D = two_d // 2

    mg = min(mg, n_mens)
    assert D % 8 == 0, "box dim must be a multiple of 8"
    assert n_mens % mg == 0, "n_mens must be a multiple of the mention group size"
    assert n_cands % 128 == 0, "n_cands must be a multiple of 128"

    f32 = jnp.float32
    men = men_embeds.astype(f32)
    en = all_en_embeds.astype(f32)

    # --- hoisted "box factory" + per-box precompute (entity side done once) ---
    men_z = men[:, :D]
    men_Z = men_z + jax.nn.softplus(men[:, D:])
    # per-dim mention log side length; subtracting it per dim inside the kernel
    # implements log vol(int) - log vol(men) with no in-kernel scalar reads
    men_c = jnp.log(jax.nn.softplus(men_Z - men_z))

    en_z = en[:, :D]
    en_Z = en_z + jax.nn.softplus(en[:, D:])

    # entity halves transposed once: (D, n_cands), candidates on lanes
    en_zT = jnp.transpose(en_z)
    en_ZT = jnp.transpose(en_Z)

    # mention groups of `mg`: (G, D, mg), box dim on sublanes
    G = n_mens // mg

    def to_groups(x):  # (n_mens, D) -> (G, D, mg)
        return jnp.transpose(x.reshape(G, mg, D), (0, 2, 1))

    men_gz, men_gZ, men_gc = to_groups(men_z), to_groups(men_Z), to_groups(men_c)

    tn = _pick_tn(n_cands, tn)
    grid = (n_cands // tn, G)   # mention-group axis fastest -> entity tile resident

    out = pl.pallas_call(
        _ivr_kernel,
        out_shape=jax.ShapeDtypeStruct((G, mg, n_cands), f32),
        grid_spec=pltpu.PrefetchScalarGridSpec(
            num_scalar_prefetch=0,
            grid=grid,
            in_specs=[
                pl.BlockSpec((1, D, mg), lambda j, g: (g, 0, 0)),   # men_z groups
                pl.BlockSpec((1, D, mg), lambda j, g: (g, 0, 0)),   # men_Z groups
                pl.BlockSpec((1, D, mg), lambda j, g: (g, 0, 0)),   # men_c groups
                pl.BlockSpec((D, tn), lambda j, g: (0, j)),         # en_z^T
                pl.BlockSpec((D, tn), lambda j, g: (0, j)),         # en_Z^T
            ],
            out_specs=pl.BlockSpec((1, mg, tn), lambda j, g: (g, 0, j)),
        ),
        compiler_params=pltpu.CompilerParams(
            dimension_semantics=("parallel", "parallel")),
    )(men_gz, men_gZ, men_gc, en_zT, en_ZT)
    return out.reshape(n_mens, n_cands)


def _reference(men_embeds, all_en_embeds):
    D = men_embeds.shape[-1] // 2
    mz, md = men_embeds[:, :D], men_embeds[:, D:]
    ez, ed = all_en_embeds[:, :D], all_en_embeds[:, D:]
    mZ = mz + jax.nn.softplus(md)
    eZ = ez + jax.nn.softplus(ed)
    log_vol_men = jnp.sum(jnp.log(jax.nn.softplus(mZ - mz)), axis=-1, keepdims=True)
    z_int = jnp.maximum(mz[:, None, :], ez[None, :, :])
    Z_int = jnp.minimum(mZ[:, None, :], eZ[None, :, :])
    log_vol_int = jnp.sum(jnp.log(jax.nn.softplus(Z_int - z_int)), axis=-1)
    return jnp.exp(log_vol_int - log_vol_men)


if __name__ == "__main__":
    n_mens, n_cands, box_dim = 16, 256, 128   # embedding vector length = 2 * box_dim
    key = jax.random.PRNGKey(0)
    k_en, k_men = jax.random.split(key)
    # Deterministic "parameter" (nn.Parameter all_en_embeds) and example input.
    all_en_embeds = jax.random.normal(k_en, (n_cands, 2 * box_dim), dtype=jnp.float32)
    men_embeds = jax.random.normal(k_men, (n_mens, 2 * box_dim), dtype=jnp.float32)

    out = intersectional_volume_ratio(men_embeds, all_en_embeds)
    out = jax.block_until_ready(out)

    ref = _reference(men_embeds, all_en_embeds)
    assert out.shape == (n_mens, n_cands)
    assert jnp.allclose(out, ref, atol=1e-3, rtol=1e-3)
    print("KERNEL_OK")
</pallas_src>

<mosaic_0001>
module attributes {stable_mosaic.version = 11 : i64} {
  func.func @_ivr_kernel(%arg0: i32, %arg1: i32, %arg2: memref<1x128x8xf32, #tpu.memory_space<vmem>>, %arg3: memref<1x128x8xf32, #tpu.memory_space<vmem>>, %arg4: memref<1x128x8xf32, #tpu.memory_space<vmem>>, %arg5: memref<128x128xf32, #tpu.memory_space<vmem>>, %arg6: memref<128x128xf32, #tpu.memory_space<vmem>>, %arg7: memref<1x8x128xf32, #tpu.memory_space<vmem>>) attributes {dimension_semantics = [#tpu.dimension_semantics<parallel>, #tpu.dimension_semantics<parallel>], iteration_bounds = array<i64: 2, 2>, scalar_prefetch = 0 : i64, scratch_operands = 0 : i64, tpu.core_type = #tpu.core_type<tc>, window_params = [{transform_indices = @transform_0, window_bounds = array<i64: 1, 128, 8>}, {transform_indices = @transform_1, window_bounds = array<i64: 1, 128, 8>}, {transform_indices = @transform_2, window_bounds = array<i64: 1, 128, 8>}, {transform_indices = @transform_3, window_bounds = array<i64: 128, 128>}, {transform_indices = @transform_4, window_bounds = array<i64: 128, 128>}, {transform_indices = @transform_5, window_bounds = array<i64: 1, 8, 128>}]} {
    %cst = arith.constant 0.000000e+00 : f32
    %0 = vector.broadcast %cst : f32 to vector<1x128xf32>
    %c0 = arith.constant 0 : index
    %c0_0 = arith.constant 0 : index
    %c0_1 = arith.constant 0 : index
    %1 = vector.load %arg2[%c0, %c0_0, %c0_1] : memref<1x128x8xf32, #tpu.memory_space<vmem>>, vector<1x128x1xf32>
    %2 = vector.shape_cast %1 : vector<1x128x1xf32> to vector<128x1xf32>
    %c0_2 = arith.constant 0 : index
    %c0_3 = arith.constant 0 : index
    %c0_4 = arith.constant 0 : index
    %3 = vector.load %arg3[%c0_2, %c0_3, %c0_4] : memref<1x128x8xf32, #tpu.memory_space<vmem>>, vector<1x128x1xf32>
    %4 = vector.shape_cast %3 : vector<1x128x1xf32> to vector<128x1xf32>
    %c0_5 = arith.constant 0 : index
    %c0_6 = arith.constant 0 : index
    %c0_7 = arith.constant 0 : index
    %5 = vector.load %arg4[%c0_5, %c0_6, %c0_7] : memref<1x128x8xf32, #tpu.memory_space<vmem>>, vector<1x128x1xf32>
    %6 = vector.shape_cast %5 : vector<1x128x1xf32> to vector<128x1xf32>
    %c0_8 = arith.constant 0 : index
    %c0_9 = arith.constant 0 : index
    %7 = vector.load %arg5[%c0_8, %c0_9] : memref<128x128xf32, #tpu.memory_space<vmem>>, vector<128x128xf32>
    %c0_10 = arith.constant 0 : index
    %c0_11 = arith.constant 0 : index
    %8 = vector.load %arg6[%c0_10, %c0_11] : memref<128x128xf32, #tpu.memory_space<vmem>>, vector<128x128xf32>
    %9 = vector.broadcast %4 : vector<128x1xf32> to vector<128x128xf32>
    %10 = arith.minimumf %9, %8 : vector<128x128xf32>
    %11 = vector.broadcast %2 : vector<128x1xf32> to vector<128x128xf32>
    %12 = arith.maximumf %11, %7 : vector<128x128xf32>
    %13 = arith.subf %10, %12 : vector<128x128xf32>
    %cst_12 = arith.constant 0.000000e+00 : f32
    %14 = vector.broadcast %cst_12 : f32 to vector<128x128xf32>
    %15 = arith.maximumf %13, %14 : vector<128x128xf32>
    %16 = vector.broadcast %cst_12 : f32 to vector<128x128xf32>
    %17 = arith.subf %13, %16 : vector<128x128xf32>
    %18 = arith.cmpf one, %17, %17 : vector<128x128xf32>
    %19 = vector.broadcast %cst_12 : f32 to vector<128x128xf32>
    %20 = arith.addf %13, %19 : vector<128x128xf32>
    %21 = math.absf %17 : vector<128x128xf32>
    %cst_13 = arith.constant 0.000000e+00 : f32
    %22 = vector.broadcast %cst_13 : f32 to vector<128x128xf32>
    %23 = arith.subf %22, %21 : vector<128x128xf32>
    %24 = math.exp %23 : vector<128x128xf32>
    %25 = math.log1p %24 : vector<128x128xf32>
    %26 = arith.addf %15, %25 : vector<128x128xf32>
    %27 = arith.select %18, %20, %26 : vector<128x128xi1>, vector<128x128xf32>
    %28 = math.log %27 : vector<128x128xf32>
    %29 = vector.broadcast %6 : vector<128x1xf32> to vector<128x128xf32>
    %30 = arith.subf %28, %29 : vector<128x128xf32>
    %cst_14 = arith.constant dense<0.000000e+00> : vector<128xf32>
    %31 = vector.multi_reduction <add>, %30, %cst_14 [0] : vector<128x128xf32> to vector<128xf32>
    %32 = vector.shape_cast %31 : vector<128xf32> to vector<1x128xf32>
    %33 = arith.addf %0, %32 : vector<1x128xf32>
    %34 = math.exp %33 : vector<1x128xf32>
    %c0_15 = arith.constant 0 : index
    %c0_16 = arith.constant 0 : index
    %c0_17 = arith.constant 0 : index
    %35 = vector.load %arg7[%c0_15, %c0_16, %c0_17] : memref<1x8x128xf32, #tpu.memory_space<vmem>>, vector<1x1x128xf32>
    %36 = vector.shape_cast %35 : vector<1x1x128xf32> to vector<1x128xf32>
    %37 = vector.shape_cast %34 : vector<1x128xf32> to vector<1x1x128xf32>
    tpu.vector_store %arg7[%c0_15, %c0_16, %c0_17], %37 {strides = array<i32>} : memref<1x8x128xf32, #tpu.memory_space<vmem>>, vector<1x1x128xf32>,
    %cst_18 = arith.constant 0.000000e+00 : f32
    %38 = vector.broadcast %cst_18 : f32 to vector<1x128xf32>
    %c0_19 = arith.constant 0 : index
    %c0_20 = arith.constant 0 : index
    %c1 = arith.constant 1 : index
    %39 = vector.load %arg2[%c0_19, %c0_20, %c1] : memref<1x128x8xf32, #tpu.memory_space<vmem>>, vector<1x128x1xf32>
    %40 = vector.shape_cast %39 : vector<1x128x1xf32> to vector<128x1xf32>
    %c0_21 = arith.constant 0 : index
    %c0_22 = arith.constant 0 : index
    %c1_23 = arith.constant 1 : index
    %41 = vector.load %arg3[%c0_21, %c0_22, %c1_23] : memref<1x128x8xf32, #tpu.memory_space<vmem>>, vector<1x128x1xf32>
    %42 = vector.shape_cast %41 : vector<1x128x1xf32> to vector<128x1xf32>
    %c0_24 = arith.constant 0 : index
    %c0_25 = arith.constant 0 : index
    %c1_26 = arith.constant 1 : index
    %43 = vector.load %arg4[%c0_24, %c0_25, %c1_26] : memref<1x128x8xf32, #tpu.memory_space<vmem>>, vector<1x128x1xf32>
    %44 = vector.shape_cast %43 : vector<1x128x1xf32> to vector<128x1xf32>
    %c0_27 = arith.constant 0 : index
    %c0_28 = arith.constant 0 : index
    %45 = vector.load %arg5[%c0_27, %c0_28] : memref<128x128xf32, #tpu.memory_space<vmem>>, vector<128x128xf32>
    %c0_29 = arith.constant 0 : index
    %c0_30 = arith.constant 0 : index
    %46 = vector.load %arg6[%c0_29, %c0_30] : memref<128x128xf32, #tpu.memory_space<vmem>>, vector<128x128xf32>
    %47 = vector.broadcast %42 : vector<128x1xf32> to vector<128x128xf32>
    %48 = arith.minimumf %47, %46 : vector<128x128xf32>
    %49 = vector.broadcast %40 : vector<128x1xf32> to vector<128x128xf32>
    %50 = arith.maximumf %49, %45 : vector<128x128xf32>
    %51 = arith.subf %48, %50 : vector<128x128xf32>
    %cst_31 = arith.constant 0.000000e+00 : f32
    %52 = vector.broadcast %cst_31 : f32 to vector<128x128xf32>
    %53 = arith.maximumf %51, %52 : vector<128x128xf32>
    %54 = vector.broadcast %cst_31 : f32 to vector<128x128xf32>
    %55 = arith.subf %51, %54 : vector<128x128xf32>
    %56 = arith.cmpf one, %55, %55 : vector<128x128xf32>
    %57 = vector.broadcast %cst_31 : f32 to vector<128x128xf32>
    %58 = arith.addf %51, %57 : vector<128x128xf32>
    %59 = math.absf %55 : vector<128x128xf32>
    %cst_32 = arith.constant 0.000000e+00 : f32
    %60 = vector.broadcast %cst_32 : f32 to vector<128x128xf32>
    %61 = arith.subf %60, %59 : vector<128x128xf32>
    %62 = math.exp %61 : vector<128x128xf32>
    %63 = math.log1p %62 : vector<128x128xf32>
    %64 = arith.addf %53, %63 : vector<128x128xf32>
    %65 = arith.select %56, %58, %64 : vector<128x128xi1>, vector<128x128xf32>
    %66 = math.log %65 : vector<128x128xf32>
    %67 = vector.broadcast %44 : vector<128x1xf32> to vector<128x128xf32>
    %68 = arith.subf %66, %67 : vector<128x128xf32>
    %cst_33 = arith.constant dense<0.000000e+00> : vector<128xf32>
    %69 = vector.multi_reduction <add>, %68, %cst_33 [0] : vector<128x128xf32> to vector<128xf32>
    %70 = vector.shape_cast %69 : vector<128xf32> to vector<1x128xf32>
    %71 = arith.addf %38, %70 : vector<1x128xf32>
    %72 = math.exp %71 : vector<1x128xf32>
    %c0_34 = arith.constant 0 : index
    %c1_35 = arith.constant 1 : index
    %c0_36 = arith.constant 0 : index
    %73 = vector.load %arg7[%c0_34, %c1_35, %c0_36] : memref<1x8x128xf32, #tpu.memory_space<vmem>>, vector<1x1x128xf32>
    %74 = vector.shape_cast %73 : vector<1x1x128xf32> to vector<1x128xf32>
    %75 = vector.shape_cast %72 : vector<1x128xf32> to vector<1x1x128xf32>
    tpu.vector_store %arg7[%c0_34, %c1_35, %c0_36], %75 {strides = array<i32>} : memref<1x8x128xf32, #tpu.memory_space<vmem>>, vector<1x1x128xf32>,
    %cst_37 = arith.constant 0.000000e+00 : f32
    %76 = vector.broadcast %cst_37 : f32 to vector<1x128xf32>
    %c0_38 = arith.constant 0 : index
    %c0_39 = arith.constant 0 : index
    %c2 = arith.constant 2 : index
    %77 = vector.load %arg2[%c0_38, %c0_39, %c2] : memref<1x128x8xf32, #tpu.memory_space<vmem>>, vector<1x128x1xf32>
    %78 = vector.shape_cast %77 : vector<1x128x1xf32> to vector<128x1xf32>
    %c0_40 = arith.constant 0 : index
    %c0_41 = arith.constant 0 : index
    %c2_42 = arith.constant 2 : index
    %79 = vector.load %arg3[%c0_40, %c0_41, %c2_42] : memref<1x128x8xf32, #tpu.memory_space<vmem>>, vector<1x128x1xf32>
    %80 = vector.shape_cast %79 : vector<1x128x1xf32> to vector<128x1xf32>
    %c0_43 = arith.constant 0 : index
    %c0_44 = arith.constant 0 : index
    %c2_45 = arith.constant 2 : index
    %81 = vector.load %arg4[%c0_43, %c0_44, %c2_45] : memref<1x128x8xf32, #tpu.memory_space<vmem>>, vector<1x128x1xf32>
    %82 = vector.shape_cast %81 : vector<1x128x1xf32> to vector<128x1xf32>
    %c0_46 = arith.constant 0 : index
    %c0_47 = arith.constant 0 : index
    %83 = vector.load %arg5[%c0_46, %c0_47] : memref<128x128xf32, #tpu.memory_space<vmem>>, vector<128x128xf32>
    %c0_48 = arith.constant 0 : index
    %c0_49 = arith.constant 0 : index
    %84 = vector.load %arg6[%c0_48, %c0_49] : memref<128x128xf32, #tpu.memory_space<vmem>>, vector<128x128xf32>
    %85 = vector.broadcast %80 : vector<128x1xf32> to vector<128x128xf32>
    %86 = arith.minimumf %85, %84 : vector<128x128xf32>
    %87 = vector.broadcast %78 : vector<128x1xf32> to vector<128x128xf32>
    %88 = arith.maximumf %87, %83 : vector<128x128xf32>
    %89 = arith.subf %86, %88 : vector<128x128xf32>
    %cst_50 = arith.constant 0.000000e+00 : f32
    %90 = vector.broadcast %cst_50 : f32 to vector<128x128xf32>
    %91 = arith.maximumf %89, %90 : vector<128x128xf32>
    %92 = vector.broadcast %cst_50 : f32 to vector<128x128xf32>
    %93 = arith.subf %89, %92 : vector<128x128xf32>
    %94 = arith.cmpf one, %93, %93 : vector<128x128xf32>
    %95 = vector.broadcast %cst_50 : f32 to vector<128x128xf32>
    %96 = arith.addf %89, %95 : vector<128x128xf32>
    %97 = math.absf %93 : vector<128x128xf32>
    %cst_51 = arith.constant 0.000000e+00 : f32
    %98 = vector.broadcast %cst_51 : f32 to vector<128x128xf32>
    %99 = arith.subf %98, %97 : vector<128x128xf32>
    %100 = math.exp %99 : vector<128x128xf32>
    %101 = math.log1p %100 : vector<128x128xf32>
    %102 = arith.addf %91, %101 : vector<128x128xf32>
    %103 = arith.select %94, %96, %102 : vector<128x128xi1>, vector<128x128xf32>
    %104 = math.log %103 : vector<128x128xf32>
    %105 = vector.broadcast %82 : vector<128x1xf32> to vector<128x128xf32>
    %106 = arith.subf %104, %105 : vector<128x128xf32>
    %cst_52 = arith.constant dense<0.000000e+00> : vector<128xf32>
    %107 = vector.multi_reduction <add>, %106, %cst_52 [0] : vector<128x128xf32> to vector<128xf32>
    %108 = vector.shape_cast %107 : vector<128xf32> to vector<1x128xf32>
    %109 = arith.addf %76, %108 : vector<1x128xf32>
    %110 = math.exp %109 : vector<1x128xf32>
    %c0_53 = arith.constant 0 : index
    %c2_54 = arith.constant 2 : index
    %c0_55 = arith.constant 0 : index
    %111 = vector.load %arg7[%c0_53, %c2_54, %c0_55] : memref<1x8x128xf32, #tpu.memory_space<vmem>>, vector<1x1x128xf32>
    %112 = vector.shape_cast %111 : vector<1x1x128xf32> to vector<1x128xf32>
    %113 = vector.shape_cast %110 : vector<1x128xf32> to vector<1x1x128xf32>
    tpu.vector_store %arg7[%c0_53, %c2_54, %c0_55], %113 {strides = array<i32>} : memref<1x8x128xf32, #tpu.memory_space<vmem>>, vector<1x1x128xf32>,
    %cst_56 = arith.constant 0.000000e+00 : f32
    %114 = vector.broadcast %cst_56 : f32 to vector<1x128xf32>
    %c0_57 = arith.constant 0 : index
    %c0_58 = arith.constant 0 : index
    %c3 = arith.constant 3 : index
    %115 = vector.load %arg2[%c0_57, %c0_58, %c3] : memref<1x128x8xf32, #tpu.memory_space<vmem>>, vector<1x128x1xf32>
    %116 = vector.shape_cast %115 : vector<1x128x1xf32> to vector<128x1xf32>
    %c0_59 = arith.constant 0 : index
    %c0_60 = arith.constant 0 : index
    %c3_61 = arith.constant 3 : index
    %117 = vector.load %arg3[%c0_59, %c0_60, %c3_61] : memref<1x128x8xf32, #tpu.memory_space<vmem>>, vector<1x128x1xf32>
    %118 = vector.shape_cast %117 : vector<1x128x1xf32> to vector<128x1xf32>
    %c0_62 = arith.constant 0 : index
    %c0_63 = arith.constant 0 : index
    %c3_64 = arith.constant 3 : index
    %119 = vector.load %arg4[%c0_62, %c0_63, %c3_64] : memref<1x128x8xf32, #tpu.memory_space<vmem>>, vector<1x128x1xf32>
    %120 = vector.shape_cast %119 : vector<1x128x1xf32> to vector<128x1xf32>
    %c0_65 = arith.constant 0 : index
    %c0_66 = arith.constant 0 : index
    %121 = vector.load %arg5[%c0_65, %c0_66] : memref<128x128xf32, #tpu.memory_space<vmem>>, vector<128x128xf32>
    %c0_67 = arith.constant 0 : index
    %c0_68 = arith.constant 0 : index
    %122 = vector.load %arg6[%c0_67, %c0_68] : memref<128x128xf32, #tpu.memory_space<vmem>>, vector<128x128xf32>
    %123 = vector.broadcast %118 : vector<128x1xf32> to vector<128x128xf32>
    %124 = arith.minimumf %123, %122 : vector<128x128xf32>
    %125 = vector.broadcast %116 : vector<128x1xf32> to vector<128x128xf32>
    %126 = arith.maximumf %125, %121 : vector<128x128xf32>
    %127 = arith.subf %124, %126 : vector<128x128xf32>
    %cst_69 = arith.constant 0.000000e+00 : f32
    %128 = vector.broadcast %cst_69 : f32 to vector<128x128xf32>
    %129 = arith.maximumf %127, %128 : vector<128x128xf32>
    %130 = vector.broadcast %cst_69 : f32 to vector<128x128xf32>
    %131 = arith.subf %127, %130 : vector<128x128xf32>
    %132 = arith.cmpf one, %131, %131 : vector<128x128xf32>
    %133 = vector.broadcast %cst_69 : f32 to vector<128x128xf32>
    %134 = arith.addf %127, %133 : vector<128x128xf32>
    %135 = math.absf %131 : vector<128x128xf32>
    %cst_70 = arith.constant 0.000000e+00 : f32
    %136 = vector.broadcast %cst_70 : f32 to vector<128x128xf32>
    %137 = arith.subf %136, %135 : vector<128x128xf32>
    %138 = math.exp %137 : vector<128x128xf32>
    %139 = math.log1p %138 : vector<128x128xf32>
    %140 = arith.addf %129, %139 : vector<128x128xf32>
    %141 = arith.select %132, %134, %140 : vector<128x128xi1>, vector<128x128xf32>
    %142 = math.log %141 : vector<128x128xf32>
    %143 = vector.broadcast %120 : vector<128x1xf32> to vector<128x128xf32>
    %144 = arith.subf %142, %143 : vector<128x128xf32>
    %cst_71 = arith.constant dense<0.000000e+00> : vector<128xf32>
    %145 = vector.multi_reduction <add>, %144, %cst_71 [0] : vector<128x128xf32> to vector<128xf32>
    %146 = vector.shape_cast %145 : vector<128xf32> to vector<1x128xf32>
    %147 = arith.addf %114, %146 : vector<1x128xf32>
    %148 = math.exp %147 : vector<1x128xf32>
    %c0_72 = arith.constant 0 : index
    %c3_73 = arith.constant 3 : index
    %c0_74 = arith.constant 0 : index
    %149 = vector.load %arg7[%c0_72, %c3_73, %c0_74] : memref<1x8x128xf32, #tpu.memory_space<vmem>>, vector<1x1x128xf32>
    %150 = vector.shape_cast %149 : vector<1x1x128xf32> to vector<1x128xf32>
    %151 = vector.shape_cast %148 : vector<1x128xf32> to vector<1x1x128xf32>
    tpu.vector_store %arg7[%c0_72, %c3_73, %c0_74], %151 {strides = array<i32>} : memref<1x8x128xf32, #tpu.memory_space<vmem>>, vector<1x1x128xf32>,
    %cst_75 = arith.constant 0.000000e+00 : f32
    %152 = vector.broadcast %cst_75 : f32 to vector<1x128xf32>
    %c0_76 = arith.constant 0 : index
    %c0_77 = arith.constant 0 : index
    %c4 = arith.constant 4 : index
    %153 = vector.load %arg2[%c0_76, %c0_77, %c4] : memref<1x128x8xf32, #tpu.memory_space<vmem>>, vector<1x128x1xf32>
    %154 = vector.shape_cast %153 : vector<1x128x1xf32> to vector<128x1xf32>
    %c0_78 = arith.constant 0 : index
    %c0_79 = arith.constant 0 : index
    %c4_80 = arith.constant 4 : index
    %155 = vector.load %arg3[%c0_78, %c0_79, %c4_80] : memref<1x128x8xf32, #tpu.memory_space<vmem>>, vector<1x128x1xf32>
    %156 = vector.shape_cast %155 : vector<1x128x1xf32> to vector<128x1xf32>
    %c0_81 = arith.constant 0 : index
    %c0_82 = arith.constant 0 : index
    %c4_83 = arith.constant 4 : index
    %157 = vector.load %arg4[%c0_81, %c0_82, %c4_83] : memref<1x128x8xf32, #tpu.memory_space<vmem>>, vector<1x128x1xf32>
    %158 = vector.shape_cast %157 : vector<1x128x1xf32> to vector<128x1xf32>
    %c0_84 = arith.constant 0 : index
    %c0_85 = arith.constant 0 : index
    %159 = vector.load %arg5[%c0_84, %c0_85] : memref<128x128xf32, #tpu.memory_space<vmem>>, vector<128x128xf32>
    %c0_86 = arith.constant 0 : index
    %c0_87 = arith.constant 0 : index
    %160 = vector.load %arg6[%c0_86, %c0_87] : memref<128x128xf32, #tpu.memory_space<vmem>>, vector<128x128xf32>
    %161 = vector.broadcast %156 : vector<128x1xf32> to vector<128x128xf32>
    %162 = arith.minimumf %161, %160 : vector<128x128xf32>
    %163 = vector.broadcast %154 : vector<128x1xf32> to vector<128x128xf32>
    %164 = arith.maximumf %163, %159 : vector<128x128xf32>
    %165 = arith.subf %162, %164 : vector<128x128xf32>
    %cst_88 = arith.constant 0.000000e+00 : f32
    %166 = vector.broadcast %cst_88 : f32 to vector<128x128xf32>
    %167 = arith.maximumf %165, %166 : vector<128x128xf32>
    %168 = vector.broadcast %cst_88 : f32 to vector<128x128xf32>
    %169 = arith.subf %165, %168 : vector<128x128xf32>
    %170 = arith.cmpf one, %169, %169 : vector<128x128xf32>
    %171 = vector.broadcast %cst_88 : f32 to vector<128x128xf32>
    %172 = arith.addf %165, %171 : vector<128x128xf32>
    %173 = math.absf %169 : vector<128x128xf32>
    %cst_89 = arith.constant 0.000000e+00 : f32
    %174 = vector.broadcast %cst_89 : f32 to vector<128x128xf32>
    %175 = arith.subf %174, %173 : vector<128x128xf32>
    %176 = math.exp %175 : vector<128x128xf32>
    %177 = math.log1p %176 : vector<128x128xf32>
    %178 = arith.addf %167, %177 : vector<128x128xf32>
    %179 = arith.select %170, %172, %178 : vector<128x128xi1>, vector<128x128xf32>
    %180 = math.log %179 : vector<128x128xf32>
    %181 = vector.broadcast %158 : vector<128x1xf32> to vector<128x128xf32>
    %182 = arith.subf %180, %181 : vector<128x128xf32>
    %cst_90 = arith.constant dense<0.000000e+00> : vector<128xf32>
    %183 = vector.multi_reduction <add>, %182, %cst_90 [0] : vector<128x128xf32> to vector<128xf32>
    %184 = vector.shape_cast %183 : vector<128xf32> to vector<1x128xf32>
    %185 = arith.addf %152, %184 : vector<1x128xf32>
    %186 = math.exp %185 : vector<1x128xf32>
    %c0_91 = arith.constant 0 : index
    %c4_92 = arith.constant 4 : index
    %c0_93 = arith.constant 0 : index
    %187 = vector.load %arg7[%c0_91, %c4_92, %c0_93] : memref<1x8x128xf32, #tpu.memory_space<vmem>>, vector<1x1x128xf32>
    %188 = vector.shape_cast %187 : vector<1x1x128xf32> to vector<1x128xf32>
    %189 = vector.shape_cast %186 : vector<1x128xf32> to vector<1x1x128xf32>
    tpu.vector_store %arg7[%c0_91, %c4_92, %c0_93], %189 {strides = array<i32>} : memref<1x8x128xf32, #tpu.memory_space<vmem>>, vector<1x1x128xf32>,
    %cst_94 = arith.constant 0.000000e+00 : f32
    %190 = vector.broadcast %cst_94 : f32 to vector<1x128xf32>
    %c0_95 = arith.constant 0 : index
    %c0_96 = arith.constant 0 : index
    %c5 = arith.constant 5 : index
    %191 = vector.load %arg2[%c0_95, %c0_96, %c5] : memref<1x128x8xf32, #tpu.memory_space<vmem>>, vector<1x128x1xf32>
    %192 = vector.shape_cast %191 : vector<1x128x1xf32> to vector<128x1xf32>
    %c0_97 = arith.constant 0 : index
    %c0_98 = arith.constant 0 : index
    %c5_99 = arith.constant 5 : index
    %193 = vector.load %arg3[%c0_97, %c0_98, %c5_99] : memref<1x128x8xf32, #tpu.memory_space<vmem>>, vector<1x128x1xf32>
    %194 = vector.shape_cast %193 : vector<1x128x1xf32> to vector<128x1xf32>
    %c0_100 = arith.constant 0 : index
    %c0_101 = arith.constant 0 : index
    %c5_102 = arith.constant 5 : index
    %195 = vector.load %arg4[%c0_100, %c0_101, %c5_102] : memref<1x128x8xf32, #tpu.memory_space<vmem>>, vector<1x128x1xf32>
    %196 = vector.shape_cast %195 : vector<1x128x1xf32> to vector<128x1xf32>
    %c0_103 = arith.constant 0 : index
    %c0_104 = arith.constant 0 : index
    %197 = vector.load %arg5[%c0_103, %c0_104] : memref<128x128xf32, #tpu.memory_space<vmem>>, vector<128x128xf32>
    %c0_105 = arith.constant 0 : index
    %c0_106 = arith.constant 0 : index
    %198 = vector.load %arg6[%c0_105, %c0_106] : memref<128x128xf32, #tpu.memory_space<vmem>>, vector<128x128xf32>
    %199 = vector.broadcast %194 : vector<128x1xf32> to vector<128x128xf32>
    %200 = arith.minimumf %199, %198 : vector<128x128xf32>
    %201 = vector.broadcast %192 : vector<128x1xf32> to vector<128x128xf32>
    %202 = arith.maximumf %201, %197 : vector<128x128xf32>
    %203 = arith.subf %200, %202 : vector<128x128xf32>
    %cst_107 = arith.constant 0.000000e+00 : f32
    %204 = vector.broadcast %cst_107 : f32 to vector<128x128xf32>
    %205 = arith.maximumf %203, %204 : vector<128x128xf32>
    %206 = vector.broadcast %cst_107 : f32 to vector<128x128xf32>
    %207 = arith.subf %203, %206 : vector<128x128xf32>
    %208 = arith.cmpf one, %207, %207 : vector<128x128xf32>
    %209 = vector.broadcast %cst_107 : f32 to vector<128x128xf32>
    %210 = arith.addf %203, %209 : vector<128x128xf32>
    %211 = math.absf %207 : vector<128x128xf32>
    %cst_108 = arith.constant 0.000000e+00 : f32
    %212 = vector.broadcast %cst_108 : f32 to vector<128x128xf32>
    %213 = arith.subf %212, %211 : vector<128x128xf32>
    %214 = math.exp %213 : vector<128x128xf32>
    %215 = math.log1p %214 : vector<128x128xf32>
    %216 = arith.addf %205, %215 : vector<128x128xf32>
    %217 = arith.select %208, %210, %216 : vector<128x128xi1>, vector<128x128xf32>
    %218 = math.log %217 : vector<128x128xf32>
    %219 = vector.broadcast %196 : vector<128x1xf32> to vector<128x128xf32>
    %220 = arith.subf %218, %219 : vector<128x128xf32>
    %cst_109 = arith.constant dense<0.000000e+00> : vector<128xf32>
    %221 = vector.multi_reduction <add>, %220, %cst_109 [0] : vector<128x128xf32> to vector<128xf32>
    %222 = vector.shape_cast %221 : vector<128xf32> to vector<1x128xf32>
    %223 = arith.addf %190, %222 : vector<1x128xf32>
    %224 = math.exp %223 : vector<1x128xf32>
    %c0_110 = arith.constant 0 : index
    %c5_111 = arith.constant 5 : index
    %c0_112 = arith.constant 0 : index
    %225 = vector.load %arg7[%c0_110, %c5_111, %c0_112] : memref<1x8x128xf32, #tpu.memory_space<vmem>>, vector<1x1x128xf32>
    %226 = vector.shape_cast %225 : vector<1x1x128xf32> to vector<1x128xf32>
    %227 = vector.shape_cast %224 : vector<1x128xf32> to vector<1x1x128xf32>
    tpu.vector_store %arg7[%c0_110, %c5_111, %c0_112], %227 {strides = array<i32>} : memref<1x8x128xf32, #tpu.memory_space<vmem>>, vector<1x1x128xf32>,
    %cst_113 = arith.constant 0.000000e+00 : f32
    %228 = vector.broadcast %cst_113 : f32 to vector<1x128xf32>
    %c0_114 = arith.constant 0 : index
    %c0_115 = arith.constant 0 : index
    %c6 = arith.constant 6 : index
    %229 = vector.load %arg2[%c0_114, %c0_115, %c6] : memref<1x128x8xf32, #tpu.memory_space<vmem>>, vector<1x128x1xf32>
    %230 = vector.shape_cast %229 : vector<1x128x1xf32> to vector<128x1xf32>
    %c0_116 = arith.constant 0 : index
    %c0_117 = arith.constant 0 : index
    %c6_118 = arith.constant 6 : index
    %231 = vector.load %arg3[%c0_116, %c0_117, %c6_118] : memref<1x128x8xf32, #tpu.memory_space<vmem>>, vector<1x128x1xf32>
    %232 = vector.shape_cast %231 : vector<1x128x1xf32> to vector<128x1xf32>
    %c0_119 = arith.constant 0 : index
    %c0_120 = arith.constant 0 : index
    %c6_121 = arith.constant 6 : index
    %233 = vector.load %arg4[%c0_119, %c0_120, %c6_121] : memref<1x128x8xf32, #tpu.memory_space<vmem>>, vector<1x128x1xf32>
    %234 = vector.shape_cast %233 : vector<1x128x1xf32> to vector<128x1xf32>
    %c0_122 = arith.constant 0 : index
    %c0_123 = arith.constant 0 : index
    %235 = vector.load %arg5[%c0_122, %c0_123] : memref<128x128xf32, #tpu.memory_space<vmem>>, vector<128x128xf32>
    %c0_124 = arith.constant 0 : index
    %c0_125 = arith.constant 0 : index
    %236 = vector.load %arg6[%c0_124, %c0_125] : memref<128x128xf32, #tpu.memory_space<vmem>>, vector<128x128xf32>
    %237 = vector.broadcast %232 : vector<128x1xf32> to vector<128x128xf32>
    %238 = arith.minimumf %237, %236 : vector<128x128xf32>
    %239 = vector.broadcast %230 : vector<128x1xf32> to vector<128x128xf32>
    %240 = arith.maximumf %239, %235 : vector<128x128xf32>
    %241 = arith.subf %238, %240 : vector<128x128xf32>
    %cst_126 = arith.constant 0.000000e+00 : f32
    %242 = vector.broadcast %cst_126 : f32 to vector<128x128xf32>
    %243 = arith.maximumf %241, %242 : vector<128x128xf32>
    %244 = vector.broadcast %cst_126 : f32 to vector<128x128xf32>
    %245 = arith.subf %241, %244 : vector<128x128xf32>
    %246 = arith.cmpf one, %245, %245 : vector<128x128xf32>
    %247 = vector.broadcast %cst_126 : f32 to vector<128x128xf32>
    %248 = arith.addf %241, %247 : vector<128x128xf32>
    %249 = math.absf %245 : vector<128x128xf32>
    %cst_127 = arith.constant 0.000000e+00 : f32
    %250 = vector.broadcast %cst_127 : f32 to vector<128x128xf32>
    %251 = arith.subf %250, %249 : vector<128x128xf32>
    %252 = math.exp %251 : vector<128x128xf32>
    %253 = math.log1p %252 : vector<128x128xf32>
    %254 = arith.addf %243, %253 : vector<128x128xf32>
    %255 = arith.select %246, %248, %254 : vector<128x128xi1>, vector<128x128xf32>
    %256 = math.log %255 : vector<128x128xf32>
    %257 = vector.broadcast %234 : vector<128x1xf32> to vector<128x128xf32>
    %258 = arith.subf %256, %257 : vector<128x128xf32>
    %cst_128 = arith.constant dense<0.000000e+00> : vector<128xf32>
    %259 = vector.multi_reduction <add>, %258, %cst_128 [0] : vector<128x128xf32> to vector<128xf32>
    %260 = vector.shape_cast %259 : vector<128xf32> to vector<1x128xf32>
    %261 = arith.addf %228, %260 : vector<1x128xf32>
    %262 = math.exp %261 : vector<1x128xf32>
    %c0_129 = arith.constant 0 : index
    %c6_130 = arith.constant 6 : index
    %c0_131 = arith.constant 0 : index
    %263 = vector.load %arg7[%c0_129, %c6_130, %c0_131] : memref<1x8x128xf32, #tpu.memory_space<vmem>>, vector<1x1x128xf32>
    %264 = vector.shape_cast %263 : vector<1x1x128xf32> to vector<1x128xf32>
    %265 = vector.shape_cast %262 : vector<1x128xf32> to vector<1x1x128xf32>
    tpu.vector_store %arg7[%c0_129, %c6_130, %c0_131], %265 {strides = array<i32>} : memref<1x8x128xf32, #tpu.memory_space<vmem>>, vector<1x1x128xf32>,
    %cst_132 = arith.constant 0.000000e+00 : f32
    %266 = vector.broadcast %cst_132 : f32 to vector<1x128xf32>
    %c0_133 = arith.constant 0 : index
    %c0_134 = arith.constant 0 : index
    %c7 = arith.constant 7 : index
    %267 = vector.load %arg2[%c0_133, %c0_134, %c7] : memref<1x128x8xf32, #tpu.memory_space<vmem>>, vector<1x128x1xf32>
    %268 = vector.shape_cast %267 : vector<1x128x1xf32> to vector<128x1xf32>
    %c0_135 = arith.constant 0 : index
    %c0_136 = arith.constant 0 : index
    %c7_137 = arith.constant 7 : index
    %269 = vector.load %arg3[%c0_135, %c0_136, %c7_137] : memref<1x128x8xf32, #tpu.memory_space<vmem>>, vector<1x128x1xf32>
    %270 = vector.shape_cast %269 : vector<1x128x1xf32> to vector<128x1xf32>
    %c0_138 = arith.constant 0 : index
    %c0_139 = arith.constant 0 : index
    %c7_140 = arith.constant 7 : index
    %271 = vector.load %arg4[%c0_138, %c0_139, %c7_140] : memref<1x128x8xf32, #tpu.memory_space<vmem>>, vector<1x128x1xf32>
    %272 = vector.shape_cast %271 : vector<1x128x1xf32> to vector<128x1xf32>
    %c0_141 = arith.constant 0 : index
    %c0_142 = arith.constant 0 : index
    %273 = vector.load %arg5[%c0_141, %c0_142] : memref<128x128xf32, #tpu.memory_space<vmem>>, vector<128x128xf32>
    %c0_143 = arith.constant 0 : index
    %c0_144 = arith.constant 0 : index
    %274 = vector.load %arg6[%c0_143, %c0_144] : memref<128x128xf32, #tpu.memory_space<vmem>>, vector<128x128xf32>
    %275 = vector.broadcast %270 : vector<128x1xf32> to vector<128x128xf32>
    %276 = arith.minimumf %275, %274 : vector<128x128xf32>
    %277 = vector.broadcast %268 : vector<128x1xf32> to vector<128x128xf32>
    %278 = arith.maximumf %277, %273 : vector<128x128xf32>
    %279 = arith.subf %276, %278 : vector<128x128xf32>
    %cst_145 = arith.constant 0.000000e+00 : f32
    %280 = vector.broadcast %cst_145 : f32 to vector<128x128xf32>
    %281 = arith.maximumf %279, %280 : vector<128x128xf32>
    %282 = vector.broadcast %cst_145 : f32 to vector<128x128xf32>
    %283 = arith.subf %279, %282 : vector<128x128xf32>
    %284 = arith.cmpf one, %283, %283 : vector<128x128xf32>
    %285 = vector.broadcast %cst_145 : f32 to vector<128x128xf32>
    %286 = arith.addf %279, %285 : vector<128x128xf32>
    %287 = math.absf %283 : vector<128x128xf32>
    %cst_146 = arith.constant 0.000000e+00 : f32
    %288 = vector.broadcast %cst_146 : f32 to vector<128x128xf32>
    %289 = arith.subf %288, %287 : vector<128x128xf32>
    %290 = math.exp %289 : vector<128x128xf32>
    %291 = math.log1p %290 : vector<128x128xf32>
    %292 = arith.addf %281, %291 : vector<128x128xf32>
    %293 = arith.select %284, %286, %292 : vector<128x128xi1>, vector<128x128xf32>
    %294 = math.log %293 : vector<128x128xf32>
    %295 = vector.broadcast %272 : vector<128x1xf32> to vector<128x128xf32>
    %296 = arith.subf %294, %295 : vector<128x128xf32>
    %cst_147 = arith.constant dense<0.000000e+00> : vector<128xf32>
    %297 = vector.multi_reduction <add>, %296, %cst_147 [0] : vector<128x128xf32> to vector<128xf32>
    %298 = vector.shape_cast %297 : vector<128xf32> to vector<1x128xf32>
    %299 = arith.addf %266, %298 : vector<1x128xf32>
    %300 = math.exp %299 : vector<1x128xf32>
    %c0_148 = arith.constant 0 : index
    %c7_149 = arith.constant 7 : index
    %c0_150 = arith.constant 0 : index
    %301 = vector.load %arg7[%c0_148, %c7_149, %c0_150] : memref<1x8x128xf32, #tpu.memory_space<vmem>>, vector<1x1x128xf32>
    %302 = vector.shape_cast %301 : vector<1x1x128xf32> to vector<1x128xf32>
    %303 = vector.shape_cast %300 : vector<1x128xf32> to vector<1x1x128xf32>
    tpu.vector_store %arg7[%c0_148, %c7_149, %c0_150], %303 {strides = array<i32>} : memref<1x8x128xf32, #tpu.memory_space<vmem>>, vector<1x1x128xf32>,
    return
  }
  func.func @transform_0(%arg0: i32, %arg1: i32) -> (i32, i32, i32) {
    %c0_i32 = arith.constant 0 : i32
    %c0_i32_0 = arith.constant 0 : i32
    %c0_i32_1 = arith.constant 0 : i32
    return %arg1, %c0_i32, %c0_i32_0 : i32, i32, i32
  }
  func.func @transform_1(%arg0: i32, %arg1: i32) -> (i32, i32, i32) {
    %c0_i32 = arith.constant 0 : i32
    %c0_i32_0 = arith.constant 0 : i32
    %c0_i32_1 = arith.constant 0 : i32
    return %arg1, %c0_i32, %c0_i32_0 : i32, i32, i32
  }
  func.func @transform_2(%arg0: i32, %arg1: i32) -> (i32, i32, i32) {
    %c0_i32 = arith.constant 0 : i32
    %c0_i32_0 = arith.constant 0 : i32
    %c0_i32_1 = arith.constant 0 : i32
    return %arg1, %c0_i32, %c0_i32_0 : i32, i32, i32
  }
  func.func @transform_3(%arg0: i32, %arg1: i32) -> (i32, i32) {
    %c0_i32 = arith.constant 0 : i32
    %c0_i32_0 = arith.constant 0 : i32
    return %c0_i32, %arg0 : i32, i32
  }
  func.func @transform_4(%arg0: i32, %arg1: i32) -> (i32, i32) {
    %c0_i32 = arith.constant 0 : i32
    %c0_i32_0 = arith.constant 0 : i32
    return %c0_i32, %arg0 : i32, i32
  }
  func.func @transform_5(%arg0: i32, %arg1: i32) -> (i32, i32, i32) {
    %c0_i32 = arith.constant 0 : i32
    %c0_i32_0 = arith.constant 0 : i32
    return %arg1, %c0_i32, %arg0 : i32, i32, i32
  }
}

</mosaic_0001>

<bundles_post_ra>
// kernel: tpu_custom_call.1
= control target key start
LH: loop header
LB: loop body
LE: loop exit
PB: predicated region body
PF: predicated region fallthrough
CT: control target
= control target key end

     0   :  { %s12525_s0 = inlined_call_operand.vmem [shape: f32[2,128,8], index: 0, kind: input, shape index: {}]   ;;  %s12526_s1 = inlined_call_operand.vmem [shape: f32[2,128,8], index: 1, kind: input, shape index: {}]   ;;  %s12527_s2 = inlined_call_operand.vmem [shape: f32[2,128,8], index: 2, kind: input, shape index: {}]   ;;  %s12528_s3 = inlined_call_operand.vmem [shape: f32[128,256], index: 3, kind: input, shape index: {}]   ;;  %s12529_s4 = inlined_call_operand.vmem [shape: f32[128,256], index: 4, kind: input, shape index: {}]   ;;  %s12530_s5 = inlined_call_operand.hbm [shape: f32[2,8,256], index: 5, kind: output, shape index: {}]  }
   0x1   :  { %12545 = sst [smem:[#allocation20_spill]] %s12525_s0 }
   0x2   :  { %12546 = sst [smem:[#allocation21_spill]] %s12526_s1 }
   0x3   :  { %10 = vsyncpa [#allocation5], 0 }
   0x4   :  { %12 = vsyncpa [#allocation5 + $0x1], 0  ;;  %s7636_s18 = smov 0   ;;  %s7638_s19 = smov 0  }
   0x5   :  { %s7640_s20 = smov 0   ;;  %s7642_s21 = smov 0  }
   0x6   :  { %s7644_s22 = smov 0   ;;  %s7646_s23 = smov 0  }
   0x7   :  { %s7648_s24 = smov 0   ;;  %s7650_s25 = smov 0  }
   0x8   :  { %s7652_s26 = smov 0   ;;  %s7654_s27 = smov 0  }
   0x9 LB: > { %s6487_s28 = sadd.s32 4294967295, %s7595_s27   ;;  %s6488_s29 = sadd.s32 4294967294, %s7595_s27   ;;  %s7595_s27 = sphi %s7654_s27, %s18_s27   ;;  %s7591_s26 = sphi %s7652_s26, %s12900_s26   ;;  %s7587_s25 = sphi %s7650_s25, %s12899_s25   ;;  %s7583_s24 = sphi %s7648_s24, %s12898_s24   ;;  %s7579_s23 = sphi %s7646_s23, %s12897_s23   ;;  %s7575_s22 = sphi %s7644_s22, %s12896_s22   ;;  %s7571_s21 = sphi %s7642_s21, %s12895_s21   ;;  %s7567_s20 = sphi %s7640_s20, %s12894_s20   ;;  %s7563_s19 = sphi %s7638_s19, %s12893_s19   ;;  %s7559_s18 = sphi %s7636_s18, %s12892_s18  }
   0xa   : > { %s27_s30 = sadd.s32 1, %s7587_s25  ;;  %s30_s6 = sadd.s32 1, %s7591_s26 }
   0xb   : > { %p28_p0 = scmp.ge.s32.totalorder %s27_s30, 2  ;;  %s115_s7 = sadd.s32 1, %s7575_s22 }
   0xc   : > { %p122_p1 = scmp.ne.s32.totalorder %s7575_s22, %s7571_s21  ;;  %p123_p2 = scmp.eq.s32.totalorder %s7595_s27, 0 }
   0xd   : > { %s12902_s30 = smov (%p28_p0, %s27_s30), 0  ;;  %s12904_s6 = smov (!%p28_p0, %s30_s6), %s7591_s26 }
   0xe   : > { %p7697_p3 = por %p123_p2, %p122_p1  ;;  %s164_s9 = ssub.s32 %s7587_s25, %s12902_s30 }
   0xf   : > { %p32_p4 = scmp.ge.s32.totalorder %s12904_s6, 2  ;;  %s169_s10 = sadd.s32 1, %s7567_s20 }
  0x10   : > { %p179_p5 = scmp.ne.s32.totalorder %s7567_s20, %s7563_s19  ;;  %p180_p6 = scmp.eq.s32.totalorder %s6487_s28, 3 }
  0x11   : > { %s12906_s6 = smov (%p32_p4, %s12904_s6), 0  ;;  %p185_p8 = scmp.ne.s32.totalorder %s7563_s19, %s7559_s18 }
  0x12   : > { %p7708_p7 = por %p180_p6, %p179_p5  ;;  %s112_s12 = ssub.s32 %s7591_s26, %s12906_s6 }
  0x13   : > { %p186_p9 = scmp.eq.s32.totalorder %s6488_s29, 3  ;;  %p113_p10 = scmp.eq.s32.totalorder %s112_s12, 0 }
  0x14   : > { %s166_s13 = sor.u32 %s164_s9, %s112_s12  ;;  %p6490_p13 = scmp.ge.s32.totalorder %s7595_s27, 4 }
  0x15   : > { %p167_p11 = scmp.eq.s32.totalorder %s166_s13, 0  ;;  %p7716_p12 = por %p186_p9, %p185_p8 }
  0x16   : > { %s7721_s15 = scalar_select %p113_p10, %s7575_s22, %s115_s7  }
  0x17   : > { %s7724_s16 = scalar_select %p167_p11, %s7567_s20, %s169_s10  }
  0x18   : > { %202 = sbr.rel (%p6490_p13) target bundleno = 53 (0x35), region = 16 }
  0x1d   : > { %229 = sbr.rel (!%p7697_p3) target bundleno = 41 (0x29), region = 32  ;;  %s231_s17 = sand.u32 (%p7697_p3), 1, %s7575_s22  }
  0x1e   : > { %s6492_s28 = sshll.u32 (%p7697_p3), %s7591_s26, 3  ;;  %s6491_s29 = sshll.u32 (%p7697_p3), %s231_s17, 7 }
  0x1f   : > { %s7734_s13 = scalar_lea.vmem (%p7697_p3), %s12528_s3, %s6492_s28  ;;  %s233_s7 = scalar_lea.vmem (%p7697_p3), [#allocation2], %s6491_s29 }
  0x20   : > { %v294_v0 = vld [vmem:[%s7734_s13] sm:$0xff] (%p7697_p3)  ;;  %v296_v1 = vld [vmem:[%s7734_s13 + $0x10] sm:$0xff] (%p7697_p3) }
  0x21   : > { %v298_v2 = vld [vmem:[%s7734_s13 + $0x20] sm:$0xff] (%p7697_p3)  ;;  %295 = vst [vmem:[%s233_s7] sm:$0xff] (%p7697_p3), %v294_v0  ;;  %297 = vst [vmem:[%s233_s7 + $0x8] sm:$0xff] (%p7697_p3), %v296_v1  ;;  %v300_v3 = vld [vmem:[%s7734_s13 + $0x30] sm:$0xff] (%p7697_p3) }
  0x22   : > { %299 = vst [vmem:[%s233_s7 + $0x10] sm:$0xff] %v298_v2  ;;  %v302_v4 = vld [vmem:[%s7734_s13 + $0x40] sm:$0xff]  ;;  %v304_v5 = vld [vmem:[%s7734_s13 + $0x50] sm:$0xff]  ;;  %301 = vst [vmem:[%s233_s7 + $0x18] sm:$0xff] %v300_v3 }
  0x23   : > { %303 = vst [vmem:[%s233_s7 + $0x20] sm:$0xff] %v302_v4  ;;  %305 = vst [vmem:[%s233_s7 + $0x28] sm:$0xff] %v304_v5  ;;  %v306_v6 = vld [vmem:[%s7734_s13 + $0x60] sm:$0xff]  ;;  %v308_v7 = vld [vmem:[%s7734_s13 + $0x70] sm:$0xff] }
  0x24   : > { %v310_v8 = vld [vmem:[%s7734_s13 + $0x80] sm:$0xff]  ;;  %307 = vst [vmem:[%s233_s7 + $0x30] sm:$0xff] %v306_v6  ;;  %309 = vst [vmem:[%s233_s7 + $0x38] sm:$0xff] %v308_v7  ;;  %v312_v9 = vld [vmem:[%s7734_s13 + $0x90] sm:$0xff] }
  0x25   : > { %311 = vst [vmem:[%s233_s7 + $0x40] sm:$0xff] %v310_v8  ;;  %v314_v10 = vld [vmem:[%s7734_s13 + $0xa0] sm:$0xff]  ;;  %v316_v11 = vld [vmem:[%s7734_s13 + $0xb0] sm:$0xff]  ;;  %313 = vst [vmem:[%s233_s7 + $0x48] sm:$0xff] %v312_v9 }
  0x26   : > { %315 = vst [vmem:[%s233_s7 + $0x50] sm:$0xff] %v314_v10  ;;  %317 = vst [vmem:[%s233_s7 + $0x58] sm:$0xff] %v316_v11  ;;  %v318_v12 = vld [vmem:[%s7734_s13 + $0xc0] sm:$0xff]  ;;  %v320_v13 = vld [vmem:[%s7734_s13 + $0xd0] sm:$0xff] }
  0x27   : > { %v322_v14 = vld [vmem:[%s7734_s13 + $0xe0] sm:$0xff]  ;;  %319 = vst [vmem:[%s233_s7 + $0x60] sm:$0xff] %v318_v12  ;;  %321 = vst [vmem:[%s233_s7 + $0x68] sm:$0xff] %v320_v13  ;;  %v324_v15 = vld [vmem:[%s7734_s13 + $0xf0] sm:$0xff] }
  0x28   : > { %323 = vst [vmem:[%s233_s7 + $0x70] sm:$0xff] %v322_v14  ;;  %325 = vst [vmem:[%s233_s7 + $0x78] sm:$0xff] %v324_v15 }
  0x29 PF: > { %331 = sbr.rel (!%p7697_p3) target bundleno = 53 (0x35), region = 70  ;;  %s333_s10 = sand.u32 (%p7697_p3), 1, %s7575_s22  }
  0x2a   : > { %s6494_s17 = sshll.u32 (%p7697_p3), %s7591_s26, 3  ;;  %s6493_s28 = sshll.u32 (%p7697_p3), %s333_s10, 7 }
  0x2b   : > { %s7759_s12 = scalar_lea.vmem (%p7697_p3), %s12529_s4, %s6494_s17  ;;  %s335_s8 = scalar_lea.vmem (%p7697_p3), [#allocation3], %s6493_s28 }
  0x2c   : > { %v396_v16 = vld [vmem:[%s7759_s12] sm:$0xff] (%p7697_p3)  ;;  %v398_v17 = vld [vmem:[%s7759_s12 + $0x10] sm:$0xff] (%p7697_p3) }
  0x2d   : > { %v400_v18 = vld [vmem:[%s7759_s12 + $0x20] sm:$0xff] (%p7697_p3)  ;;  %397 = vst [vmem:[%s335_s8] sm:$0xff] (%p7697_p3), %v396_v16  ;;  %399 = vst [vmem:[%s335_s8 + $0x8] sm:$0xff] (%p7697_p3), %v398_v17  ;;  %v402_v19 = vld [vmem:[%s7759_s12 + $0x30] sm:$0xff] (%p7697_p3) }
  0x2e   : > { %401 = vst [vmem:[%s335_s8 + $0x10] sm:$0xff] %v400_v18  ;;  %v404_v20 = vld [vmem:[%s7759_s12 + $0x40] sm:$0xff]  ;;  %v406_v21 = vld [vmem:[%s7759_s12 + $0x50] sm:$0xff]  ;;  %403 = vst [vmem:[%s335_s8 + $0x18] sm:$0xff] %v402_v19 }
  0x2f   : > { %405 = vst [vmem:[%s335_s8 + $0x20] sm:$0xff] %v404_v20  ;;  %407 = vst [vmem:[%s335_s8 + $0x28] sm:$0xff] %v406_v21  ;;  %v408_v22 = vld [vmem:[%s7759_s12 + $0x60] sm:$0xff]  ;;  %v410_v23 = vld [vmem:[%s7759_s12 + $0x70] sm:$0xff] }
  0x30   : > { %v412_v24 = vld [vmem:[%s7759_s12 + $0x80] sm:$0xff]  ;;  %409 = vst [vmem:[%s335_s8 + $0x30] sm:$0xff] %v408_v22  ;;  %411 = vst [vmem:[%s335_s8 + $0x38] sm:$0xff] %v410_v23  ;;  %v414_v25 = vld [vmem:[%s7759_s12 + $0x90] sm:$0xff] }
  0x31   : > { %413 = vst [vmem:[%s335_s8 + $0x40] sm:$0xff] %v412_v24  ;;  %v416_v26 = vld [vmem:[%s7759_s12 + $0xa0] sm:$0xff]  ;;  %v418_v27 = vld [vmem:[%s7759_s12 + $0xb0] sm:$0xff]  ;;  %415 = vst [vmem:[%s335_s8 + $0x48] sm:$0xff] %v414_v25 }
  0x32   : > { %417 = vst [vmem:[%s335_s8 + $0x50] sm:$0xff] %v416_v26  ;;  %419 = vst [vmem:[%s335_s8 + $0x58] sm:$0xff] %v418_v27  ;;  %v420_v28 = vld [vmem:[%s7759_s12 + $0xc0] sm:$0xff]  ;;  %v422_v29 = vld [vmem:[%s7759_s12 + $0xd0] sm:$0xff] }
  0x33   : > { %v424_v30 = vld [vmem:[%s7759_s12 + $0xe0] sm:$0xff]  ;;  %421 = vst [vmem:[%s335_s8 + $0x60] sm:$0xff] %v420_v28  ;;  %423 = vst [vmem:[%s335_s8 + $0x68] sm:$0xff] %v422_v29  ;;  %v426_v31 = vld [vmem:[%s7759_s12 + $0xf0] sm:$0xff] }
  0x34   : > { %425 = vst [vmem:[%s335_s8 + $0x70] sm:$0xff] %v424_v30  ;;  %427 = vst [vmem:[%s335_s8 + $0x78] sm:$0xff] %v426_v31 }
  0x35 PF: > { %p6495_p0 = scmp.ge.s32.totalorder %s7595_s27, 1  ;;  %p432_p1 = scmp.lt.s32.totalorder %s7595_s27, 5 }
  0x37   : > { %p433_p2 = pnand %p6495_p0, %p432_p1 }
  0x39   : > { %436 = sbr.rel (%p433_p2) target bundleno = 1080 (0x438), region = 108 }
  0x3e   : > { %p492_p3 = scmp.lt.s32.totalorder %s7579_s23, 1  ;;  %v7597_v32 = vmov 0   ;;  %s12550_s1 = sld [smem:[#allocation21_spill]]  ;;  %v7598_v17 = vmov 1  }
  0x3f   : > { %6609 = vset.pattern.permute.xlu1 %v7597_v32  ;;  %6608 = vset.pattern.permute.xlu0 %v7597_v32  ;;  %s12551_s0 = sld [smem:[#allocation20_spill]]  ;;  %s489_s9 = sand.u32 1, %s7563_s19  }
  0x40   : > { %s493_s13 = scalar_select %p492_p3, %s7579_s23, 1 }
  0x41   : > { %s8800_s8 = sshll.u32 %s489_s9, 3 }
  0x42   : > { %s7781_s7 = sshll.u32 %s493_s13, 7  ;;  %s8862_s13 = scalar_lea.vmem [#allocation4], %s8800_s8 }
  0x43   : > { %s7925_s10 = scalar_lea.vmem %s12527_s2, %s7781_s7  ;;  %s6340_s8 = scalar_lea.sflag [#allocation5], %s489_s9 }
  0x44   : > { %s7787_s28 = scalar_lea.vmem %s12550_s1, %s7781_s7  ;;  %v7930_v1 = vld [vmem:[%s7925_s10 + $0x8] sm:$0xff]  ;;  %v7933_v2 = vld [vmem:[%s7925_s10] sm:$0xff]  ;;  %v7938_v3 = vld [vmem:[%s7925_s10 + $0x18] sm:$0xff]  ;;  %s7605_s1 = smov [#allocation4]  }
  0x45   : > { %v7790_v33 = vld [vmem:[%s7787_s28 + $0x10] sm:$0xff]  ;;  %v7793_v34 = vld [vmem:[%s7787_s28] sm:$0xff]  ;;  %v7798_v35 = vld [vmem:[%s7787_s28 + $0x18] sm:$0xff]  ;;  %s7855_s12 = scalar_lea.vmem %s12551_s0, %s7781_s7  ;;  %s439_s7 = sand.u32 1, %s7571_s21  }
  0x46   : > { %599 = vperm.xlu1 %6609, %v7790_v33   ;;  %589 = vperm.xlu0 %6608, %v7793_v34   ;;  %v7801_v36 = vld [vmem:[%s7787_s28 + $0x8] sm:$0xff]  ;;  %v7809_v38 = vld [vmem:[%s7787_s28 + $0x20] sm:$0xff]  ;;  %v7814_v39 = vld [vmem:[%s7787_s28 + $0x38] sm:$0xff]  ;;  %s6496_s17 = sshll.u32 %s439_s7, 7  ;;  %s6355_s7 = sshll.u32 %s8862_s13, 4  ;;  %s6356_s7 = int_to_ptr.vmem [resolvable:$true] %s6355_s7 }
  0x47   : > { %v7806_v37 = vld [vmem:[%s7787_s28 + $0x28] sm:$0xff]  ;;  %v7817_v40 = vld [vmem:[%s7787_s28 + $0x30] sm:$0xff]  ;;  %v7825_v42 = vld [vmem:[%s7787_s28 + $0x40] sm:$0xff]  ;;  %s8050_s29 = scalar_lea.vmem [#allocation3], %s6496_s17  ;;  %s8055_s21 = scalar_lea.vmem [#allocation2], %s6496_s17 }
  0x48   : > { %v7822_v41 = vld [vmem:[%s7787_s28 + $0x48] sm:$0xff]  ;;  %v7830_v43 = vld [vmem:[%s7787_s28 + $0x58] sm:$0xff]  ;;  %v7833_v44 = vld [vmem:[%s7787_s28 + $0x50] sm:$0xff]  ;;  %s7487_s0 = scalar_lea.vmem %s6356_s7, 128 }
  0x49   : > { %v7838_v45 = vld [vmem:[%s7787_s28 + $0x68] sm:$0xff]  ;;  %v7841_v46 = vld [vmem:[%s7787_s28 + $0x60] sm:$0xff]  ;;  %v7846_v47 = vld [vmem:[%s7787_s28 + $0x78] sm:$0xff]  ;;  %p7488_p4 = scmp.ne.s32.totalorder %s6356_s7, %s7487_s0 }
  0x4a   : > { %604 = vperm.xlu1 %6609, %v7798_v35   ;;  %594 = vperm.xlu0 %6608, %v7801_v36   ;;  %v7849_v48 = vld [vmem:[%s7787_s28 + $0x70] sm:$0xff]  ;;  %v7860_v49 = vld [vmem:[%s7855_s12 + $0x8] sm:$0xff]  ;;  %v7863_v50 = vld [vmem:[%s7855_s12] sm:$0xff] }
  0x4b   : > { %v7868_v51 = vld [vmem:[%s7855_s12 + $0x18] sm:$0xff]  ;;  %v7871_v52 = vld [vmem:[%s7855_s12 + $0x10] sm:$0xff]  ;;  %v7876_v53 = vld [vmem:[%s7855_s12 + $0x28] sm:$0xff]  ;;  %p7489_p5 = pnand %p7488_p4, %p7708_p7 }
  0x4c   : > { %v7879_v54 = vld [vmem:[%s7855_s12 + $0x20] sm:$0xff]  ;;  %v7884_v55 = vld [vmem:[%s7855_s12 + $0x38] sm:$0xff]  ;;  %v7887_v56 = vld [vmem:[%s7855_s12 + $0x30] sm:$0xff] }
  0x4d   : > { %v7892_v57 = vld [vmem:[%s7855_s12 + $0x48] sm:$0xff]  ;;  %v7895_v58 = vld [vmem:[%s7855_s12 + $0x40] sm:$0xff]  ;;  %v7900_v59 = vld [vmem:[%s7855_s12 + $0x58] sm:$0xff]  ;;  %p7490_p6 = pneg %p7489_p5 }
  0x4e   : > { %614 = vperm.xlu1 %6609, %v7806_v37   ;;  %609 = vperm.xlu0 %6608, %v7809_v38   ;;  %v7903_v60 = vld [vmem:[%s7855_s12 + $0x50] sm:$0xff]  ;;  %v7908_v61 = vld [vmem:[%s7855_s12 + $0x68] sm:$0xff]  ;;  %v7911_v62 = vld [vmem:[%s7855_s12 + $0x60] sm:$0xff] }
  0x4f   : > { %v7916_v63 = vld [vmem:[%s7855_s12 + $0x78] sm:$0xff]  ;;  %v7919_v0 = vld [vmem:[%s7855_s12 + $0x70] sm:$0xff]  ;;  %v7946_v5 = vld [vmem:[%s7925_s10 + $0x28] sm:$0xff] }
  0x50   : > { %v7941_v4 = vld [vmem:[%s7925_s10 + $0x10] sm:$0xff]  ;;  %v7949_v6 = vld [vmem:[%s7925_s10 + $0x20] sm:$0xff]  ;;  %v7954_v7 = vld [vmem:[%s7925_s10 + $0x38] sm:$0xff] }
  0x51   : > { %v7957_v8 = vld [vmem:[%s7925_s10 + $0x30] sm:$0xff]  ;;  %v7962_v9 = vld [vmem:[%s7925_s10 + $0x48] sm:$0xff]  ;;  %v7965_v10 = vld [vmem:[%s7925_s10 + $0x40] sm:$0xff] }
  0x52   : > { %624 = vperm.xlu1 %6609, %v7814_v39   ;;  %619 = vperm.xlu0 %6608, %v7817_v40   ;;  %v7970_v11 = vld [vmem:[%s7925_s10 + $0x58] sm:$0xff]  ;;  %v7973_v12 = vld [vmem:[%s7925_s10 + $0x50] sm:$0xff]  ;;  %v7978_v13 = vld [vmem:[%s7925_s10 + $0x68] sm:$0xff] }
  0x53   : > { %v7981_v14 = vld [vmem:[%s7925_s10 + $0x60] sm:$0xff]  ;;  %v7986_v15 = vld [vmem:[%s7925_s10 + $0x78] sm:$0xff]  ;;  %v7989_v16 = vld [vmem:[%s7925_s10 + $0x70] sm:$0xff] }
  0x56   : > { %634 = vperm.xlu1 %6609, %v7822_v41   ;;  %629 = vperm.xlu0 %6608, %v7825_v42  }
  0x5a   : > { %644 = vperm.xlu1 %6609, %v7830_v43   ;;  %639 = vperm.xlu0 %6608, %v7833_v44  }
  0x5e   : > { %654 = vperm.xlu1 %6609, %v7838_v45   ;;  %649 = vperm.xlu0 %6608, %v7841_v46  }
  0x62   : > { %664 = vperm.xlu1 %6609, %v7846_v47   ;;  %659 = vperm.xlu0 %6608, %v7849_v48  }
  0x66   : > { %690 = vperm.xlu1 %6609, %v7860_v49   ;;  %685 = vperm.xlu0 %6608, %v7863_v50  }
  0x6a   : > { %700 = vperm.xlu1 %6609, %v7868_v51   ;;  %695 = vperm.xlu0 %6608, %v7871_v52  }
  0x6e   : > { %710 = vperm.xlu1 %6609, %v7876_v53   ;;  %705 = vperm.xlu0 %6608, %v7879_v54  }
  0x72   : > { %720 = vperm.xlu1 %6609, %v7884_v55   ;;  %715 = vperm.xlu0 %6608, %v7887_v56  }
  0x76   : > { %730 = vperm.xlu1 %6609, %v7892_v57   ;;  %725 = vperm.xlu0 %6608, %v7895_v58  }
  0x7a   : > { %740 = vperm.xlu1 %6609, %v7900_v59   ;;  %735 = vperm.xlu0 %6608, %v7903_v60  }
  0x7e   : > { %750 = vperm.xlu1 %6609, %v7908_v61   ;;  %745 = vperm.xlu0 %6608, %v7911_v62  }
  0x82   : > { %760 = vperm.xlu1 %6609, %v7916_v63   ;;  %755 = vperm.xlu0 %6608, %v7919_v0  }
  0x86   : > { %1122 = vperm.xlu1 %6609, %v7930_v1   ;;  %1117 = vperm.xlu0 %6608, %v7933_v2  }
  0x8a   : > { %1132 = vperm.xlu1 %6609, %v7938_v3   ;;  %1127 = vperm.xlu0 %6608, %v7941_v4  }
  0x8e   : > { %1142 = vperm.xlu1 %6609, %v7946_v5   ;;  %1137 = vperm.xlu0 %6608, %v7949_v6  }
  0x92   : > { %1152 = vperm.xlu1 %6609, %v7954_v7   ;;  %1147 = vperm.xlu0 %6608, %v7957_v8  }
  0x96   : > { %1162 = vperm.xlu1 %6609, %v7962_v9   ;;  %1157 = vperm.xlu0 %6608, %v7965_v10  }
  0x9a   : > { %1172 = vperm.xlu1 %6609, %v7970_v11   ;;  %1167 = vperm.xlu0 %6608, %v7973_v12  }
  0x9e   : > { %1182 = vperm.xlu1 %6609, %v7978_v13   ;;  %1177 = vperm.xlu0 %6608, %v7981_v14  }
  0xa2   : > { %1192 = vperm.xlu1 %6609, %v7986_v15   ;;  %1187 = vperm.xlu0 %6608, %v7989_v16  }
  0xa6   : > { %6611 = vset.pattern.permute.xlu1 %v7598_v17  ;;  %6610 = vset.pattern.permute.xlu0 %v7598_v17 }
  0xa7   : > { %1323 = vperm.xlu1 %6611, %v7801_v36   ;;  %1318 = vperm.xlu0 %6610, %v7793_v34  }
  0xab   : > { %1328 = vperm.xlu1 %6611, %v7790_v33   ;;  %1333 = vperm.xlu0 %6610, %v7798_v35  }
  0xaf   : > { %1338 = vperm.xlu1 %6611, %v7809_v38   ;;  %1343 = vperm.xlu0 %6610, %v7806_v37   ;;  %v572_v37 = vld [vmem:[%s8050_s29 + $0x8] sm:$0xff] }
  0xb3   : > { %1348 = vperm.xlu1 %6611, %v7817_v40   ;;  %1353 = vperm.xlu0 %6610, %v7814_v39   ;;  %v556_v39 = vld [vmem:[%s8055_s21 + $0x8] sm:$0xff]  ;;  %v555_v40 = vld [vmem:[%s8055_s21] sm:$0xff] }
  0xb7   : > { %1358 = vperm.xlu1 %6611, %v7825_v42   ;;  %1363 = vperm.xlu0 %6610, %v7822_v41   ;;  %v571_v41 = vld [vmem:[%s8050_s29] sm:$0xff] }
  0xbb   : > { %1368 = vperm.xlu1 %6611, %v7833_v44   ;;  %1373 = vperm.xlu0 %6610, %v7830_v43  }
  0xbf   : > { %1378 = vperm.xlu1 %6611, %v7841_v46   ;;  %1383 = vperm.xlu0 %6610, %v7838_v45  }
  0xc1   : > { %v8007_v18 = vpop.permute.xlu1 %599  ;;  %v590_v19 = vpop.permute.xlu0 %589 }
  0xc3   : > { %1388 = vperm.xlu1 %6611, %v7849_v48   ;;  %1393 = vperm.xlu0 %6610, %v7846_v47   ;;  %v573_v47 = vld [vmem:[%s8050_s29 + $0x10] sm:$0xff]  ;;  %v667_v48 = vmin.f32 %v590_v19, %v571_v41 }
  0xc5   : > { %v8011_v20 = vpop.permute.xlu1 %604  ;;  %v595_v21 = vpop.permute.xlu0 %594 }
  0xc6   : > { %v668_v44 = vmin.f32 %v595_v21, %v572_v37 }
  0xc7   : > { %1414 = vperm.xlu1 %6611, %v7863_v50   ;;  %1419 = vperm.xlu0 %6610, %v7860_v49   ;;  %v574_v49 = vld [vmem:[%s8050_s29 + $0x18] sm:$0xff] }
  0xc9   : > { %v8015_v22 = vpop.permute.xlu1 %614  ;;  %v8017_v23 = vpop.permute.xlu0 %609 }
  0xcb   : > { %1424 = vperm.xlu1 %6611, %v7871_v52   ;;  %1429 = vperm.xlu0 %6610, %v7868_v51   ;;  %v558_v51 = vld [vmem:[%s8055_s21 + $0x18] sm:$0xff]  ;;  %v557_v52 = vld [vmem:[%s8055_s21 + $0x10] sm:$0xff] }
  0xcd   : > { %v8021_v24 = vpop.permute.xlu1 %624  ;;  %v8023_v25 = vpop.permute.xlu0 %619 }
  0xcf   : > { %1434 = vperm.xlu1 %6611, %v7879_v54   ;;  %1439 = vperm.xlu0 %6610, %v7876_v53  }
  0xd1   : > { %v8027_v26 = vpop.permute.xlu1 %634  ;;  %v8029_v27 = vpop.permute.xlu0 %629 }
  0xd3   : > { %1444 = vperm.xlu1 %6611, %v7887_v56   ;;  %1449 = vperm.xlu0 %6610, %v7884_v55   ;;  %v669_v56 = vmin.f32 %v8007_v18, %v573_v47 }
  0xd5   : > { %v8033_v28 = vpop.permute.xlu1 %644  ;;  %v8035_v29 = vpop.permute.xlu0 %639 }
  0xd7   : > { %1454 = vperm.xlu1 %6611, %v7895_v58   ;;  %1459 = vperm.xlu0 %6610, %v7892_v57   ;;  %v576_v57 = vld [vmem:[%s8050_s29 + $0x28] sm:$0xff] }
  0xd8   : > { %v672_v19 = vmin.f32 %v8015_v22, %v576_v57  ;;  %v577_v22 = vld [vmem:[%s8050_s29 + $0x30] sm:$0xff] }
  0xd9   : > { %v8040_v30 = vpop.permute.xlu1 %654  ;;  %v8042_v31 = vpop.permute.xlu0 %649 }
  0xdb   : > { %1464 = vperm.xlu1 %6611, %v7903_v60   ;;  %1469 = vperm.xlu0 %6610, %v7900_v59   ;;  %v670_v59 = vmin.f32 %v8011_v20, %v574_v49  ;;  %v575_v60 = vld [vmem:[%s8050_s29 + $0x20] sm:$0xff] }
  0xdd   : > { %v8046_v32 = vpop.permute.xlu1 %664  ;;  %v8048_v35 = vpop.permute.xlu0 %659 }
  0xdf   : > { %1474 = vperm.xlu1 %6611, %v7911_v62   ;;  %1479 = vperm.xlu0 %6610, %v7908_v61  }
  0xe1   : > { %v691_v42 = vpop.permute.xlu1 %690  ;;  %v686_v43 = vpop.permute.xlu0 %685 }
  0xe2   : > { %v764_v45 = vmax.f32 %v691_v42, %v556_v39  ;;  %v763_v46 = vmax.f32 %v686_v43, %v555_v40  ;;  %v578_v42 = vld [vmem:[%s8050_s29 + $0x38] sm:$0xff] }
  0xe3   : > { %1484 = vperm.xlu1 %6611, %v7919_v0   ;;  %1489 = vperm.xlu0 %6610, %v7916_v63   ;;  %v560_v63 = vld [vmem:[%s8055_s21 + $0x28] sm:$0xff]  ;;  %v559_v0 = vld [vmem:[%s8055_s21 + $0x20] sm:$0xff] }
  0xe4   : > { %v8064_v50 = vsub.f32 %v668_v44, %v764_v45  ;;  %v8068_v53 = vsub.f32 %v667_v48, %v763_v46  ;;  %v562_v46 = vld [vmem:[%s8055_s21 + $0x38] sm:$0xff] }
  0xe5   : > { %v701_v54 = vpop.permute.xlu1 %700  ;;  %v696_v55 = vpop.permute.xlu0 %695 }
  0xe6   : > { %v844_v58 = vand.u32 2147483647, %v8064_v50  ;;  %v766_v61 = vmax.f32 %v701_v54, %v558_v51  ;;  %v765_v62 = vmax.f32 %v696_v55, %v557_v52  ;;  %v843_v18 = vand.u32 2147483647, %v8068_v53  ;;  %v580_v54 = vld [vmem:[%s8050_s29 + $0x48] sm:$0xff] }
  0xe7   : > { %1846 = vperm.xlu1 %6611, %v7933_v2   ;;  %1851 = vperm.xlu0 %6610, %v7930_v1   ;;  %v671_v2 = vmin.f32 %v8017_v23, %v575_v60  ;;  %v561_v23 = vld [vmem:[%s8055_s21 + $0x30] sm:$0xff]  ;;  %v674_v52 = vmin.f32 %v8021_v24, %v578_v42  ;;  %v579_v60 = vld [vmem:[%s8050_s29 + $0x40] sm:$0xff]  ;;  %vm812_vm0 = vcmp.ne.f32.partialorder %v8064_v50, %v8064_v50 }
  0xe8   : > { %v860_v17 = vsub.f32 0.0, %v844_v58  ;;  %v8081_v21 = vsub.f32 %v670_v59, %v766_v61  ;;  %v8083_v20 = vsub.f32 %v669_v56, %v765_v62  ;;  %v859_v47 = vsub.f32 0.0, %v843_v18  ;;  %v564_v58 = vld [vmem:[%s8055_s21 + $0x48] sm:$0xff]  ;;  %v582_v18 = vld [vmem:[%s8050_s29 + $0x58] sm:$0xff] }
  0xe9   : > { %v711_v37 = vpop.permute.xlu1 %710  ;;  %v706_v39 = vpop.permute.xlu0 %705  ;;  %vm811_vm3 = vcmp.ne.f32.partialorder %v8068_v53, %v8068_v53 }
  0xea   : > { %v877_v40 = vmul.f32 1.442695, %v860_v17  ;;  %v768_v1 = vmax.f32 %v711_v37, %v560_v63  ;;  %v767_v41 = vmax.f32 %v706_v39, %v559_v0  ;;  %v846_v43 = vand.u32 2147483647, %v8081_v21  ;;  %v563_v17 = vld [vmem:[%s8055_s21 + $0x40] sm:$0xff] }
  0xeb   : > { %1856 = vperm.xlu1 %6611, %v7941_v4   ;;  %1861 = vperm.xlu0 %6610, %v7938_v3   ;;  %v845_v48 = vand.u32 2147483647, %v8083_v20  ;;  %v673_v3 = vmin.f32 %v8023_v25, %v577_v22  ;;  %v875_v24 = vmul.f32 1.442695, %v859_v47  ;;  %vm814_vm6 = vcmp.ne.f32.partialorder %v8081_v21, %v8081_v21 }
  0xec   : > { %6624 = vpow2.f32 %v877_v40  ;;  %v8091_v44 = vsub.f32 %v672_v19, %v768_v1  ;;  %v8093_v45 = vsub.f32 %v671_v2, %v767_v41  ;;  %v862_v55 = vsub.f32 0.0, %v846_v43  ;;  %v566_v2 = vld [vmem:[%s8055_s21 + $0x58] sm:$0xff]  ;;  %v581_v1 = vld [vmem:[%s8050_s29 + $0x50] sm:$0xff] }
  0xed   : > { %v721_v49 = vpop.permute.xlu1 %720  ;;  %v716_v51 = vpop.permute.xlu0 %715  ;;  %v861_v61 = vsub.f32 0.0, %v845_v48  ;;  %v675_v40 = vmin.f32 %v8029_v27, %v579_v60  ;;  %v565_v43 = vld [vmem:[%s8055_s21 + $0x50] sm:$0xff]  ;;  %6626 = vpow2.f32 %v875_v24  ;;  %vm813_vm7 = vcmp.ne.f32.partialorder %v8083_v20, %v8083_v20 }
  0xee   : > { %v848_v4 = vand.u32 2147483647, %v8091_v44  ;;  %v770_v56 = vmax.f32 %v721_v49, %v562_v46  ;;  %v769_v57 = vmax.f32 %v716_v51, %v561_v23  ;;  %v847_v59 = vand.u32 2147483647, %v8093_v45 }
  0xef   : > { %1866 = vperm.xlu1 %6611, %v7949_v6   ;;  %1871 = vperm.xlu0 %6610, %v7946_v5   ;;  %v676_v6 = vmin.f32 %v8027_v26, %v580_v54  ;;  %v881_v37 = vmul.f32 1.442695, %v862_v55  ;;  %v879_v22 = vmul.f32 1.442695, %v861_v61  ;;  %v677_v51 = vmin.f32 %v8035_v29, %v581_v1 }
  0xf0   : > { %v8107_v62 = vsub.f32 %v674_v52, %v770_v56  ;;  %v8109_v25 = vsub.f32 %v673_v3, %v769_v57  ;;  %v864_v19 = vsub.f32 0.0, %v848_v4  ;;  %v863_v41 = vsub.f32 0.0, %v847_v59  ;;  %v584_v52 = vld [vmem:[%s8050_s29 + $0x68] sm:$0xff]  ;;  %v583_v4 = vld [vmem:[%s8050_s29 + $0x60] sm:$0xff]  ;;  %v586_v3 = vld [vmem:[%s8050_s29 + $0x78] sm:$0xff] }
  0xf1   : > { %v731_v63 = vpop.permute.xlu1 %730  ;;  %v726_v0 = vpop.permute.xlu0 %725  ;;  %6628 = vpow2.f32 %v881_v37  ;;  %vm816_vm9 = vcmp.ne.f32.partialorder %v8091_v44, %v8091_v44  ;;  %vm815_vm11 = vcmp.ne.f32.partialorder %v8093_v45, %v8093_v45 }
  0xf2   : > { %v772_v5 = vmax.f32 %v731_v63, %v564_v58  ;;  %v850_v39 = vand.u32 2147483647, %v8107_v62  ;;  %v771_v26 = vmax.f32 %v726_v0, %v563_v17  ;;  %v849_v23 = vand.u32 2147483647, %v8109_v25  ;;  %v568_v58 = vld [vmem:[%s8055_s21 + $0x68] sm:$0xff]  ;;  %v567_v63 = vld [vmem:[%s8055_s21 + $0x60] sm:$0xff] }
  0xf3   : > { %1876 = vperm.xlu1 %6611, %v7957_v8   ;;  %1881 = vperm.xlu0 %6610, %v7954_v7   ;;  %v678_v7 = vmin.f32 %v8033_v28, %v582_v18  ;;  %v885_v27 = vmul.f32 1.442695, %v864_v19  ;;  %v883_v28 = vmul.f32 1.442695, %v863_v41  ;;  %6630 = vpow2.f32 %v879_v22 }
  0xf4   : > { %v8120_v42 = vsub.f32 %v676_v6, %v772_v5  ;;  %v866_v46 = vsub.f32 0.0, %v850_v39  ;;  %v8125_v48 = vsub.f32 %v675_v40, %v771_v26  ;;  %v865_v60 = vsub.f32 0.0, %v849_v23  ;;  %v570_v6 = vld [vmem:[%s8055_s21 + $0x78] sm:$0xff]  ;;  %v569_v39 = vld [vmem:[%s8055_s21 + $0x70] sm:$0xff] }
  0xf5   : > { %v741_v8 = vpop.permute.xlu1 %740  ;;  %v736_v47 = vpop.permute.xlu0 %735  ;;  %v679_v0 = vmin.f32 %v8042_v31, %v583_v4  ;;  %v682_v17 = vmin.f32 %v8046_v32, %v586_v3  ;;  %6632 = vpow2.f32 %v885_v27  ;;  %vm818_vm13 = vcmp.ne.f32.partialorder %v8107_v62, %v8107_v62 }
  0xf6   : > { %v774_v49 = vmax.f32 %v741_v8, %v566_v2  ;;  %v852_v54 = vand.u32 2147483647, %v8120_v42  ;;  %v773_v55 = vmax.f32 %v736_v47, %v565_v43  ;;  %v851_v56 = vand.u32 2147483647, %v8125_v48  ;;  %v585_v2 = vld [vmem:[%s8050_s29 + $0x70] sm:$0xff] }
  0xf7   : > { %1886 = vperm.xlu1 %6611, %v7965_v10   ;;  %1891 = vperm.xlu0 %6610, %v7962_v9   ;;  %v889_v59 = vmul.f32 1.442695, %v866_v46  ;;  %v680_v9 = vmin.f32 %v8040_v30, %v584_v52  ;;  %6634 = vpow2.f32 %v883_v28  ;;  %v887_v32 = vmul.f32 1.442695, %v865_v60 }
  0xf8   : > { %v8135_v57 = vsub.f32 %v678_v7, %v774_v49  ;;  %v8140_v24 = vsub.f32 %v677_v51, %v773_v55  ;;  %v868_v19 = vsub.f32 0.0, %v852_v54  ;;  %v867_v30 = vsub.f32 0.0, %v851_v56 }
  0xf9   : > { %v8138_v29 = vpop.eup %6624  ;;  %v751_v61 = vpop.permute.xlu1 %750  ;;  %6636 = vpow2.f32 %v889_v59  ;;  %vm817_vm14 = vcmp.ne.f32.partialorder %v8109_v25, %v8109_v25 }
  0xfa   : > { %v746_v10 = vpop.permute.xlu0 %745  ;;  %v854_v5 = vand.u32 2147483647, %v8135_v57  ;;  %v853_v18 = vand.u32 2147483647, %v8140_v24  ;;  %v776_v37 = vmax.f32 %v751_v61, %v568_v58  ;;  %v916_v31 = vadd.f32 1.0, %v8138_v29  ;;  %v8171_v3 = vpop.eup %6626 }
  0xfb   : > { %1896 = vperm.xlu1 %6611, %v7973_v12   ;;  %1901 = vperm.xlu0 %6610, %v7970_v11   ;;  %v775_v40 = vmax.f32 %v746_v10, %v567_v63  ;;  %v681_v11 = vmin.f32 %v8048_v35, %v585_v2  ;;  %v893_v8 = vmul.f32 1.442695, %v868_v19  ;;  %v891_v47 = vmul.f32 1.442695, %v867_v30 }
  0xfc   : > { %v870_v1 = vsub.f32 0.0, %v854_v5  ;;  %v8154_v41 = vsub.f32 %v680_v9, %v776_v37  ;;  %v869_v22 = vsub.f32 0.0, %v853_v18  ;;  %6638 = vlog2.f32 %v916_v31 }
  0xfd   : > { %v761_v26 = vpop.permute.xlu1 %760  ;;  %v8156_v46 = vsub.f32 %v679_v0, %v775_v40  ;;  %6640 = vpow2.f32 %v887_v32  ;;  %v919_v28 = vmul.f32 -0.5, %v8138_v29  ;;  %v796_v58 = vmax.f32 %v8064_v50, 0.0 }
  0xfe   : > { %v756_v43 = vpop.permute.xlu0 %755  ;;  %v778_v12 = vmax.f32 %v761_v26, %v570_v6  ;;  %v856_v7 = vand.u32 2147483647, %v8154_v41  ;;  %v897_v51 = vmul.f32 1.442695, %v870_v1  ;;  %6642 = vpow2.f32 %v893_v8  ;;  %v8177_v56 = vpop.eup %6628 }
  0xff   : > { %v777_v23 = vmax.f32 %v756_v43, %v569_v39  ;;  %1906 = vperm.xlu1 %6611, %v7981_v14   ;;  %1911 = vperm.xlu0 %6610, %v7978_v13   ;;  %v855_v27 = vand.u32 2147483647, %v8156_v46  ;;  %v895_v14 = vmul.f32 1.442695, %v869_v22  ;;  %6644 = vpow2.f32 %v891_v47 }
 0x100   : > { %v8163_v49 = vsub.f32 %v682_v17, %v778_v12  ;;  %v872_v13 = vsub.f32 0.0, %v856_v7  ;;  %6646 = vpow2.f32 %v897_v51  ;;  %v907_v63 = vadd.f32 1.0, %v8171_v3 }
 0x101   : > { %v8165_v52 = vsub.f32 %v681_v11, %v777_v23  ;;  %v8167_v4 = vpop.permute.xlu1 %1122  ;;  %v871_v54 = vsub.f32 0.0, %v855_v27  ;;  %6648 = vpow2.f32 %v895_v14  ;;  %v920_v18 = vadd.f32 1.0, %v919_v28 }
 0x102   : > { %v8169_v35 = vpop.permute.xlu0 %1117  ;;  %v858_v55 = vand.u32 2147483647, %v8163_v49  ;;  %v901_v59 = vmul.f32 1.442695, %v872_v13  ;;  %v934_v37 = vadd.f32 1.0, %v8177_v56  ;;  %v7599_v39 = vmov 2  }
 0x103   : > { %1916 = vperm.xlu1 %6611, %v7989_v16   ;;  %1921 = vperm.xlu0 %6610, %v7986_v15   ;;  %v857_v60 = vand.u32 2147483647, %v8165_v52  ;;  %v899_v61 = vmul.f32 1.442695, %v871_v54  ;;  %v8186_v16 = vpop.eup %6630  ;;  %v795_v15 = vmax.f32 %v8068_v53, 0.0  ;;  %v910_v1 = vmul.f32 -0.5, %v8171_v3 }
 0x104   : > { %v874_v10 = vsub.f32 0.0, %v858_v55  ;;  %v8191_v19 = vpop.eup %6632  ;;  %6650 = vpow2.f32 %v901_v59  ;;  %v922_v32 = vand.u32 2147483647, %v8138_v29  ;;  %v925_v26 = vadd.f32 1.0, %v8186_v16  ;;  %v1984_v13 = vld [vmem:[%s7787_s28 + $0x18] sm:$0xff] }
 0x105   : > { %v8182_v9 = vpop.permute.xlu1 %1132  ;;  %v873_v40 = vsub.f32 0.0, %v857_v60  ;;  %6652 = vlog2.f32 %v907_v63  ;;  %v8198_v31 = vpop.eup %6634  ;;  %v921_v8 = vmul.f32 %v8138_v29, %v920_v18  ;;  %v952_v47 = vadd.f32 1.0, %v8191_v19  ;;  %v1987_v60 = vld [vmem:[%s7787_s28 + $0x30] sm:$0xff] }
 0x106   : > { %v8184_v0 = vpop.permute.xlu0 %1127  ;;  %v905_v5 = vmul.f32 1.442695, %v874_v10  ;;  %6654 = vpow2.f32 %v899_v61  ;;  %v8207_v12 = vpop.eup %6636  ;;  %v913_v51 = vand.u32 2147483647, %v8171_v3  ;;  %v943_v14 = vadd.f32 1.0, %v8198_v31 }
 0x107   : > { %6612 = vset.pattern.permute.xlu1 %v7599_v39  ;;  %6613 = vset.pattern.permute.xlu0 %v7599_v39  ;;  %v903_v27 = vmul.f32 1.442695, %v873_v40  ;;  %vm8222_vm1 = vcmp.lt.f32.partialorder %v922_v32, 0.0004427343  ;;  %v911_v55 = vadd.f32 1.0, %v910_v1  ;;  %v946_v18 = vmul.f32 -0.5, %v8198_v31 }
 0x108   : > { %2047 = vperm.xlu1 %6612, %v7793_v34   ;;  %2052 = vperm.xlu0 %6613, %v7801_v36   ;;  %6656 = vpow2.f32 %v905_v5  ;;  %v937_v36 = vmul.f32 -0.5, %v8177_v56  ;;  %v955_v5 = vmul.f32 -0.5, %v8191_v19  ;;  %vm8242_vm2 = vcmp.lt.f32.partialorder %v913_v51, 0.0004427343  ;;  %v1986_v51 = vld [vmem:[%s7787_s28 + $0x28] sm:$0xff] }
 0x109   : > { %v8203_v43 = vpop.permute.xlu1 %1142  ;;  %6658 = vlog2.f32 %v934_v37  ;;  %v6639_v7 = vpop.eup %6638  ;;  %v970_v37 = vadd.f32 1.0, %v8207_v12  ;;  %v931_v32 = vand.u32 2147483647, %v8186_v16  ;;  %v973_v1 = vmul.f32 -0.5, %v8207_v12 }
 0x10a   : > { %v8205_v22 = vpop.permute.xlu0 %1137  ;;  %6660 = vlog2.f32 %v925_v26  ;;  %v918_v29 = vmul.f32 0.6931472, %v6639_v7  ;;  %v8231_v61 = vpop.eup %6640  ;;  %v938_v10 = vadd.f32 1.0, %v937_v36  ;;  %v958_v54 = vand.u32 2147483647, %v8191_v19 }
 0x10b   : > { %6662 = vlog2.f32 %v952_v47  ;;  %v8240_v39 = vpop.eup %6642  ;;  %v961_v47 = vadd.f32 1.0, %v8231_v61  ;;  %vm8278_vm5 = vcmp.lt.f32.partialorder %v931_v32, 0.0004427343 }
 0x10c   : > { %2057 = vperm.xlu1 %6612, %v7790_v33   ;;  %2067 = vperm.xlu0 %6613, %v7809_v38   ;;  %v940_v33 = vand.u32 2147483647, %v8177_v56  ;;  %v928_v38 = vmul.f32 -0.5, %v8186_v16  ;;  %6664 = vlog2.f32 %v943_v14  ;;  %v924_v63 = vsel %vm8222_vm1, %v921_v8, %v918_v29  ;;  %v8248_v26 = vpop.eup %6644  ;;  %v1989_v14 = vld [vmem:[%s7787_s28 + $0x40] sm:$0xff] }
 0x10d   : > { %v8226_v28 = vpop.permute.xlu1 %1152  ;;  %6666 = vpow2.f32 %v903_v27  ;;  %v1052_v36 = vadd.f32 %v924_v63, %v796_v58  ;;  %v912_v8 = vmul.f32 %v8171_v3, %v911_v55  ;;  %v8260_v29 = vpop.eup %6646  ;;  %v947_v63 = vadd.f32 1.0, %v946_v18 }
 0x10e   : > { %v8228_v59 = vpop.permute.xlu0 %1147  ;;  %6668 = vlog2.f32 %v970_v37  ;;  %vm8267_vm4 = vcmp.lt.f32.partialorder %v940_v33, 0.0004427343  ;;  %v929_v3 = vadd.f32 1.0, %v928_v38  ;;  %v8272_v55 = vpop.eup %6648  ;;  %v949_v37 = vand.u32 2147483647, %v8198_v31 }
 0x10f   : > { %v988_v11 = vadd.f32 1.0, %v8240_v39  ;;  %v976_v33 = vand.u32 2147483647, %v8207_v12  ;;  %6670 = vlog2.f32 %v961_v47  ;;  %v964_v18 = vmul.f32 -0.5, %v8231_v61  ;;  %v1988_v47 = vld [vmem:[%s7787_s28 + $0x38] sm:$0xff] }
 0x110   : > { %2062 = vperm.xlu1 %6612, %v1984_v13   ;;  %2077 = vperm.xlu0 %6613, %v1987_v60   ;;  %v8265_v13 = vmul.f32 %v8177_v56, %v938_v10  ;;  %v956_v60 = vadd.f32 1.0, %v955_v5  ;;  %v974_v10 = vadd.f32 1.0, %v973_v1  ;;  %v1068_v5 = vsel %vm812_vm0, %v8064_v50, %v1052_v36  ;;  %v1992_v56 = vld [vmem:[%s7787_s28 + $0x58] sm:$0xff] }
 0x111   : > { %v8254_v7 = vpop.permute.xlu1 %1162  ;;  %v8276_v34 = vpop.eup %6650  ;;  %6672 = vlog2.f32 %v988_v11  ;;  %v979_v32 = vadd.f32 1.0, %v8248_v26  ;;  %v930_v50 = vmul.f32 %v8186_v16, %v929_v3  ;;  %vm8302_vm8 = vcmp.lt.f32.partialorder %v958_v54, 0.0004427343 }
 0x112   : > { %v8256_v27 = vpop.permute.xlu0 %1157  ;;  %v6653_v38 = vpop.eup %6652  ;;  %v1006_v11 = vadd.f32 1.0, %v8260_v29  ;;  %v957_v6 = vmul.f32 %v8191_v19, %v956_v60  ;;  %vm8313_vm10 = vcmp.lt.f32.partialorder %v949_v37, 0.0004427343  ;;  %v8322_v54 = vmul.f32 %v8207_v12, %v974_v10  ;;  %v1990_v10 = vld [vmem:[%s7787_s28 + $0x48] sm:$0xff] }
 0x113   : > { %v909_v30 = vmul.f32 0.6931472, %v6653_v38  ;;  %v948_v38 = vmul.f32 %v8198_v31, %v947_v63  ;;  %6674 = vlog2.f32 %v979_v32  ;;  %vm8324_vm12 = vcmp.lt.f32.partialorder %v976_v33, 0.0004427343  ;;  %v1993_v33 = vld [vmem:[%s7787_s28 + $0x60] sm:$0xff] }
 0x114   : > { %2072 = vperm.xlu1 %6612, %v1986_v51   ;;  %2087 = vperm.xlu0 %6613, %v1989_v14   ;;  %v1991_v51 = vld [vmem:[%s7787_s28 + $0x50] sm:$0xff]  ;;  %v8297_v14 = vpop.eup %6654  ;;  %6676 = vlog2.f32 %v1068_v5  ;;  %v994_v31 = vand.u32 2147483647, %v8240_v39  ;;  %vm820_vm0 = vcmp.ne.f32.partialorder %v8120_v42, %v8120_v42 }
 0x115   : > { %v8291_v1 = vpop.permute.xlu1 %1172  ;;  %v8307_v2 = vpop.eup %6656  ;;  %v915_v3 = vsel %vm8242_vm2, %v912_v8, %v909_v30  ;;  %v965_v30 = vadd.f32 1.0, %v964_v18  ;;  %v991_v8 = vmul.f32 -0.5, %v8240_v39  ;;  %6678 = vlog2.f32 %v1006_v11 }
 0x116   : > { %v8293_v23 = vpop.permute.xlu0 %1167  ;;  %v6659_v16 = vpop.eup %6658  ;;  %v1051_v40 = vadd.f32 %v915_v3, %v795_v15  ;;  %v997_v3 = vadd.f32 1.0, %v8272_v55  ;;  %v12567_v11 = vmax.f32 %v8081_v21, 0.0  ;;  %vm8410_vm1 = vcmp.lt.f32.partialorder %v994_v31, 0.0004427343 }
 0x117   : > { %v6661_v60 = vpop.eup %6660  ;;  %v936_v63 = vmul.f32 0.6931472, %v6659_v16  ;;  %v992_v36 = vadd.f32 1.0, %v991_v8  ;;  %v985_v8 = vand.u32 2147483647, %v8248_v26 }
 0x118   : > { %2082 = vperm.xlu1 %6612, %v1988_v47   ;;  %2097 = vperm.xlu0 %6613, %v1991_v51   ;;  %v6663_v5 = vpop.eup %6662  ;;  %v927_v32 = vmul.f32 0.6931472, %v6661_v60  ;;  %v982_v47 = vmul.f32 -0.5, %v8248_v26  ;;  %v1067_v15 = vsel %vm811_vm3, %v8068_v53, %v1051_v40  ;;  %vm819_vm3 = vcmp.ne.f32.partialorder %v8125_v48, %v8125_v48 }
 0x119   : > { %v8332_v37 = vpop.permute.xlu1 %1182  ;;  %v6665_v51 = vpop.eup %6664  ;;  %v942_v18 = vsel %vm8267_vm4, %v8265_v13, %v936_v63  ;;  %v954_v16 = vmul.f32 0.6931472, %v6663_v5  ;;  %6680 = vlog2.f32 %v1067_v15  ;;  %v12568_v13 = vmax.f32 %v8083_v20, 0.0 }
 0x11a   : > { %12566 = vst [vmem:[#allocation7_spill] sm:$0xff] %v8332_v37  ;;  %v8334_v12 = vpop.permute.xlu0 %1177  ;;  %v1054_v60 = vadd.f32 %v942_v18, %v12567_v11  ;;  %v933_v37 = vsel %vm8278_vm5, %v930_v50, %v927_v32  ;;  %v945_v53 = vmul.f32 0.6931472, %v6665_v51  ;;  %v8354_v58 = vpop.eup %6666  ;;  %v966_v5 = vmul.f32 %v8231_v61, %v965_v30  ;;  %v1995_v50 = vld [vmem:[%s7787_s28 + $0x70] sm:$0xff] }
 0x11b   : > { %v1053_v40 = vadd.f32 %v933_v37, %v12568_v13  ;;  %v960_v63 = vsel %vm8302_vm8, %v957_v6, %v954_v16  ;;  %6682 = vlog2.f32 %v997_v3  ;;  %v6669_v32 = vpop.eup %6668  ;;  %v12569_v37 = vmax.f32 %v8091_v44, 0.0 }
 0x11c   : > { %2092 = vperm.xlu1 %6612, %v1990_v10   ;;  %2107 = vperm.xlu0 %6613, %v1993_v33   ;;  %v1070_v10 = vsel %vm814_vm6, %v8081_v21, %v1054_v60  ;;  %v951_v6 = vsel %vm8313_vm10, %v948_v38, %v945_v53  ;;  %v12570_v21 = vmax.f32 %v8093_v45, 0.0  ;;  %v972_v16 = vmul.f32 0.6931472, %v6669_v32  ;;  %v6671_v3 = vpop.eup %6670  ;;  %v1994_v53 = vld [vmem:[%s7787_s28 + $0x68] sm:$0xff] }
 0x11d   : > { %v8361_v15 = vpop.permute.xlu1 %1192  ;;  %v1056_v33 = vadd.f32 %v960_v63, %v12569_v37  ;;  %6684 = vlog2.f32 %v1070_v10  ;;  %v1069_v30 = vsel %vm813_vm7, %v8083_v20, %v1053_v40  ;;  %v983_v38 = vadd.f32 1.0, %v982_v47 }
 0x11e   : > { %v8363_v18 = vpop.permute.xlu0 %1187  ;;  %v1055_v51 = vadd.f32 %v951_v6, %v12570_v21  ;;  %6686 = vlog2.f32 %v1069_v30  ;;  %v978_v11 = vsel %vm8324_vm12, %v8322_v54, %v972_v16  ;;  %v1009_v60 = vmul.f32 -0.5, %v8260_v29  ;;  %v6673_v47 = vpop.eup %6672 }
 0x11f   : > { %v1072_v17 = vsel %vm816_vm9, %v8091_v44, %v1056_v33  ;;  %v1965_v44 = vld [vmem:[%s7855_s12] sm:$0xff]  ;;  %v12571_v13 = vmax.f32 %v8107_v62, 0.0  ;;  %v963_v63 = vmul.f32 0.6931472, %v6671_v3  ;;  %v990_v54 = vmul.f32 0.6931472, %v6673_v47 }
 0x120   : > { %2102 = vperm.xlu1 %6612, %v1992_v56   ;;  %2117 = vperm.xlu0 %6613, %v1995_v50   ;;  %6688 = vlog2.f32 %v1072_v17  ;;  %v1071_v20 = vsel %vm815_vm11, %v8093_v45, %v1055_v51  ;;  %v1000_v56 = vmul.f32 -0.5, %v8272_v55  ;;  %v12572_v45 = vand.u32 2147483647, %v8231_v61  ;;  %v6675_v37 = vpop.eup %6674  ;;  %v1996_v17 = vld [vmem:[%s7787_s28 + $0x78] sm:$0xff]  ;;  %v1967_v3 = vld [vmem:[%s7855_s12 + $0x10] sm:$0xff] }
 0x121   : > { %6690 = vlog2.f32 %v1071_v20  ;;  %v1058_v40 = vadd.f32 %v978_v11, %v12571_v13  ;;  %v993_v19 = vmul.f32 %v8240_v39, %v992_v36  ;;  %v984_v6 = vmul.f32 %v8248_v26, %v983_v38  ;;  %v6677_v21 = vpop.eup %6676 }
 0x122   : > { %v8401_v50 = vpop.permute.xlu1 %1323  ;;  %v8403_v32 = vpop.permute.xlu0 %1318  ;;  %vm968_vm15 = vcmp.lt.f32.partialorder %v12572_v45, 0.0004427343  ;;  %v1024_v30 = vadd.f32 1.0, %v8276_v34  ;;  %v12575_v39 = vmax.f32 %v8109_v25, 0.0  ;;  %v981_v51 = vmul.f32 0.6931472, %v6675_v37 }
 0x123   : > { %v1074_v33 = vsel %vm818_vm13, %v8107_v62, %v1058_v40  ;;  %v969_v61 = vsel %vm968_vm15, %v966_v5, %v963_v63  ;;  %v996_v36 = vsel %vm8410_vm1, %v993_v19, %v990_v54  ;;  %v1010_v16 = vadd.f32 1.0, %v1009_v60  ;;  %v6679_v20 = vpop.eup %6678  ;;  %v1966_v45 = vld [vmem:[%s7855_s12 + $0x8] sm:$0xff]  ;;  %v1969_v54 = vld [vmem:[%s7855_s12 + $0x20] sm:$0xff] }
 0x124   : > { %2112 = vperm.xlu1 %6612, %v1994_v53   ;;  %2143 = vperm.xlu0 %6613, %v1965_v44   ;;  %v1057_v31 = vadd.f32 %v969_v61, %v12575_v39  ;;  %v803_v62 = vmax.f32 %v8125_v48, 0.0  ;;  %vm986_vm2 = vcmp.lt.f32.partialorder %v985_v8, 0.0004427343  ;;  %v1001_v5 = vadd.f32 1.0, %v1000_v56 }
 0x125   : > { %6692 = vlog2.f32 %v1024_v30  ;;  %v987_v60 = vsel %vm986_vm2, %v984_v6, %v981_v51  ;;  %v1003_v53 = vand.u32 2147483647, %v8272_v55  ;;  %v1086_v44 = vmul.f32 0.6931472, %v6677_v21 }
 0x126   : > { %v8427_v26 = vpop.permute.xlu1 %1328  ;;  %v8429_v38 = vpop.permute.xlu0 %1333  ;;  %6694 = vlog2.f32 %v1074_v33  ;;  %v1073_v11 = vsel %vm817_vm14, %v8109_v25, %v1057_v31  ;;  %v12576_v8 = vmax.f32 %v8120_v42, 0.0  ;;  %v1059_v13 = vadd.f32 %v987_v60, %v803_v62  ;;  %v1968_v62 = vld [vmem:[%s7855_s12 + $0x18] sm:$0xff] }
 0x127   : > { %6696 = vlog2.f32 %v1073_v11  ;;  %v6681_v40 = vpop.eup %6680  ;;  %v805_v63 = vmax.f32 %v8140_v24, 0.0  ;;  %v1011_v56 = vmul.f32 %v8260_v29, %v1010_v16  ;;  %v1012_v25 = vand.u32 2147483647, %v8260_v29 }
 0x128   : > { %v1060_v47 = vadd.f32 %v996_v36, %v12576_v8  ;;  %2122 = vperm.xlu1 %6612, %v1996_v17   ;;  %2153 = vperm.xlu0 %6613, %v1967_v3   ;;  %v6683_v19 = vpop.eup %6682  ;;  %v1084_v10 = vmul.f32 0.6931472, %v6681_v40  ;;  %v1075_v37 = vsel %vm819_vm3, %v8125_v48, %v1059_v13  ;;  %v1008_v33 = vmul.f32 0.6931472, %v6679_v20 }
 0x129   : > { %v1015_v61 = vadd.f32 1.0, %v8297_v14  ;;  %6698 = vlog2.f32 %v1075_v37  ;;  %v999_v21 = vmul.f32 0.6931472, %v6683_v19  ;;  %v1002_v39 = vmul.f32 %v8272_v55, %v1001_v5  ;;  %v1970_v19 = vld [vmem:[%s7855_s12 + $0x28] sm:$0xff] }
 0x12a   : > { %v8447_v6 = vpop.permute.xlu1 %1338  ;;  %v8449_v30 = vpop.permute.xlu0 %1343  ;;  %v1027_v29 = vmul.f32 -0.5, %v8276_v34  ;;  %v1196_v36 = vsub.f32 %v1086_v44, %v8167_v4  ;;  %v1195_v48 = vsub.f32 %v1084_v10, %v8169_v35  ;;  %v1076_v51 = vsel %vm820_vm0, %v8120_v42, %v1060_v47  ;;  %v1971_v4 = vld [vmem:[%s7855_s12 + $0x30] sm:$0xff]  ;;  %v1973_v10 = vld [vmem:[%s7855_s12 + $0x40] sm:$0xff] }
 0x12b   : > { %v6685_v31 = vpop.eup %6684  ;;  %vm1004_vm4 = vcmp.lt.f32.partialorder %v1003_v53, 0.0004427343  ;;  %vm8459_vm5 = vcmp.lt.f32.partialorder %v1012_v25, 0.0004427343  ;;  %6700 = vlog2.f32 %v1015_v61  ;;  %v806_v35 = vmax.f32 %v8135_v57, 0.0 }
 0x12c   : > { %2148 = vperm.xlu1 %6612, %v1966_v45   ;;  %2163 = vperm.xlu0 %6613, %v1969_v54   ;;  %v6687_v16 = vpop.eup %6686  ;;  %v1090_v17 = vmul.f32 0.6931472, %v6685_v31  ;;  %v1005_v55 = vsel %vm1004_vm4, %v1002_v39, %v999_v21  ;;  %v1014_v42 = vsel %vm8459_vm5, %v1011_v56, %v1008_v33  ;;  %6702 = vlog2.f32 %v1076_v51 }
 0x12d   : > { %v6689_v5 = vpop.eup %6688  ;;  %v1088_v20 = vmul.f32 0.6931472, %v6687_v16  ;;  %v1061_v11 = vadd.f32 %v1005_v55, %v805_v63  ;;  %vm821_vm6 = vcmp.ne.f32.partialorder %v8140_v24, %v8140_v24  ;;  %v1028_v8 = vadd.f32 1.0, %v1027_v29 }
 0x12e   : > { %v8468_v60 = vpop.permute.xlu1 %1348  ;;  %v8470_v53 = vpop.permute.xlu0 %1353  ;;  %v1042_v47 = vadd.f32 1.0, %v8307_v2  ;;  %v1211_v13 = vadd.f32 %v1196_v36, %v1195_v48  ;;  %v1198_v56 = vsub.f32 %v1090_v17, %v8182_v9  ;;  %v1062_v45 = vadd.f32 %v1014_v42, %v806_v35  ;;  %v1972_v17 = vld [vmem:[%s7855_s12 + $0x38] sm:$0xff]  ;;  %v1975_v35 = vld [vmem:[%s7855_s12 + $0x50] sm:$0xff] }
 0x12f   : > { %v6691_v44 = vpop.eup %6690  ;;  %v1197_v40 = vsub.f32 %v1088_v20, %v8184_v0  ;;  %v1077_v63 = vsel %vm821_vm6, %v8140_v24, %v1061_v11  ;;  %v1030_v54 = vand.u32 2147483647, %v8276_v34  ;;  %v1094_v33 = vmul.f32 0.6931472, %v6689_v5 }
 0x130   : > { %v1092_v25 = vmul.f32 0.6931472, %v6691_v44  ;;  %2158 = vperm.xlu1 %6612, %v1968_v62   ;;  %2173 = vperm.xlu0 %6613, %v1971_v4   ;;  %6704 = vlog2.f32 %v1077_v63  ;;  %v1018_v39 = vmul.f32 -0.5, %v8297_v14  ;;  %v1033_v9 = vadd.f32 1.0, %v8354_v58 }
 0x131   : > { %v1212_v37 = vadd.f32 %v1211_v13, %v1197_v40  ;;  %6706 = vlog2.f32 %v1042_v47  ;;  %vm822_vm7 = vcmp.ne.f32.partialorder %v8135_v57, %v8135_v57  ;;  %vm8492_vm8 = vcmp.lt.f32.partialorder %v1030_v54, 0.0004427343 }
 0x132   : > { %v1199_v61 = vsub.f32 %v1092_v25, %v8205_v22  ;;  %v8482_v21 = vpop.permute.xlu1 %1358  ;;  %v8484_v0 = vpop.permute.xlu0 %1363  ;;  %v1029_v22 = vmul.f32 %v8276_v34, %v1028_v8  ;;  %v1078_v51 = vsel %vm822_vm7, %v8135_v57, %v1062_v45  ;;  %6708 = vlog2.f32 %v1033_v9  ;;  %v1974_v25 = vld [vmem:[%s7855_s12 + $0x48] sm:$0xff] }
 0x133   : > { %v6693_v24 = vpop.eup %6692  ;;  %v1213_v31 = vadd.f32 %v1212_v37, %v1198_v56  ;;  %v1200_v3 = vsub.f32 %v1094_v33, %v8203_v43  ;;  %v808_v57 = vmax.f32 %v8154_v41, 0.0  ;;  %v1019_v42 = vadd.f32 1.0, %v1018_v39 }
 0x134   : > { %v6695_v29 = vpop.eup %6694  ;;  %v1026_v36 = vmul.f32 0.6931472, %v6693_v24  ;;  %2168 = vperm.xlu1 %6612, %v1970_v19   ;;  %2183 = vperm.xlu0 %6613, %v1973_v10   ;;  %v1045_v11 = vmul.f32 -0.5, %v8307_v2  ;;  %6710 = vlog2.f32 %v1078_v51  ;;  %v1021_v47 = vand.u32 2147483647, %v8297_v14  ;;  %v1977_v10 = vld [vmem:[%s7855_s12 + $0x60] sm:$0xff] }
 0x135   : > { %v6697_v48 = vpop.eup %6696  ;;  %v1214_v55 = vadd.f32 %v1213_v31, %v1199_v61  ;;  %v1098_v20 = vmul.f32 0.6931472, %v6695_v29  ;;  %v1036_v45 = vmul.f32 -0.5, %v8354_v58  ;;  %v1020_v33 = vmul.f32 %v8297_v14, %v1019_v42  ;;  %v1976_v14 = vld [vmem:[%s7855_s12 + $0x58] sm:$0xff]  ;;  %v1284_v42 = vld [vmem:[%s8055_s21] sm:$0xff] }
 0x136   : > { %v1096_v62 = vmul.f32 0.6931472, %v6697_v48  ;;  %v1032_v4 = vsel %vm8492_vm8, %v1029_v22, %v1026_v36  ;;  %v8500_v5 = vpop.permute.xlu1 %1368  ;;  %v8502_v34 = vpop.permute.xlu0 %1373  ;;  %v1046_v61 = vadd.f32 1.0, %v1045_v11  ;;  %v807_v39 = vmax.f32 %v8156_v46, 0.0 }
 0x137   : > { %v6699_v44 = vpop.eup %6698  ;;  %v1215_v8 = vadd.f32 %v1214_v55, %v1200_v3  ;;  %v1064_v40 = vadd.f32 %v1032_v4, %v808_v57  ;;  %vm824_vm9 = vcmp.ne.f32.partialorder %v8154_v41, %v8154_v41  ;;  %vm1022_vm10 = vcmp.lt.f32.partialorder %v1021_v47, 0.0004427343  ;;  %v1979_v3 = vld [vmem:[%s7855_s12 + $0x70] sm:$0xff]  ;;  %v1300_v4 = vld [vmem:[%s8050_s29] sm:$0xff]  ;;  %v1978_v47 = vld [vmem:[%s7855_s12 + $0x68] sm:$0xff] }
 0x138   : > { %v1201_v43 = vsub.f32 %v1096_v62, %v8228_v59  ;;  %2178 = vperm.xlu1 %6612, %v1972_v17   ;;  %v1100_v13 = vmul.f32 0.6931472, %v6699_v44  ;;  %2193 = vperm.xlu0 %6613, %v1975_v35   ;;  %v6701_v63 = vpop.eup %6700  ;;  %v1202_v59 = vsub.f32 %v1098_v20, %v8226_v28  ;;  %v1048_v9 = vand.u32 2147483647, %v8307_v2 }
 0x139   : > { %v1017_v37 = vmul.f32 0.6931472, %v6701_v63  ;;  %v6703_v24 = vpop.eup %6702  ;;  %v1080_v28 = vsel %vm824_vm9, %v8154_v41, %v1064_v40  ;;  %v1037_v51 = vadd.f32 1.0, %v1036_v45  ;;  %vm823_vm11 = vcmp.ne.f32.partialorder %v8156_v46, %v8156_v46  ;;  %v1997_v45 = vld [vmem:[%s7925_s10] sm:$0xff] }
 0x13a   : > { %v1216_v56 = vadd.f32 %v1215_v8, %v1201_v43  ;;  %v8511_v54 = vpop.permute.xlu1 %1378  ;;  %v8513_v19 = vpop.permute.xlu0 %1383  ;;  %v1203_v29 = vsub.f32 %v1100_v13, %v8256_v27  ;;  %v810_v27 = vmax.f32 %v8163_v49, 0.0  ;;  %v1102_v62 = vmul.f32 0.6931472, %v6703_v24  ;;  %v1301_v43 = vld [vmem:[%s8050_s29 + $0x8] sm:$0xff] }
 0x13b   : > { %v1023_v36 = vsel %vm1022_vm10, %v1020_v33, %v1017_v37  ;;  %v1047_v41 = vmul.f32 %v8307_v2, %v1046_v61  ;;  %6712 = vlog2.f32 %v1080_v28  ;;  %v1039_v20 = vand.u32 2147483647, %v8354_v58  ;;  %v1285_v8 = vld [vmem:[%s8055_s21 + $0x8] sm:$0xff]  ;;  %v1290_v61 = vld [vmem:[%s8055_s21 + $0x30] sm:$0xff] }
 0x13c   : > { %2188 = vperm.xlu1 %6612, %v1974_v25   ;;  %v1217_v31 = vadd.f32 %v1216_v56, %v1202_v59  ;;  %2203 = vperm.xlu0 %6613, %v1977_v10   ;;  %v1063_v48 = vadd.f32 %v1023_v36, %v807_v39  ;;  %v809_v11 = vmax.f32 %v8165_v52, 0.0  ;;  %vm1049_vm12 = vcmp.lt.f32.partialorder %v1048_v9, 0.0004427343  ;;  %v1286_v39 = vld [vmem:[%s8055_s21 + $0x10] sm:$0xff] }
 0x13d   : > { %v6705_v22 = vpop.eup %6704  ;;  %v1396_v25 = vmin.f32 %v8403_v32, %v1300_v4  ;;  %v1204_v10 = vsub.f32 %v1102_v62, %v8254_v7  ;;  %vm826_vm13 = vcmp.ne.f32.partialorder %v8163_v49, %v8163_v49  ;;  %vm8548_vm14 = vcmp.lt.f32.partialorder %v1039_v20, 0.0004427343  ;;  %v1302_v32 = vld [vmem:[%s8050_s29 + $0x10] sm:$0xff]  ;;  %v1287_v7 = vld [vmem:[%s8055_s21 + $0x18] sm:$0xff] }
 0x13e   : > { %v8525_v16 = vpop.permute.xlu1 %1388  ;;  %v8527_v17 = vpop.permute.xlu0 %1393  ;;  %v1079_v35 = vsel %vm823_vm11, %v8156_v46, %v1063_v48  ;;  %v1218_v44 = vadd.f32 %v1217_v31, %v1203_v29  ;;  %v1104_v13 = vmul.f32 0.6931472, %v6705_v22  ;;  %v1038_v46 = vmul.f32 %v8354_v58, %v1037_v51  ;;  %v1303_v48 = vld [vmem:[%s8050_s29 + $0x18] sm:$0xff] }
 0x13f   : > { %v6707_v55 = vpop.eup %6706  ;;  %6714 = vlog2.f32 %v1079_v35  ;;  %v1397_v58 = vmin.f32 %v8401_v50, %v1301_v43  ;;  %vm825_vm15 = vcmp.ne.f32.partialorder %v8165_v52, %v8165_v52  ;;  %v1304_v35 = vld [vmem:[%s8050_s29 + $0x20] sm:$0xff]  ;;  %v1289_v43 = vld [vmem:[%s8055_s21 + $0x28] sm:$0xff] }
 0x140   : > { %v1044_v57 = vmul.f32 0.6931472, %v6707_v55  ;;  %2198 = vperm.xlu1 %6612, %v1976_v14   ;;  %2213 = vperm.xlu0 %6613, %v1979_v3   ;;  %v6709_v2 = vpop.eup %6708  ;;  %v1219_v29 = vadd.f32 %v1218_v44, %v1204_v10  ;;  %v1980_v14 = vld [vmem:[%s7855_s12 + $0x78] sm:$0xff]  ;;  %v1205_v50 = vsub.f32 %v1104_v13, %v8293_v23  ;;  %v1288_v44 = vld [vmem:[%s8055_s21 + $0x20] sm:$0xff] }
 0x141   : > { %v1035_v37 = vmul.f32 0.6931472, %v6709_v2  ;;  %v6711_v9 = vpop.eup %6710  ;;  %v8583_v2 = vld [vmem:[%s8050_s29 + $0x38] sm:$0xff] }
 0x142   : > { %v1050_v40 = vsel %vm1049_vm12, %v1047_v41, %v1044_v57  ;;  %v1415_v63 = vpop.permute.xlu1 %1414  ;;  %v1420_v56 = vpop.permute.xlu0 %1419  ;;  %v1106_v23 = vmul.f32 0.6931472, %v6711_v9  ;;  %v1305_v57 = vld [vmem:[%s8050_s29 + $0x28] sm:$0xff] }
 0x143   : > { %v1066_v59 = vadd.f32 %v1050_v40, %v810_v27  ;;  %v1492_v33 = vmax.f32 %v1415_v63, %v1284_v42  ;;  %v1493_v24 = vmax.f32 %v1420_v56, %v1285_v8  ;;  %v1041_v28 = vsel %vm8548_vm14, %v1038_v46, %v1035_v37  ;;  %v1999_v27 = vld [vmem:[%s7925_s10 + $0x10] sm:$0xff]  ;;  %v1998_v8 = vld [vmem:[%s7925_s10 + $0x8] sm:$0xff]  ;;  %v2001_v46 = vld [vmem:[%s7925_s10 + $0x20] sm:$0xff] }
 0x144   : > { %2208 = vperm.xlu1 %6612, %v1978_v47   ;;  %2575 = vperm.xlu0 %6613, %v1997_v45   ;;  %v1065_v22 = vadd.f32 %v1041_v28, %v809_v11  ;;  %v1399_v42 = vmin.f32 %v8429_v38, %v1303_v48  ;;  %v1306_v47 = vld [vmem:[%s8050_s29 + $0x30] sm:$0xff]  ;;  %v1400_v38 = vmin.f32 %v8447_v6, %v1304_v35  ;;  %v8589_v63 = vld [vmem:[%s8050_s29 + $0x40] sm:$0xff]  ;;  %v8592_v56 = vld [vmem:[%s8050_s29 + $0x48] sm:$0xff] }
 0x145   : > { %v1082_v31 = vsel %vm826_vm13, %v8163_v49, %v1066_v59  ;;  %v8559_v36 = vsub.f32 %v1396_v25, %v1492_v33  ;;  %v8564_v51 = vsub.f32 %v1397_v58, %v1493_v24  ;;  %v1398_v49 = vmin.f32 %v8427_v26, %v1302_v32  ;;  %v1291_v58 = vld [vmem:[%s8055_s21 + $0x38] sm:$0xff]  ;;  %v8603_v24 = vld [vmem:[%s8050_s29 + $0x50] sm:$0xff] }
 0x146   : > { %6716 = vlog2.f32 %v1082_v31  ;;  %v1425_v3 = vpop.permute.xlu1 %1424  ;;  %v1430_v55 = vpop.permute.xlu0 %1429  ;;  %v1081_v4 = vsel %vm825_vm15, %v8165_v52, %v1065_v22  ;;  %v1220_v52 = vadd.f32 %v1219_v29, %v1205_v50  ;;  %v1401_v25 = vmin.f32 %v8449_v30, %v1305_v57  ;;  %v8612_v28 = vld [vmem:[%s8050_s29 + $0x58] sm:$0xff]  ;;  %v2003_v22 = vld [vmem:[%s7925_s10 + $0x30] sm:$0xff]  ;;  %v1292_v57 = vld [vmem:[%s8055_s21 + $0x40] sm:$0xff] }
 0x147   : > { %v1494_v62 = vmax.f32 %v1425_v3, %v1286_v39  ;;  %v1495_v41 = vmax.f32 %v1430_v55, %v1287_v7  ;;  %v1572_v20 = vand.u32 2147483647, %v8559_v36  ;;  %6718 = vlog2.f32 %v1081_v4  ;;  %v2000_v7 = vld [vmem:[%s7925_s10 + $0x18] sm:$0xff]  ;;  %v8618_v3 = vld [vmem:[%s8050_s29 + $0x60] sm:$0xff]  ;;  %v8621_v55 = vld [vmem:[%s8050_s29 + $0x68] sm:$0xff] }
 0x148   : > { %2218 = vperm.xlu1 %6612, %v1980_v14   ;;  %v1573_v26 = vand.u32 2147483647, %v8564_v51  ;;  %2585 = vperm.xlu0 %6613, %v1999_v27   ;;  %v1206_v10 = vsub.f32 %v1106_v23, %v8291_v1  ;;  %v6713_v32 = vpop.eup %6712  ;;  %v1402_v6 = vmin.f32 %v8468_v60, %v1306_v47  ;;  %v1403_v30 = vmin.f32 %v8470_v53, %v8583_v2  ;;  %v8627_v23 = vld [vmem:[%s8050_s29 + $0x70] sm:$0xff] }
 0x149   : > { %v8576_v11 = vsub.f32 %v1398_v49, %v1494_v62  ;;  %v8594_v45 = vsub.f32 %v1399_v42, %v1495_v41  ;;  %v1588_v59 = vsub.f32 0.0, %v1572_v20  ;;  %v1404_v31 = vmin.f32 %v8482_v21, %v8589_v63 }
 0x14a   : > { %v1435_v13 = vpop.permute.xlu1 %1434  ;;  %v1440_v40 = vpop.permute.xlu0 %1439  ;;  %v1589_v39 = vsub.f32 0.0, %v1573_v26  ;;  %v1221_v29 = vadd.f32 %v1220_v52, %v1206_v10  ;;  %v1405_v60 = vmin.f32 %v8484_v0, %v8592_v56  ;;  %v1110_v62 = vmul.f32 0.6931472, %v6713_v32  ;;  %v1293_v10 = vld [vmem:[%s8055_s21 + $0x48] sm:$0xff] }
 0x14b   : > { %v1496_v37 = vmax.f32 %v1435_v13, %v1288_v44  ;;  %v1497_v33 = vmax.f32 %v1440_v40, %v1289_v43  ;;  %v1574_v1 = vand.u32 2147483647, %v8576_v11  ;;  %v1575_v27 = vand.u32 2147483647, %v8594_v45  ;;  %v2002_v43 = vld [vmem:[%s7925_s10 + $0x28] sm:$0xff]  ;;  %v2005_v40 = vld [vmem:[%s7925_s10 + $0x40] sm:$0xff] }
 0x14c   : > { %2580 = vperm.xlu1 %6612, %v1998_v8   ;;  %2595 = vperm.xlu0 %6613, %v2001_v46   ;;  %v6715_v9 = vpop.eup %6714  ;;  %v1406_v41 = vmin.f32 %v8500_v5, %v8603_v24  ;;  %v1604_v4 = vmul.f32 1.442695, %v1588_v59  ;;  %v1606_v42 = vmul.f32 1.442695, %v1589_v39  ;;  %v1407_v8 = vmin.f32 %v8502_v34, %v8612_v28 }
 0x14d   : > { %v8614_v53 = vsub.f32 %v1400_v38, %v1496_v37  ;;  %v1108_v48 = vmul.f32 0.6931472, %v6715_v9  ;;  %v8629_v35 = vsub.f32 %v1401_v25, %v1497_v33  ;;  %v1590_v26 = vsub.f32 0.0, %v1574_v1  ;;  %v12583_v33 = vld [vmem:[#allocation7_spill] sm:$0xff] }
 0x14e   : > { %v1445_v14 = vpop.permute.xlu1 %1444  ;;  %v1450_v50 = vpop.permute.xlu0 %1449  ;;  %v1408_v52 = vmin.f32 %v8511_v54, %v8618_v3  ;;  %v1409_v47 = vmin.f32 %v8513_v19, %v8621_v55  ;;  %v1591_v25 = vsub.f32 0.0, %v1575_v27  ;;  %v1410_v34 = vmin.f32 %v8525_v16, %v8627_v23 }
 0x14f   : > { %v1498_v21 = vmax.f32 %v1445_v14, %v1290_v61  ;;  %v1499_v49 = vmax.f32 %v1450_v50, %v1291_v58  ;;  %v1207_v20 = vsub.f32 %v1108_v48, %v8334_v12  ;;  %v1576_v44 = vand.u32 2147483647, %v8614_v53  ;;  %v1295_v50 = vld [vmem:[%s8055_s21 + $0x58] sm:$0xff] }
 0x150   : > { %2590 = vperm.xlu1 %6612, %v2000_v7   ;;  %2605 = vperm.xlu0 %6613, %v2003_v22   ;;  %6720 = vpow2.f32 %v1604_v4  ;;  %v1577_v59 = vand.u32 2147483647, %v8629_v35  ;;  %v1208_v61 = vsub.f32 %v1110_v62, %v12583_v33  ;;  %v1608_v58 = vmul.f32 1.442695, %v1590_v26  ;;  %v2007_v22 = vld [vmem:[%s7925_s10 + $0x50] sm:$0xff] }
 0x151   : > { %v8641_v2 = vsub.f32 %v1402_v6, %v1498_v21  ;;  %v1222_v38 = vadd.f32 %v1221_v29, %v1207_v20  ;;  %v8644_v63 = vsub.f32 %v1403_v30, %v1499_v49  ;;  %6722 = vpow2.f32 %v1606_v42  ;;  %v1294_v6 = vld [vmem:[%s8055_s21 + $0x50] sm:$0xff]  ;;  %v2004_v30 = vld [vmem:[%s7925_s10 + $0x38] sm:$0xff]  ;;  %v1296_v20 = vld [vmem:[%s8055_s21 + $0x60] sm:$0xff] }
 0x152   : > { %v1455_v13 = vpop.permute.xlu1 %1454  ;;  %v1460_v12 = vpop.permute.xlu0 %1459  ;;  %v1592_v32 = vsub.f32 0.0, %v1576_v44  ;;  %v1610_v21 = vmul.f32 1.442695, %v1591_v25  ;;  %v1593_v62 = vsub.f32 0.0, %v1577_v59  ;;  %6724 = vpow2.f32 %v1608_v58 }
 0x153   : > { %v6717_v46 = vpop.eup %6716  ;;  %v1500_v37 = vmax.f32 %v1455_v13, %v1292_v57  ;;  %v1578_v7 = vand.u32 2147483647, %v8641_v2  ;;  %v1501_v29 = vmax.f32 %v1460_v12, %v1293_v10  ;;  %v1223_v27 = vadd.f32 %v1222_v38, %v1208_v61  ;;  %v1315_v38 = vld [vmem:[%s8050_s29 + $0x78] sm:$0xff] }
 0x154   : > { %2600 = vperm.xlu1 %6612, %v2002_v43   ;;  %2615 = vperm.xlu0 %6613, %v2005_v40   ;;  %v6719_v39 = vpop.eup %6718  ;;  %v1114_v1 = vmul.f32 0.6931472, %v6717_v46  ;;  %v1579_v49 = vand.u32 2147483647, %v8644_v63  ;;  %v1612_v26 = vmul.f32 1.442695, %v1592_v32  ;;  %6726 = vpow2.f32 %v1610_v21 }
 0x155   : > { %v8654_v9 = vsub.f32 %v1404_v31, %v1500_v37  ;;  %v1112_v48 = vmul.f32 0.6931472, %v6719_v39  ;;  %v8663_v57 = vsub.f32 %v1405_v60, %v1501_v29  ;;  %v2006_v43 = vld [vmem:[%s7925_s10 + $0x48] sm:$0xff]  ;;  %v1594_v12 = vsub.f32 0.0, %v1578_v7  ;;  %v2009_v46 = vld [vmem:[%s7925_s10 + $0x60] sm:$0xff]  ;;  %v2008_v32 = vld [vmem:[%s7925_s10 + $0x58] sm:$0xff] }
 0x156   : > { %v1465_v28 = vpop.permute.xlu1 %1464  ;;  %v1470_v14 = vpop.permute.xlu0 %1469  ;;  %v1210_v13 = vsub.f32 %v1114_v1, %v8361_v15  ;;  %v1595_v25 = vsub.f32 0.0, %v1579_v49  ;;  %v1297_v15 = vld [vmem:[%s8055_s21 + $0x68] sm:$0xff]  ;;  %v1614_v37 = vmul.f32 1.442695, %v1593_v62  ;;  %6728 = vpow2.f32 %v1612_v26  ;;  %v1299_v29 = vld [vmem:[%s8055_s21 + $0x78] sm:$0xff] }
 0x157   : > { %v1580_v4 = vand.u32 2147483647, %v8654_v9  ;;  %v1502_v31 = vmax.f32 %v1465_v28, %v1294_v6  ;;  %v1209_v42 = vsub.f32 %v1112_v48, %v8363_v18  ;;  %v1503_v44 = vmax.f32 %v1470_v14, %v1295_v50  ;;  %v2011_v28 = vld [vmem:[%s7925_s10 + $0x70] sm:$0xff] }
 0x158   : > { %2610 = vperm.xlu1 %6612, %v2004_v30   ;;  %2625 = vperm.xlu0 %6613, %v2007_v22   ;;  %v1581_v0 = vand.u32 2147483647, %v8663_v57  ;;  %v1411_v6 = vmin.f32 %v8527_v17, %v1315_v38  ;;  %v1616_v30 = vmul.f32 1.442695, %v1594_v12  ;;  %v1618_v50 = vmul.f32 1.442695, %v1595_v25 }
 0x159   : > { %v8673_v56 = vsub.f32 %v1406_v41, %v1502_v31  ;;  %v1224_v18 = vadd.f32 %v1223_v27, %v1209_v42  ;;  %v8677_v10 = vsub.f32 %v1407_v8, %v1503_v44  ;;  %v1596_v33 = vsub.f32 0.0, %v1580_v4  ;;  %v1298_v8 = vld [vmem:[%s8055_s21 + $0x70] sm:$0xff]  ;;  %v2010_v4 = vld [vmem:[%s7925_s10 + $0x68] sm:$0xff] }
 0x15a   : > { %v1475_v60 = vpop.permute.xlu1 %1474  ;;  %v1480_v40 = vpop.permute.xlu0 %1479  ;;  %v1597_v41 = vsub.f32 0.0, %v1581_v0  ;;  %6730 = vpow2.f32 %v1614_v37  ;;  %v1524_v37 = vmax.f32 %v8559_v36, 0.0  ;;  %vm1540_vm0 = vcmp.ne.f32.partialorder %v8559_v36, %v8559_v36 }
 0x15b   : > { %v1504_v59 = vmax.f32 %v1475_v60, %v1296_v20  ;;  %v1582_v5 = vand.u32 2147483647, %v8673_v56  ;;  %v1225_v24 = vadd.f32 %v1224_v18, %v1210_v13  ;;  %v1583_v61 = vand.u32 2147483647, %v8677_v10  ;;  %v2710_v13 = vld [vmem:[%s7787_s28] sm:$0xff] }
 0x15c   : > { %2620 = vperm.xlu1 %6612, %v2006_v43   ;;  %2635 = vperm.xlu0 %6613, %v2009_v46   ;;  %v1505_v39 = vmax.f32 %v1480_v40, %v1297_v15  ;;  %v1620_v3 = vmul.f32 1.442695, %v1596_v33  ;;  %v1622_v49 = vmul.f32 1.442695, %v1597_v41  ;;  %6732 = vpow2.f32 %v1616_v30  ;;  %v2012_v40 = vld [vmem:[%s7925_s10 + $0x78] sm:$0xff] }
 0x15d   : > { %v8685_v58 = vsub.f32 %v1408_v52, %v1504_v59  ;;  %v1226_v14 = vrot.slane %v1225_v24, 4  ;;  %v1598_v22 = vsub.f32 0.0, %v1582_v5  ;;  %v1599_v52 = vsub.f32 0.0, %v1583_v61  ;;  %v8698_v27 = vpop.eup %6720 }
 0x15e   : > { %v1485_v1 = vpop.permute.xlu1 %1484  ;;  %v1490_v7 = vpop.permute.xlu0 %1489  ;;  %v8696_v48 = vsub.f32 %v1409_v47, %v1505_v39  ;;  %6734 = vpow2.f32 %v1618_v50  ;;  %v1636_v60 = vadd.f32 1.0, %v8698_v27  ;;  %v1525_v5 = vmax.f32 %v8564_v51, 0.0 }
 0x15f   : > { %v1584_v54 = vand.u32 2147483647, %v8685_v58  ;;  %v1506_v17 = vmax.f32 %v1485_v1, %v1298_v8  ;;  %v1227_v21 = vadd.f32 %v1226_v14, %v1225_v24  ;;  %v1507_v62 = vmax.f32 %v1490_v7, %v1299_v29  ;;  %v8701_v31 = vpop.eup %6722  ;;  %v7408_v7 = vld [vmem:[%s7787_s28 + $0x18] sm:$0xff]  ;;  %v2711_v14 = vld [vmem:[%s7787_s28 + $0x8] sm:$0xff] }
 0x160   : > { %2630 = vperm.xlu1 %6612, %v2008_v32   ;;  %2645 = vperm.xlu0 %6613, %v2011_v28   ;;  %v1585_v42 = vand.u32 2147483647, %v8696_v48  ;;  %v1624_v44 = vmul.f32 1.442695, %v1598_v22  ;;  %6736 = vpow2.f32 %v1620_v3  ;;  %v1626_v12 = vmul.f32 1.442695, %v1599_v52  ;;  %v8719_v46 = vpop.eup %6724 }
 0x161   : > { %v1600_v20 = vsub.f32 0.0, %v1584_v54  ;;  %v8707_v19 = vsub.f32 %v1410_v34, %v1506_v17  ;;  %v1228_v26 = vrot.slane %v1227_v21, 2  ;;  %v8713_v43 = vsub.f32 %v1411_v6, %v1507_v62  ;;  %v8730_v61 = vpop.eup %6726  ;;  %v7411_v62 = vld [vmem:[%s7787_s28 + $0x48] sm:$0xff]  ;;  %v2716_v17 = vld [vmem:[%s7787_s28 + $0x30] sm:$0xff] }
 0x162   : > { %v8709_v55 = vpop.permute.xlu1 %1846  ;;  %v8711_v47 = vpop.permute.xlu0 %1851  ;;  %v1601_v0 = vsub.f32 0.0, %v1585_v42  ;;  %6738 = vpow2.f32 %v1622_v49  ;;  %v7600_v34 = vmov 3   ;;  %v1645_v33 = vadd.f32 1.0, %v8701_v31 }
 0x163   : > { %v1229_v16 = vadd.f32 %v1228_v26, %v1227_v21  ;;  %v1586_v23 = vand.u32 2147483647, %v8707_v19  ;;  %v1628_v18 = vmul.f32 1.442695, %v1600_v20  ;;  %v1587_v38 = vand.u32 2147483647, %v8713_v43  ;;  %v8741_v50 = vpop.eup %6728 }
 0x164   : > { %2640 = vperm.xlu1 %6612, %v2010_v4   ;;  %6614 = vset.pattern.permute.xlu0 %v7600_v34  ;;  %6740 = vlog2.f32 %v1636_v60  ;;  %v1526_v24 = vmax.f32 %v8576_v11, 0.0  ;;  %v1630_v41 = vmul.f32 1.442695, %v1601_v0  ;;  %v1527_v32 = vmax.f32 %v8594_v45, 0.0 }
 0x165   : > { %2776 = vperm.xlu0 %6614, %v2710_v13   ;;  %v1230_v15 = vrot.slane %v1229_v16, 1  ;;  %6742 = vpow2.f32 %v1624_v44  ;;  %v1602_v6 = vsub.f32 0.0, %v1586_v23  ;;  %v1603_v1 = vsub.f32 0.0, %v1587_v38 }
 0x166   : > { %v8722_v25 = vpop.permute.xlu1 %1856  ;;  %v8724_v59 = vpop.permute.xlu0 %1861  ;;  %6744 = vpow2.f32 %v1626_v12  ;;  %v1639_v54 = vmul.f32 -0.5, %v8698_v27  ;;  %v1648_v3 = vmul.f32 -0.5, %v8701_v31  ;;  %v1654_v52 = vadd.f32 1.0, %v8719_v46  ;;  %v7409_v12 = vld [vmem:[%s7787_s28 + $0x28] sm:$0xff] }
 0x167   : > { %v1231_v8 = vadd.f32 %v1230_v15, %v1229_v16  ;;  %6746 = vlog2.f32 %v1645_v33  ;;  %v1663_v49 = vadd.f32 1.0, %v8730_v61  ;;  %v1632_v20 = vmul.f32 1.442695, %v1602_v6  ;;  %v8751_v42 = vpop.eup %6730  ;;  %v2712_v16 = vld [vmem:[%s7787_s28 + $0x10] sm:$0xff] }
 0x168   : > { %2650 = vperm.xlu1 %6612, %v2012_v40   ;;  %6748 = vpow2.f32 %v1628_v18  ;;  %v1634_v44 = vmul.f32 1.442695, %v1603_v1  ;;  %v1672_v13 = vadd.f32 1.0, %v8741_v50  ;;  %v1642_v40 = vand.u32 2147483647, %v8698_v27 }
 0x169   : > { %2791 = vperm.xlu0 %6614, %v7408_v7   ;;  %v1233_v22 = vmul.f32 1.442695, %v1231_v8  ;;  %6750 = vpow2.f32 %v1630_v41  ;;  %v8761_v23 = vpop.eup %6732  ;;  %v1649_v18 = vadd.f32 1.0, %v1648_v3  ;;  %v1657_v41 = vmul.f32 -0.5, %v8719_v46 }
 0x16a   : > { %v8736_v29 = vpop.permute.xlu1 %1866  ;;  %v8738_v28 = vpop.permute.xlu0 %1871  ;;  %v1651_v6 = vand.u32 2147483647, %v8701_v31  ;;  %v1660_v1 = vand.u32 2147483647, %v8719_v46  ;;  %v1681_v7 = vadd.f32 1.0, %v8751_v42  ;;  %v1690_v3 = vadd.f32 1.0, %v8761_v23 }
 0x16b   : > { %6752 = vpow2.f32 %v1233_v22  ;;  %v8764_v38 = vpop.eup %6734  ;;  %v1666_v22 = vmul.f32 -0.5, %v8730_v61  ;;  %vm8789_vm1 = vcmp.lt.f32.partialorder %v1642_v40, 0.0004427343  ;;  %vm1541_vm2 = vcmp.ne.f32.partialorder %v8564_v51, %v8564_v51 }
 0x16c   : > { %6615 = vset.pattern.permute.xlu1 %v7600_v34  ;;  %6754 = vlog2.f32 %v1654_v52  ;;  %v1640_v34 = vadd.f32 1.0, %v1639_v54  ;;  %v1675_v54 = vmul.f32 -0.5, %v8741_v50  ;;  %v7410_v52 = vld [vmem:[%s7787_s28 + $0x38] sm:$0xff]  ;;  %v1658_v26 = vadd.f32 1.0, %v1657_v41 }
 0x16d   : > { %2781 = vperm.xlu1 %6615, %v2711_v14   ;;  %2801 = vperm.xlu0 %6614, %v7409_v12   ;;  %6756 = vlog2.f32 %v1663_v49  ;;  %v8771_v8 = vpop.eup %6736  ;;  %vm8805_vm3 = vcmp.lt.f32.partialorder %v1651_v6, 0.0004427343  ;;  %vm8809_vm4 = vcmp.lt.f32.partialorder %v1660_v1, 0.0004427343  ;;  %v1678_v6 = vand.u32 2147483647, %v8741_v50 }
 0x16e   : > { %v8756_v0 = vpop.permute.xlu1 %1876  ;;  %v8758_v60 = vpop.permute.xlu0 %1881  ;;  %6758 = vlog2.f32 %v1672_v13  ;;  %v2714_v13 = vld [vmem:[%s7787_s28 + $0x20] sm:$0xff]  ;;  %v1676_v4 = vadd.f32 1.0, %v1675_v54  ;;  %v1687_v33 = vand.u32 2147483647, %v8751_v42  ;;  %vm1542_vm5 = vcmp.ne.f32.partialorder %v8576_v11, %v8576_v11 }
 0x16f   : > { %6760 = vpow2.f32 %v1632_v20  ;;  %v8777_v14 = vpop.eup %6738  ;;  %v1693_v54 = vmul.f32 -0.5, %v8761_v23  ;;  %vm1543_vm7 = vcmp.ne.f32.partialorder %v8594_v45, %v8594_v45  ;;  %vm1544_vm8 = vcmp.ne.f32.partialorder %v8614_v53, %v8614_v53 }
 0x170   : > { %6762 = vpow2.f32 %v1634_v44  ;;  %v1650_v44 = vmul.f32 %v8701_v31, %v1649_v18  ;;  %v1684_v18 = vmul.f32 -0.5, %v8751_v42  ;;  %vm8865_vm9 = vcmp.lt.f32.partialorder %v1678_v6, 0.0004427343 }
 0x171   : > { %2786 = vperm.xlu1 %6615, %v2712_v16   ;;  %2811 = vperm.xlu0 %6614, %v7410_v52   ;;  %v6741_v12 = vpop.eup %6740  ;;  %v1641_v16 = vmul.f32 %v8698_v27, %v1640_v34  ;;  %6764 = vlog2.f32 %v1681_v7  ;;  %v1669_v27 = vand.u32 2147483647, %v8730_v61  ;;  %v1699_v7 = vadd.f32 1.0, %v8764_v38 }
 0x172   : > { %v8783_v49 = vpop.permute.xlu1 %1886  ;;  %v8785_v20 = vpop.permute.xlu0 %1891  ;;  %v1638_v52 = vmul.f32 0.6931472, %v6741_v12  ;;  %6766 = vlog2.f32 %v1690_v3  ;;  %v1667_v12 = vadd.f32 1.0, %v1666_v22  ;;  %v1659_v22 = vmul.f32 %v8719_v46, %v1658_v26 }
 0x173   : > { %v8796_v15 = vpop.eup %6742  ;;  %6768 = vlog2.f32 %v1699_v7  ;;  %vm8832_vm6 = vcmp.lt.f32.partialorder %v1669_v27, 0.0004427343  ;;  %v1685_v26 = vadd.f32 1.0, %v1684_v18  ;;  %v1696_v27 = vand.u32 2147483647, %v8761_v23 }
 0x174   : > { %v8803_v34 = vpop.eup %6744  ;;  %v1644_v3 = vsel %vm8789_vm1, %v1641_v16, %v1638_v52  ;;  %v1708_v16 = vadd.f32 1.0, %v8771_v8  ;;  %vm8869_vm10 = vcmp.lt.f32.partialorder %v1687_v33, 0.0004427343  ;;  %v1702_v6 = vmul.f32 -0.5, %v8764_v38 }
 0x175   : > { %2796 = vperm.xlu1 %6615, %v2714_v13   ;;  %v6747_v41 = vpop.eup %6746  ;;  %2821 = vperm.xlu0 %6614, %v7411_v62   ;;  %v1780_v13 = vadd.f32 %v1644_v3, %v1524_v37  ;;  %vm1545_vm11 = vcmp.ne.f32.partialorder %v8629_v35, %v8629_v35  ;;  %vm8883_vm12 = vcmp.lt.f32.partialorder %v1696_v27, 0.0004427343  ;;  %vm1546_vm13 = vcmp.ne.f32.partialorder %v8641_v2, %v8641_v2  ;;  %v2720_v27 = vld [vmem:[%s7787_s28 + $0x50] sm:$0xff] }
 0x176   : > { %v8819_v21 = vpop.permute.xlu1 %1896  ;;  %v8821_v1 = vpop.permute.xlu0 %1901  ;;  %v1647_v30 = vmul.f32 0.6931472, %v6747_v41  ;;  %vm1547_vm14 = vcmp.ne.f32.partialorder %v8644_v63, %v8644_v63  ;;  %vm1548_vm15 = vcmp.ne.f32.partialorder %v8654_v9, %v8654_v9 }
 0x177   : > { %v8824_v39 = vpop.eup %6748  ;;  %v1796_v37 = vsel %vm1540_vm0, %v8559_v36, %v1780_v13  ;;  %v1668_v36 = vmul.f32 %v8730_v61, %v1667_v12  ;;  %v12602_v61 = vmax.f32 %v8641_v2, 0.0 }
 0x178   : > { %v8838_v52 = vpop.eup %6750  ;;  %v1653_v46 = vsel %vm8805_vm3, %v1650_v44, %v1647_v30  ;;  %6770 = vlog2.f32 %v1796_v37  ;;  %v1677_v30 = vmul.f32 %v8741_v50, %v1676_v4  ;;  %v7412_v44 = vld [vmem:[%s7787_s28 + $0x58] sm:$0xff]  ;;  %v1717_v50 = vadd.f32 1.0, %v8777_v14  ;;  %v2723_v4 = vld [vmem:[%s7787_s28 + $0x68] sm:$0xff] }
 0x179   : > { %2806 = vperm.xlu1 %6615, %v2716_v17   ;;  %v6753_v7 = vpop.eup %6752  ;;  %v1781_v41 = vadd.f32 %v1653_v46, %v1525_v5  ;;  %2831 = vperm.xlu0 %6614, %v7412_v44   ;;  %v2718_v17 = vld [vmem:[%s7787_s28 + $0x40] sm:$0xff]  ;;  %6772 = vlog2.f32 %v1708_v16  ;;  %v1694_v46 = vadd.f32 1.0, %v1693_v54  ;;  %v1686_v16 = vmul.f32 %v8751_v42, %v1685_v26 }
 0x17a   : > { %v8856_v40 = vpop.permute.xlu1 %1906  ;;  %v8858_v18 = vpop.permute.xlu0 %1911  ;;  %1235 = vst [vmem:[%s8862_s13] sm:$0x1] %v6753_v7 }
 0x17b   : > { %v6755_v3 = vpop.eup %6754  ;;  %v1797_v13 = vsel %vm1541_vm2, %v8564_v51, %v1781_v41  ;;  %vm1549_vm2 = vcmp.ne.f32.partialorder %v8663_v57, %v8663_v57 }
 0x17c   : > { %v6757_v12 = vpop.eup %6756  ;;  %v1656_v37 = vmul.f32 0.6931472, %v6755_v3  ;;  %6774 = vlog2.f32 %v1797_v13  ;;  %v1705_v3 = vand.u32 2147483647, %v8764_v38  ;;  %v1726_v13 = vadd.f32 1.0, %v8796_v15 }
 0x17d   : > { %v6759_v7 = vpop.eup %6758  ;;  %v1665_v33 = vmul.f32 0.6931472, %v6757_v12  ;;  %2816 = vperm.xlu1 %6615, %v2718_v17   ;;  %6776 = vlog2.f32 %v1717_v50  ;;  %2841 = vperm.xlu0 %6614, %v2723_v4  }
 0x17e   : > { %v8887_v51 = vpop.eup %6760  ;;  %v1662_v54 = vsel %vm8809_vm4, %v1659_v22, %v1656_v37  ;;  %v1674_v41 = vmul.f32 0.6931472, %v6759_v7  ;;  %v8894_v42 = vpop.permute.xlu1 %1916  ;;  %v1711_v22 = vmul.f32 -0.5, %v8771_v8  ;;  %v2725_v37 = vld [vmem:[%s7787_s28 + $0x78] sm:$0xff]  ;;  %6778 = vlog2.f32 %v1726_v13 }
 0x17f   : > { %12598 = vst [vmem:[#allocation7_spill] sm:$0xff] %v8894_v42  ;;  %v8896_v26 = vpop.permute.xlu0 %1921  ;;  %v8899_v17 = vpop.eup %6762  ;;  %v1782_v12 = vadd.f32 %v1662_v54, %v1526_v24  ;;  %v1671_v31 = vsel %vm8832_vm6, %v1668_v36, %v1665_v33  ;;  %v1703_v42 = vadd.f32 1.0, %v1702_v6  ;;  %v12600_v36 = vmax.f32 %v8614_v53, 0.0 }
 0x180   : > { %12599 = vst [vmem:[#allocation8_spill] sm:$0xff] %v8896_v26  ;;  %v6765_v50 = vpop.eup %6764  ;;  %v1783_v4 = vadd.f32 %v1671_v31, %v1527_v32  ;;  %v1680_v7 = vsel %vm8865_vm9, %v1677_v30, %v1674_v41  ;;  %v1695_v26 = vmul.f32 %v8761_v23, %v1694_v46  ;;  %v1714_v30 = vand.u32 2147483647, %v8771_v8 }
 0x181   : > { %v6767_v24 = vpop.eup %6766  ;;  %v1798_v62 = vsel %vm1542_vm5, %v8576_v11, %v1782_v12  ;;  %v1784_v33 = vadd.f32 %v1680_v7, %v12600_v36  ;;  %v1683_v54 = vmul.f32 0.6931472, %v6765_v50  ;;  %2826 = vperm.xlu1 %6615, %v2720_v27   ;;  %2851 = vperm.xlu0 %6614, %v2725_v37   ;;  %v2722_v11 = vld [vmem:[%s7787_s28 + $0x60] sm:$0xff]  ;;  %v1712_v6 = vadd.f32 1.0, %v1711_v22 }
 0x182   : > { %6780 = vlog2.f32 %v1798_v62  ;;  %v1799_v32 = vsel %vm1543_vm7, %v8594_v45, %v1783_v4  ;;  %v1692_v23 = vmul.f32 0.6931472, %v6767_v24  ;;  %v2695_v45 = vld [vmem:[%s7855_s12 + $0x8] sm:$0xff]  ;;  %v6769_v12 = vpop.eup %6768  ;;  %v12601_v31 = vmax.f32 %v8629_v35, 0.0 }
 0x183   : > { %6782 = vlog2.f32 %v1799_v32  ;;  %v1800_v5 = vsel %vm1544_vm8, %v8614_v53, %v1784_v33  ;;  %v1689_v46 = vsel %vm8869_vm10, %v1686_v16, %v1683_v54  ;;  %v8933_v41 = vpop.permute.xlu1 %2047  ;;  %v8935_v27 = vpop.permute.xlu0 %2052  ;;  %v1720_v53 = vmul.f32 -0.5, %v8777_v14  ;;  %v2697_v33 = vld [vmem:[%s7855_s12 + $0x18] sm:$0xff] }
 0x184   : > { %6784 = vlog2.f32 %v1800_v5  ;;  %v1785_v13 = vadd.f32 %v1689_v46, %v12601_v31  ;;  %v1698_v37 = vsel %vm8883_vm12, %v1695_v26, %v1692_v23  ;;  %v1701_v22 = vmul.f32 0.6931472, %v6769_v12 }
 0x185   : > { %v1786_v16 = vadd.f32 %v1698_v37, %v12602_v61  ;;  %v1704_v50 = vmul.f32 %v8764_v38, %v1703_v42  ;;  %v1735_v4 = vadd.f32 1.0, %v8803_v34  ;;  %2836 = vperm.xlu1 %6615, %v2722_v11   ;;  %vm1706_vm0 = vcmp.lt.f32.partialorder %v1705_v3, 0.0004427343  ;;  %2877 = vperm.xlu0 %6614, %v2695_v45   ;;  %v2724_v38 = vld [vmem:[%s7787_s28 + $0x70] sm:$0xff]  ;;  %v6771_v42 = vpop.eup %6770 }
 0x186   : > { %v1801_v44 = vsel %vm1545_vm11, %v8629_v35, %v1785_v13  ;;  %vm8953_vm1 = vcmp.lt.f32.partialorder %v1714_v30, 0.0004427343  ;;  %v1729_v7 = vmul.f32 -0.5, %v8796_v15  ;;  %v1744_v36 = vadd.f32 1.0, %v8824_v39  ;;  %v6773_v54 = vpop.eup %6772 }
 0x187   : > { %6786 = vlog2.f32 %v1801_v44  ;;  %v1802_v24 = vsel %vm1546_vm13, %v8641_v2, %v1786_v16  ;;  %v1707_v62 = vsel %vm1706_vm0, %v1704_v50, %v1701_v22  ;;  %v8964_v35 = vpop.permute.xlu1 %2057  ;;  %v8966_v3 = vpop.permute.xlu0 %2067  ;;  %v12605_v32 = vmax.f32 %v8644_v63, 0.0 }
 0x188   : > { %6788 = vlog2.f32 %v1802_v24  ;;  %v1713_v30 = vmul.f32 %v8771_v8, %v1712_v6  ;;  %v1721_v11 = vadd.f32 1.0, %v1720_v53  ;;  %v1813_v5 = vmul.f32 0.6931472, %v6771_v42  ;;  %v2694_v8 = vld [vmem:[%s7855_s12] sm:$0xff] }
 0x189   : > { %v1787_v23 = vadd.f32 %v1707_v62, %v12605_v32  ;;  %v1710_v46 = vmul.f32 0.6931472, %v6773_v54  ;;  %v1723_v2 = vand.u32 2147483647, %v8777_v14  ;;  %6790 = vlog2.f32 %v1735_v4  ;;  %2846 = vperm.xlu1 %6615, %v2724_v38   ;;  %v6775_v45 = vpop.eup %6774  ;;  %2887 = vperm.xlu0 %6614, %v2697_v33  }
 0x18a   : > { %v1730_v31 = vadd.f32 1.0, %v1729_v7  ;;  %v1732_v13 = vand.u32 2147483647, %v8796_v15  ;;  %6792 = vlog2.f32 %v1744_v36  ;;  %v6777_v6 = vpop.eup %6776  ;;  %v1815_v37 = vmul.f32 0.6931472, %v6775_v45 }
 0x18b   : > { %v1803_v12 = vsel %vm1547_vm14, %v8644_v63, %v1787_v23  ;;  %v1716_v53 = vsel %vm8953_vm1, %v1713_v30, %v1710_v46  ;;  %v8983_v61 = vpop.permute.xlu1 %2062  ;;  %v8985_v16 = vpop.permute.xlu0 %2077  ;;  %v2699_v63 = vld [vmem:[%s7855_s12 + $0x28] sm:$0xff]  ;;  %v12606_v22 = vmax.f32 %v8654_v9, 0.0  ;;  %v1719_v4 = vmul.f32 0.6931472, %v6777_v6 }
 0x18c   : > { %6794 = vlog2.f32 %v1803_v12  ;;  %v1722_v44 = vmul.f32 %v8777_v14, %v1721_v11  ;;  %v1738_v7 = vmul.f32 -0.5, %v8803_v34  ;;  %v1924_v26 = vsub.f32 %v1813_v5, %v8709_v55  ;;  %v6779_v24 = vpop.eup %6778  ;;  %v2696_v55 = vld [vmem:[%s7855_s12 + $0x10] sm:$0xff]  ;;  %v2701_v5 = vld [vmem:[%s7855_s12 + $0x38] sm:$0xff] }
 0x18d   : > { %v1788_v50 = vadd.f32 %v1716_v53, %v12606_v22  ;;  %v1925_v38 = vsub.f32 %v1815_v37, %v8711_v47  ;;  %vm1724_vm3 = vcmp.lt.f32.partialorder %v1723_v2, 0.0004427343  ;;  %v1753_v42 = vadd.f32 1.0, %v8838_v52  ;;  %2872 = vperm.xlu1 %6615, %v2694_v8   ;;  %2897 = vperm.xlu0 %6614, %v2699_v63  }
 0x18e   : > { %v1725_v36 = vsel %vm1724_vm3, %v1722_v44, %v1719_v4  ;;  %v1731_v14 = vmul.f32 %v8796_v15, %v1730_v31  ;;  %vm9000_vm4 = vcmp.lt.f32.partialorder %v1732_v13, 0.0004427343  ;;  %v12609_v54 = vmax.f32 %v8663_v57, 0.0 }
 0x18f   : > { %v1804_v62 = vsel %vm1548_vm15, %v8654_v9, %v1788_v50  ;;  %v6781_v47 = vpop.eup %6780  ;;  %v1728_v23 = vmul.f32 0.6931472, %v6779_v24  ;;  %v1747_v30 = vmul.f32 -0.5, %v8824_v39  ;;  %v9008_v11 = vpop.permute.xlu1 %2072  ;;  %v1739_v2 = vadd.f32 1.0, %v1738_v7  ;;  %v2698_v50 = vld [vmem:[%s7855_s12 + $0x20] sm:$0xff] }
 0x190   : > { %6796 = vlog2.f32 %v1804_v62  ;;  %v1789_v32 = vadd.f32 %v1725_v36, %v12609_v54  ;;  %v9010_v9 = vpop.permute.xlu0 %2087  ;;  %v6783_v15 = vpop.eup %6782  ;;  %v1817_v46 = vmul.f32 0.6931472, %v6781_v47  ;;  %v1741_v45 = vand.u32 2147483647, %v8803_v34 }
 0x191   : > { %6798 = vlog2.f32 %v1753_v42  ;;  %v6785_v12 = vpop.eup %6784  ;;  %v1940_v31 = vadd.f32 %v1925_v38, %v1924_v26  ;;  %v1819_v13 = vmul.f32 0.6931472, %v6783_v15  ;;  %v1734_v6 = vsel %vm9000_vm4, %v1731_v14, %v1728_v23  ;;  %2882 = vperm.xlu1 %6615, %v2696_v55   ;;  %2907 = vperm.xlu0 %6614, %v2701_v5  }
 0x192   : > { %v1805_v8 = vsel %vm1549_vm2, %v8663_v57, %v1789_v32  ;;  %v1926_v37 = vsub.f32 %v1817_v46, %v8722_v25  ;;  %v1821_v53 = vmul.f32 0.6931472, %v6785_v12  ;;  %v12610_v63 = vmax.f32 %v8673_v56, 0.0  ;;  %v2703_v25 = vld [vmem:[%s7855_s12 + $0x48] sm:$0xff] }
 0x193   : > { %6800 = vlog2.f32 %v1805_v8  ;;  %vm1550_vm5 = vcmp.ne.f32.partialorder %v8673_v56, %v8673_v56  ;;  %v1748_v4 = vadd.f32 1.0, %v1747_v30  ;;  %v1750_v44 = vand.u32 2147483647, %v8824_v39  ;;  %v9028_v7 = vpop.permute.xlu1 %2082 }
 0x194   : > { %v1790_v22 = vadd.f32 %v1734_v6, %v12610_v63  ;;  %v1762_v57 = vadd.f32 1.0, %v8887_v51  ;;  %v9030_v26 = vpop.permute.xlu0 %2097  ;;  %v6787_v38 = vpop.eup %6786  ;;  %v1941_v42 = vadd.f32 %v1940_v31, %v1926_v37  ;;  %v1927_v24 = vsub.f32 %v1819_v13, %v8724_v59  ;;  %v2705_v31 = vld [vmem:[%s7855_s12 + $0x58] sm:$0xff] }
 0x195   : > { %v1928_v62 = vsub.f32 %v1821_v53, %v8736_v29  ;;  %v6789_v14 = vpop.eup %6788  ;;  %v1823_v33 = vmul.f32 0.6931472, %v6787_v38  ;;  %vm9036_vm6 = vcmp.lt.f32.partialorder %v1741_v45, 0.0004427343  ;;  %v1756_v47 = vmul.f32 -0.5, %v8838_v52  ;;  %2892 = vperm.xlu1 %6615, %v2698_v50   ;;  %2917 = vperm.xlu0 %6614, %v2703_v25   ;;  %v2700_v29 = vld [vmem:[%s7855_s12 + $0x30] sm:$0xff] }
 0x196   : > { %v1806_v36 = vsel %vm1550_vm5, %v8673_v56, %v1790_v22  ;;  %v6791_v54 = vpop.eup %6790  ;;  %v1942_v32 = vadd.f32 %v1941_v42, %v1927_v24  ;;  %v1825_v23 = vmul.f32 0.6931472, %v6789_v14  ;;  %v1740_v59 = vmul.f32 %v8803_v34, %v1739_v2  ;;  %v2707_v24 = vld [vmem:[%s7855_s12 + $0x68] sm:$0xff] }
 0x197   : > { %6802 = vlog2.f32 %v1806_v36  ;;  %v6793_v56 = vpop.eup %6792  ;;  %v1737_v30 = vmul.f32 0.6931472, %v6791_v54  ;;  %v1749_v5 = vmul.f32 %v8824_v39, %v1748_v4  ;;  %vm9044_vm7 = vcmp.lt.f32.partialorder %v1750_v44, 0.0004427343  ;;  %v9049_v45 = vpop.permute.xlu1 %2092 }
 0x198   : > { %6804 = vlog2.f32 %v1762_v57  ;;  %v1771_v46 = vadd.f32 1.0, %v8899_v17  ;;  %v9051_v12 = vpop.permute.xlu0 %2107  ;;  %v1943_v2 = vadd.f32 %v1942_v32, %v1928_v62  ;;  %v1929_v13 = vsub.f32 %v1823_v33, %v8738_v28 }
 0x199   : > { %v6795_v34 = vpop.eup %6794  ;;  %v1930_v8 = vsub.f32 %v1825_v23, %v8756_v0  ;;  %v1746_v6 = vmul.f32 0.6931472, %v6793_v56  ;;  %v1743_v39 = vsel %vm9036_vm6, %v1740_v59, %v1737_v30  ;;  %v1757_v37 = vadd.f32 1.0, %v1756_v47  ;;  %2902 = vperm.xlu1 %6615, %v2700_v29   ;;  %2927 = vperm.xlu0 %6614, %v2705_v31   ;;  %v2702_v0 = vld [vmem:[%s7855_s12 + $0x40] sm:$0xff] }
 0x19a   : > { %v1765_v53 = vmul.f32 -0.5, %v8887_v51  ;;  %6806 = vlog2.f32 %v1771_v46  ;;  %v1944_v63 = vadd.f32 %v1943_v2, %v1929_v13  ;;  %v1827_v22 = vmul.f32 0.6931472, %v6795_v34  ;;  %v2029_v31 = vld [vmem:[%s8050_s29] sm:$0xff] }
 0x19b   : > { %v12615_v50 = vmax.f32 %v8677_v10, 0.0  ;;  %v1752_v28 = vsel %vm9044_vm7, %v1749_v5, %v1746_v6  ;;  %vm1551_vm8 = vcmp.ne.f32.partialorder %v8677_v10, %v8677_v10  ;;  %v12616_v44 = vmax.f32 %v8685_v58, 0.0  ;;  %v9069_v38 = vpop.permute.xlu1 %2102  ;;  %v2013_v34 = vld [vmem:[%s8055_s21] sm:$0xff] }
 0x19c   : > { %v1759_v25 = vand.u32 2147483647, %v8838_v52  ;;  %v9071_v42 = vpop.permute.xlu0 %2117  ;;  %v1945_v36 = vadd.f32 %v1944_v63, %v1930_v8  ;;  %vm1552_vm9 = vcmp.ne.f32.partialorder %v8685_v58, %v8685_v58  ;;  %v1758_v54 = vmul.f32 %v8838_v52, %v1757_v37  ;;  %v2709_v52 = vld [vmem:[%s7855_s12 + $0x78] sm:$0xff]  ;;  %v2706_v63 = vld [vmem:[%s7855_s12 + $0x60] sm:$0xff] }
 0x19d   : > { %v1791_v4 = vadd.f32 %v1743_v39, %v12615_v50  ;;  %v1792_v57 = vadd.f32 %v1752_v28, %v12616_v44  ;;  %v6797_v62 = vpop.eup %6796  ;;  %2912 = vperm.xlu1 %6615, %v2702_v0   ;;  %v1931_v32 = vsub.f32 %v1827_v22, %v8758_v60  ;;  %v1766_v59 = vadd.f32 1.0, %v1765_v53  ;;  %2937 = vperm.xlu0 %6614, %v2707_v24   ;;  %v2015_v53 = vld [vmem:[%s8055_s21 + $0x10] sm:$0xff]  ;;  %v2727_v24 = vld [vmem:[%s7925_s10 + $0x8] sm:$0xff] }
 0x19e   : > { %v6799_v33 = vpop.eup %6798  ;;  %v1829_v55 = vmul.f32 0.6931472, %v6797_v62  ;;  %v1537_v56 = vmax.f32 %v8696_v48, 0.0  ;;  %vm1760_vm10 = vcmp.lt.f32.partialorder %v1759_v25, 0.0004427343  ;;  %v1774_v30 = vmul.f32 -0.5, %v8899_v17 }
 0x19f   : > { %v1807_v14 = vsel %vm1551_vm8, %v8677_v10, %v1791_v4  ;;  %v1808_v47 = vsel %vm1552_vm9, %v8685_v58, %v1792_v57  ;;  %v1755_v23 = vmul.f32 0.6931472, %v6799_v33  ;;  %v2704_v10 = vld [vmem:[%s7855_s12 + $0x50] sm:$0xff]  ;;  %v9083_v5 = vpop.permute.xlu1 %2112  ;;  %v1946_v15 = vadd.f32 %v1945_v36, %v1931_v32  ;;  %v2014_v32 = vld [vmem:[%s8055_s21 + $0x8] sm:$0xff] }
 0x1a0   : > { %6808 = vlog2.f32 %v1807_v14  ;;  %v6801_v29 = vpop.eup %6800  ;;  %v2144_v58 = vpop.permute.xlu0 %2143  ;;  %v1932_v60 = vsub.f32 %v1829_v55, %v8783_v49  ;;  %v1538_v2 = vmax.f32 %v8707_v19, 0.0  ;;  %v1768_v8 = vand.u32 2147483647, %v8887_v51  ;;  %v2031_v0 = vld [vmem:[%s8050_s29 + $0x10] sm:$0xff] }
 0x1a1   : > { %6810 = vlog2.f32 %v1808_v47  ;;  %v1761_v46 = vsel %vm1760_vm10, %v1758_v54, %v1755_v23  ;;  %2922 = vperm.xlu1 %6615, %v2704_v10   ;;  %v1831_v39 = vmul.f32 0.6931472, %v6801_v29  ;;  %vm1553_vm11 = vcmp.ne.f32.partialorder %v8696_v48, %v8696_v48  ;;  %2947 = vperm.xlu0 %6614, %v2709_v52   ;;  %v2708_v23 = vld [vmem:[%s7855_s12 + $0x70] sm:$0xff]  ;;  %v2729_v52 = vld [vmem:[%s7925_s10 + $0x18] sm:$0xff] }
 0x1a2   : > { %v1793_v13 = vadd.f32 %v1761_v46, %v1537_v56  ;;  %v1767_v37 = vmul.f32 %v8887_v51, %v1766_v59  ;;  %v1777_v49 = vand.u32 2147483647, %v8899_v17  ;;  %v1775_v4 = vadd.f32 1.0, %v1774_v30  ;;  %v2033_v46 = vld [vmem:[%s8050_s29 + $0x20] sm:$0xff]  ;;  %v2036_v56 = vld [vmem:[%s8050_s29 + $0x38] sm:$0xff] }
 0x1a3   : > { %v2125_v28 = vmin.f32 %v8933_v41, %v2029_v31  ;;  %v2221_v44 = vmax.f32 %v2144_v58, %v2013_v34  ;;  %v9100_v57 = vpop.permute.xlu1 %2122  ;;  %v1947_v62 = vadd.f32 %v1946_v15, %v1932_v60  ;;  %v1539_v14 = vmax.f32 %v8713_v43, 0.0  ;;  %v2017_v58 = vld [vmem:[%s8055_s21 + $0x20] sm:$0xff]  ;;  %v2030_v60 = vld [vmem:[%s8050_s29 + $0x8] sm:$0xff] }
 0x1a4   : > { %v6803_v6 = vpop.eup %6802  ;;  %v1809_v50 = vsel %vm1553_vm11, %v8696_v48, %v1793_v13  ;;  %v2154_v25 = vpop.permute.xlu0 %2153  ;;  %vm1769_vm12 = vcmp.lt.f32.partialorder %v1768_v8, 0.0004427343  ;;  %v1933_v55 = vsub.f32 %v1831_v39, %v8785_v20  ;;  %vm1554_vm13 = vcmp.ne.f32.partialorder %v8707_v19, %v8707_v19  ;;  %v2032_v39 = vld [vmem:[%s8050_s29 + $0x18] sm:$0xff] }
 0x1a5   : > { %v6805_v22 = vpop.eup %6804  ;;  %v1833_v51 = vmul.f32 0.6931472, %v6803_v6  ;;  %6812 = vlog2.f32 %v1809_v50  ;;  %v9104_v33 = vsub.f32 %v2125_v28, %v2221_v44  ;;  %v2223_v48 = vmax.f32 %v2154_v25, %v2015_v53  ;;  %2932 = vperm.xlu1 %6615, %v2706_v63   ;;  %3309 = vperm.xlu0 %6614, %v2727_v24   ;;  %v2726_v53 = vld [vmem:[%s7925_s10] sm:$0xff]  ;;  %v2731_v44 = vld [vmem:[%s7925_s10 + $0x28] sm:$0xff] }
 0x1a6   : > { %v1764_v36 = vmul.f32 0.6931472, %v6805_v22  ;;  %v2127_v54 = vmin.f32 %v8964_v35, %v2031_v0  ;;  %v1776_v29 = vmul.f32 %v8899_v17, %v1775_v4  ;;  %vm9113_vm14 = vcmp.lt.f32.partialorder %v1777_v49, 0.0004427343 }
 0x1a7   : > { %v6807_v41 = vpop.eup %6806  ;;  %v2149_v20 = vpop.permute.xlu1 %2148  ;;  %v1948_v15 = vadd.f32 %v1947_v62, %v1933_v55  ;;  %v1934_v35 = vsub.f32 %v1833_v51, %v8819_v21  ;;  %v2301_v31 = vand.u32 2147483647, %v9104_v33  ;;  %vm1555_vm15 = vcmp.ne.f32.partialorder %v8713_v43, %v8713_v43  ;;  %v2016_v21 = vld [vmem:[%s8055_s21 + $0x18] sm:$0xff] }
 0x1a8   : > { %v1770_v47 = vsel %vm1769_vm12, %v1767_v37, %v1764_v36  ;;  %v1773_v10 = vmul.f32 0.6931472, %v6807_v41  ;;  %v2164_v30 = vpop.permute.xlu0 %2163  ;;  %v9123_v34 = vsub.f32 %v2127_v54, %v2223_v48  ;;  %v2222_v13 = vmax.f32 %v2149_v20, %v2014_v32  ;;  %v2035_v41 = vld [vmem:[%s8050_s29 + $0x30] sm:$0xff]  ;;  %v2018_v32 = vld [vmem:[%s8055_s21 + $0x28] sm:$0xff] }
 0x1a9   : > { %v1794_v59 = vadd.f32 %v1770_v47, %v1538_v2  ;;  %2942 = vperm.xlu1 %6615, %v2708_v23   ;;  %v2317_v37 = vsub.f32 0.0, %v2301_v31  ;;  %v2225_v49 = vmax.f32 %v2164_v30, %v2017_v58  ;;  %3319 = vperm.xlu0 %6614, %v2729_v52   ;;  %v2126_v22 = vmin.f32 %v8935_v27, %v2030_v60  ;;  %v2021_v30 = vld [vmem:[%s8055_s21 + $0x40] sm:$0xff] }
 0x1aa   : > { %v1779_v2 = vsel %vm9113_vm14, %v1776_v29, %v1773_v10  ;;  %v2129_v50 = vmin.f32 %v8966_v3, %v2033_v46  ;;  %v2303_v4 = vand.u32 2147483647, %v9123_v34  ;;  %v1949_v25 = vadd.f32 %v1948_v15, %v1934_v35  ;;  %v2037_v15 = vld [vmem:[%s8050_s29 + $0x40] sm:$0xff]  ;;  %v2039_v35 = vld [vmem:[%s8050_s29 + $0x50] sm:$0xff] }
 0x1ab   : > { %v1810_v17 = vsel %vm1554_vm13, %v8707_v19, %v1794_v59  ;;  %v1795_v6 = vadd.f32 %v1779_v2, %v1539_v14  ;;  %v2159_v28 = vpop.permute.xlu1 %2158  ;;  %v2128_v27 = vmin.f32 %v8983_v61, %v2032_v39  ;;  %v2333_v3 = vmul.f32 1.442695, %v2317_v37  ;;  %v2019_v14 = vld [vmem:[%s8055_s21 + $0x30] sm:$0xff]  ;;  %v2733_v59 = vld [vmem:[%s7925_s10 + $0x38] sm:$0xff]  ;;  %v2730_v46 = vld [vmem:[%s7925_s10 + $0x20] sm:$0xff] }
 0x1ac   : > { %6814 = vlog2.f32 %v1810_v17  ;;  %v2174_v0 = vpop.permute.xlu0 %2173  ;;  %v2224_v51 = vmax.f32 %v2159_v28, %v2016_v21  ;;  %v9145_v36 = vsub.f32 %v2126_v22, %v2222_v13  ;;  %v2319_v55 = vsub.f32 0.0, %v2303_v4  ;;  %v2022_v28 = vld [vmem:[%s8055_s21 + $0x48] sm:$0xff] }
 0x1ad   : > { %v6809_v8 = vpop.eup %6808  ;;  %v1811_v62 = vsel %vm1555_vm15, %v8713_v43, %v1795_v6  ;;  %3304 = vperm.xlu1 %6615, %v2726_v53   ;;  %v9150_v47 = vsub.f32 %v2129_v50, %v2225_v49  ;;  %3329 = vperm.xlu0 %6614, %v2731_v44   ;;  %v2728_v43 = vld [vmem:[%s7925_s10 + $0x10] sm:$0xff]  ;;  %v2227_v20 = vmax.f32 %v2174_v0, %v2019_v14  ;;  %v2020_v49 = vld [vmem:[%s8055_s21 + $0x38] sm:$0xff] }
 0x1ae   : > { %v6811_v63 = vpop.eup %6810  ;;  %v1835_v19 = vmul.f32 0.6931472, %v6809_v8  ;;  %6816 = vlog2.f32 %v1811_v62  ;;  %v9153_v54 = vsub.f32 %v2128_v27, %v2224_v51  ;;  %v2131_v52 = vmin.f32 %v8985_v16, %v2035_v41  ;;  %v2735_v8 = vld [vmem:[%s7925_s10 + $0x48] sm:$0xff]  ;;  %v2737_v14 = vld [vmem:[%s7925_s10 + $0x58] sm:$0xff]  ;;  %v2041_v41 = vld [vmem:[%s8050_s29 + $0x60] sm:$0xff] }
 0x1af   : > { %v1837_v24 = vmul.f32 0.6931472, %v6811_v63  ;;  %v2169_v61 = vpop.permute.xlu1 %2168  ;;  %6818 = vpow2.f32 %v2333_v3  ;;  %v2302_v60 = vand.u32 2147483647, %v9145_v36  ;;  %v2337_v17 = vmul.f32 1.442695, %v2319_v55 }
 0x1b0   : > { %v1935_v48 = vsub.f32 %v1835_v19, %v8821_v1  ;;  %v2184_v23 = vpop.permute.xlu0 %2183  ;;  %v2034_v1 = vld [vmem:[%s8050_s29 + $0x28] sm:$0xff]  ;;  %v2226_v2 = vmax.f32 %v2169_v61, %v2018_v32  ;;  %v2304_v13 = vand.u32 2147483647, %v9153_v54  ;;  %v9170_v37 = vsub.f32 %v2131_v52, %v2227_v20  ;;  %v2023_v63 = vld [vmem:[%s8055_s21 + $0x50] sm:$0xff]  ;;  %v2025_v3 = vld [vmem:[%s8055_s21 + $0x60] sm:$0xff] }
 0x1b1   : > { %v1936_v29 = vsub.f32 %v1837_v24, %v8856_v40  ;;  %3314 = vperm.xlu1 %6615, %v2728_v43   ;;  %v2305_v40 = vand.u32 2147483647, %v9150_v47  ;;  %3339 = vperm.xlu0 %6614, %v2733_v59   ;;  %v2229_v21 = vmax.f32 %v2184_v23, %v2021_v30  ;;  %v2130_v39 = vmin.f32 %v9008_v11, %v2034_v1  ;;  %v2038_v11 = vld [vmem:[%s8050_s29 + $0x48] sm:$0xff]  ;;  %v2732_v24 = vld [vmem:[%s7925_s10 + $0x30] sm:$0xff]  ;;  %v2040_v23 = vld [vmem:[%s8050_s29 + $0x58] sm:$0xff] }
 0x1b2   : > { %v1950_v10 = vadd.f32 %v1949_v25, %v1935_v48  ;;  %v6813_v58 = vpop.eup %6812  ;;  %v2133_v19 = vmin.f32 %v9010_v9, %v2037_v15  ;;  %v2132_v22 = vmin.f32 %v9028_v7, %v2036_v56  ;;  %v2135_v50 = vmin.f32 %v9030_v26, %v2039_v35  ;;  %v2024_v1 = vld [vmem:[%s8055_s21 + $0x58] sm:$0xff]  ;;  %v12619_v20 = vld [vmem:[#allocation7_spill] sm:$0xff]  ;;  %v2734_v35 = vld [vmem:[%s7925_s10 + $0x40] sm:$0xff] }
 0x1b3   : > { %v1839_v31 = vmul.f32 0.6931472, %v6813_v58  ;;  %v2179_v16 = vpop.permute.xlu1 %2178  ;;  %v2318_v4 = vsub.f32 0.0, %v2302_v60  ;;  %6820 = vpow2.f32 %v2337_v17  ;;  %v2321_v44 = vsub.f32 0.0, %v2305_v40  ;;  %v2739_v60 = vld [vmem:[%s7925_s10 + $0x68] sm:$0xff] }
 0x1b4   : > { %v1951_v6 = vadd.f32 %v1950_v10, %v1936_v29  ;;  %v2194_v53 = vpop.permute.xlu0 %2193  ;;  %v9180_v25 = vsub.f32 %v2130_v39, %v2226_v2  ;;  %v2320_v7 = vsub.f32 0.0, %v2304_v13  ;;  %v9183_v62 = vsub.f32 %v2133_v19, %v2229_v21  ;;  %v2043_v13 = vld [vmem:[%s8050_s29 + $0x70] sm:$0xff]  ;;  %v12620_v39 = vld [vmem:[#allocation8_spill] sm:$0xff] }
 0x1b5   : > { %3324 = vperm.xlu1 %6615, %v2730_v46   ;;  %v1937_v0 = vsub.f32 %v1839_v31, %v8858_v18  ;;  %3349 = vperm.xlu0 %6614, %v2735_v8   ;;  %v2228_v26 = vmax.f32 %v2179_v16, %v2020_v49  ;;  %v2231_v51 = vmax.f32 %v2194_v53, %v2023_v63  ;;  %v2307_v55 = vand.u32 2147483647, %v9170_v37 }
 0x1b6   : > { %v2134_v32 = vmin.f32 %v9049_v45, %v2038_v11  ;;  %v2335_v59 = vmul.f32 1.442695, %v2318_v4  ;;  %v2341_v58 = vmul.f32 1.442695, %v2321_v44  ;;  %v2306_v52 = vand.u32 2147483647, %v9180_v25 }
 0x1b7   : > { %v2189_v27 = vpop.permute.xlu1 %2188  ;;  %v1952_v18 = vadd.f32 %v1951_v6, %v1937_v0  ;;  %v9191_v10 = vsub.f32 %v2132_v22, %v2228_v26  ;;  %v9193_v29 = vsub.f32 %v2135_v50, %v2231_v51  ;;  %v2137_v46 = vmin.f32 %v9051_v12, %v2041_v41  ;;  %v2027_v4 = vld [vmem:[%s8055_s21 + $0x70] sm:$0xff] }
 0x1b8   : > { %v2230_v43 = vmax.f32 %v2189_v27, %v2022_v28  ;;  %v2204_v61 = vpop.permute.xlu0 %2203  ;;  %v2339_v31 = vmul.f32 1.442695, %v2320_v7  ;;  %v2309_v17 = vand.u32 2147483647, %v9183_v62  ;;  %v2323_v21 = vsub.f32 0.0, %v2307_v55  ;;  %v2736_v28 = vld [vmem:[%s7925_s10 + $0x50] sm:$0xff] }
 0x1b9   : > { %v6815_v9 = vpop.eup %6814  ;;  %3334 = vperm.xlu1 %6615, %v2732_v24   ;;  %v2233_v15 = vmax.f32 %v2204_v61, %v2025_v3  ;;  %3359 = vperm.xlu0 %6614, %v2737_v14   ;;  %v2308_v16 = vand.u32 2147483647, %v9191_v10  ;;  %6822 = vpow2.f32 %v2335_v59  ;;  %v2311_v12 = vand.u32 2147483647, %v9193_v29  ;;  %v2042_v7 = vld [vmem:[%s8050_s29 + $0x68] sm:$0xff]  ;;  %v2044_v14 = vld [vmem:[%s8050_s29 + $0x78] sm:$0xff] }
 0x1ba   : > { %v1841_v48 = vmul.f32 0.6931472, %v6815_v9  ;;  %v9204_v8 = vsub.f32 %v2134_v32, %v2230_v43  ;;  %v2136_v63 = vmin.f32 %v9069_v38, %v2040_v23  ;;  %v2322_v19 = vsub.f32 0.0, %v2306_v52  ;;  %v2026_v9 = vld [vmem:[%s8055_s21 + $0x68] sm:$0xff]  ;;  %v7413_v32 = vld [vmem:[%s7925_s10 + $0x78] sm:$0xff]  ;;  %v2738_v23 = vld [vmem:[%s7925_s10 + $0x60] sm:$0xff] }
 0x1bb   : > { %v6817_v56 = vpop.eup %6816  ;;  %v2199_v40 = vpop.permute.xlu1 %2198  ;;  %v9211_v22 = vsub.f32 %v2137_v46, %v2233_v15  ;;  %v2139_v11 = vmin.f32 %v9071_v42, %v2043_v13  ;;  %6824 = vpow2.f32 %v2341_v58  ;;  %v2325_v44 = vsub.f32 0.0, %v2309_v17 }
 0x1bc   : > { %v1938_v30 = vsub.f32 %v1841_v48, %v12619_v20  ;;  %v1843_v45 = vmul.f32 0.6931472, %v6817_v56  ;;  %v2214_v6 = vpop.permute.xlu0 %2213  ;;  %v9208_v53 = vpop.eup %6818  ;;  %v2232_v50 = vmax.f32 %v2199_v40, %v2024_v1  ;;  %6826 = vpow2.f32 %v2339_v31  ;;  %v2028_v31 = vld [vmem:[%s8055_s21 + $0x78] sm:$0xff] }
 0x1bd   : > { %3344 = vperm.xlu1 %6615, %v2734_v35   ;;  %3369 = vperm.xlu0 %6614, %v2739_v60   ;;  %v2345_v26 = vmul.f32 1.442695, %v2323_v21  ;;  %v2324_v38 = vsub.f32 0.0, %v2308_v16  ;;  %v2310_v51 = vand.u32 2147483647, %v9204_v8  ;;  %v2235_v48 = vmax.f32 %v2214_v6, %v2027_v4  ;;  %v7414_v6 = vld [vmem:[%s7787_s28 + $0x8] sm:$0xff] }
 0x1be   : > { %v1953_v2 = vadd.f32 %v1952_v18, %v1938_v30  ;;  %v1939_v49 = vsub.f32 %v1843_v45, %v12620_v39  ;;  %v2327_v18 = vsub.f32 0.0, %v2311_v12  ;;  %v2365_v42 = vadd.f32 1.0, %v9208_v53 }
 0x1bf   : > { %v2209_v24 = vpop.permute.xlu1 %2208  ;;  %v2343_v41 = vmul.f32 1.442695, %v2322_v19  ;;  %v2313_v55 = vand.u32 2147483647, %v9211_v22  ;;  %v9224_v43 = vsub.f32 %v2136_v63, %v2232_v50  ;;  %v2138_v56 = vmin.f32 %v9083_v5, %v2042_v7 }
 0x1c0   : > { %v1954_v0 = vadd.f32 %v1953_v2, %v1939_v49  ;;  %v9219_v27 = vpop.permute.xlu0 %2575  ;;  %v2234_v61 = vmax.f32 %v2209_v24, %v2026_v9  ;;  %v9228_v59 = vpop.eup %6820  ;;  %v2349_v20 = vmul.f32 1.442695, %v2325_v44  ;;  %v2140_v58 = vmin.f32 %v9100_v57, %v2044_v14  ;;  %v2740_v2 = vld [vmem:[%s7925_s10 + $0x70] sm:$0xff]  ;;  %v3439_v14 = vld [vmem:[%s7787_s28] sm:$0xff] }
 0x1c1   : > { %3354 = vperm.xlu1 %6615, %v2736_v28   ;;  %3379 = vperm.xlu0 %6614, %v7413_v32   ;;  %6828 = vpow2.f32 %v2345_v26  ;;  %v2347_v52 = vmul.f32 1.442695, %v2324_v38  ;;  %v2326_v15 = vsub.f32 0.0, %v2310_v51  ;;  %v2353_v45 = vmul.f32 1.442695, %v2327_v18  ;;  %v7415_v51 = vld [vmem:[%s7787_s28 + $0x20] sm:$0xff] }
 0x1c2   : > { %v1955_v3 = vrot.slane %v1954_v0, 4  ;;  %v9234_v46 = vsub.f32 %v2139_v11, %v2235_v48  ;;  %6830 = vlog2.f32 %v2365_v42  ;;  %v2329_v5 = vsub.f32 0.0, %v2313_v55  ;;  %v3450_v42 = vld [vmem:[%s7787_s28 + $0x58] sm:$0xff] }
 0x1c3   : > { %v2219_v30 = vpop.permute.xlu1 %2218  ;;  %6832 = vpow2.f32 %v2343_v41  ;;  %v2312_v17 = vand.u32 2147483647, %v9224_v43  ;;  %v9238_v40 = vsub.f32 %v2138_v56, %v2234_v61  ;;  %v7601_v57 = vmov 4  }
 0x1c4   : > { %v1956_v1 = vadd.f32 %v1955_v3, %v1954_v0  ;;  %v9232_v35 = vpop.permute.xlu0 %2585  ;;  %v2253_v21 = vmax.f32 %v9104_v33, 0.0  ;;  %v2255_v16 = vmax.f32 %v9123_v34, 0.0  ;;  %6834 = vpow2.f32 %v2349_v20 }
 0x1c5   : > { %3364 = vperm.xlu1 %6615, %v2738_v23   ;;  %6617 = vset.pattern.permute.xlu0 %v7601_v57  ;;  %6836 = vpow2.f32 %v2347_v52  ;;  %v2351_v49 = vmul.f32 1.442695, %v2326_v15  ;;  %v2236_v12 = vmax.f32 %v2219_v30, %v2028_v31  ;;  %v2383_v63 = vadd.f32 1.0, %v9228_v59 }
 0x1c6   : > { %v1957_v60 = vrot.slane %v1956_v1, 2  ;;  %3510 = vperm.xlu0 %6617, %v7414_v6   ;;  %v2254_v4 = vmax.f32 %v9145_v36, 0.0  ;;  %6838 = vpow2.f32 %v2353_v45  ;;  %v2315_v28 = vand.u32 2147483647, %v9234_v46  ;;  %v9251_v0 = vpop.eup %6822  ;;  %v7416_v45 = vld [vmem:[%s7787_s28 + $0x30] sm:$0xff] }
 0x1c7   : > { %v9244_v39 = vpop.permute.xlu1 %2580  ;;  %v2357_v11 = vmul.f32 1.442695, %v2329_v5  ;;  %v2328_v44 = vsub.f32 0.0, %v2312_v17  ;;  %v2314_v24 = vand.u32 2147483647, %v9238_v40  ;;  %v9254_v9 = vsub.f32 %v2140_v58, %v2236_v12  ;;  %v3441_v5 = vld [vmem:[%s7787_s28 + $0x10] sm:$0xff] }
 0x1c8   : > { %v1958_v13 = vadd.f32 %v1957_v60, %v1956_v1  ;;  %v9247_v19 = vpop.permute.xlu0 %2595  ;;  %v2257_v26 = vmax.f32 %v9150_v47, 0.0  ;;  %v2368_v38 = vmul.f32 -0.5, %v9208_v53  ;;  %6840 = vlog2.f32 %v2383_v63  ;;  %v9262_v18 = vpop.eup %6824 }
 0x1c9   : > { %3374 = vperm.xlu1 %6615, %v2740_v2   ;;  %v2256_v48 = vmax.f32 %v9153_v54, 0.0  ;;  %6842 = vpow2.f32 %v2351_v49  ;;  %v9269_v61 = vpop.eup %6826  ;;  %v2331_v23 = vsub.f32 0.0, %v2315_v28  ;;  %v2316_v1 = vand.u32 2147483647, %v9254_v9 }
 0x1ca   : > { %v1959_v50 = vrot.slane %v1958_v13, 1  ;;  %3525 = vperm.xlu0 %6617, %v7415_v51   ;;  %v2374_v56 = vadd.f32 1.0, %v9251_v0  ;;  %6844 = vpow2.f32 %v2357_v11  ;;  %v2355_v30 = vmul.f32 1.442695, %v2328_v44 }
 0x1cb   : > { %v9259_v3 = vpop.permute.xlu1 %2590  ;;  %v2330_v58 = vsub.f32 0.0, %v2314_v24  ;;  %v2369_v15 = vadd.f32 1.0, %v2368_v38  ;;  %v2401_v60 = vadd.f32 1.0, %v9262_v18  ;;  %v2386_v2 = vmul.f32 -0.5, %v9228_v59 }
 0x1cc   : > { %v1960_v7 = vadd.f32 %v1959_v50, %v1958_v13  ;;  %v9267_v55 = vpop.permute.xlu0 %2605  ;;  %v2361_v12 = vmul.f32 1.442695, %v2331_v23  ;;  %v2332_v63 = vsub.f32 0.0, %v2316_v1  ;;  %v2392_v44 = vadd.f32 1.0, %v9269_v61  ;;  %v3442_v1 = vld [vmem:[%s7787_s28 + $0x18] sm:$0xff] }
 0x1cd   : > { %6616 = vset.pattern.permute.xlu1 %v7601_v57  ;;  %v2371_v57 = vand.u32 2147483647, %v9208_v53  ;;  %v2359_v11 = vmul.f32 1.442695, %v2330_v58  ;;  %vm2269_vm0 = vcmp.ne.f32.partialorder %v9104_v33, %v9104_v33  ;;  %v2370_v38 = vmul.f32 %v9208_v53, %v2369_v15 }
 0x1ce   : > { %v1962_v32 = vmul.f32 1.442695, %v1960_v7  ;;  %3505 = vperm.xlu1 %6616, %v3439_v14   ;;  %3535 = vperm.xlu0 %6617, %v7416_v45   ;;  %v9285_v6 = vpop.eup %6828  ;;  %v2389_v51 = vand.u32 2147483647, %v9228_v59  ;;  %v2377_v14 = vmul.f32 -0.5, %v9251_v0  ;;  %v2387_v58 = vadd.f32 1.0, %v2386_v2 }
 0x1cf   : > { %v9277_v31 = vpop.permute.xlu1 %2600  ;;  %v6831_v50 = vpop.eup %6830  ;;  %vm9303_vm1 = vcmp.lt.f32.partialorder %v2371_v57, 0.0004427343  ;;  %v2404_v57 = vmul.f32 -0.5, %v9262_v18  ;;  %vm2271_vm2 = vcmp.ne.f32.partialorder %v9123_v34, %v9123_v34  ;;  %v2407_v17 = vand.u32 2147483647, %v9262_v18 }
 0x1d0   : > { %6846 = vpow2.f32 %v1962_v32  ;;  %v9283_v13 = vpop.permute.xlu0 %2615  ;;  %v9290_v24 = vpop.eup %6832  ;;  %v2367_v7 = vmul.f32 0.6931472, %v6831_v50  ;;  %v7417_v32 = vld [vmem:[%s7787_s28 + $0x40] sm:$0xff]  ;;  %vm9322_vm3 = vcmp.lt.f32.partialorder %v2389_v51, 0.0004427343  ;;  %vm2270_vm4 = vcmp.ne.f32.partialorder %v9145_v36, %v9145_v36 }
 0x1d1   : > { %6848 = vlog2.f32 %v2374_v56  ;;  %v9301_v56 = vpop.eup %6834  ;;  %v2405_v49 = vadd.f32 1.0, %v2404_v57  ;;  %vm2273_vm6 = vcmp.ne.f32.partialorder %v9150_v47, %v9150_v47  ;;  %vm9372_vm7 = vcmp.lt.f32.partialorder %v2407_v17, 0.0004427343 }
 0x1d2   : > { %6850 = vlog2.f32 %v2401_v60  ;;  %3515 = vperm.xlu1 %6616, %v3441_v5   ;;  %3545 = vperm.xlu0 %6617, %v7417_v32   ;;  %v2419_v60 = vadd.f32 1.0, %v9285_v6  ;;  %v9310_v15 = vpop.eup %6836  ;;  %v2373_v45 = vsel %vm9303_vm1, %v2370_v38, %v2367_v7  ;;  %v2363_v5 = vmul.f32 1.442695, %v2332_v63  ;;  %v7418_v38 = vld [vmem:[%s7787_s28 + $0x50] sm:$0xff] }
 0x1d3   : > { %6852 = vpow2.f32 %v2355_v30  ;;  %v9298_v23 = vpop.permute.xlu1 %2610  ;;  %v9315_v50 = vpop.eup %6838  ;;  %v2380_v32 = vand.u32 2147483647, %v9251_v0  ;;  %v2378_v63 = vadd.f32 1.0, %v2377_v14  ;;  %v2410_v7 = vadd.f32 1.0, %v9290_v24 }
 0x1d4   : > { %6854 = vlog2.f32 %v2392_v44  ;;  %v9308_v53 = vpop.permute.xlu0 %2625  ;;  %v3444_v44 = vld [vmem:[%s7787_s28 + $0x28] sm:$0xff]  ;;  %v2509_v28 = vadd.f32 %v2373_v45, %v2253_v21  ;;  %v2437_v51 = vadd.f32 1.0, %v9301_v56  ;;  %v2398_v21 = vand.u32 2147483647, %v9269_v61 }
 0x1d5   : > { %6856 = vpow2.f32 %v2361_v12  ;;  %v6841_v2 = vpop.eup %6840  ;;  %vm9343_vm5 = vcmp.lt.f32.partialorder %v2380_v32, 0.0004427343  ;;  %v2379_v57 = vmul.f32 %v9251_v0, %v2378_v63  ;;  %v7419_v32 = vld [vmem:[%s7787_s28 + $0x60] sm:$0xff]  ;;  %vm2272_vm8 = vcmp.ne.f32.partialorder %v9153_v54, %v9153_v54 }
 0x1d6   : > { %6858 = vlog2.f32 %v2419_v60  ;;  %3520 = vperm.xlu1 %6616, %v3442_v1   ;;  %3555 = vperm.xlu0 %6617, %v7418_v38   ;;  %v2388_v60 = vmul.f32 %v9228_v59, %v2387_v58  ;;  %v9338_v14 = vpop.eup %6842  ;;  %v2385_v38 = vmul.f32 0.6931472, %v6841_v2  ;;  %v2422_v58 = vmul.f32 -0.5, %v9285_v6 }
 0x1d7   : > { %6860 = vpow2.f32 %v2359_v11  ;;  %v9328_v30 = vpop.permute.xlu1 %2620  ;;  %v2395_v11 = vmul.f32 -0.5, %v9269_v61  ;;  %v9349_v45 = vpop.eup %6844  ;;  %v2428_v2 = vadd.f32 1.0, %v9310_v15  ;;  %v2525_v12 = vsel %vm2269_vm0, %v9104_v33, %v2509_v28 }
 0x1d8   : > { %v9336_v1 = vpop.permute.xlu0 %2635  ;;  %6862 = vpow2.f32 %v2363_v5  ;;  %v2391_v5 = vsel %vm9322_vm3, %v2388_v60, %v2385_v38  ;;  %v2425_v60 = vand.u32 2147483647, %v9285_v6  ;;  %v2455_v33 = vadd.f32 1.0, %v9315_v50 }
 0x1d9   : > { %6864 = vlog2.f32 %v2410_v7  ;;  %v3446_v7 = vld [vmem:[%s7787_s28 + $0x38] sm:$0xff]  ;;  %v2511_v0 = vadd.f32 %v2391_v5, %v2255_v16  ;;  %v2396_v63 = vadd.f32 1.0, %v2395_v11  ;;  %vm9379_vm9 = vcmp.lt.f32.partialorder %v2398_v21, 0.0004427343  ;;  %v7420_v21 = vld [vmem:[%s7787_s28 + $0x70] sm:$0xff] }
 0x1da   : > { %3530 = vperm.xlu1 %6616, %v3444_v44   ;;  %6866 = vlog2.f32 %v2437_v51  ;;  %3565 = vperm.xlu0 %6617, %v7419_v32   ;;  %v2406_v32 = vmul.f32 %v9262_v18, %v2405_v49  ;;  %v2423_v5 = vadd.f32 1.0, %v2422_v58  ;;  %v2413_v18 = vmul.f32 -0.5, %v9290_v24  ;;  %v3448_v58 = vld [vmem:[%s7787_s28 + $0x48] sm:$0xff] }
 0x1db   : > { %v9358_v52 = vpop.permute.xlu1 %2630  ;;  %6868 = vlog2.f32 %v2428_v2  ;;  %v2527_v49 = vsel %vm2271_vm2, %v9123_v34, %v2511_v0  ;;  %vm2275_vm10 = vcmp.ne.f32.partialorder %v9170_v37, %v9170_v37  ;;  %vm9400_vm11 = vcmp.lt.f32.partialorder %v2425_v60, 0.0004427343  ;;  %v3423_v34 = vld [vmem:[%s7855_s12] sm:$0xff] }
 0x1dc   : > { %v9368_v51 = vpop.permute.xlu0 %2645  ;;  %6870 = vlog2.f32 %v2525_v12  ;;  %v2416_v59 = vand.u32 2147483647, %v9290_v24  ;;  %v2424_v20 = vmul.f32 %v9285_v6, %v2423_v5  ;;  %vm2274_vm12 = vcmp.ne.f32.partialorder %v9180_v25, %v9180_v25  ;;  %v3425_v6 = vld [vmem:[%s7855_s12 + $0x10] sm:$0xff] }
 0x1dd   : > { %v6847_v44 = vpop.eup %6846  ;;  %6872 = vlog2.f32 %v2455_v33  ;;  %v2458_v12 = vmul.f32 -0.5, %v9315_v50  ;;  %vm2277_vm0 = vcmp.ne.f32.partialorder %v9183_v62, %v9183_v62  ;;  %vm2276_vm1 = vcmp.ne.f32.partialorder %v9191_v10, %v9191_v10 }
 0x1de   : > { %v6849_v38 = vpop.eup %6848  ;;  %1964 = vst [vmem:[%s8862_s13 + $0x1] sm:$0x1] %v6847_v44  ;;  %3540 = vperm.xlu1 %6616, %v3446_v7   ;;  %v2440_v44 = vmul.f32 -0.5, %v9301_v56  ;;  %3575 = vperm.xlu0 %6617, %v7420_v21   ;;  %v2397_v7 = vmul.f32 %v9269_v61, %v2396_v63  ;;  %v2431_v61 = vmul.f32 -0.5, %v9310_v15  ;;  %6874 = vlog2.f32 %v2527_v49 }
 0x1df   : > { %v6851_v28 = vpop.eup %6850  ;;  %v2376_v16 = vmul.f32 0.6931472, %v6849_v38  ;;  %v9392_v38 = vpop.permute.xlu1 %2640  ;;  %vm9454_vm13 = vcmp.lt.f32.partialorder %v2416_v59, 0.0004427343  ;;  %vm2279_vm2 = vcmp.ne.f32.partialorder %v9193_v29, %v9193_v29 }
 0x1e0   : > { %v9384_v17 = vpop.eup %6852  ;;  %v2403_v2 = vmul.f32 0.6931472, %v6851_v28 }
 0x1e1   : > { %v2382_v41 = vsel %vm9343_vm5, %v2379_v57, %v2376_v16  ;;  %v6855_v0 = vpop.eup %6854  ;;  %v9411_v57 = vpop.permute.xlu0 %2776  ;;  %v2446_v16 = vadd.f32 1.0, %v9338_v14 }
 0x1e2   : > { %v2510_v28 = vadd.f32 %v2382_v41, %v2254_v4  ;;  %v2409_v21 = vsel %vm9372_vm7, %v2406_v32, %v2403_v2  ;;  %v9413_v63 = vpop.eup %6856  ;;  %v2394_v33 = vmul.f32 0.6931472, %v6855_v0  ;;  %3550 = vperm.xlu1 %6616, %v3448_v58   ;;  %v2414_v32 = vadd.f32 1.0, %v2413_v18  ;;  %3601 = vperm.xlu0 %6617, %v3423_v34  }
 0x1e3   : > { %v2513_v60 = vadd.f32 %v2409_v21, %v2257_v26  ;;  %v6859_v4 = vpop.eup %6858  ;;  %v2441_v2 = vadd.f32 1.0, %v2440_v44  ;;  %v9423_v49 = vpop.permute.xlu1 %2650  ;;  %v2443_v18 = vand.u32 2147483647, %v9301_v56  ;;  %v2434_v44 = vand.u32 2147483647, %v9310_v15 }
 0x1e4   : > { %v2526_v41 = vsel %vm2270_vm4, %v9145_v36, %v2510_v28  ;;  %v9426_v26 = vpop.eup %6860  ;;  %v2400_v0 = vsel %vm9379_vm9, %v2397_v7, %v2394_v33  ;;  %v2421_v36 = vmul.f32 0.6931472, %v6859_v4  ;;  %v2432_v7 = vadd.f32 1.0, %v2431_v61  ;;  %v3452_v61 = vld [vmem:[%s7787_s28 + $0x68] sm:$0xff]  ;;  %v3429_v4 = vld [vmem:[%s7855_s12 + $0x30] sm:$0xff] }
 0x1e5   : > { %6876 = vlog2.f32 %v2526_v41  ;;  %v2529_v58 = vsel %vm2273_vm6, %v9150_v47, %v2513_v60  ;;  %v2512_v5 = vadd.f32 %v2400_v0, %v2256_v48  ;;  %v9441_v34 = vpop.permute.xlu0 %2791  ;;  %v9443_v47 = vpop.eup %6862  ;;  %v2473_v28 = vadd.f32 1.0, %v9349_v45 }
 0x1e6   : > { %6878 = vlog2.f32 %v2529_v58  ;;  %v2427_v11 = vsel %vm9400_vm11, %v2424_v20, %v2421_v36  ;;  %3560 = vperm.xlu1 %6616, %v3450_v42   ;;  %v6865_v21 = vpop.eup %6864  ;;  %v12633_v60 = vmax.f32 %v9170_v37, 0.0  ;;  %3611 = vperm.xlu0 %6617, %v3425_v6   ;;  %v2415_v41 = vmul.f32 %v9290_v24, %v2414_v32 }
 0x1e7   : > { %6880 = vlog2.f32 %v2446_v16  ;;  %v2528_v48 = vsel %vm2272_vm8, %v9153_v54, %v2512_v5  ;;  %v6867_v16 = vpop.eup %6866  ;;  %v2412_v42 = vmul.f32 0.6931472, %v6865_v21  ;;  %v2442_v20 = vmul.f32 %v9301_v56, %v2441_v2  ;;  %v3427_v54 = vld [vmem:[%s7855_s12 + $0x20] sm:$0xff] }
 0x1e8   : > { %v2515_v33 = vadd.f32 %v2427_v11, %v12633_v60  ;;  %6882 = vlog2.f32 %v2528_v48  ;;  %v9462_v58 = vpop.permute.xlu1 %2781  ;;  %v2439_v0 = vmul.f32 0.6931472, %v6867_v16  ;;  %v2449_v36 = vmul.f32 -0.5, %v9338_v14  ;;  %v6869_v5 = vpop.eup %6868  ;;  %v3454_v48 = vld [vmem:[%s7787_s28 + $0x78] sm:$0xff] }
 0x1e9   : > { %6884 = vlog2.f32 %v2473_v28  ;;  %v9470_v6 = vpop.permute.xlu0 %2801  ;;  %v2418_v24 = vsel %vm9454_vm13, %v2415_v41, %v2412_v42  ;;  %vm2444_vm14 = vcmp.lt.f32.partialorder %v2443_v18, 0.0004427343  ;;  %v2433_v56 = vmul.f32 %v9310_v15, %v2432_v7  ;;  %v6871_v60 = vpop.eup %6870 }
 0x1ea   : > { %v2531_v59 = vsel %vm2275_vm10, %v9170_v37, %v2515_v33  ;;  %vm9475_vm15 = vcmp.lt.f32.partialorder %v2434_v44, 0.0004427343  ;;  %3570 = vperm.xlu1 %6616, %v3452_v61   ;;  %v12638_v37 = vmax.f32 %v9180_v25, 0.0  ;;  %v2445_v11 = vsel %vm2444_vm14, %v2442_v20, %v2439_v0  ;;  %3621 = vperm.xlu0 %6617, %v3427_v54   ;;  %v6873_v61 = vpop.eup %6872 }
 0x1eb   : > { %v2430_v28 = vmul.f32 0.6931472, %v6869_v5  ;;  %v2459_v21 = vadd.f32 1.0, %v2458_v12  ;;  %6886 = vlog2.f32 %v2531_v59  ;;  %v12639_v18 = vmax.f32 %v9183_v62, 0.0 }
 0x1ec   : > { %v2514_v2 = vadd.f32 %v2418_v24, %v12638_v37  ;;  %v2461_v15 = vand.u32 2147483647, %v9315_v50  ;;  %v2464_v44 = vadd.f32 1.0, %v9384_v17  ;;  %v9486_v7 = vpop.permute.xlu1 %2786  ;;  %v2450_v42 = vadd.f32 1.0, %v2449_v36 }
 0x1ed   : > { %v2517_v33 = vadd.f32 %v2445_v11, %v12639_v18  ;;  %v2436_v16 = vsel %vm9475_vm15, %v2433_v56, %v2430_v28  ;;  %v9497_v41 = vpop.permute.xlu0 %2811  ;;  %v12640_v20 = vmax.f32 %v9191_v10, 0.0  ;;  %v2457_v59 = vmul.f32 0.6931472, %v6873_v61  ;;  %v3424_v56 = vld [vmem:[%s7855_s12 + $0x8] sm:$0xff] }
 0x1ee   : > { %v2530_v12 = vsel %vm2274_vm12, %v9180_v25, %v2514_v2  ;;  %3580 = vperm.xlu1 %6616, %v3454_v48   ;;  %v6875_v25 = vpop.eup %6874  ;;  %v2542_v0 = vmul.f32 0.6931472, %v6871_v60  ;;  %v2460_v36 = vmul.f32 %v9315_v50, %v2459_v21  ;;  %v2476_v24 = vmul.f32 -0.5, %v9349_v45  ;;  %3631 = vperm.xlu0 %6617, %v3429_v4  }
 0x1ef   : > { %6888 = vlog2.f32 %v2530_v12  ;;  %v2516_v54 = vadd.f32 %v2436_v16, %v12640_v20  ;;  %v2533_v5 = vsel %vm2277_vm0, %v9183_v62, %v2517_v33  ;;  %vm9510_vm3 = vcmp.lt.f32.partialorder %v2461_v15, 0.0004427343  ;;  %v3431_v62 = vld [vmem:[%s7855_s12 + $0x40] sm:$0xff] }
 0x1f0   : > { %v2452_v2 = vand.u32 2147483647, %v9338_v14  ;;  %6890 = vlog2.f32 %v2464_v44  ;;  %v9515_v11 = vpop.permute.xlu1 %2796  ;;  %v2463_v50 = vsel %vm9510_vm3, %v2460_v36, %v2457_v59  ;;  %v2451_v21 = vmul.f32 %v9338_v14, %v2450_v42  ;;  %v3426_v14 = vld [vmem:[%s7855_s12 + $0x18] sm:$0xff] }
 0x1f1   : > { %v2532_v32 = vsel %vm2276_vm1, %v9191_v10, %v2516_v54  ;;  %v2491_v10 = vadd.f32 1.0, %v9413_v63  ;;  %v9522_v48 = vpop.permute.xlu0 %2821  ;;  %v2546_v18 = vmul.f32 0.6931472, %v6875_v25  ;;  %v2479_v15 = vand.u32 2147483647, %v9349_v45 }
 0x1f2   : > { %v6877_v28 = vpop.eup %6876  ;;  %6892 = vlog2.f32 %v2532_v32  ;;  %3606 = vperm.xlu1 %6616, %v3424_v56   ;;  %v2653_v4 = vsub.f32 %v2542_v0, %v9219_v27  ;;  %v2477_v61 = vadd.f32 1.0, %v2476_v24  ;;  %v2482_v12 = vadd.f32 1.0, %v9426_v26  ;;  %3641 = vperm.xlu0 %6617, %v3431_v62  }
 0x1f3   : > { %v6879_v60 = vpop.eup %6878  ;;  %v2544_v33 = vmul.f32 0.6931472, %v6877_v28  ;;  %6894 = vlog2.f32 %v2533_v5  ;;  %v12643_v42 = vmax.f32 %v9193_v29, 0.0  ;;  %v2467_v59 = vmul.f32 -0.5, %v9384_v17  ;;  %v3433_v5 = vld [vmem:[%s7855_s12 + $0x50] sm:$0xff] }
 0x1f4   : > { %v6881_v44 = vpop.eup %6880  ;;  %6896 = vlog2.f32 %v2491_v10  ;;  %v9532_v25 = vpop.permute.xlu1 %2806  ;;  %v2550_v56 = vmul.f32 0.6931472, %v6879_v60  ;;  %vm2278_vm4 = vcmp.ne.f32.partialorder %v9204_v8, %v9204_v8  ;;  %vm2453_vm5 = vcmp.lt.f32.partialorder %v2452_v2, 0.0004427343  ;;  %v3428_v2 = vld [vmem:[%s7855_s12 + $0x28] sm:$0xff] }
 0x1f5   : > { %v2654_v16 = vsub.f32 %v2544_v33, %v9244_v39  ;;  %v2519_v20 = vadd.f32 %v2463_v50, %v12643_v42  ;;  %v2448_v54 = vmul.f32 0.6931472, %v6881_v44  ;;  %v6883_v36 = vpop.eup %6882  ;;  %6898 = vlog2.f32 %v2482_v12  ;;  %v9537_v27 = vpop.permute.xlu0 %2831 }
 0x1f6   : > { %v6885_v39 = vpop.eup %6884  ;;  %v2655_v0 = vsub.f32 %v2546_v18, %v9232_v35  ;;  %v2548_v32 = vmul.f32 0.6931472, %v6883_v36  ;;  %3616 = vperm.xlu1 %6616, %v3426_v14   ;;  %v12644_v62 = vmax.f32 %v9204_v8, 0.0  ;;  %v2478_v10 = vmul.f32 %v9349_v45, %v2477_v61  ;;  %3651 = vperm.xlu0 %6617, %v3433_v5   ;;  %v3430_v5 = vld [vmem:[%s7855_s12 + $0x38] sm:$0xff] }
 0x1f7   : > { %v2669_v24 = vadd.f32 %v2654_v16, %v2653_v4  ;;  %v2454_v37 = vsel %vm2453_vm5, %v2451_v21, %v2448_v54  ;;  %v2475_v50 = vmul.f32 0.6931472, %v6885_v39  ;;  %vm9543_vm6 = vcmp.lt.f32.partialorder %v2479_v15, 0.0004427343  ;;  %v3435_v4 = vld [vmem:[%s7855_s12 + $0x60] sm:$0xff] }
 0x1f8   : > { %v2518_v28 = vadd.f32 %v2454_v37, %v12644_v62  ;;  %v2656_v33 = vsub.f32 %v2548_v32, %v9259_v3  ;;  %v2535_v21 = vsel %vm2279_vm2, %v9193_v29, %v2519_v20  ;;  %v2468_v18 = vadd.f32 1.0, %v2467_v59  ;;  %v9553_v44 = vpop.permute.xlu1 %2816  ;;  %v6887_v12 = vpop.eup %6886 }
 0x1f9   : > { %v2670_v35 = vadd.f32 %v2669_v24, %v2655_v0  ;;  %v2657_v45 = vsub.f32 %v2550_v56, %v9247_v19  ;;  %v2481_v3 = vsel %vm9543_vm6, %v2478_v10, %v2475_v50  ;;  %v2494_v61 = vmul.f32 -0.5, %v9413_v63  ;;  %v9564_v14 = vpop.permute.xlu0 %2841  ;;  %v3437_v24 = vld [vmem:[%s7855_s12 + $0x70] sm:$0xff] }
 0x1fa   : > { %v2534_v15 = vsel %vm2278_vm4, %v9204_v8, %v2518_v28  ;;  %v12647_v16 = vmax.f32 %v9211_v22, 0.0  ;;  %v2485_v19 = vmul.f32 -0.5, %v9426_v26  ;;  %3626 = vperm.xlu1 %6616, %v3428_v2   ;;  %v2266_v54 = vmax.f32 %v9238_v40, 0.0  ;;  %3661 = vperm.xlu0 %6617, %v3435_v4  }
 0x1fb   : > { %v2671_v29 = vadd.f32 %v2670_v35, %v2656_v33  ;;  %6900 = vlog2.f32 %v2534_v15  ;;  %v2470_v8 = vand.u32 2147483647, %v9384_v17  ;;  %v2500_v59 = vadd.f32 1.0, %v9443_v47 }
 0x1fc   : > { %v2521_v42 = vadd.f32 %v2481_v3, %v12647_v16  ;;  %v6889_v20 = vpop.eup %6888  ;;  %6902 = vlog2.f32 %v2535_v21  ;;  %v2554_v36 = vmul.f32 0.6931472, %v6887_v12  ;;  %vm2281_vm7 = vcmp.ne.f32.partialorder %v9211_v22, %v9211_v22  ;;  %v9575_v0 = vpop.permute.xlu1 %2826  ;;  %v3432_v21 = vld [vmem:[%s7855_s12 + $0x48] sm:$0xff] }
 0x1fd   : > { %v2552_v56 = vmul.f32 0.6931472, %v6889_v20  ;;  %v2672_v39 = vadd.f32 %v2671_v29, %v2657_v45  ;;  %v6891_v32 = vpop.eup %6890  ;;  %v2469_v62 = vmul.f32 %v9384_v17, %v2468_v18  ;;  %v2495_v28 = vadd.f32 1.0, %v2494_v61  ;;  %v9581_v10 = vpop.permute.xlu0 %2851 }
 0x1fe   : > { %v2537_v37 = vsel %vm2281_vm7, %v9211_v22, %v2521_v42  ;;  %v2497_v50 = vand.u32 2147483647, %v9413_v63  ;;  %v2466_v33 = vmul.f32 0.6931472, %v6891_v32  ;;  %v2486_v35 = vadd.f32 1.0, %v2485_v19  ;;  %3636 = vperm.xlu1 %6616, %v3430_v5   ;;  %3671 = vperm.xlu0 %6617, %v3437_v24  }
 0x1ff   : > { %v6893_v60 = vpop.eup %6892  ;;  %v2658_v2 = vsub.f32 %v2552_v56, %v9277_v31  ;;  %6904 = vlog2.f32 %v2500_v59  ;;  %vm2471_vm8 = vcmp.lt.f32.partialorder %v2470_v8, 0.0004427343  ;;  %v2488_v22 = vand.u32 2147483647, %v9426_v26  ;;  %v3455_v31 = vld [vmem:[%s7925_s10] sm:$0xff] }
 0x200   : > { %v6895_v4 = vpop.eup %6894  ;;  %v2556_v12 = vmul.f32 0.6931472, %v6893_v60  ;;  %v2659_v18 = vsub.f32 %v2554_v36, %v9267_v55  ;;  %6906 = vlog2.f32 %v2537_v37  ;;  %v2472_v15 = vsel %vm2471_vm8, %v2469_v62, %v2466_v33  ;;  %v9587_v3 = vpop.permute.xlu1 %2836  ;;  %v2759_v62 = vld [vmem:[%s8050_s29 + $0x8] sm:$0xff] }
 0x201   : > { %v6897_v17 = vpop.eup %6896  ;;  %v2673_v45 = vadd.f32 %v2672_v39, %v2658_v2  ;;  %v12648_v29 = vmax.f32 %v9224_v43, 0.0  ;;  %v2496_v19 = vmul.f32 %v9413_v63, %v2495_v28  ;;  %v2878_v20 = vpop.permute.xlu0 %2877  ;;  %vm2280_vm9 = vcmp.ne.f32.partialorder %v9224_v43, %v9224_v43  ;;  %v2761_v39 = vld [vmem:[%s8050_s29 + $0x18] sm:$0xff] }
 0x202   : > { %v2660_v61 = vsub.f32 %v2556_v12, %v9298_v23  ;;  %v2493_v42 = vmul.f32 0.6931472, %v6897_v17  ;;  %v6899_v8 = vpop.eup %6898  ;;  %vm2498_vm10 = vcmp.lt.f32.partialorder %v2497_v50, 0.0004427343  ;;  %v2487_v55 = vmul.f32 %v9426_v26, %v2486_v35  ;;  %3646 = vperm.xlu1 %6616, %v3432_v21   ;;  %4033 = vperm.xlu0 %6617, %v3455_v31   ;;  %v3434_v63 = vld [vmem:[%s7855_s12 + $0x58] sm:$0xff]  ;;  %v2743_v26 = vld [vmem:[%s8055_s21 + $0x8] sm:$0xff] }
 0x203   : > { %v2520_v16 = vadd.f32 %v2472_v15, %v12648_v29  ;;  %v2674_v59 = vadd.f32 %v2673_v45, %v2659_v18  ;;  %v2558_v23 = vmul.f32 0.6931472, %v6895_v4  ;;  %v2484_v56 = vmul.f32 0.6931472, %v6899_v8  ;;  %v2745_v2 = vld [vmem:[%s8055_s21 + $0x18] sm:$0xff]  ;;  %v2742_v4 = vld [vmem:[%s8055_s21] sm:$0xff] }
 0x204   : > { %v2499_v36 = vsel %vm2498_vm10, %v2496_v19, %v2493_v42  ;;  %v12649_v24 = vmax.f32 %v9234_v46, 0.0  ;;  %vm2489_vm11 = vcmp.lt.f32.partialorder %v2488_v22, 0.0004427343  ;;  %v2503_v37 = vmul.f32 -0.5, %v9443_v47  ;;  %v9605_v28 = vpop.permute.xlu1 %2846  ;;  %v2758_v18 = vld [vmem:[%s8050_s29] sm:$0xff]  ;;  %v7421_v31 = vld [vmem:[%s7925_s10 + $0x10] sm:$0xff] }
 0x205   : > { %v2536_v5 = vsel %vm2280_vm9, %v9224_v43, %v2520_v16  ;;  %v2675_v43 = vadd.f32 %v2674_v59, %v2660_v61  ;;  %vm2283_vm12 = vcmp.ne.f32.partialorder %v9234_v46, %v9234_v46  ;;  %v2490_v50 = vsel %vm2489_vm11, %v2487_v55, %v2484_v56  ;;  %v2888_v60 = vpop.permute.xlu0 %2887  ;;  %v3436_v61 = vld [vmem:[%s7855_s12 + $0x68] sm:$0xff]  ;;  %v7422_v56 = vld [vmem:[%s7925_s10 + $0x20] sm:$0xff] }
 0x206   : > { %6908 = vlog2.f32 %v2536_v5  ;;  %v2523_v32 = vadd.f32 %v2499_v36, %v12649_v24  ;;  %vm2282_vm13 = vcmp.ne.f32.partialorder %v9238_v40, %v9238_v40  ;;  %v2522_v33 = vadd.f32 %v2490_v50, %v2266_v54  ;;  %3656 = vperm.xlu1 %6616, %v3434_v63   ;;  %4043 = vperm.xlu0 %6617, %v7421_v31   ;;  %v2760_v50 = vld [vmem:[%s8050_s29 + $0x10] sm:$0xff] }
 0x207   : > { %v2506_v35 = vand.u32 2147483647, %v9443_v47  ;;  %v2857_v21 = vmin.f32 %v9441_v34, %v2761_v39  ;;  %v2661_v22 = vsub.f32 %v2558_v23, %v9283_v13  ;;  %v2855_v45 = vmin.f32 %v9462_v58, %v2759_v62  ;;  %v3438_v39 = vld [vmem:[%s7855_s12 + $0x78] sm:$0xff]  ;;  %v2744_v62 = vld [vmem:[%s8055_s21 + $0x10] sm:$0xff] }
 0x208   : > { %v6901_v12 = vpop.eup %6900  ;;  %v2539_v17 = vsel %vm2283_vm12, %v9234_v46, %v2523_v32  ;;  %v2951_v15 = vmax.f32 %v2878_v20, %v2743_v26  ;;  %v2538_v34 = vsel %vm2282_vm13, %v9238_v40, %v2522_v33  ;;  %v2504_v16 = vadd.f32 1.0, %v2503_v37  ;;  %v2873_v13 = vpop.permute.xlu1 %2872  ;;  %v2747_v40 = vld [vmem:[%s8055_s21 + $0x28] sm:$0xff] }
 0x209   : > { %v6903_v54 = vpop.eup %6902  ;;  %v2560_v29 = vmul.f32 0.6931472, %v6901_v12  ;;  %v2953_v42 = vmax.f32 %v2888_v60, %v2745_v2  ;;  %v2676_v46 = vadd.f32 %v2675_v43, %v2661_v22  ;;  %6910 = vlog2.f32 %v2538_v34  ;;  %v2898_v20 = vpop.permute.xlu0 %2897  ;;  %v2763_v32 = vld [vmem:[%s8050_s29 + $0x28] sm:$0xff] }
 0x20a   : > { %v9627_v58 = vsub.f32 %v2855_v45, %v2951_v15  ;;  %v2950_v19 = vmax.f32 %v2873_v13, %v2742_v4  ;;  %6912 = vlog2.f32 %v2539_v17  ;;  %v2854_v59 = vmin.f32 %v9411_v57, %v2758_v18  ;;  %3666 = vperm.xlu1 %6616, %v3436_v61   ;;  %4053 = vperm.xlu0 %6617, %v7422_v56   ;;  %v2749_v18 = vld [vmem:[%s8055_s21 + $0x38] sm:$0xff]  ;;  %v3456_v45 = vld [vmem:[%s7925_s10 + $0x8] sm:$0xff] }
 0x20b   : > { %v2662_v8 = vsub.f32 %v2560_v29, %v9328_v30  ;;  %v9631_v55 = vsub.f32 %v2857_v21, %v2953_v42  ;;  %v2562_v5 = vmul.f32 0.6931472, %v6903_v54  ;;  %v2268_v63 = vmax.f32 %v9254_v9, 0.0  ;;  %v2746_v54 = vld [vmem:[%s8055_s21 + $0x20] sm:$0xff]  ;;  %v2767_v13 = vld [vmem:[%s8050_s29 + $0x48] sm:$0xff] }
 0x20c   : > { %v6905_v23 = vpop.eup %6904  ;;  %v3031_v36 = vand.u32 2147483647, %v9627_v58  ;;  %v2505_v30 = vmul.f32 %v9443_v47, %v2504_v16  ;;  %v9640_v57 = vsub.f32 %v2854_v59, %v2950_v19  ;;  %v2883_v37 = vpop.permute.xlu1 %2882  ;;  %vm2507_vm14 = vcmp.lt.f32.partialorder %v2506_v35, 0.0004427343  ;;  %v7423_v35 = vld [vmem:[%s7925_s10 + $0x30] sm:$0xff]  ;;  %v2765_v16 = vld [vmem:[%s8050_s29 + $0x38] sm:$0xff] }
 0x20d   : > { %v2502_v24 = vmul.f32 0.6931472, %v6905_v23  ;;  %v6907_v26 = vpop.eup %6906  ;;  %v2677_v43 = vadd.f32 %v2676_v46, %v2662_v8  ;;  %v3033_v60 = vand.u32 2147483647, %v9631_v55  ;;  %v2955_v2 = vmax.f32 %v2898_v20, %v2747_v40  ;;  %v2908_v33 = vpop.permute.xlu0 %2907  ;;  %v2762_v42 = vld [vmem:[%s8050_s29 + $0x20] sm:$0xff] }
 0x20e   : > { %v3047_v4 = vsub.f32 0.0, %v3031_v36  ;;  %3676 = vperm.xlu1 %6616, %v3438_v39   ;;  %v2663_v47 = vsub.f32 %v2562_v5, %v9308_v53  ;;  %v2859_v22 = vmin.f32 %v9470_v6, %v2763_v32  ;;  %v2952_v17 = vmax.f32 %v2883_v37, %v2744_v62  ;;  %4063 = vperm.xlu0 %6617, %v7423_v35   ;;  %v7424_v5 = vld [vmem:[%s7925_s10 + $0x40] sm:$0xff]  ;;  %v3458_v36 = vld [vmem:[%s7925_s10 + $0x18] sm:$0xff]  ;;  %v2748_v37 = vld [vmem:[%s8055_s21 + $0x30] sm:$0xff] }
 0x20f   : > { %v2508_v21 = vsel %vm2507_vm14, %v2505_v30, %v2502_v24  ;;  %v2566_v15 = vmul.f32 0.6931472, %v6907_v26  ;;  %vm2284_vm15 = vcmp.ne.f32.partialorder %v9254_v9, %v9254_v9  ;;  %v2856_v31 = vmin.f32 %v9486_v7, %v2760_v50  ;;  %v2764_v30 = vld [vmem:[%s8050_s29 + $0x30] sm:$0xff]  ;;  %v2769_v26 = vld [vmem:[%s8050_s29 + $0x58] sm:$0xff]  ;;  %v3460_v35 = vld [vmem:[%s7925_s10 + $0x28] sm:$0xff] }
 0x210   : > { %v2524_v12 = vadd.f32 %v2508_v21, %v2268_v63  ;;  %v3030_v61 = vand.u32 2147483647, %v9640_v57  ;;  %v2893_v53 = vpop.permute.xlu1 %2892  ;;  %v2678_v6 = vadd.f32 %v2677_v43, %v2663_v47  ;;  %v3049_v46 = vsub.f32 0.0, %v3033_v60 }
 0x211   : > { %v9659_v19 = vsub.f32 %v2859_v22, %v2955_v2  ;;  %v2918_v20 = vpop.permute.xlu0 %2917  ;;  %v3064_v8 = vmul.f32 1.442695, %v3047_v4  ;;  %v2957_v59 = vmax.f32 %v2908_v33, %v2749_v18  ;;  %v9661_v40 = vsub.f32 %v2856_v31, %v2952_v17  ;;  %v2766_v33 = vld [vmem:[%s8050_s29 + $0x40] sm:$0xff]  ;;  %v2753_v17 = vld [vmem:[%s8055_s21 + $0x58] sm:$0xff]  ;;  %v7425_v18 = vld [vmem:[%s7925_s10 + $0x50] sm:$0xff] }
 0x212   : > { %v2540_v34 = vsel %vm2284_vm15, %v9254_v9, %v2524_v12  ;;  %4038 = vperm.xlu1 %6616, %v3456_v45   ;;  %v2954_v23 = vmax.f32 %v2893_v53, %v2746_v54  ;;  %v2751_v9 = vld [vmem:[%s8055_s21 + $0x48] sm:$0xff]  ;;  %4073 = vperm.xlu0 %6617, %v7424_v5   ;;  %v2861_v39 = vmin.f32 %v9497_v41, %v2765_v16  ;;  %v3068_v43 = vmul.f32 1.442695, %v3049_v46  ;;  %v2750_v16 = vld [vmem:[%s8055_s21 + $0x40] sm:$0xff]  ;;  %v2768_v46 = vld [vmem:[%s8050_s29 + $0x50] sm:$0xff] }
 0x213   : > { %v6909_v29 = vpop.eup %6908  ;;  %6914 = vlog2.f32 %v2540_v34  ;;  %v2858_v63 = vmin.f32 %v9515_v11, %v2762_v42  ;;  %v2863_v24 = vmin.f32 %v9522_v48, %v2767_v13  ;;  %v2665_v62 = vsub.f32 %v2566_v15, %v9336_v1  ;;  %v9677_v11 = vld [vmem:[%s8050_s29 + $0x68] sm:$0xff] }
 0x214   : > { %v2564_v7 = vmul.f32 0.6931472, %v6909_v29  ;;  %v2903_v32 = vpop.permute.xlu1 %2902  ;;  %v3046_v50 = vsub.f32 0.0, %v3030_v61  ;;  %v3035_v60 = vand.u32 2147483647, %v9659_v19  ;;  %6916 = vpow2.f32 %v3064_v8 }
 0x215   : > { %v9679_v48 = vsub.f32 %v2861_v39, %v2957_v59  ;;  %v2959_v21 = vmax.f32 %v2918_v20, %v2751_v9  ;;  %v3032_v47 = vand.u32 2147483647, %v9661_v40  ;;  %v9682_v12 = vsub.f32 %v2858_v63, %v2954_v23  ;;  %v7426_v59 = vld [vmem:[%s7925_s10 + $0x60] sm:$0xff]  ;;  %v2752_v23 = vld [vmem:[%s8055_s21 + $0x50] sm:$0xff]  ;;  %v3462_v9 = vld [vmem:[%s7925_s10 + $0x38] sm:$0xff] }
 0x216   : > { %v2664_v56 = vsub.f32 %v2564_v7, %v9358_v52  ;;  %v2928_v52 = vpop.permute.xlu0 %2927  ;;  %v6911_v2 = vpop.eup %6910  ;;  %4048 = vperm.xlu1 %6616, %v3458_v36   ;;  %v2956_v22 = vmax.f32 %v2903_v32, %v2748_v37  ;;  %4083 = vperm.xlu0 %6617, %v7425_v18   ;;  %v2860_v15 = vmin.f32 %v9532_v25, %v2764_v30  ;;  %v3051_v34 = vsub.f32 0.0, %v3035_v60  ;;  %v2755_v7 = vld [vmem:[%s8055_s21 + $0x68] sm:$0xff] }
 0x217   : > { %v6913_v1 = vpop.eup %6912  ;;  %v2568_v4 = vmul.f32 0.6931472, %v6911_v2  ;;  %v2865_v31 = vmin.f32 %v9537_v27, %v2769_v26  ;;  %v9689_v61 = vsub.f32 %v2863_v24, %v2959_v21  ;;  %v2862_v29 = vmin.f32 %v9553_v44, %v2766_v33  ;;  %v3464_v33 = vld [vmem:[%s7925_s10 + $0x48] sm:$0xff] }
 0x218   : > { %v2679_v41 = vadd.f32 %v2678_v6, %v2664_v56  ;;  %v2913_v53 = vpop.permute.xlu1 %2912  ;;  %v3062_v6 = vmul.f32 1.442695, %v3046_v50  ;;  %v2570_v13 = vmul.f32 0.6931472, %v6913_v1  ;;  %v2867_v25 = vmin.f32 %v9564_v14, %v9677_v11  ;;  %v2773_v1 = vld [vmem:[%s8050_s29 + $0x78] sm:$0xff] }
 0x219   : > { %v2666_v54 = vsub.f32 %v2568_v4, %v9392_v38  ;;  %v3037_v27 = vand.u32 2147483647, %v9679_v48  ;;  %v2961_v20 = vmax.f32 %v2928_v52, %v2753_v17  ;;  %6918 = vpow2.f32 %v3068_v43  ;;  %v2757_v43 = vld [vmem:[%s8055_s21 + $0x78] sm:$0xff] }
 0x21a   : > { %v2680_v45 = vadd.f32 %v2679_v41, %v2665_v62  ;;  %v2938_v42 = vpop.permute.xlu0 %2937  ;;  %4058 = vperm.xlu1 %6616, %v3460_v35   ;;  %v3048_v38 = vsub.f32 0.0, %v3032_v47  ;;  %v3034_v44 = vand.u32 2147483647, %v9682_v12  ;;  %v9700_v8 = vsub.f32 %v2860_v15, %v2956_v22  ;;  %4093 = vperm.xlu0 %6617, %v7426_v59  }
 0x21b   : > { %v3039_v14 = vand.u32 2147483647, %v9689_v61  ;;  %v9706_v36 = vsub.f32 %v2865_v31, %v2961_v20  ;;  %v2958_v56 = vmax.f32 %v2913_v53, %v2750_v16  ;;  %v2864_v63 = vmin.f32 %v9575_v0, %v2768_v46  ;;  %v7427_v0 = vld [vmem:[%s7925_s10 + $0x70] sm:$0xff]  ;;  %v2754_v53 = vld [vmem:[%s8055_s21 + $0x60] sm:$0xff] }
 0x21c   : > { %v2681_v5 = vadd.f32 %v2680_v45, %v2666_v54  ;;  %v2923_v39 = vpop.permute.xlu1 %2922  ;;  %6920 = vpow2.f32 %v3062_v6  ;;  %v3072_v24 = vmul.f32 1.442695, %v3051_v34  ;;  %v2963_v30 = vmax.f32 %v2938_v42, %v2755_v7  ;;  %v3466_v42 = vld [vmem:[%s7925_s10 + $0x58] sm:$0xff]  ;;  %v2772_v7 = vld [vmem:[%s8050_s29 + $0x70] sm:$0xff] }
 0x21d   : > { %v2667_v37 = vsub.f32 %v2570_v13, %v9368_v51  ;;  %v3053_v62 = vsub.f32 0.0, %v3037_v27  ;;  %v2960_v26 = vmax.f32 %v2923_v39, %v2752_v23  ;;  %v3066_v60 = vmul.f32 1.442695, %v3048_v38  ;;  %v7428_v27 = vld [vmem:[%s7787_s28] sm:$0xff] }
 0x21e   : > { %v2948_v32 = vpop.permute.xlu0 %2947  ;;  %4068 = vperm.xlu1 %6616, %v3462_v9   ;;  %v3050_v52 = vsub.f32 0.0, %v3034_v44  ;;  %v3036_v2 = vand.u32 2147483647, %v9700_v8  ;;  %v9712_v41 = vsub.f32 %v2862_v29, %v2958_v56  ;;  %4103 = vperm.xlu0 %6617, %v7427_v0   ;;  %v3055_v4 = vsub.f32 0.0, %v3039_v14 }
 0x21f   : > { %v2682_v21 = vadd.f32 %v2681_v5, %v2667_v37  ;;  %v3041_v51 = vand.u32 2147483647, %v9706_v36  ;;  %6922 = vpow2.f32 %v3072_v24  ;;  %v9719_v17 = vsub.f32 %v2867_v25, %v2963_v30  ;;  %v2770_v25 = vld [vmem:[%s8050_s29 + $0x60] sm:$0xff]  ;;  %v3468_v24 = vld [vmem:[%s7925_s10 + $0x68] sm:$0xff] }
 0x220   : > { %v6915_v50 = vpop.eup %6914  ;;  %v2933_v47 = vpop.permute.xlu1 %2932  ;;  %v3038_v22 = vand.u32 2147483647, %v9712_v41  ;;  %v2965_v18 = vmax.f32 %v2948_v32, %v2757_v43  ;;  %v3076_v15 = vmul.f32 1.442695, %v3053_v62  ;;  %v9724_v31 = vsub.f32 %v2864_v63, %v2960_v26  ;;  %v2756_v63 = vld [vmem:[%s8055_s21 + $0x70] sm:$0xff]  ;;  %v7429_v26 = vld [vmem:[%s7787_s28 + $0x18] sm:$0xff] }
 0x221   : > { %v2572_v11 = vmul.f32 0.6931472, %v6915_v50  ;;  %v9727_v54 = vpop.eup %6916  ;;  %v2869_v29 = vmin.f32 %v9581_v10, %v2773_v1  ;;  %v3070_v6 = vmul.f32 1.442695, %v3050_v52  ;;  %v3052_v34 = vsub.f32 0.0, %v3036_v2 }
 0x222   : > { %v9721_v35 = vpop.permute.xlu0 %3309  ;;  %4078 = vperm.xlu1 %6616, %v3464_v33   ;;  %v7602_v16 = vmov 5   ;;  %6924 = vpow2.f32 %v3066_v60  ;;  %v3057_v46 = vsub.f32 0.0, %v3041_v51  ;;  %v3054_v38 = vsub.f32 0.0, %v3038_v22  ;;  %v3470_v51 = vld [vmem:[%s7925_s10 + $0x78] sm:$0xff] }
 0x223   : > { %v2668_v45 = vsub.f32 %v2572_v11, %v9423_v49  ;;  %6618 = vset.pattern.permute.xlu0 %v7602_v16  ;;  %v3080_v49 = vmul.f32 1.442695, %v3055_v4  ;;  %v3043_v10 = vand.u32 2147483647, %v9719_v17  ;;  %v9736_v44 = vsub.f32 %v2869_v29, %v2965_v18 }
 0x224   : > { %4234 = vperm.xlu0 %6618, %v7428_v27   ;;  %v2943_v20 = vpop.permute.xlu1 %2942  ;;  %v2962_v59 = vmax.f32 %v2933_v47, %v2754_v53  ;;  %6926 = vpow2.f32 %v3076_v15  ;;  %v3040_v5 = vand.u32 2147483647, %v9724_v31  ;;  %v3103_v14 = vadd.f32 1.0, %v9727_v54 }
 0x225   : > { %v2683_v13 = vadd.f32 %v2682_v21, %v2668_v45  ;;  %v2866_v56 = vmin.f32 %v9587_v3, %v2770_v25  ;;  %6928 = vpow2.f32 %v3070_v6  ;;  %v3074_v39 = vmul.f32 1.442695, %v3052_v34  ;;  %v7430_v45 = vld [vmem:[%s7787_s28 + $0x28] sm:$0xff] }
 0x226   : > { %v9738_v23 = vpop.permute.xlu0 %3319  ;;  %4088 = vperm.xlu1 %6616, %v3466_v42   ;;  %v9745_v30 = vpop.eup %6918  ;;  %v2868_v37 = vmin.f32 %v9605_v28, %v2772_v7  ;;  %6930 = vpow2.f32 %v3080_v49  ;;  %v3084_v62 = vmul.f32 1.442695, %v3057_v46  ;;  %v3078_v50 = vmul.f32 1.442695, %v3054_v38 }
 0x227   : > { %v2684_v9 = vrot.slane %v2683_v13, 4  ;;  %v3059_v60 = vsub.f32 0.0, %v3043_v10  ;;  %v3045_v3 = vand.u32 2147483647, %v9736_v44  ;;  %v9752_v52 = vsub.f32 %v2866_v56, %v2962_v59  ;;  %v7434_v59 = vld [vmem:[%s7787_s28 + $0x68] sm:$0xff] }
 0x228   : > { %4249 = vperm.xlu0 %6618, %v7429_v26   ;;  %v9749_v43 = vpop.permute.xlu1 %3304  ;;  %v3056_v28 = vsub.f32 0.0, %v3040_v5  ;;  %6932 = vlog2.f32 %v3103_v14  ;;  %v2964_v11 = vmax.f32 %v2943_v20, %v2756_v63  ;;  %v2983_v21 = vmax.f32 %v9627_v58, 0.0  ;;  %v4169_v14 = vld [vmem:[%s7787_s28 + $0x8] sm:$0xff] }
 0x229   : > { %v2685_v32 = vadd.f32 %v2684_v9, %v2683_v13  ;;  %v9756_v0 = vpop.eup %6920  ;;  %v2985_v1 = vmax.f32 %v9631_v55, 0.0  ;;  %6934 = vpow2.f32 %v3074_v39  ;;  %v3121_v18 = vadd.f32 1.0, %v9745_v30  ;;  %v7431_v9 = vld [vmem:[%s7787_s28 + $0x38] sm:$0xff] }
 0x22a   : > { %v9754_v2 = vpop.permute.xlu0 %3329  ;;  %4098 = vperm.xlu1 %6616, %v3468_v24   ;;  %6936 = vpow2.f32 %v3084_v62  ;;  %v3088_v53 = vmul.f32 1.442695, %v3059_v60  ;;  %v3061_v29 = vsub.f32 0.0, %v3045_v3  ;;  %v3042_v6 = vand.u32 2147483647, %v9752_v52 }
 0x22b   : > { %v2686_v33 = vrot.slane %v2685_v32, 2  ;;  %v3094_v34 = vadd.f32 1.0, %v9756_v0  ;;  %6938 = vpow2.f32 %v3078_v50  ;;  %v3082_v49 = vmul.f32 1.442695, %v3056_v28 }
 0x22c   : > { %4259 = vperm.xlu0 %6618, %v7430_v45   ;;  %v9765_v15 = vpop.permute.xlu1 %3314  ;;  %v9771_v13 = vpop.eup %6922  ;;  %v9773_v46 = vsub.f32 %v2868_v37, %v2964_v11  ;;  %v3106_v7 = vmul.f32 -0.5, %v9727_v54  ;;  %6940 = vlog2.f32 %v3121_v18  ;;  %v3092_v39 = vmul.f32 1.442695, %v3061_v29  ;;  %v7432_v18 = vld [vmem:[%s7787_s28 + $0x48] sm:$0xff]  ;;  %v4170_v45 = vld [vmem:[%s7787_s28 + $0x10] sm:$0xff] }
 0x22d   : > { %v2687_v47 = vadd.f32 %v2686_v33, %v2685_v32  ;;  %6942 = vlog2.f32 %v3094_v34  ;;  %v3058_v63 = vsub.f32 0.0, %v3042_v6  ;;  %v3139_v24 = vadd.f32 1.0, %v9771_v13 }
 0x22e   : > { %v9769_v42 = vpop.permute.xlu0 %3339  ;;  %4108 = vperm.xlu1 %6616, %v3470_v51   ;;  %6944 = vpow2.f32 %v3088_v53  ;;  %v3044_v26 = vand.u32 2147483647, %v9773_v46  ;;  %v3107_v60 = vadd.f32 1.0, %v3106_v7  ;;  %v3124_v3 = vmul.f32 -0.5, %v9745_v30  ;;  %v4172_v51 = vld [vmem:[%s7787_s28 + $0x20] sm:$0xff] }
 0x22f   : > { %v2688_v25 = vrot.slane %v2687_v47, 1  ;;  %v9784_v56 = vpop.eup %6924  ;;  %6946 = vpow2.f32 %v3082_v49  ;;  %v3097_v33 = vmul.f32 -0.5, %v9756_v0  ;;  %v3086_v29 = vmul.f32 1.442695, %v3058_v63  ;;  %v7433_v49 = vld [vmem:[%s7787_s28 + $0x58] sm:$0xff] }
 0x230   : > { %4269 = vperm.xlu0 %6618, %v7431_v9   ;;  %v9781_v5 = vpop.permute.xlu1 %3324  ;;  %6948 = vlog2.f32 %v3139_v24  ;;  %v3109_v6 = vand.u32 2147483647, %v9727_v54  ;;  %v3127_v34 = vand.u32 2147483647, %v9745_v30  ;;  %v3060_v7 = vsub.f32 0.0, %v3044_v26 }
 0x231   : > { %v2689_v38 = vadd.f32 %v2688_v25, %v2687_v47  ;;  %v9792_v50 = vpop.eup %6926  ;;  %v3112_v47 = vadd.f32 1.0, %v9784_v56  ;;  %vm2999_vm0 = vcmp.ne.f32.partialorder %v9627_v58, %v9627_v58  ;;  %v3098_v63 = vadd.f32 1.0, %v3097_v33 }
 0x232   : > { %v9787_v32 = vpop.permute.xlu0 %3349  ;;  %6619 = vset.pattern.permute.xlu1 %v7602_v16  ;;  %v9796_v28 = vpop.eup %6928  ;;  %v3100_v24 = vand.u32 2147483647, %v9756_v0  ;;  %v3142_v26 = vmul.f32 -0.5, %v9771_v13  ;;  %vm9827_vm1 = vcmp.lt.f32.partialorder %v3109_v6, 0.0004427343  ;;  %vm2998_vm3 = vcmp.ne.f32.partialorder %v9640_v57, %v9640_v57 }
 0x233   : > { %v2691_v37 = vmul.f32 1.442695, %v2689_v38  ;;  %4239 = vperm.xlu1 %6619, %v4169_v14   ;;  %v9805_v53 = vpop.eup %6930  ;;  %v3157_v38 = vadd.f32 1.0, %v9792_v50  ;;  %v3108_v14 = vmul.f32 %v9727_v54, %v3107_v60  ;;  %vm9831_vm2 = vcmp.lt.f32.partialorder %v3127_v34, 0.0004427343 }
 0x234   : > { %4279 = vperm.xlu0 %6618, %v7432_v18   ;;  %v9802_v16 = vpop.permute.xlu1 %3334  ;;  %vm3001_vm4 = vcmp.ne.f32.partialorder %v9631_v55, %v9631_v55  ;;  %vm9848_vm5 = vcmp.lt.f32.partialorder %v3100_v24, 0.0004427343  ;;  %v3143_v54 = vadd.f32 1.0, %v3142_v26  ;;  %v3160_v27 = vmul.f32 -0.5, %v9792_v50 }
 0x235   : > { %6950 = vpow2.f32 %v2691_v37  ;;  %v6933_v9 = vpop.eup %6932  ;;  %vm3003_vm6 = vcmp.ne.f32.partialorder %v9659_v19, %v9659_v19  ;;  %vm3000_vm9 = vcmp.ne.f32.partialorder %v9661_v40, %v9661_v40  ;;  %vm3002_vm11 = vcmp.ne.f32.partialorder %v9682_v12, %v9682_v12 }
 0x236   : > { %6952 = vpow2.f32 %v3092_v39  ;;  %v9809_v25 = vpop.permute.xlu0 %3359  ;;  %v3125_v39 = vadd.f32 1.0, %v3124_v3  ;;  %v9817_v37 = vpop.eup %6934  ;;  %v3105_v18 = vmul.f32 0.6931472, %v6933_v9  ;;  %v3115_v3 = vmul.f32 -0.5, %v9784_v56 }
 0x237   : > { %6954 = vlog2.f32 %v3112_v47  ;;  %4244 = vperm.xlu1 %6619, %v4170_v45   ;;  %v3130_v47 = vadd.f32 1.0, %v9796_v28  ;;  %v9825_v62 = vpop.eup %6936  ;;  %v3118_v9 = vand.u32 2147483647, %v9784_v56  ;;  %vm3005_vm14 = vcmp.ne.f32.partialorder %v9679_v48, %v9679_v48 }
 0x238   : > { %6956 = vlog2.f32 %v3157_v38  ;;  %4289 = vperm.xlu0 %6618, %v7433_v49   ;;  %v9822_v11 = vpop.permute.xlu1 %3344  ;;  %v3111_v45 = vsel %vm9827_vm1, %v3108_v14, %v3105_v18  ;;  %v3090_v49 = vmul.f32 1.442695, %v3060_v7  ;;  %v9843_v6 = vpop.eup %6938  ;;  %v3126_v34 = vmul.f32 %v9745_v30, %v3125_v39  ;;  %v4174_v39 = vld [vmem:[%s7787_s28 + $0x30] sm:$0xff] }
 0x239   : > { %6958 = vpow2.f32 %v3086_v29  ;;  %v3175_v29 = vadd.f32 1.0, %v9805_v53  ;;  %v3145_v7 = vand.u32 2147483647, %v9771_v13  ;;  %v6941_v14 = vpop.eup %6940  ;;  %v3239_v18 = vadd.f32 %v3111_v45, %v2983_v21 }
 0x23a   : > { %v9836_v33 = vpop.permute.xlu0 %3369  ;;  %6960 = vlog2.f32 %v3130_v47  ;;  %v3099_v47 = vmul.f32 %v9756_v0, %v3098_v63  ;;  %v6943_v24 = vpop.eup %6942  ;;  %v3123_v10 = vmul.f32 0.6931472, %v6941_v14  ;;  %v3116_v20 = vadd.f32 1.0, %v3115_v3  ;;  %v4176_v14 = vld [vmem:[%s7787_s28 + $0x40] sm:$0xff]  ;;  %v4178_v3 = vld [vmem:[%s7787_s28 + $0x50] sm:$0xff] }
 0x23b   : > { %4254 = vperm.xlu1 %6619, %v4172_v51   ;;  %6962 = vlog2.f32 %v3175_v29  ;;  %v3148_v51 = vadd.f32 1.0, %v9817_v37  ;;  %v9865_v4 = vpop.eup %6944  ;;  %v3096_v0 = vmul.f32 0.6931472, %v6943_v24  ;;  %v3163_v21 = vand.u32 2147483647, %v9792_v50 }
 0x23c   : > { %4299 = vperm.xlu0 %6618, %v7434_v59   ;;  %v9858_v30 = vpop.permute.xlu1 %3354  ;;  %6964 = vpow2.f32 %v3090_v49  ;;  %v3133_v59 = vmul.f32 -0.5, %v9796_v28  ;;  %v9869_v63 = vpop.eup %6946  ;;  %v3129_v26 = vsel %vm9831_vm2, %v3126_v34, %v3123_v10  ;;  %vm9875_vm7 = vcmp.lt.f32.partialorder %v3145_v7, 0.0004427343  ;;  %v7435_v7 = vld [vmem:[%s7787_s28 + $0x78] sm:$0xff] }
 0x23d   : > { %vm9879_vm8 = vcmp.lt.f32.partialorder %v3118_v9, 0.0004427343  ;;  %6966 = vlog2.f32 %v3148_v51  ;;  %v6949_v49 = vpop.eup %6948  ;;  %v3255_v10 = vsel %vm2999_vm0, %v9627_v58, %v3239_v18  ;;  %v3241_v60 = vadd.f32 %v3129_v26, %v2985_v1 }
 0x23e   : > { %v9863_v22 = vpop.permute.xlu0 %3379  ;;  %v3102_v29 = vsel %vm9848_vm5, %v3099_v47, %v3096_v0  ;;  %v3144_v34 = vmul.f32 %v9771_v13, %v3143_v54  ;;  %v12661_v24 = vmax.f32 %v9640_v57, 0.0  ;;  %v3141_v18 = vmul.f32 0.6931472, %v6949_v49  ;;  %v4157_v13 = vld [vmem:[%s7855_s12 + $0x28] sm:$0xff] }
 0x23f   : > { %12656 = vst [vmem:[#allocation7_spill] sm:$0xff] %v9863_v22  ;;  %4264 = vperm.xlu1 %6619, %v4174_v39   ;;  %v3117_v1 = vmul.f32 %v9784_v56, %v3116_v20  ;;  %v3161_v51 = vadd.f32 1.0, %v3160_v27  ;;  %vm9904_vm10 = vcmp.lt.f32.partialorder %v3163_v21, 0.0004427343  ;;  %v3134_v47 = vadd.f32 1.0, %v3133_v59 }
 0x240   : > { %4309 = vperm.xlu0 %6618, %v7435_v7   ;;  %v9895_v9 = vpop.permute.xlu1 %3364  ;;  %v3238_v58 = vadd.f32 %v3102_v29, %v12661_v24  ;;  %v3178_v54 = vmul.f32 -0.5, %v9805_v53  ;;  %v3193_v0 = vadd.f32 1.0, %v9825_v62  ;;  %6968 = vlog2.f32 %v3255_v10  ;;  %v7436_v7 = vld [vmem:[%s7855_s12 + $0x8] sm:$0xff] }
 0x241   : > { %v3147_v20 = vsel %vm9875_vm7, %v3144_v34, %v3141_v18  ;;  %v3151_v56 = vmul.f32 -0.5, %v9817_v37  ;;  %v3257_v21 = vsel %vm3001_vm4, %v9631_v55, %v3241_v60  ;;  %v12664_v59 = vmax.f32 %v9659_v19, 0.0  ;;  %v4155_v55 = vld [vmem:[%s7855_s12 + $0x18] sm:$0xff] }
 0x242   : > { %v6951_v39 = vpop.eup %6950  ;;  %v9910_v26 = vpop.permute.xlu0 %3510  ;;  %v3254_v27 = vsel %vm2998_vm3, %v9640_v57, %v3238_v58  ;;  %v3181_v24 = vand.u32 2147483647, %v9805_v53  ;;  %v3166_v58 = vadd.f32 1.0, %v9843_v6  ;;  %vm3004_vm0 = vcmp.ne.f32.partialorder %v9700_v8, %v9700_v8 }
 0x243   : > { %v9901_v38 = vpop.eup %6952  ;;  %2693 = vst [vmem:[%s8862_s13 + $0x2] sm:$0x1] %v6951_v39  ;;  %4274 = vperm.xlu1 %6619, %v4176_v14   ;;  %6970 = vlog2.f32 %v3254_v27  ;;  %v3243_v10 = vadd.f32 %v3147_v20, %v12664_v59  ;;  %v3162_v39 = vmul.f32 %v9792_v50, %v3161_v51  ;;  %v3136_v14 = vand.u32 2147483647, %v9796_v28 }
 0x244   : > { %v6955_v49 = vpop.eup %6954  ;;  %4335 = vperm.xlu0 %6618, %v7436_v7   ;;  %v9926_v57 = vpop.permute.xlu1 %3374  ;;  %v3135_v27 = vmul.f32 %v9796_v28, %v3134_v47  ;;  %6972 = vlog2.f32 %v3193_v0  ;;  %v12665_v51 = vmax.f32 %v9661_v40, 0.0  ;;  %v3179_v7 = vadd.f32 1.0, %v3178_v54  ;;  %v4180_v47 = vld [vmem:[%s7787_s28 + $0x60] sm:$0xff] }
 0x245   : > { %v3114_v29 = vmul.f32 0.6931472, %v6955_v49  ;;  %v6957_v34 = vpop.eup %6956  ;;  %6974 = vlog2.f32 %v3257_v21  ;;  %v3152_v22 = vadd.f32 1.0, %v3151_v56  ;;  %v3259_v45 = vsel %vm3003_vm6, %v9659_v19, %v3243_v10 }
 0x246   : > { %v9934_v60 = vpop.eup %6958  ;;  %v3159_v49 = vmul.f32 0.6931472, %v6957_v34  ;;  %v9939_v20 = vpop.permute.xlu0 %3525  ;;  %6976 = vlog2.f32 %v3166_v58  ;;  %vm3137_vm12 = vcmp.lt.f32.partialorder %v3136_v14, 0.0004427343  ;;  %v3154_v56 = vand.u32 2147483647, %v9817_v37 }
 0x247   : > { %v3120_v18 = vsel %vm9879_vm8, %v3117_v1, %v3114_v29  ;;  %v6961_v50 = vpop.eup %6960  ;;  %4284 = vperm.xlu1 %6619, %v4178_v3   ;;  %v3211_v29 = vadd.f32 1.0, %v9865_v4  ;;  %v12667_v14 = vmax.f32 %v9682_v12, 0.0  ;;  %vm9970_vm13 = vcmp.lt.f32.partialorder %v3181_v24, 0.0004427343 }
 0x248   : > { %v3240_v59 = vadd.f32 %v3120_v18, %v12665_v51  ;;  %v3165_v28 = vsel %vm9904_vm10, %v3162_v39, %v3159_v49  ;;  %v3132_v1 = vmul.f32 0.6931472, %v6961_v50  ;;  %4345 = vperm.xlu0 %6618, %v4155_v55   ;;  %v6963_v0 = vpop.eup %6962  ;;  %v3180_v55 = vmul.f32 %v9805_v53, %v3179_v7 }
 0x249   : > { %v9957_v19 = vpop.permute.xlu1 %3505  ;;  %v3177_v10 = vmul.f32 0.6931472, %v6963_v0  ;;  %v9963_v34 = vpop.eup %6964  ;;  %v3196_v50 = vmul.f32 -0.5, %v9825_v62  ;;  %v3169_v51 = vmul.f32 -0.5, %v9843_v6  ;;  %vm3155_vm15 = vcmp.lt.f32.partialorder %v3154_v56, 0.0004427343 }
 0x24a   : > { %v3256_v54 = vsel %vm3000_vm9, %v9661_v40, %v3240_v59  ;;  %v3138_v21 = vsel %vm3137_vm12, %v3135_v27, %v3132_v1  ;;  %v9961_v3 = vpop.permute.xlu0 %3535  ;;  %v12666_v40 = vmax.f32 %v9679_v48, 0.0  ;;  %v6967_v18 = vpop.eup %6966  ;;  %v3153_v27 = vmul.f32 %v9817_v37, %v3152_v22  ;;  %v4182_v59 = vld [vmem:[%s7787_s28 + $0x70] sm:$0xff] }
 0x24b   : > { %6978 = vlog2.f32 %v3256_v54  ;;  %v3242_v58 = vadd.f32 %v3138_v21, %v12667_v14  ;;  %4294 = vperm.xlu1 %6619, %v4180_v47   ;;  %v3183_v53 = vsel %vm9970_vm13, %v3180_v55, %v3177_v10  ;;  %v3150_v24 = vmul.f32 0.6931472, %v6967_v18  ;;  %v4152_v14 = vld [vmem:[%s7855_s12] sm:$0xff]  ;;  %v4161_v18 = vld [vmem:[%s7855_s12 + $0x48] sm:$0xff] }
 0x24c   : > { %6980 = vlog2.f32 %v3259_v45  ;;  %v3245_v39 = vadd.f32 %v3165_v28, %v12666_v40  ;;  %4355 = vperm.xlu0 %6618, %v4157_v13   ;;  %v4159_v28 = vld [vmem:[%s7855_s12 + $0x38] sm:$0xff]  ;;  %v2992_v22 = vmax.f32 %v9724_v31, 0.0  ;;  %v3184_v0 = vadd.f32 1.0, %v9869_v63 }
 0x24d   : > { %v3258_v45 = vsel %vm3002_vm11, %v9682_v12, %v3242_v58  ;;  %6982 = vlog2.f32 %v3211_v29  ;;  %v9984_v7 = vpop.permute.xlu1 %3515  ;;  %v2997_v12 = vmax.f32 %v9736_v44, 0.0  ;;  %v3156_v47 = vsel %vm3155_vm15, %v3153_v27, %v3150_v24  ;;  %v6969_v54 = vpop.eup %6968 }
 0x24e   : > { %6984 = vlog2.f32 %v3258_v45  ;;  %v9990_v37 = vpop.permute.xlu0 %3545  ;;  %v3261_v1 = vsel %vm3005_vm14, %v9679_v48, %v3245_v39  ;;  %v12670_v21 = vmax.f32 %v9689_v61, 0.0  ;;  %v12671_v29 = vmax.f32 %v9700_v8, 0.0 }
 0x24f   : > { %4304 = vperm.xlu1 %6619, %v4182_v59   ;;  %v3199_v40 = vand.u32 2147483647, %v9825_v62  ;;  %v3197_v48 = vadd.f32 1.0, %v3196_v50  ;;  %v3170_v39 = vadd.f32 1.0, %v3169_v51  ;;  %6986 = vlog2.f32 %v3184_v0 }
 0x250   : > { %v3247_v10 = vadd.f32 %v3183_v53, %v12670_v21  ;;  %v3244_v56 = vadd.f32 %v3156_v47, %v12671_v29  ;;  %4365 = vperm.xlu0 %6618, %v4159_v28   ;;  %v6971_v58 = vpop.eup %6970  ;;  %6988 = vlog2.f32 %v3261_v1  ;;  %v3229_v59 = vadd.f32 1.0, %v9901_v38  ;;  %v4154_v47 = vld [vmem:[%s7855_s12 + $0x10] sm:$0xff] }
 0x251   : > { %v10004_v55 = vpop.permute.xlu1 %3520  ;;  %v3271_v49 = vmul.f32 0.6931472, %v6971_v58  ;;  %v6973_v53 = vpop.eup %6972  ;;  %vm3007_vm1 = vcmp.ne.f32.partialorder %v9689_v61, %v9689_v61  ;;  %v3172_v50 = vand.u32 2147483647, %v9843_v6  ;;  %v3273_v28 = vmul.f32 0.6931472, %v6969_v54 }
 0x252   : > { %v3260_v27 = vsel %vm3004_vm0, %v9700_v8, %v3244_v56  ;;  %v10009_v45 = vpop.permute.xlu0 %3555  ;;  %v6975_v51 = vpop.eup %6974  ;;  %v3263_v1 = vsel %vm3007_vm1, %v9689_v61, %v3247_v10  ;;  %vm10016_vm2 = vcmp.lt.f32.partialorder %v3199_v40, 0.0004427343  ;;  %v3198_v21 = vmul.f32 %v9825_v62, %v3197_v48  ;;  %v4163_v61 = vld [vmem:[%s7855_s12 + $0x58] sm:$0xff] }
 0x253   : > { %6990 = vlog2.f32 %v3260_v27  ;;  %4330 = vperm.xlu1 %6619, %v4152_v14   ;;  %v6977_v0 = vpop.eup %6976  ;;  %vm3006_vm3 = vcmp.ne.f32.partialorder %v9712_v41, %v9712_v41  ;;  %v3214_v29 = vmul.f32 -0.5, %v9865_v4  ;;  %v3187_v56 = vmul.f32 -0.5, %v9869_v63 }
 0x254   : > { %6992 = vlog2.f32 %v3229_v59  ;;  %4375 = vperm.xlu0 %6618, %v4161_v18   ;;  %v3382_v10 = vsub.f32 %v3271_v49, %v9749_v43  ;;  %v3195_v40 = vmul.f32 0.6931472, %v6973_v53  ;;  %v3168_v14 = vmul.f32 0.6931472, %v6977_v0 }
 0x255   : > { %v10026_v54 = vpop.permute.xlu1 %3530  ;;  %v3171_v58 = vmul.f32 %v9843_v6, %v3170_v39  ;;  %v3277_v48 = vmul.f32 0.6931472, %v6975_v51  ;;  %6994 = vlog2.f32 %v3263_v1  ;;  %vm3173_vm4 = vcmp.lt.f32.partialorder %v3172_v50, 0.0004427343  ;;  %v4156_v6 = vld [vmem:[%s7855_s12 + $0x20] sm:$0xff] }
 0x256   : > { %v10031_v18 = vpop.permute.xlu0 %3565  ;;  %v3202_v27 = vadd.f32 1.0, %v9934_v60  ;;  %v3383_v24 = vsub.f32 %v3273_v28, %v9721_v35  ;;  %vm3009_vm5 = vcmp.ne.f32.partialorder %v9706_v36, %v9706_v36  ;;  %v3217_v49 = vand.u32 2147483647, %v9865_v4 }
 0x257   : > { %4340 = vperm.xlu1 %6619, %v4154_v47   ;;  %v3174_v43 = vsel %vm3173_vm4, %v3171_v58, %v3168_v14  ;;  %v12674_v39 = vmax.f32 %v9712_v41, 0.0  ;;  %v3215_v51 = vadd.f32 1.0, %v3214_v29  ;;  %v3188_v50 = vadd.f32 1.0, %v3187_v56 }
 0x258   : > { %v6979_v62 = vpop.eup %6978  ;;  %4385 = vperm.xlu0 %6618, %v4163_v61   ;;  %v3190_v1 = vand.u32 2147483647, %v9869_v63  ;;  %v3398_v35 = vadd.f32 %v3383_v24, %v3382_v10  ;;  %v3201_v14 = vsel %vm10016_vm2, %v3198_v21, %v3195_v40  ;;  %6996 = vlog2.f32 %v3202_v27  ;;  %v7437_v21 = vld [vmem:[%s7855_s12 + $0x68] sm:$0xff]  ;;  %v4158_v10 = vld [vmem:[%s7855_s12 + $0x30] sm:$0xff] }
 0x259   : > { %v6981_v59 = vpop.eup %6980  ;;  %v3275_v13 = vmul.f32 0.6931472, %v6979_v62  ;;  %v3246_v53 = vadd.f32 %v3174_v43, %v12674_v39  ;;  %v10042_v47 = vpop.permute.xlu1 %3540  ;;  %v3385_v29 = vsub.f32 %v3277_v48, %v9738_v23  ;;  %v3232_v24 = vmul.f32 -0.5, %v9901_v38 }
 0x25a   : > { %v6983_v0 = vpop.eup %6982  ;;  %v10047_v61 = vpop.permute.xlu0 %3575  ;;  %v3281_v56 = vmul.f32 0.6931472, %v6981_v59  ;;  %v12675_v40 = vmax.f32 %v9706_v36, 0.0  ;;  %vm10059_vm6 = vcmp.lt.f32.partialorder %v3217_v49, 0.0004427343  ;;  %v3205_v48 = vmul.f32 -0.5, %v9934_v60 }
 0x25b   : > { %v3384_v28 = vsub.f32 %v3275_v13, %v9765_v15  ;;  %v6985_v58 = vpop.eup %6984  ;;  %v3262_v62 = vsel %vm3006_vm3, %v9712_v41, %v3246_v53  ;;  %4350 = vperm.xlu1 %6619, %v4156_v6   ;;  %v3213_v8 = vmul.f32 0.6931472, %v6983_v0  ;;  %v3220_v41 = vadd.f32 1.0, %v9963_v34  ;;  %v4162_v49 = vld [vmem:[%s7855_s12 + $0x50] sm:$0xff] }
 0x25c   : > { %v3279_v13 = vmul.f32 0.6931472, %v6985_v58  ;;  %6998 = vlog2.f32 %v3262_v62  ;;  %4395 = vperm.xlu0 %6618, %v7437_v21   ;;  %v3249_v27 = vadd.f32 %v3201_v14, %v12675_v40  ;;  %v6987_v43 = vpop.eup %6986  ;;  %vm3011_vm7 = vcmp.ne.f32.partialorder %v9719_v17, %v9719_v17 }
 0x25d   : > { %v3399_v15 = vadd.f32 %v3398_v35, %v3384_v28  ;;  %v10065_v59 = vpop.permute.xlu1 %3550  ;;  %v3216_v53 = vmul.f32 %v9865_v4, %v3215_v51  ;;  %vm10071_vm8 = vcmp.lt.f32.partialorder %v3190_v1, 0.0004427343  ;;  %v6989_v35 = vpop.eup %6988  ;;  %v3186_v28 = vmul.f32 0.6931472, %v6987_v43  ;;  %v7438_v1 = vld [vmem:[%s7855_s12 + $0x78] sm:$0xff] }
 0x25e   : > { %v3386_v6 = vsub.f32 %v3279_v13, %v9781_v5  ;;  %v10075_v0 = vpop.permute.xlu0 %3601  ;;  %v3189_v14 = vmul.f32 %v9869_v63, %v3188_v50  ;;  %v3233_v58 = vadd.f32 1.0, %v3232_v24  ;;  %7000 = vlog2.f32 %v3220_v41 }
 0x25f   : > { %v3400_v39 = vadd.f32 %v3399_v15, %v3385_v29  ;;  %4360 = vperm.xlu1 %6619, %v4158_v10   ;;  %v3387_v29 = vsub.f32 %v3281_v56, %v9754_v2  ;;  %v3219_v4 = vsel %vm10059_vm6, %v3216_v53, %v3213_v8  ;;  %v3235_v51 = vand.u32 2147483647, %v9901_v38  ;;  %v4160_v15 = vld [vmem:[%s7855_s12 + $0x40] sm:$0xff]  ;;  %v7439_v53 = vld [vmem:[%s7925_s10 + $0x8] sm:$0xff] }
 0x260   : > { %v6991_v5 = vpop.eup %6990  ;;  %4405 = vperm.xlu0 %6618, %v7438_v1   ;;  %v3265_v63 = vsel %vm3009_vm5, %v9706_v36, %v3249_v27  ;;  %v3192_v50 = vsel %vm10071_vm8, %v3189_v14, %v3186_v28  ;;  %v3206_v2 = vadd.f32 1.0, %v3205_v48  ;;  %v10092_v24 = vmul.f32 0.6931472, %v6989_v35  ;;  %v3471_v35 = vld [vmem:[%s8055_s21] sm:$0xff] }
 0x261   : > { %v3401_v62 = vadd.f32 %v3400_v39, %v3386_v6  ;;  %v6993_v13 = vpop.eup %6992  ;;  %v3283_v21 = vmul.f32 0.6931472, %v6991_v5  ;;  %v10090_v56 = vpop.permute.xlu1 %3560  ;;  %v3248_v8 = vadd.f32 %v3192_v50, %v2992_v22  ;;  %v3208_v40 = vand.u32 2147483647, %v9934_v60  ;;  %v4166_v5 = vld [vmem:[%s7855_s12 + $0x70] sm:$0xff] }
 0x262   : > { %v3231_v10 = vmul.f32 0.6931472, %v6993_v13  ;;  %v3612_v23 = vpop.permute.xlu0 %3611  ;;  %v12680_v41 = vmax.f32 %v9719_v17, 0.0  ;;  %vm3008_vm9 = vcmp.ne.f32.partialorder %v9724_v31, %v9724_v31  ;;  %v3234_v27 = vmul.f32 %v9901_v38, %v3233_v58  ;;  %v6995_v43 = vpop.eup %6994 }
 0x263   : > { %v3223_v48 = vmul.f32 -0.5, %v9963_v34  ;;  %4370 = vperm.xlu1 %6619, %v4160_v15   ;;  %v3388_v22 = vsub.f32 %v3283_v21, %v9802_v16  ;;  %v3402_v6 = vadd.f32 %v3401_v62, %v3387_v29  ;;  %7002 = vlog2.f32 %v3265_v63  ;;  %v3487_v16 = vld [vmem:[%s8050_s29] sm:$0xff]  ;;  %v3489_v29 = vld [vmem:[%s8050_s29 + $0x10] sm:$0xff] }
 0x264   : > { %v3251_v36 = vadd.f32 %v3219_v4, %v12680_v41  ;;  %v3264_v39 = vsel %vm3008_vm9, %v9724_v31, %v3248_v8  ;;  %4767 = vperm.xlu0 %6618, %v7439_v53   ;;  %vm3013_vm10 = vcmp.ne.f32.partialorder %v9736_v44, %v9736_v44  ;;  %vm10109_vm11 = vcmp.lt.f32.partialorder %v3235_v51, 0.0004427343  ;;  %v3473_v62 = vld [vmem:[%s8055_s21 + $0x10] sm:$0xff]  ;;  %v3475_v51 = vld [vmem:[%s8055_s21 + $0x20] sm:$0xff]  ;;  %v7440_v8 = vld [vmem:[%s7925_s10 + $0x18] sm:$0xff] }
 0x265   : > { %7004 = vlog2.f32 %v3264_v39  ;;  %vm3010_vm12 = vcmp.ne.f32.partialorder %v9752_v52, %v9752_v52  ;;  %v10117_v31 = vpop.permute.xlu1 %3570  ;;  %v3389_v28 = vsub.f32 %v10092_v24, %v9769_v42  ;;  %v3237_v14 = vsel %vm10109_vm11, %v3234_v27, %v3231_v10  ;;  %v6997_v1 = vpop.eup %6996  ;;  %v3491_v21 = vld [vmem:[%s8050_s29 + $0x20] sm:$0xff]  ;;  %v3477_v53 = vld [vmem:[%s8055_s21 + $0x30] sm:$0xff] }
 0x266   : > { %v3207_v58 = vmul.f32 %v9934_v60, %v3206_v2  ;;  %vm10124_vm13 = vcmp.lt.f32.partialorder %v3208_v40, 0.0004427343  ;;  %v3622_v4 = vpop.permute.xlu0 %3621  ;;  %v10131_v15 = vmul.f32 0.6931472, %v6995_v43  ;;  %v3267_v42 = vsel %vm3011_vm7, %v9719_v17, %v3251_v36  ;;  %v4164_v10 = vld [vmem:[%s7855_s12 + $0x60] sm:$0xff] }
 0x267   : > { %v3224_v13 = vadd.f32 1.0, %v3223_v48  ;;  %v3226_v60 = vand.u32 2147483647, %v9963_v34  ;;  %4380 = vperm.xlu1 %6619, %v4162_v49   ;;  %v3403_v63 = vadd.f32 %v3402_v6, %v3388_v22  ;;  %v3204_v50 = vmul.f32 0.6931472, %v6997_v1 }
 0x268   : > { %v3583_v2 = vmin.f32 %v9957_v19, %v3487_v16  ;;  %v3679_v24 = vmax.f32 %v10075_v0, %v3471_v35  ;;  %4777 = vperm.xlu0 %6618, %v7440_v8   ;;  %v3253_v41 = vadd.f32 %v3237_v14, %v2997_v12  ;;  %v3585_v17 = vmin.f32 %v9984_v7, %v3489_v29  ;;  %v3493_v35 = vld [vmem:[%s8050_s29 + $0x30] sm:$0xff]  ;;  %v4184_v8 = vld [vmem:[%s7925_s10] sm:$0xff] }
 0x269   : > { %v6999_v40 = vpop.eup %6998  ;;  %v3681_v36 = vmax.f32 %v3612_v23, %v3473_v62  ;;  %v3683_v27 = vmax.f32 %v3622_v4, %v3475_v51  ;;  %v10146_v48 = vpop.permute.xlu1 %3580  ;;  %v3210_v19 = vsel %vm10124_vm13, %v3207_v58, %v3204_v50  ;;  %v3587_v0 = vmin.f32 %v9939_v20, %v3491_v21  ;;  %v7441_v58 = vld [vmem:[%s7925_s10 + $0x28] sm:$0xff] }
 0x26a   : > { %v3287_v43 = vmul.f32 0.6931472, %v6999_v40  ;;  %v10151_v22 = vsub.f32 %v3583_v2, %v3679_v24  ;;  %v3632_v6 = vpop.permute.xlu0 %3631  ;;  %7006 = vlog2.f32 %v3267_v42  ;;  %v12685_v12 = vmax.f32 %v9752_v52, 0.0  ;;  %v3472_v42 = vld [vmem:[%s8055_s21 + $0x8] sm:$0xff]  ;;  %v7442_v24 = vld [vmem:[%s7925_s10 + $0x38] sm:$0xff] }
 0x26b   : > { %v3225_v23 = vmul.f32 %v9963_v34, %v3224_v13  ;;  %v10156_v39 = vsub.f32 %v3585_v17, %v3681_v36  ;;  %4390 = vperm.xlu1 %6619, %v4164_v10   ;;  %v7001_v49 = vpop.eup %7000  ;;  %v3404_v16 = vadd.f32 %v3403_v63, %v3389_v28  ;;  %vm10160_vm14 = vcmp.lt.f32.partialorder %v3226_v60, 0.0004427343  ;;  %v3488_v21 = vld [vmem:[%s8050_s29 + $0x8] sm:$0xff] }
 0x26c   : > { %v3250_v7 = vadd.f32 %v3210_v19, %v12685_v12  ;;  %v3390_v38 = vsub.f32 %v3287_v43, %v9822_v11  ;;  %v3759_v14 = vand.u32 2147483647, %v10151_v22  ;;  %4787 = vperm.xlu0 %6618, %v7441_v58   ;;  %v3269_v34 = vsel %vm3013_vm10, %v9736_v44, %v3253_v41 }
 0x26d   : > { %v3222_v28 = vmul.f32 0.6931472, %v7001_v49  ;;  %v10176_v29 = vsub.f32 %v3587_v0, %v3683_v27  ;;  %v3607_v62 = vpop.permute.xlu1 %3606  ;;  %v3761_v51 = vand.u32 2147483647, %v10156_v39  ;;  %v3685_v1 = vmax.f32 %v3632_v6, %v3477_v53  ;;  %v3479_v0 = vld [vmem:[%s8055_s21 + $0x40] sm:$0xff]  ;;  %v4186_v53 = vld [vmem:[%s7925_s10 + $0x10] sm:$0xff] }
 0x26e   : > { %v3266_v11 = vsel %vm3010_vm12, %v9752_v52, %v3250_v7  ;;  %v3775_v4 = vsub.f32 0.0, %v3759_v14  ;;  %v10180_v13 = vpop.permute.xlu0 %3641  ;;  %v3589_v60 = vmin.f32 %v9961_v3, %v3493_v35  ;;  %v3405_v52 = vadd.f32 %v3404_v16, %v3390_v38  ;;  %v3495_v7 = vld [vmem:[%s8050_s29 + $0x40] sm:$0xff]  ;;  %v10210_v16 = vld [vmem:[%s8050_s29 + $0x18] sm:$0xff]  ;;  %v3497_v14 = vld [vmem:[%s8050_s29 + $0x50] sm:$0xff] }
 0x26f   : > { %7008 = vlog2.f32 %v3266_v11  ;;  %v3228_v44 = vsel %vm10160_vm14, %v3225_v23, %v3222_v28  ;;  %4400 = vperm.xlu1 %6619, %v4166_v5   ;;  %v12688_v63 = vmax.f32 %v9773_v46, 0.0  ;;  %v3391_v40 = vsub.f32 %v10131_v15, %v9787_v32  ;;  %v7443_v23 = vld [vmem:[%s7925_s10 + $0x48] sm:$0xff] }
 0x270   : > { %7010 = vlog2.f32 %v3269_v34  ;;  %v3791_v2 = vmul.f32 1.442695, %v3775_v4  ;;  %4797 = vperm.xlu0 %6618, %v7442_v24   ;;  %v7003_v10 = vpop.eup %7002  ;;  %vm3012_vm15 = vcmp.ne.f32.partialorder %v9773_v46, %v9773_v46  ;;  %v3680_v3 = vmax.f32 %v3607_v62, %v3472_v42  ;;  %v10221_v28 = vld [vmem:[%s8050_s29 + $0x28] sm:$0xff]  ;;  %v3481_v4 = vld [vmem:[%s8055_s21 + $0x50] sm:$0xff] }
 0x271   : > { %v3252_v50 = vadd.f32 %v3228_v44, %v12688_v63  ;;  %v3617_v41 = vpop.permute.xlu1 %3616  ;;  %v3777_v27 = vsub.f32 0.0, %v3761_v51  ;;  %v3763_v43 = vand.u32 2147483647, %v10176_v29  ;;  %v10196_v19 = vsub.f32 %v3589_v60, %v3685_v1  ;;  %v10229_v44 = vld [vmem:[%s8055_s21 + $0x28] sm:$0xff]  ;;  %v7444_v60 = vld [vmem:[%s7925_s10 + $0x58] sm:$0xff] }
 0x272   : > { %v7005_v17 = vpop.eup %7004  ;;  %v10199_v32 = vpop.permute.xlu0 %3651  ;;  %v3584_v6 = vmin.f32 %v9910_v26, %v3488_v21  ;;  %v3406_v12 = vadd.f32 %v3405_v52, %v3391_v40  ;;  %v3293_v49 = vmul.f32 0.6931472, %v7003_v10  ;;  %v3687_v26 = vmax.f32 %v10180_v13, %v3479_v0  ;;  %v3499_v13 = vld [vmem:[%s8050_s29 + $0x60] sm:$0xff] }
 0x273   : > { %v3268_v36 = vsel %vm3012_vm15, %v9773_v46, %v3252_v50  ;;  %v3291_v15 = vmul.f32 0.6931472, %v7005_v17  ;;  %4762 = vperm.xlu1 %6619, %v4184_v8   ;;  %v10204_v46 = vld [vmem:[%s8055_s21 + $0x18] sm:$0xff]  ;;  %v3795_v58 = vmul.f32 1.442695, %v3777_v27  ;;  %v3779_v5 = vsub.f32 0.0, %v3763_v43 }
 0x274   : > { %7012 = vlog2.f32 %v3268_v36  ;;  %4807 = vperm.xlu0 %6618, %v7443_v23   ;;  %v10212_v20 = vsub.f32 %v3584_v6, %v3680_v3  ;;  %v3765_v34 = vand.u32 2147483647, %v10196_v19  ;;  %v3682_v62 = vmax.f32 %v3617_v41, %v10204_v46  ;;  %v10242_v8 = vld [vmem:[%s8050_s29 + $0x38] sm:$0xff]  ;;  %v10254_v36 = vld [vmem:[%s8050_s29 + $0x48] sm:$0xff] }
 0x275   : > { %7014 = vpow2.f32 %v3791_v2  ;;  %v3392_v38 = vsub.f32 %v3291_v15, %v9858_v30  ;;  %v3627_v35 = vpop.permute.xlu1 %3626  ;;  %v3591_v30 = vmin.f32 %v9990_v37, %v3495_v7  ;;  %v3586_v42 = vmin.f32 %v10004_v55, %v10210_v16  ;;  %v4188_v37 = vld [vmem:[%s7925_s10 + $0x20] sm:$0xff]  ;;  %v10245_v55 = vld [vmem:[%s8050_s29 + $0x70] sm:$0xff]  ;;  %v7445_v7 = vld [vmem:[%s7925_s10 + $0x68] sm:$0xff] }
 0x276   : > { %v10217_v11 = vpop.permute.xlu0 %3661  ;;  %v3393_v52 = vsub.f32 %v3293_v49, %v9809_v25  ;;  %v3593_v21 = vmin.f32 %v10009_v45, %v3497_v14  ;;  %v3760_v63 = vand.u32 2147483647, %v10212_v20  ;;  %v3483_v2 = vld [vmem:[%s8055_s21 + $0x60] sm:$0xff]  ;;  %7016 = vpow2.f32 %v3795_v58  ;;  %v10274_v14 = vld [vmem:[%s8050_s29 + $0x58] sm:$0xff] }
 0x277   : > { %4772 = vperm.xlu1 %6619, %v4186_v53   ;;  %v7007_v51 = vpop.eup %7006  ;;  %v3407_v1 = vadd.f32 %v3406_v12, %v3392_v38  ;;  %v10236_v50 = vsub.f32 %v3591_v30, %v3687_v26  ;;  %v3799_v10 = vmul.f32 1.442695, %v3779_v5  ;;  %v3781_v40 = vsub.f32 0.0, %v3765_v34  ;;  %v10261_v12 = vld [vmem:[%s8055_s21 + $0x38] sm:$0xff] }
 0x278   : > { %4817 = vperm.xlu0 %6618, %v7444_v60   ;;  %v3689_v25 = vmax.f32 %v10199_v32, %v3481_v4  ;;  %v3588_v41 = vmin.f32 %v10026_v54, %v10221_v28  ;;  %v3595_v17 = vmin.f32 %v10031_v18, %v3499_v13  ;;  %v10256_v27 = vsub.f32 %v3586_v42, %v3682_v62  ;;  %v4190_v54 = vld [vmem:[%s7925_s10 + $0x30] sm:$0xff]  ;;  %v7446_v13 = vld [vmem:[%s7925_s10 + $0x78] sm:$0xff]  ;;  %v4192_v60 = vld [vmem:[%s7925_s10 + $0x40] sm:$0xff] }
 0x279   : > { %v10239_v24 = vpop.permute.xlu1 %3636  ;;  %v3684_v43 = vmax.f32 %v3627_v35, %v10229_v44  ;;  %v3297_v0 = vmul.f32 0.6931472, %v7007_v51  ;;  %v3408_v32 = vadd.f32 %v3407_v1, %v3393_v52  ;;  %v3691_v6 = vmax.f32 %v10217_v11, %v3483_v2  ;;  %v10289_v1 = vld [vmem:[%s8050_s29 + $0x68] sm:$0xff] }
 0x27a   : > { %v10248_v45 = vpop.permute.xlu0 %3671  ;;  %v3590_v18 = vmin.f32 %v10042_v47, %v10242_v8  ;;  %v3597_v53 = vmin.f32 %v10047_v61, %v10245_v55  ;;  %v3776_v49 = vsub.f32 0.0, %v3760_v63  ;;  %v3767_v38 = vand.u32 2147483647, %v10236_v50  ;;  %v10300_v63 = vld [vmem:[%s8050_s29 + $0x78] sm:$0xff] }
 0x27b   : > { %4782 = vperm.xlu1 %6619, %v4188_v37   ;;  %7018 = vpow2.f32 %v3799_v10  ;;  %v3803_v58 = vmul.f32 1.442695, %v3781_v40  ;;  %v10276_v5 = vsub.f32 %v3593_v21, %v3689_v25  ;;  %v3592_v61 = vmin.f32 %v10065_v59, %v10254_v36  ;;  %v7447_v10 = vld [vmem:[%s8055_s21 + $0x70] sm:$0xff] }
 0x27c   : > { %v7009_v3 = vpop.eup %7008  ;;  %4827 = vperm.xlu0 %6618, %v7445_v7   ;;  %v3762_v34 = vand.u32 2147483647, %v10256_v27  ;;  %v10283_v11 = vsub.f32 %v3588_v41, %v3684_v43  ;;  %v3395_v62 = vsub.f32 %v3297_v0, %v9836_v33  ;;  %v10291_v42 = vsub.f32 %v3595_v17, %v3691_v6  ;;  %v4194_v6 = vld [vmem:[%s7925_s10 + $0x50] sm:$0xff] }
 0x27d   : > { %v3295_v15 = vmul.f32 0.6931472, %v7009_v3  ;;  %v7011_v23 = vpop.eup %7010  ;;  %v10270_v26 = vpop.permute.xlu1 %3646  ;;  %v3594_v21 = vmin.f32 %v10090_v56, %v10274_v14  ;;  %v3793_v2 = vmul.f32 1.442695, %v3776_v49  ;;  %v3783_v33 = vsub.f32 0.0, %v3767_v38  ;;  %v12689_v7 = vld [vmem:[#allocation7_spill] sm:$0xff] }
 0x27e   : > { %v10278_v47 = vpop.permute.xlu0 %4033  ;;  %v3301_v4 = vmul.f32 0.6931472, %v7011_v23  ;;  %7020 = vpow2.f32 %v3803_v58  ;;  %v3769_v55 = vand.u32 2147483647, %v10276_v5  ;;  %v3693_v40 = vmax.f32 %v10248_v45, %v7447_v10  ;;  %v7449_v56 = vld [vmem:[%s7787_s28 + $0x20] sm:$0xff] }
 0x27f   : > { %v3394_v35 = vsub.f32 %v3295_v15, %v9895_v9  ;;  %v3686_v9 = vmax.f32 %v10239_v24, %v10261_v12  ;;  %4792 = vperm.xlu1 %6619, %v4190_v54   ;;  %v3778_v41 = vsub.f32 0.0, %v3762_v34  ;;  %v3764_v17 = vand.u32 2147483647, %v10283_v11 }
 0x280   : > { %4837 = vperm.xlu0 %6618, %v7446_v13   ;;  %v3596_v0 = vmin.f32 %v10117_v31, %v10289_v1  ;;  %v3598_v15 = vmin.f32 %v10146_v48, %v10300_v63  ;;  %v3397_v54 = vsub.f32 %v3301_v4, %v12689_v7  ;;  %7022 = vpow2.f32 %v3793_v2 }
 0x281   : > { %v7013_v30 = vpop.eup %7012  ;;  %v3409_v51 = vadd.f32 %v3408_v32, %v3394_v35  ;;  %v10302_v24 = vpop.permute.xlu1 %3656  ;;  %v10311_v43 = vsub.f32 %v3590_v18, %v3686_v9  ;;  %v3771_v32 = vand.u32 2147483647, %v10291_v42  ;;  %v3807_v23 = vmul.f32 1.442695, %v3783_v33  ;;  %v10322_v18 = vld [vmem:[%s8055_s21 + $0x48] sm:$0xff] }
 0x282   : > { %v10295_v37 = vpop.eup %7014  ;;  %v3299_v52 = vmul.f32 0.6931472, %v7013_v30  ;;  %v10307_v25 = vpop.permute.xlu0 %4043  ;;  %v3785_v58 = vsub.f32 0.0, %v3769_v55  ;;  %v10328_v34 = vsub.f32 %v3597_v53, %v3693_v40  ;;  %v3797_v4 = vmul.f32 1.442695, %v3778_v41  ;;  %v4196_v53 = vld [vmem:[%s7925_s10 + $0x60] sm:$0xff] }
 0x283   : > { %v3410_v8 = vadd.f32 %v3409_v51, %v3395_v62  ;;  %4802 = vperm.xlu1 %6619, %v4192_v60   ;;  %v3823_v45 = vadd.f32 1.0, %v10295_v37  ;;  %v10332_v30 = vpop.eup %7016  ;;  %v3780_v51 = vsub.f32 0.0, %v3764_v17  ;;  %v3766_v13 = vand.u32 2147483647, %v10311_v43  ;;  %v10336_v60 = vld [vmem:[%s8055_s21 + $0x58] sm:$0xff] }
 0x284   : > { %v3396_v3 = vsub.f32 %v3299_v52, %v9926_v57  ;;  %12690 = vst [vmem:[#allocation8_spill] sm:$0xff] %v10336_v60  ;;  %v3787_v2 = vsub.f32 0.0, %v3771_v32  ;;  %v3688_v33 = vmax.f32 %v10270_v26, %v10322_v18  ;;  %v3773_v41 = vand.u32 2147483647, %v10328_v34  ;;  %v7451_v52 = vld [vmem:[%s7787_s28 + $0x40] sm:$0xff] }
 0x285   : > { %v10324_v49 = vpop.permute.xlu1 %3666  ;;  %7024 = vlog2.f32 %v3823_v45  ;;  %v3690_v17 = vmax.f32 %v10302_v24, %v10336_v60  ;;  %v3841_v32 = vadd.f32 1.0, %v10332_v30  ;;  %v3801_v7 = vmul.f32 1.442695, %v3780_v51  ;;  %v4198_v24 = vld [vmem:[%s7925_s10 + $0x70] sm:$0xff]  ;;  %v10364_v51 = vld [vmem:[%s8055_s21 + $0x68] sm:$0xff] }
 0x286   : > { %v3411_v57 = vadd.f32 %v3410_v8, %v3396_v3  ;;  %v10330_v9 = vpop.permute.xlu0 %4053  ;;  %7026 = vpow2.f32 %v3807_v23  ;;  %v3811_v3 = vmul.f32 1.442695, %v3785_v58  ;;  %v10357_v23 = vsub.f32 %v3592_v61, %v3688_v33  ;;  %12691 = vst [vmem:[#allocation7_spill] sm:$0xff] %v10364_v51  ;;  %v7448_v61 = vld [vmem:[%s7787_s28 + $0x8] sm:$0xff]  ;;  %v3486_v33 = vld [vmem:[%s8055_s21 + $0x78] sm:$0xff] }
 0x287   : > { %4812 = vperm.xlu1 %6619, %v4194_v6   ;;  %7028 = vpow2.f32 %v3797_v4  ;;  %v7603_v4 = vmov 6   ;;  %v3789_v59 = vsub.f32 0.0, %v3773_v41  ;;  %v10371_v36 = vsub.f32 %v3594_v21, %v3690_v17 }
 0x288   : > { %v3412_v62 = vadd.f32 %v3411_v57, %v3397_v54  ;;  %v10352_v45 = vpop.eup %7018  ;;  %v3782_v54 = vsub.f32 0.0, %v3766_v13  ;;  %v3815_v57 = vmul.f32 1.442695, %v3787_v2  ;;  %7030 = vlog2.f32 %v3841_v32  ;;  %6621 = vset.pattern.permute.xlu0 %v7603_v4 }
 0x289   : > { %v10344_v40 = vpop.permute.xlu1 %3676  ;;  %7032 = vpow2.f32 %v3811_v3  ;;  %4968 = vperm.xlu0 %6621, %v7448_v61   ;;  %v3859_v2 = vadd.f32 1.0, %v10352_v45  ;;  %v3768_v14 = vand.u32 2147483647, %v10357_v23  ;;  %v3692_v21 = vmax.f32 %v10324_v49, %v10364_v51  ;;  %v4902_v51 = vld [vmem:[%s7787_s28 + $0x28] sm:$0xff] }
 0x28a   : > { %v3413_v8 = vrot.slane %v3412_v62, 4  ;;  %v10350_v26 = vpop.permute.xlu0 %4063  ;;  %7034 = vpow2.f32 %v3801_v7  ;;  %v3805_v3 = vmul.f32 1.442695, %v3782_v54  ;;  %v3826_v17 = vmul.f32 -0.5, %v10295_v37  ;;  %v4897_v7 = vld [vmem:[%s7787_s28] sm:$0xff] }
 0x28b   : > { %4822 = vperm.xlu1 %6619, %v4196_v53   ;;  %7036 = vpow2.f32 %v3815_v57  ;;  %v3770_v61 = vand.u32 2147483647, %v10371_v36  ;;  %v3844_v57 = vmul.f32 -0.5, %v10332_v30  ;;  %vm3727_vm1 = vcmp.ne.f32.partialorder %v10151_v22, %v10151_v22 }
 0x28c   : > { %v3414_v6 = vadd.f32 %v3413_v8, %v3412_v62  ;;  %v10378_v8 = vpop.eup %7020  ;;  %7038 = vlog2.f32 %v3859_v2  ;;  %v4899_v2 = vld [vmem:[%s7787_s28 + $0x10] sm:$0xff]  ;;  %vm3729_vm3 = vcmp.ne.f32.partialorder %v10156_v39, %v10156_v39  ;;  %vm3731_vm6 = vcmp.ne.f32.partialorder %v10176_v29, %v10176_v29 }
 0x28d   : > { %v10366_v13 = vpop.permute.xlu1 %4038  ;;  %v10390_v54 = vpop.eup %7022  ;;  %4983 = vperm.xlu0 %6621, %v7449_v56   ;;  %v3877_v49 = vadd.f32 1.0, %v10378_v8  ;;  %7040 = vpow2.f32 %v3805_v3  ;;  %v10404_v56 = vsub.f32 %v3596_v0, %v3692_v21  ;;  %v3786_v31 = vsub.f32 0.0, %v3770_v61  ;;  %v7450_v21 = vld [vmem:[%s7787_s28 + $0x30] sm:$0xff] }
 0x28e   : > { %v3415_v58 = vrot.slane %v3414_v6, 2  ;;  %v10376_v53 = vpop.permute.xlu0 %4073  ;;  %v3845_v1 = vadd.f32 1.0, %v3844_v57  ;;  %v3847_v0 = vand.u32 2147483647, %v10332_v30  ;;  %vm3733_vm7 = vcmp.ne.f32.partialorder %v10196_v19, %v10196_v19 }
 0x28f   : > { %4832 = vperm.xlu1 %6619, %v4198_v24   ;;  %v3819_v24 = vmul.f32 1.442695, %v3789_v59  ;;  %v3829_v59 = vand.u32 2147483647, %v10295_v37  ;;  %7042 = vlog2.f32 %v3877_v49  ;;  %v3880_v49 = vmul.f32 -0.5, %v10378_v8 }
 0x290   : > { %v3416_v32 = vadd.f32 %v3415_v58, %v3414_v6  ;;  %v3694_v6 = vmax.f32 %v10344_v40, %v3486_v33  ;;  %v3784_v33 = vsub.f32 0.0, %v3768_v14  ;;  %vm10440_vm2 = vcmp.lt.f32.partialorder %v3847_v0, 0.0004427343 }
 0x291   : > { %v10387_v58 = vpop.permute.xlu1 %4048  ;;  %7044 = vpow2.f32 %v3819_v24  ;;  %4993 = vperm.xlu0 %6621, %v7450_v21   ;;  %vm10425_vm0 = vcmp.lt.f32.partialorder %v3829_v59, 0.0004427343  ;;  %v3772_v24 = vand.u32 2147483647, %v10404_v56  ;;  %v3813_v21 = vmul.f32 1.442695, %v3786_v31 }
 0x292   : > { %v3417_v41 = vrot.slane %v3416_v32, 1  ;;  %v10396_v62 = vpop.permute.xlu0 %4083  ;;  %v7025_v55 = vpop.eup %7024  ;;  %v10409_v3 = vsub.f32 %v3598_v15, %v3694_v6  ;;  %v3862_v15 = vmul.f32 -0.5, %v10352_v45  ;;  %v3809_v6 = vmul.f32 1.442695, %v3784_v33 }
 0x293   : > { %12692 = vst [vmem:[#allocation9_spill] sm:$0xff] %v10396_v62  ;;  %6620 = vset.pattern.permute.xlu1 %v7603_v4  ;;  %v3832_v4 = vadd.f32 1.0, %v10390_v54  ;;  %v10415_v40 = vpop.eup %7026  ;;  %v3825_v63 = vmul.f32 0.6931472, %v7025_v55  ;;  %v3865_v31 = vand.u32 2147483647, %v10352_v45  ;;  %vm3728_vm9 = vcmp.ne.f32.partialorder %v10212_v20, %v10212_v20 }
 0x294   : > { %v3418_v10 = vadd.f32 %v3417_v41, %v3416_v32  ;;  %4963 = vperm.xlu1 %6620, %v4897_v7   ;;  %v3827_v41 = vadd.f32 1.0, %v3826_v17  ;;  %v10423_v17 = vpop.eup %7028  ;;  %v3774_v57 = vand.u32 2147483647, %v10409_v3  ;;  %v3895_v33 = vadd.f32 1.0, %v10415_v40 }
 0x295   : > { %v10412_v14 = vpop.permute.xlu1 %4058  ;;  %v7031_v61 = vpop.eup %7030  ;;  %5003 = vperm.xlu0 %6621, %v7451_v52   ;;  %v3863_v38 = vadd.f32 1.0, %v3862_v15  ;;  %v3788_v0 = vsub.f32 0.0, %v3772_v24  ;;  %v3883_v52 = vand.u32 2147483647, %v10378_v8  ;;  %v3881_v7 = vadd.f32 1.0, %v3880_v49 }
 0x296   : > { %v3420_v32 = vmul.f32 1.442695, %v3418_v10  ;;  %v10419_v10 = vpop.permute.xlu0 %4093  ;;  %v3828_v55 = vmul.f32 %v10295_v37, %v3827_v41  ;;  %v3843_v48 = vmul.f32 0.6931472, %v7031_v61  ;;  %v10447_v41 = vpop.eup %7032  ;;  %v3850_v61 = vadd.f32 1.0, %v10423_v17 }
 0x297   : > { %12693 = vst [vmem:[#allocation10_spill] sm:$0xff] %v10419_v10  ;;  %v3835_v15 = vmul.f32 -0.5, %v10390_v54  ;;  %v12700_v49 = vmax.f32 %v10156_v39, 0.0  ;;  %vm10478_vm4 = vcmp.lt.f32.partialorder %v3865_v31, 0.0004427343  ;;  %v4904_v31 = vld [vmem:[%s7787_s28 + $0x38] sm:$0xff]  ;;  %vm3730_vm11 = vcmp.ne.f32.partialorder %v10256_v27, %v10256_v27 }
 0x298   : > { %7046 = vpow2.f32 %v3420_v32  ;;  %4973 = vperm.xlu1 %6620, %v4899_v2   ;;  %v4900_v32 = vld [vmem:[%s7787_s28 + $0x18] sm:$0xff]  ;;  %v3831_v35 = vsel %vm10425_vm0, %v3828_v55, %v3825_v63  ;;  %v3790_v63 = vsub.f32 0.0, %v3774_v57  ;;  %vm10482_vm5 = vcmp.lt.f32.partialorder %v3883_v52, 0.0004427343  ;;  %v7453_v57 = vld [vmem:[%s7787_s28 + $0x60] sm:$0xff] }
 0x299   : > { %7048 = vlog2.f32 %v3832_v4  ;;  %v10436_v59 = vpop.permute.xlu1 %4068  ;;  %v3846_v4 = vmul.f32 %v10332_v30, %v3845_v1  ;;  %v10453_v30 = vpop.eup %7034  ;;  %vm3735_vm13 = vcmp.ne.f32.partialorder %v10236_v50, %v10236_v50  ;;  %vm3732_vm14 = vcmp.ne.f32.partialorder %v10283_v11, %v10283_v11 }
 0x29a   : > { %v10445_v37 = vpop.permute.xlu0 %4103  ;;  %7050 = vlog2.f32 %v3895_v33  ;;  %v3913_v33 = vadd.f32 1.0, %v10447_v41 }
 0x29b   : > { %12698 = vst [vmem:[#allocation11_spill] sm:$0xff] %v10445_v37  ;;  %v3849_v1 = vsel %vm10440_vm2, %v3846_v4, %v3843_v48  ;;  %v10458_v37 = vpop.eup %7036  ;;  %7052 = vlog2.f32 %v3850_v61  ;;  %v12699_v48 = vmax.f32 %v10151_v22, 0.0  ;;  %vm3734_vm2 = vcmp.ne.f32.partialorder %v10311_v43, %v10311_v43 }
 0x29c   : > { %4978 = vperm.xlu1 %6620, %v4900_v32   ;;  %v7039_v10 = vpop.eup %7038  ;;  %7054 = vpow2.f32 %v3809_v6  ;;  %v7452_v32 = vld [vmem:[%s7787_s28 + $0x50] sm:$0xff]  ;;  %v3969_v4 = vadd.f32 %v3849_v1, %v12700_v49  ;;  %v3882_v1 = vmul.f32 %v10378_v8, %v3881_v7 }
 0x29d   : > { %v10461_v55 = vpop.permute.xlu1 %4078  ;;  %v3967_v24 = vadd.f32 %v3831_v35, %v12699_v48  ;;  %5013 = vperm.xlu0 %6621, %v7452_v32   ;;  %7056 = vpow2.f32 %v3813_v21  ;;  %v3861_v2 = vmul.f32 0.6931472, %v7039_v10  ;;  %v10475_v6 = vpop.eup %7040  ;;  %v3817_v35 = vmul.f32 1.442695, %v3788_v0 }
 0x29e   : > { %v3864_v48 = vmul.f32 %v10352_v45, %v3863_v38  ;;  %v7043_v21 = vpop.eup %7042  ;;  %v3821_v10 = vmul.f32 1.442695, %v3790_v63  ;;  %v3836_v0 = vadd.f32 1.0, %v3835_v15  ;;  %v3868_v38 = vadd.f32 1.0, %v10453_v30 }
 0x29f   : > { %v10473_v61 = vpop.permute.xlu0 %4234  ;;  %v3983_v52 = vsel %vm3727_vm1, %v10151_v22, %v3967_v24  ;;  %v3879_v49 = vmul.f32 0.6931472, %v7043_v21  ;;  %7058 = vlog2.f32 %v3913_v33  ;;  %v10499_v63 = vpop.eup %7044  ;;  %v3985_v8 = vsel %vm3729_vm3, %v10156_v39, %v3969_v4 }
 0x2a0   : > { %4988 = vperm.xlu1 %6620, %v4902_v51   ;;  %v3853_v51 = vmul.f32 -0.5, %v10423_v17  ;;  %v3867_v7 = vsel %vm10478_vm4, %v3864_v48, %v3861_v2  ;;  %v3838_v15 = vand.u32 2147483647, %v10390_v54  ;;  %7060 = vlog2.f32 %v3868_v38 }
 0x2a1   : > { %v10490_v45 = vpop.permute.xlu1 %4088  ;;  %5023 = vperm.xlu0 %6621, %v7453_v57   ;;  %7062 = vpow2.f32 %v3817_v35  ;;  %v3885_v57 = vsel %vm10482_vm5, %v3882_v1, %v3879_v49  ;;  %v3931_v21 = vadd.f32 1.0, %v10458_v37  ;;  %v3837_v60 = vmul.f32 %v10390_v54, %v3836_v0  ;;  %v4906_v35 = vld [vmem:[%s7787_s28 + $0x48] sm:$0xff] }
 0x2a2   : > { %12705 = vst [vmem:[#allocation12_spill] sm:$0xff] %v10490_v45  ;;  %7064 = vlog2.f32 %v3983_v52  ;;  %v3898_v4 = vmul.f32 -0.5, %v10415_v40  ;;  %v12707_v48 = vmax.f32 %v10176_v29, 0.0  ;;  %v3854_v38 = vadd.f32 1.0, %v3853_v51 }
 0x2a3   : > { %v10508_v22 = vpop.permute.xlu0 %4249  ;;  %7066 = vlog2.f32 %v3985_v8  ;;  %v12708_v52 = vmax.f32 %v10196_v19, 0.0  ;;  %vm3839_vm8 = vcmp.lt.f32.partialorder %v3838_v15, 0.0004427343  ;;  %v3886_v54 = vadd.f32 1.0, %v10475_v6 }
 0x2a4   : > { %4998 = vperm.xlu1 %6620, %v4904_v31   ;;  %v3971_v32 = vadd.f32 %v3867_v7, %v12707_v48  ;;  %v7454_v31 = vld [vmem:[%s7787_s28 + $0x70] sm:$0xff]  ;;  %7068 = vpow2.f32 %v3821_v10  ;;  %v3901_v8 = vand.u32 2147483647, %v10415_v40  ;;  %v3856_v7 = vand.u32 2147483647, %v10423_v17 }
 0x2a5   : > { %v7047_v24 = vpop.eup %7046  ;;  %v10519_v2 = vpop.permute.xlu1 %4098  ;;  %5033 = vperm.xlu0 %6621, %v7454_v31   ;;  %v3973_v49 = vadd.f32 %v3885_v57, %v12708_v52  ;;  %7070 = vlog2.f32 %v3931_v21  ;;  %v12709_v10 = vmax.f32 %v10212_v20, 0.0  ;;  %v3871_v15 = vmul.f32 -0.5, %v10453_v30  ;;  %v7455_v52 = vld [vmem:[%s7855_s12] sm:$0xff] }
 0x2a6   : > { %v7049_v39 = vpop.eup %7048  ;;  %3422 = vst [vmem:[%s8862_s13 + $0x3] sm:$0x1] %v7047_v24  ;;  %12706 = vst [vmem:[#allocation13_spill] sm:$0xff] %v10519_v2  ;;  %7072 = vlog2.f32 %v3886_v54  ;;  %v3987_v21 = vsel %vm3731_vm6, %v10176_v29, %v3971_v32  ;;  %v3916_v31 = vmul.f32 -0.5, %v10447_v41  ;;  %v3949_v29 = vadd.f32 1.0, %v10499_v63 }
 0x2a7   : > { %v3834_v1 = vmul.f32 0.6931472, %v7049_v39  ;;  %v10528_v0 = vpop.permute.xlu0 %4259  ;;  %v7051_v51 = vpop.eup %7050  ;;  %v3989_v54 = vsel %vm3733_vm7, %v10196_v19, %v3973_v49  ;;  %vm10559_vm10 = vcmp.lt.f32.partialorder %v3901_v8, 0.0004427343  ;;  %vm3857_vm12 = vcmp.lt.f32.partialorder %v3856_v7, 0.0004427343 }
 0x2a8   : > { %5008 = vperm.xlu1 %6620, %v4906_v35   ;;  %v7053_v48 = vpop.eup %7052  ;;  %v3899_v35 = vadd.f32 1.0, %v3898_v4  ;;  %v3897_v19 = vmul.f32 0.6931472, %v7051_v51  ;;  %v4910_v49 = vld [vmem:[%s7787_s28 + $0x68] sm:$0xff]  ;;  %v3889_v8 = vmul.f32 -0.5, %v10475_v6  ;;  %v3917_v7 = vadd.f32 1.0, %v3916_v31 }
 0x2a9   : > { %v3840_v24 = vsel %vm3839_vm8, %v3837_v60, %v3834_v1  ;;  %v10537_v39 = vpop.permute.xlu1 %4108  ;;  %v4908_v60 = vld [vmem:[%s7787_s28 + $0x58] sm:$0xff]  ;;  %v3855_v1 = vmul.f32 %v10423_v17, %v3854_v38  ;;  %5059 = vperm.xlu0 %6621, %v7455_v52   ;;  %v3852_v33 = vmul.f32 0.6931472, %v7053_v48  ;;  %v3872_v38 = vadd.f32 1.0, %v3871_v15 }
 0x2aa   : > { %v3968_v57 = vadd.f32 %v3840_v24, %v12709_v10  ;;  %12710 = vst [vmem:[#allocation14_spill] sm:$0xff] %v10537_v39  ;;  %v10547_v24 = vpop.eup %7054  ;;  %v3874_v52 = vand.u32 2147483647, %v10453_v30  ;;  %v3919_v51 = vand.u32 2147483647, %v10447_v41  ;;  %vm3737_vm1 = vcmp.ne.f32.partialorder %v10276_v5, %v10276_v5 }
 0x2ab   : > { %v10555_v4 = vpop.permute.xlu0 %4269  ;;  %v10557_v17 = vpop.eup %7056  ;;  %vm3739_vm5 = vcmp.ne.f32.partialorder %v10291_v42, %v10291_v42  ;;  %vm3736_vm7 = vcmp.ne.f32.partialorder %v10357_v23, %v10357_v23  ;;  %vm3741_vm8 = vcmp.ne.f32.partialorder %v10328_v34, %v10328_v34 }
 0x2ac   : > { %v3984_v10 = vsel %vm3728_vm9, %v10212_v20, %v3968_v57  ;;  %5018 = vperm.xlu1 %6620, %v4908_v60   ;;  %v3858_v20 = vsel %vm3857_vm12, %v3855_v1, %v3852_v33  ;;  %v12713_v57 = vmax.f32 %v10256_v27, 0.0  ;;  %v7059_v2 = vpop.eup %7058  ;;  %v3900_v33 = vmul.f32 %v10415_v40, %v3899_v35 }
 0x2ad   : > { %7074 = vlog2.f32 %v3984_v10  ;;  %v7456_v10 = vld [vmem:[%s7855_s12 + $0x10] sm:$0xff]  ;;  %v7061_v60 = vpop.eup %7060  ;;  %v3934_v1 = vmul.f32 -0.5, %v10458_v37  ;;  %v3904_v40 = vadd.f32 1.0, %v10547_v24  ;;  %vm10593_vm15 = vcmp.lt.f32.partialorder %v3874_v52, 0.0004427343 }
 0x2ae   : > { %7076 = vlog2.f32 %v3987_v21  ;;  %v3970_v48 = vadd.f32 %v3858_v20, %v12713_v57  ;;  %5069 = vperm.xlu0 %6621, %v7456_v10   ;;  %v10571_v39 = vpop.permute.xlu1 %4239  ;;  %v10587_v35 = vpop.eup %7062  ;;  %v3903_v31 = vsel %vm10559_vm10, %v3900_v33, %v3897_v19  ;;  %v3892_v10 = vand.u32 2147483647, %v10475_v6  ;;  %v10609_v52 = vld [vmem:[%s7855_s12 + $0x30] sm:$0xff] }
 0x2af   : > { %7078 = vlog2.f32 %v3989_v54  ;;  %v10577_v15 = vpop.permute.xlu0 %4279  ;;  %v3870_v54 = vmul.f32 0.6931472, %v7061_v60  ;;  %v7065_v20 = vpop.eup %7064  ;;  %v3915_v19 = vmul.f32 0.6931472, %v7059_v2  ;;  %v3918_v33 = vmul.f32 %v10447_v41, %v3917_v7  ;;  %12719 = vst [vmem:[#allocation16_spill] sm:$0xff] %v10609_v52 }
 0x2b0   : > { %7080 = vlog2.f32 %v3949_v29  ;;  %v3986_v21 = vsel %vm3730_vm11, %v10256_v27, %v3970_v48  ;;  %5028 = vperm.xlu1 %6620, %v4910_v49   ;;  %v3873_v29 = vmul.f32 %v10453_v30, %v3872_v38  ;;  %v4912_v27 = vld [vmem:[%s7787_s28 + $0x78] sm:$0xff]  ;;  %v3890_v48 = vadd.f32 1.0, %v3889_v8  ;;  %v7457_v49 = vld [vmem:[%s7855_s12 + $0x20] sm:$0xff]  ;;  %v7067_v32 = vpop.eup %7066 }
 0x2b1   : > { %7082 = vlog2.f32 %v3986_v21  ;;  %vm10602_vm0 = vcmp.lt.f32.partialorder %v3919_v51, 0.0004427343  ;;  %v10613_v60 = vpop.eup %7068  ;;  %v12721_v21 = vmax.f32 %v10236_v50, 0.0  ;;  %v12722_v2 = vmax.f32 %v10283_v11, 0.0 }
 0x2b2   : > { %7084 = vlog2.f32 %v3904_v40  ;;  %5079 = vperm.xlu0 %6621, %v7457_v49   ;;  %v10599_v45 = vpop.permute.xlu1 %4244  ;;  %v3876_v38 = vsel %vm10593_vm15, %v3873_v29, %v3870_v54  ;;  %v3935_v7 = vadd.f32 1.0, %v3934_v1  ;;  %v3952_v51 = vmul.f32 -0.5, %v10499_v63  ;;  %v7071_v49 = vpop.eup %7070 }
 0x2b3   : > { %12716 = vst [vmem:[#allocation15_spill] sm:$0xff] %v10599_v45  ;;  %v10611_v8 = vpop.permute.xlu0 %4289  ;;  %v3975_v40 = vadd.f32 %v3903_v31, %v12721_v21  ;;  %v3972_v41 = vadd.f32 %v3876_v38, %v12722_v2  ;;  %v4000_v57 = vmul.f32 0.6931472, %v7065_v20  ;;  %v3937_v54 = vand.u32 2147483647, %v10458_v37  ;;  %v10627_v31 = vld [vmem:[%s7855_s12 + $0x8] sm:$0xff]  ;;  %v7073_v21 = vpop.eup %7072 }
 0x2b4   : > { %12720 = vst [vmem:[#allocation17_spill] sm:$0xff] %v10611_v8  ;;  %5038 = vperm.xlu1 %6620, %v4912_v27   ;;  %v3922_v29 = vadd.f32 1.0, %v10557_v17  ;;  %v10629_v38 = vmul.f32 0.6931472, %v7067_v32  ;;  %v3891_v27 = vmul.f32 %v10475_v6, %v3890_v48  ;;  %vm10636_vm3 = vcmp.lt.f32.partialorder %v3892_v10, 0.0004427343 }
 0x2b5   : > { %v3988_v1 = vsel %vm3732_vm14, %v10283_v11, %v3972_v41  ;;  %v3921_v32 = vsel %vm10602_vm0, %v3918_v33, %v3915_v19  ;;  %v3888_v8 = vmul.f32 0.6931472, %v7073_v21  ;;  %v3907_v45 = vmul.f32 -0.5, %v10547_v24  ;;  %v10662_v21 = vld [vmem:[%s7855_s12 + $0x18] sm:$0xff] }
 0x2b6   : > { %5089 = vperm.xlu0 %6621, %v10609_v52   ;;  %v10641_v2 = vpop.permute.xlu1 %4254  ;;  %7086 = vlog2.f32 %v3988_v1  ;;  %v3991_v11 = vsel %vm3735_vm13, %v10236_v50, %v3975_v40  ;;  %v3953_v6 = vadd.f32 1.0, %v3952_v51  ;;  %v3955_v48 = vand.u32 2147483647, %v10499_v63 }
 0x2b7   : > { %v10646_v62 = vpop.permute.xlu0 %4299  ;;  %7088 = vlog2.f32 %v3922_v29  ;;  %v3933_v19 = vmul.f32 0.6931472, %v7071_v49  ;;  %v3936_v33 = vmul.f32 %v10458_v37, %v3935_v7  ;;  %vm10655_vm4 = vcmp.lt.f32.partialorder %v3937_v54, 0.0004427343  ;;  %v7458_v37 = vld [vmem:[%s7855_s12 + $0x40] sm:$0xff] }
 0x2b8   : > { %5064 = vperm.xlu1 %6620, %v10627_v31   ;;  %v3894_v41 = vsel %vm10636_vm3, %v3891_v27, %v3888_v8  ;;  %v4111_v40 = vsub.f32 %v4000_v57, %v10278_v47  ;;  %v12727_v29 = vmax.f32 %v10276_v5, 0.0  ;;  %v12728_v49 = vmax.f32 %v10311_v43, 0.0 }
 0x2b9   : > { %v4113_v8 = vsub.f32 %v10629_v38, %v10307_v25  ;;  %7090 = vlog2.f32 %v3991_v11  ;;  %v3908_v47 = vadd.f32 1.0, %v3907_v45  ;;  %v3940_v57 = vadd.f32 1.0, %v10587_v35 }
 0x2ba   : > { %v7075_v10 = vpop.eup %7074  ;;  %v3977_v1 = vadd.f32 %v3921_v32, %v12727_v29  ;;  %v3974_v52 = vadd.f32 %v3894_v41, %v12728_v49  ;;  %5099 = vperm.xlu0 %6621, %v7458_v37   ;;  %v10670_v7 = vpop.permute.xlu1 %4264  ;;  %v3954_v25 = vmul.f32 %v10499_v63, %v3953_v6  ;;  %vm10685_vm6 = vcmp.lt.f32.partialorder %v3955_v48, 0.0004427343  ;;  %v7459_v41 = vld [vmem:[%s7855_s12 + $0x50] sm:$0xff] }
 0x2bb   : > { %v7077_v50 = vpop.eup %7076  ;;  %v4002_v51 = vmul.f32 0.6931472, %v7075_v10  ;;  %v10677_v27 = vpop.permute.xlu0 %4309  ;;  %v3910_v45 = vand.u32 2147483647, %v10547_v24  ;;  %v3925_v11 = vmul.f32 -0.5, %v10557_v17  ;;  %v3909_v49 = vmul.f32 %v10547_v24, %v3908_v47 }
 0x2bc   : > { %v7079_v54 = vpop.eup %7078  ;;  %v3990_v10 = vsel %vm3734_vm2, %v10311_v43, %v3974_v52  ;;  %5074 = vperm.xlu1 %6620, %v10662_v21   ;;  %v10697_v43 = vld [vmem:[%s7855_s12 + $0x28] sm:$0xff]  ;;  %v4008_v52 = vmul.f32 0.6931472, %v7077_v50  ;;  %v3993_v48 = vsel %vm3737_vm1, %v10276_v5, %v3977_v1  ;;  %v12731_v37 = vmax.f32 %v10291_v42, 0.0 }
 0x2bd   : > { %v7081_v20 = vpop.eup %7080  ;;  %v4112_v32 = vsub.f32 %v4002_v51, %v10366_v13  ;;  %v3939_v13 = vsel %vm10655_vm4, %v3936_v33, %v3933_v19  ;;  %7092 = vlog2.f32 %v3990_v10  ;;  %v10706_v33 = vmul.f32 0.6931472, %v7079_v54  ;;  %v10719_v54 = vld [vmem:[%s7855_s12 + $0x38] sm:$0xff]  ;;  %v7460_v10 = vld [vmem:[%s7855_s12 + $0x60] sm:$0xff] }
 0x2be   : > { %v7083_v63 = vpop.eup %7082  ;;  %7094 = vlog2.f32 %v3940_v57  ;;  %5109 = vperm.xlu0 %6621, %v7459_v41   ;;  %v10704_v30 = vpop.permute.xlu1 %4274  ;;  %v3951_v29 = vmul.f32 0.6931472, %v7081_v20  ;;  %v3979_v5 = vadd.f32 %v3939_v13, %v12731_v37  ;;  %v3958_v57 = vadd.f32 1.0, %v10613_v60  ;;  %v7461_v37 = vld [vmem:[%s7855_s12 + $0x70] sm:$0xff] }
 0x2bf   : > { %v4127_v6 = vadd.f32 %v4112_v32, %v4111_v40  ;;  %v7085_v19 = vpop.eup %7084  ;;  %v4006_v51 = vmul.f32 0.6931472, %v7083_v63  ;;  %v10709_v50 = vpop.permute.xlu0 %4335  ;;  %7096 = vlog2.f32 %v3993_v48  ;;  %vm3911_vm9 = vcmp.lt.f32.partialorder %v3910_v45, 0.0004427343 }
 0x2c0   : > { %v3906_v1 = vmul.f32 0.6931472, %v7085_v19  ;;  %5084 = vperm.xlu1 %6620, %v10697_v43   ;;  %v3926_v24 = vadd.f32 1.0, %v3925_v11  ;;  %v3943_v20 = vmul.f32 -0.5, %v10587_v35  ;;  %7098 = vlog2.f32 %v3958_v57 }
 0x2c1   : > { %v4128_v40 = vadd.f32 %v4127_v6, %v4113_v8  ;;  %v4114_v32 = vsub.f32 %v4006_v51, %v10387_v58  ;;  %v4115_v8 = vsub.f32 %v4008_v52, %v10330_v9  ;;  %v3957_v58 = vsel %vm10685_vm6, %v3954_v25, %v3951_v29  ;;  %v4217_v29 = vld [vmem:[%s8050_s29 + $0x8] sm:$0xff] }
 0x2c2   : > { %v3912_v47 = vsel %vm3911_vm9, %v3909_v49, %v3906_v1  ;;  %5119 = vperm.xlu0 %6621, %v7460_v10   ;;  %v10724_v13 = vpop.permute.xlu1 %4284  ;;  %v12732_v45 = vmax.f32 %v10357_v23, 0.0  ;;  %v3928_v6 = vand.u32 2147483647, %v10557_v17  ;;  %v4117_v48 = vsub.f32 %v10706_v33, %v10350_v26 }
 0x2c3   : > { %v4129_v63 = vadd.f32 %v4128_v40, %v4114_v32  ;;  %v4346_v9 = vpop.permute.xlu0 %4345  ;;  %v7087_v52 = vpop.eup %7086  ;;  %v3995_v41 = vsel %vm3739_vm5, %v10291_v42, %v3979_v5  ;;  %vm3738_vm10 = vcmp.ne.f32.partialorder %v10371_v36, %v10371_v36  ;;  %v4315_v25 = vmin.f32 %v10508_v22, %v10210_v16  ;;  %v10749_v42 = vld [vmem:[%s7855_s12 + $0x48] sm:$0xff] }
 0x2c4   : > { %v3976_v11 = vadd.f32 %v3912_v47, %v12732_v45  ;;  %5094 = vperm.xlu1 %6620, %v10719_v54   ;;  %v7089_v38 = vpop.eup %7088  ;;  %v4010_v19 = vmul.f32 0.6931472, %v7087_v52  ;;  %v3927_v33 = vmul.f32 %v10557_v17, %v3926_v24  ;;  %v12733_v49 = vmax.f32 %v10328_v34, 0.0  ;;  %v7462_v47 = vld [vmem:[%s8055_s21 + $0x8] sm:$0xff] }
 0x2c5   : > { %v4130_v51 = vadd.f32 %v4129_v63, %v4115_v8  ;;  %v3924_v16 = vmul.f32 0.6931472, %v7089_v38  ;;  %v3944_v22 = vadd.f32 1.0, %v3943_v20  ;;  %vm3929_vm11 = vcmp.lt.f32.partialorder %v3928_v6, 0.0004427343 }
 0x2c6   : > { %v3992_v26 = vsel %vm3736_vm7, %v10357_v23, %v3976_v11  ;;  %v3981_v40 = vadd.f32 %v3957_v58, %v12733_v49  ;;  %5129 = vperm.xlu0 %6621, %v7461_v37   ;;  %v10754_v5 = vpop.permute.xlu1 %4294  ;;  %v4116_v1 = vsub.f32 %v4010_v19, %v10412_v14  ;;  %v3961_v23 = vmul.f32 -0.5, %v10613_v60  ;;  %v7091_v57 = vpop.eup %7090  ;;  %v10769_v11 = vld [vmem:[%s7855_s12 + $0x58] sm:$0xff] }
 0x2c7   : > { %7100 = vlog2.f32 %v3992_v26  ;;  %v4356_v17 = vpop.permute.xlu0 %4355  ;;  %v3930_v32 = vsel %vm3929_vm11, %v3927_v33, %v3924_v16  ;;  %v3946_v24 = vand.u32 2147483647, %v10587_v35  ;;  %v4313_v8 = vmin.f32 %v10571_v39, %v4217_v29 }
 0x2c8   : > { %7102 = vlog2.f32 %v3995_v41  ;;  %v4409_v20 = vmax.f32 %v10709_v50, %v7462_v47  ;;  %5104 = vperm.xlu1 %6620, %v10749_v42   ;;  %v4131_v10 = vadd.f32 %v4130_v51, %v4116_v1  ;;  %v12734_v14 = vmax.f32 %v10371_v36, 0.0  ;;  %v7463_v41 = vld [vmem:[%s7925_s10] sm:$0xff] }
 0x2c9   : > { %v4317_v58 = vmin.f32 %v10528_v0, %v10221_v28  ;;  %v4411_v45 = vmax.f32 %v4346_v9, %v10204_v46  ;;  %v3997_v39 = vsel %vm3741_vm8, %v10328_v34, %v3981_v40  ;;  %v3945_v50 = vmul.f32 %v10587_v35, %v3944_v22 }
 0x2ca   : > { %v3978_v63 = vadd.f32 %v3930_v32, %v12734_v14  ;;  %v7093_v6 = vpop.eup %7092  ;;  %v10776_v52 = vsub.f32 %v4313_v8, %v4409_v20  ;;  %5491 = vperm.xlu0 %6621, %v7463_v41   ;;  %v4413_v38 = vmax.f32 %v4356_v17, %v10229_v44  ;;  %v10780_v28 = vpop.permute.xlu1 %4304  ;;  %v4132_v9 = vadd.f32 %v4131_v10, %v4117_v48  ;;  %v10791_v44 = vld [vmem:[%s7855_s12 + $0x68] sm:$0xff]  ;;  %v4200_v14 = vld [vmem:[%s8055_s21] sm:$0xff] }
 0x2cb   : > { %v7095_v46 = vpop.eup %7094  ;;  %v4014_v0 = vmul.f32 0.6931472, %v7093_v6  ;;  %v3962_v34 = vadd.f32 1.0, %v3961_v23  ;;  %v4366_v35 = vpop.permute.xlu0 %4365  ;;  %v10787_v33 = vsub.f32 %v4315_v25, %v4411_v45  ;;  %v4016_v29 = vmul.f32 0.6931472, %v7091_v57  ;;  %v7464_v25 = vld [vmem:[%s7925_s10 + $0x10] sm:$0xff] }
 0x2cc   : > { %v3994_v19 = vsel %vm3738_vm10, %v10371_v36, %v3978_v63  ;;  %v3942_v51 = vmul.f32 0.6931472, %v7095_v46  ;;  %v4489_v26 = vand.u32 2147483647, %v10776_v52  ;;  %5114 = vperm.xlu1 %6620, %v10769_v11   ;;  %vm3947_vm12 = vcmp.lt.f32.partialorder %v3946_v24, 0.0004427343  ;;  %v7097_v49 = vpop.eup %7096 }
 0x2cd   : > { %7104 = vlog2.f32 %v3994_v19  ;;  %v4118_v48 = vsub.f32 %v4014_v0, %v10436_v59  ;;  %v3964_v36 = vand.u32 2147483647, %v10613_v60  ;;  %v3726_v40 = vmax.f32 %v10409_v3, 0.0  ;;  %v7099_v1 = vpop.eup %7098  ;;  %v4223_v57 = vld [vmem:[%s8050_s29 + $0x38] sm:$0xff] }
 0x2ce   : > { %vm3740_vm13 = vcmp.ne.f32.partialorder %v10404_v56, %v10404_v56  ;;  %v3948_v16 = vsel %vm3947_vm12, %v3945_v50, %v3942_v51  ;;  %5501 = vperm.xlu0 %6621, %v7464_v25   ;;  %v10799_v22 = vsub.f32 %v4317_v58, %v4413_v38  ;;  %v4331_v37 = vpop.permute.xlu1 %4330  ;;  %7106 = vlog2.f32 %v3997_v39  ;;  %v4896_v58 = vld [vmem:[%s7855_s12 + $0x78] sm:$0xff]  ;;  %v7465_v39 = vld [vmem:[%s7925_s10 + $0x20] sm:$0xff] }
 0x2cf   : > { %v12735_v59 = vmax.f32 %v10404_v56, 0.0  ;;  %v3963_v17 = vmul.f32 %v10613_v60, %v3962_v34  ;;  %v4505_v32 = vsub.f32 0.0, %v4489_v26  ;;  %v4376_v24 = vpop.permute.xlu0 %4375  ;;  %v4133_v8 = vadd.f32 %v4132_v9, %v4118_v48  ;;  %v7466_v26 = vld [vmem:[%s8050_s29] sm:$0xff] }
 0x2d0   : > { %v3960_v47 = vmul.f32 0.6931472, %v7099_v1  ;;  %v4491_v20 = vand.u32 2147483647, %v10787_v33  ;;  %v4415_v10 = vmax.f32 %v4366_v35, %v10261_v12  ;;  %5124 = vperm.xlu1 %6620, %v10791_v44   ;;  %v4119_v63 = vsub.f32 %v4016_v29, %v10376_v53 }
 0x2d1   : > { %v3980_v23 = vadd.f32 %v3948_v16, %v12735_v59  ;;  %vm3742_vm14 = vcmp.ne.f32.partialorder %v10409_v3, %v10409_v3  ;;  %vm3965_vm15 = vcmp.lt.f32.partialorder %v3964_v36, 0.0004427343  ;;  %v4319_v12 = vmin.f32 %v10555_v4, %v4223_v57  ;;  %v4225_v4 = vld [vmem:[%s8050_s29 + $0x48] sm:$0xff]  ;;  %v7467_v16 = vld [vmem:[%s7925_s10 + $0x30] sm:$0xff] }
 0x2d2   : > { %v3966_v45 = vsel %vm3965_vm15, %v3963_v17, %v3960_v47  ;;  %v4493_v6 = vand.u32 2147483647, %v10799_v22  ;;  %5511 = vperm.xlu0 %6621, %v7465_v39   ;;  %v4341_v53 = vpop.permute.xlu1 %4340  ;;  %v4020_v41 = vmul.f32 0.6931472, %v7097_v49  ;;  %v4522_v38 = vmul.f32 1.442695, %v4505_v32 }
 0x2d3   : > { %v3996_v60 = vsel %vm3740_vm13, %v10404_v56, %v3980_v23  ;;  %v3982_v56 = vadd.f32 %v3966_v45, %v3726_v40  ;;  %v4408_v46 = vmax.f32 %v4331_v37, %v4200_v14  ;;  %v10820_v0 = vpop.permute.xlu0 %4385  ;;  %v4134_v34 = vadd.f32 %v4133_v8, %v4119_v63  ;;  %v4914_v36 = vld [vmem:[%s7925_s10 + $0x8] sm:$0xff]  ;;  %v10836_v37 = vld [vmem:[%s8055_s21 + $0x10] sm:$0xff] }
 0x2d4   : > { %7108 = vlog2.f32 %v3996_v60  ;;  %v7101_v50 = vpop.eup %7100  ;;  %v4507_v35 = vsub.f32 0.0, %v4491_v20  ;;  %v10823_v51 = vsub.f32 %v4319_v12, %v4415_v10  ;;  %5134 = vperm.xlu1 %6620, %v4896_v58   ;;  %v4312_v29 = vmin.f32 %v10473_v61, %v7466_v26  ;;  %v4218_v57 = vld [vmem:[%s8050_s29 + $0x10] sm:$0xff]  ;;  %v7468_v60 = vld [vmem:[%s7925_s10 + $0x40] sm:$0xff] }
 0x2d5   : > { %v7103_v9 = vpop.eup %7102  ;;  %v4018_v19 = vmul.f32 0.6931472, %v7101_v50  ;;  %v3998_v48 = vsel %vm3742_vm14, %v10409_v3, %v3982_v56  ;;  %v4509_v40 = vsub.f32 0.0, %v4493_v6  ;;  %v4417_v25 = vmax.f32 %v4376_v24, %v10322_v18  ;;  %v12737_v45 = vld [vmem:[#allocation15_spill] sm:$0xff]  ;;  %v12738_v50 = vld [vmem:[#allocation12_spill] sm:$0xff] }
 0x2d6   : > { %7110 = vlog2.f32 %v3998_v48  ;;  %5521 = vperm.xlu0 %6621, %v7467_v16   ;;  %v10838_v1 = vpop.permute.xlu1 %4350  ;;  %v4321_v61 = vmin.f32 %v10577_v15, %v4225_v4  ;;  %v10841_v59 = vsub.f32 %v4312_v29, %v4408_v46  ;;  %v4526_v32 = vmul.f32 1.442695, %v4507_v35  ;;  %v4916_v15 = vld [vmem:[%s7925_s10 + $0x18] sm:$0xff]  ;;  %v10862_v46 = vld [vmem:[%s8055_s21 + $0x20] sm:$0xff]  ;;  %v4918_v4 = vld [vmem:[%s7925_s10 + $0x28] sm:$0xff] }
 0x2d7   : > { %v4120_v49 = vsub.f32 %v4018_v19, %v10461_v55  ;;  %7112 = vpow2.f32 %v4522_v38  ;;  %v10843_v3 = vpop.permute.xlu0 %4395  ;;  %v12736_v55 = vld [vmem:[#allocation9_spill] sm:$0xff]  ;;  %v4495_v18 = vand.u32 2147483647, %v10823_v51  ;;  %v4024_v8 = vmul.f32 0.6931472, %v7103_v9  ;;  %v4227_v56 = vld [vmem:[%s8050_s29 + $0x58] sm:$0xff] }
 0x2d8   : > { %v4121_v23 = vsub.f32 %v4020_v41, %v12736_v55  ;;  %5496 = vperm.xlu1 %6620, %v4914_v36   ;;  %v4410_v47 = vmax.f32 %v4341_v53, %v10836_v37  ;;  %v4530_v14 = vmul.f32 1.442695, %v4509_v40  ;;  %v10850_v63 = vsub.f32 %v4321_v61, %v4417_v25  ;;  %v12739_v19 = vld [vmem:[#allocation8_spill] sm:$0xff]  ;;  %v12740_v35 = vld [vmem:[#allocation10_spill] sm:$0xff]  ;;  %v10871_v48 = vld [vmem:[%s8050_s29 + $0x20] sm:$0xff] }
 0x2d9   : > { %v4135_v17 = vadd.f32 %v4134_v34, %v4120_v49  ;;  %v4314_v12 = vmin.f32 %v12737_v45, %v4218_v57  ;;  %v4488_v6 = vand.u32 2147483647, %v10841_v59  ;;  %7114 = vpow2.f32 %v4526_v32  ;;  %v4229_v36 = vld [vmem:[%s8050_s29 + $0x68] sm:$0xff]  ;;  %v7469_v40 = vld [vmem:[%s7925_s10 + $0x50] sm:$0xff]  ;;  %v12741_v61 = vld [vmem:[#allocation17_spill] sm:$0xff] }
 0x2da   : > { %v7105_v24 = vpop.eup %7104  ;;  %5531 = vperm.xlu0 %6621, %v7468_v60   ;;  %v10853_v58 = vpop.permute.xlu1 %4360  ;;  %v4511_v38 = vsub.f32 0.0, %v4495_v18  ;;  %v4419_v34 = vmax.f32 %v10820_v0, %v12739_v19  ;;  %v4123_v26 = vsub.f32 %v4024_v8, %v12740_v35  ;;  %7116 = vpow2.f32 %v4530_v14  ;;  %v10883_v0 = vld [vmem:[%s8050_s29 + $0x78] sm:$0xff] }
 0x2db   : > { %v4022_v20 = vmul.f32 0.6931472, %v7105_v24  ;;  %v4136_v10 = vadd.f32 %v4135_v17, %v4121_v23  ;;  %v10857_v39 = vpop.permute.xlu0 %4405  ;;  %v7107_v53 = vpop.eup %7106  ;;  %v10864_v9 = vsub.f32 %v4314_v12, %v4410_v47  ;;  %v4497_v49 = vand.u32 2147483647, %v10850_v63  ;;  %v10880_v23 = vld [vmem:[%s8050_s29 + $0x30] sm:$0xff]  ;;  %v10886_v17 = vld [vmem:[%s8050_s29 + $0x40] sm:$0xff] }
 0x2dc   : > { %5506 = vperm.xlu1 %6620, %v4916_v15   ;;  %v4323_v55 = vmin.f32 %v12741_v61, %v4227_v56  ;;  %v4504_v57 = vsub.f32 0.0, %v4488_v6  ;;  %v4412_v32 = vmax.f32 %v10838_v1, %v10862_v46  ;;  %v4028_v24 = vmul.f32 0.6931472, %v7107_v53  ;;  %v4920_v45 = vld [vmem:[%s7925_s10 + $0x38] sm:$0xff]  ;;  %v12742_v1 = vld [vmem:[#allocation13_spill] sm:$0xff]  ;;  %v10903_v53 = vld [vmem:[%s8050_s29 + $0x50] sm:$0xff] }
 0x2dd   : > { %v4122_v41 = vsub.f32 %v4022_v20, %v12738_v50  ;;  %v4534_v15 = vmul.f32 1.442695, %v4511_v38  ;;  %v4316_v20 = vmin.f32 %v10641_v2, %v10871_v48  ;;  %v4490_v14 = vand.u32 2147483647, %v10864_v9  ;;  %v7470_v38 = vld [vmem:[%s7925_s10 + $0x60] sm:$0xff] }
 0x2de   : > { %5541 = vperm.xlu0 %6621, %v7469_v40   ;;  %v10876_v16 = vpop.permute.xlu1 %4370  ;;  %v10896_v60 = vsub.f32 %v4323_v55, %v4419_v34  ;;  %v4318_v6 = vmin.f32 %v10670_v7, %v10880_v23  ;;  %v4513_v50 = vsub.f32 0.0, %v4497_v49  ;;  %v4327_v34 = vmin.f32 %v10677_v27, %v10883_v0  ;;  %v10933_v23 = vld [vmem:[%s8055_s21 + $0x40] sm:$0xff]  ;;  %v4922_v0 = vld [vmem:[%s7925_s10 + $0x48] sm:$0xff] }
 0x2df   : > { %v4137_v29 = vadd.f32 %v4136_v10, %v4122_v41  ;;  %v10890_v18 = vpop.permute.xlu0 %4767  ;;  %v4325_v10 = vmin.f32 %v10646_v62, %v4229_v36  ;;  %v12743_v41 = vld [vmem:[#allocation7_spill] sm:$0xff]  ;;  %v4320_v7 = vmin.f32 %v10704_v30, %v10886_v17  ;;  %v10917_v35 = vsub.f32 %v4316_v20, %v4412_v32  ;;  %v10927_v30 = vld [vmem:[%s8050_s29 + $0x60] sm:$0xff]  ;;  %12745 = vst [vmem:[#allocation9_spill] sm:$0xff] %v10933_v23  ;;  %v12746_v17 = vld [vmem:[#allocation14_spill] sm:$0xff] }
 0x2e0   : > { %5516 = vperm.xlu1 %6620, %v4918_v4   ;;  %v4421_v56 = vmax.f32 %v10843_v3, %v12743_v41  ;;  %v10909_v62 = vld [vmem:[%s8055_s21 + $0x30] sm:$0xff]  ;;  %v4520_v4 = vmul.f32 1.442695, %v4504_v57  ;;  %7118 = vpow2.f32 %v4534_v15  ;;  %v4322_v27 = vmin.f32 %v10724_v13, %v10903_v53 }
 0x2e1   : > { %v7109_v25 = vpop.eup %7108  ;;  %v4138_v47 = vadd.f32 %v4137_v29, %v4123_v26  ;;  %v12744_v29 = vld [vmem:[#allocation11_spill] sm:$0xff]  ;;  %v4499_v61 = vand.u32 2147483647, %v10896_v60  ;;  %v4414_v55 = vmax.f32 %v10853_v58, %v10909_v62  ;;  %v4492_v20 = vand.u32 2147483647, %v10917_v35 }
 0x2e2   : > { %v4026_v8 = vmul.f32 0.6931472, %v7109_v25  ;;  %5551 = vperm.xlu0 %6621, %v7470_v38   ;;  %v10911_v2 = vpop.permute.xlu1 %4380  ;;  %v4125_v36 = vsub.f32 %v4028_v24, %v12744_v29  ;;  %v4506_v25 = vsub.f32 0.0, %v4490_v14  ;;  %v4538_v24 = vmul.f32 1.442695, %v4513_v50  ;;  %v7472_v14 = vld [vmem:[%s8055_s21 + $0x78] sm:$0xff] }
 0x2e3   : > { %v7111_v19 = vpop.eup %7110  ;;  %v10919_v3 = vpop.permute.xlu0 %4777  ;;  %7120 = vpow2.f32 %v4520_v4  ;;  %v4423_v58 = vmax.f32 %v10857_v39, %v7472_v14  ;;  %v10952_v41 = vld [vmem:[%s8050_s29 + $0x70] sm:$0xff]  ;;  %v10958_v4 = vsub.f32 %v4318_v6, %v4414_v55  ;;  %v10961_v29 = vld [vmem:[%s7925_s10 + $0x58] sm:$0xff]  ;;  %vm4457_vm1 = vcmp.ne.f32.partialorder %v10776_v52, %v10776_v52 }
 0x2e4   : > { %v4124_v12 = vsub.f32 %v4026_v8, %v12742_v1  ;;  %v10921_v26 = vpop.eup %7112  ;;  %v4030_v40 = vmul.f32 0.6931472, %v7111_v19  ;;  %5526 = vperm.xlu1 %6620, %v4920_v45   ;;  %v10937_v8 = vsub.f32 %v4325_v10, %v4421_v56  ;;  %v4416_v56 = vmax.f32 %v10876_v16, %v10933_v23  ;;  %12747 = vst [vmem:[#allocation15_spill] sm:$0xff] %v10961_v29  ;;  %v10967_v16 = vld [vmem:[%s8055_s21 + $0x50] sm:$0xff] }
 0x2e5   : > { %v4561_v45 = vadd.f32 1.0, %v10921_v26  ;;  %v4524_v39 = vmul.f32 1.442695, %v4506_v25  ;;  %v4515_v19 = vsub.f32 0.0, %v4499_v61  ;;  %12748 = vst [vmem:[#allocation12_spill] sm:$0xff] %v10967_v16  ;;  %v4326_v6 = vmin.f32 %v10780_v28, %v10952_v41 }
 0x2e6   : > { %v4139_v49 = vadd.f32 %v4138_v47, %v4124_v12  ;;  %v4126_v57 = vsub.f32 %v4030_v40, %v12746_v17  ;;  %v7471_v47 = vld [vmem:[%s7925_s10 + $0x70] sm:$0xff]  ;;  %v10940_v15 = vpop.permute.xlu1 %4390  ;;  %v10956_v38 = vpop.eup %7114  ;;  %v4501_v40 = vand.u32 2147483647, %v10937_v8  ;;  %v12534_v17 = vmov 7  }
 0x2e7   : > { %5561 = vperm.xlu0 %6621, %v7471_v47   ;;  %v10946_v1 = vpop.permute.xlu0 %4787  ;;  %7122 = vlog2.f32 %v4561_v45  ;;  %v10971_v25 = vpop.eup %7116  ;;  %v4508_v61 = vsub.f32 0.0, %v4492_v20  ;;  %v10975_v55 = vsub.f32 %v4327_v34, %v4423_v58  ;;  %v10981_v45 = vsub.f32 %v4320_v7, %v4416_v56  ;;  %v10989_v20 = vld [vmem:[%s8055_s21 + $0x60] sm:$0xff]  ;;  %v10992_v58 = vld [vmem:[%s7925_s10 + $0x68] sm:$0xff] }
 0x2e8   : > { %v4140_v32 = vadd.f32 %v4139_v49, %v4125_v36  ;;  %5536 = vperm.xlu1 %6620, %v4922_v0   ;;  %7124 = vpow2.f32 %v4538_v24  ;;  %v4579_v49 = vadd.f32 1.0, %v10956_v38  ;;  %v4542_v28 = vmul.f32 1.442695, %v4515_v19  ;;  %12749 = vst [vmem:[#allocation8_spill] sm:$0xff] %v10989_v20  ;;  %12750 = vst [vmem:[#allocation10_spill] sm:$0xff] %v10992_v58 }
 0x2e9   : > { %7126 = vpow2.f32 %v4524_v39  ;;  %v4494_v24 = vand.u32 2147483647, %v10958_v4  ;;  %v4418_v34 = vmax.f32 %v10911_v2, %v10967_v16  ;;  %v4517_v41 = vsub.f32 0.0, %v4501_v40 }
 0x2ea   : > { %v4141_v12 = vadd.f32 %v4140_v32, %v4126_v57  ;;  %v10969_v0 = vpop.permute.xlu1 %4400  ;;  %v7473_v57 = vld [vmem:[%s7787_s28] sm:$0xff]  ;;  %v4597_v56 = vadd.f32 1.0, %v10971_v25  ;;  %v4528_v19 = vmul.f32 1.442695, %v4508_v61  ;;  %v4503_v2 = vand.u32 2147483647, %v10975_v55 }
 0x2eb   : > { %6622 = vset.pattern.permute.xlu0 %v12534_v17  ;;  %v10978_v32 = vpop.permute.xlu0 %4797  ;;  %7128 = vlog2.f32 %v4579_v49  ;;  %v4496_v7 = vand.u32 2147483647, %v10981_v45  ;;  %v4420_v40 = vmax.f32 %v10940_v15, %v10989_v20  ;;  %v5612_v17 = vld [vmem:[%s7855_s12 + $0x10] sm:$0xff]  ;;  %v4510_v61 = vsub.f32 0.0, %v4494_v24 }
 0x2ec   : > { %v4142_v36 = vrot.slane %v4141_v12, 4  ;;  %5692 = vperm.xlu0 %6622, %v7473_v57   ;;  %5546 = vperm.xlu1 %6620, %v10961_v29   ;;  %7130 = vpow2.f32 %v4542_v28  ;;  %v11013_v49 = vsub.f32 %v4322_v27, %v4418_v34  ;;  %v4546_v39 = vmul.f32 1.442695, %v4517_v41 }
 0x2ed   : > { %v11008_v10 = vpop.eup %7118  ;;  %7132 = vlog2.f32 %v4597_v56  ;;  %v4519_v24 = vsub.f32 0.0, %v4503_v2  ;;  %v4564_v13 = vmul.f32 -0.5, %v10921_v26  ;;  %v12753_v34 = vmin.f32 %v10754_v5, %v10927_v30  ;;  %v5614_v56 = vld [vmem:[%s7855_s12 + $0x20] sm:$0xff] }
 0x2ee   : > { %v4143_v47 = vadd.f32 %v4142_v36, %v4141_v12  ;;  %v4214_v36 = vld [vmem:[%s8055_s21 + $0x70] sm:$0xff]  ;;  %v10997_v57 = vpop.permute.xlu1 %4762  ;;  %7134 = vpow2.f32 %v4528_v19  ;;  %v4615_v41 = vadd.f32 1.0, %v11008_v10  ;;  %v4532_v19 = vmul.f32 1.442695, %v4510_v61 }
 0x2ef   : > { %v4498_v2 = vand.u32 2147483647, %v11013_v49  ;;  %7136 = vpow2.f32 %v4546_v39  ;;  %v4567_v5 = vand.u32 2147483647, %v10921_v26  ;;  %v12755_v15 = vmov 7  }
 0x2f0   : > { %v4144_v12 = vrot.slane %v4143_v47, 2  ;;  %5793 = vperm.xlu0 %6622, %v10627_v31   ;;  %5556 = vperm.xlu1 %6620, %v10992_v58   ;;  %v4422_v31 = vmax.f32 %v10969_v0, %v4214_v36  ;;  %v11026_v53 = vpop.eup %7120  ;;  %v4512_v0 = vsub.f32 0.0, %v4496_v7  ;;  %v11031_v36 = vsub.f32 %v12753_v34, %v4420_v40 }
 0x2f1   : > { %v4550_v40 = vmul.f32 1.442695, %v4519_v24  ;;  %v4565_v34 = vadd.f32 1.0, %v4564_v13  ;;  %7138 = vlog2.f32 %v4615_v41  ;;  %v4552_v61 = vadd.f32 1.0, %v11026_v53 }
 0x2f2   : > { %v4145_v14 = vadd.f32 %v4144_v12, %v4143_v47  ;;  %v11016_v47 = vpop.permute.xlu0 %4807  ;;  %v11019_v12 = vld [vmem:[%s7925_s10 + $0x78] sm:$0xff]  ;;  %v11022_v58 = vpop.permute.xlu1 %4772  ;;  %v4536_v39 = vmul.f32 1.442695, %v4512_v0  ;;  %vm11064_vm0 = vcmp.lt.f32.partialorder %v4567_v5, 0.0004427343  ;;  %v4618_v23 = vmul.f32 -0.5, %v11008_v10 }
 0x2f3   : > { %12751 = vst [vmem:[#allocation17_spill] sm:$0xff] %v11016_v47  ;;  %12752 = vst [vmem:[#allocation13_spill] sm:$0xff] %v11019_v12  ;;  %vm4459_vm2 = vcmp.ne.f32.partialorder %v10787_v33, %v10787_v33  ;;  %v5629_v47 = vld [vmem:[%s7787_s28 + $0x18] sm:$0xff]  ;;  %vm4461_vm5 = vcmp.ne.f32.partialorder %v10799_v22, %v10799_v22  ;;  %vm4456_vm6 = vcmp.ne.f32.partialorder %v10841_v59, %v10841_v59 }
 0x2f4   : > { %v4146_v50 = vrot.slane %v4145_v14, 1  ;;  %5798 = vperm.xlu0 %6622, %v5612_v17   ;;  %5566 = vperm.xlu1 %6620, %v11019_v12   ;;  %v11037_v17 = vsub.f32 %v4326_v6, %v4422_v31  ;;  %v7123_v7 = vpop.eup %7122  ;;  %v4600_v12 = vmul.f32 -0.5, %v10971_v25  ;;  %vm4463_vm8 = vcmp.ne.f32.partialorder %v10823_v51, %v10823_v51 }
 0x2f5   : > { %v11048_v31 = vpop.eup %7124  ;;  %v4563_v0 = vmul.f32 0.6931472, %v7123_v7  ;;  %vm4458_vm10 = vcmp.ne.f32.partialorder %v10864_v9, %v10864_v9  ;;  %vm4465_vm12 = vcmp.ne.f32.partialorder %v10850_v63, %v10850_v63  ;;  %vm4460_vm15 = vcmp.ne.f32.partialorder %v10917_v35, %v10917_v35 }
 0x2f6   : > { %v4147_v27 = vadd.f32 %v4146_v50, %v4145_v14  ;;  %v11041_v30 = vpop.permute.xlu1 %4782  ;;  %v5627_v14 = vld [vmem:[%s7787_s28 + $0x8] sm:$0xff]  ;;  %v11046_v6 = vpop.permute.xlu0 %4817  ;;  %v4500_v50 = vand.u32 2147483647, %v11031_v36  ;;  %v4502_v13 = vand.u32 2147483647, %v11037_v17  ;;  %v4601_v16 = vadd.f32 1.0, %v4600_v12 }
 0x2f7   : > { %12754 = vst [vmem:[#allocation7_spill] sm:$0xff] %v11046_v6  ;;  %v11056_v41 = vpop.eup %7126  ;;  %v5610_v6 = vld [vmem:[%s7855_s12] sm:$0xff] }
 0x2f8   : > { %v4149_v28 = vmul.f32 1.442695, %v4147_v27  ;;  %5803 = vperm.xlu0 %6622, %v10662_v21   ;;  %v4582_v27 = vmul.f32 -0.5, %v10956_v38  ;;  %6623 = vset.pattern.permute.xlu1 %v12755_v15  ;;  %v4514_v21 = vsub.f32 0.0, %v4498_v2  ;;  %v4566_v15 = vmul.f32 %v10921_v26, %v4565_v34 }
 0x2f9   : > { %5697 = vperm.xlu1 %6623, %v5627_v14   ;;  %v4633_v2 = vadd.f32 1.0, %v11048_v31  ;;  %v7129_v14 = vpop.eup %7128  ;;  %v4603_v26 = vand.u32 2147483647, %v10971_v25  ;;  %v4518_v5 = vsub.f32 0.0, %v4502_v13  ;;  %v4570_v34 = vadd.f32 1.0, %v11056_v41 }
 0x2fa   : > { %7140 = vpow2.f32 %v4149_v28  ;;  %v11060_v20 = vpop.permute.xlu1 %4792  ;;  %v4583_v7 = vadd.f32 1.0, %v4582_v27  ;;  %v4516_v28 = vsub.f32 0.0, %v4500_v50  ;;  %v11074_v24 = vpop.permute.xlu0 %4827  ;;  %v4581_v29 = vmul.f32 0.6931472, %v7129_v14  ;;  %v5628_v50 = vld [vmem:[%s7787_s28 + $0x10] sm:$0xff] }
 0x2fb   : > { %7142 = vpow2.f32 %v4532_v19  ;;  %12758 = vst [vmem:[#allocation11_spill] sm:$0xff] %v11074_v24  ;;  %v4555_v19 = vmul.f32 -0.5, %v11026_v53  ;;  %vm11100_vm4 = vcmp.lt.f32.partialorder %v4603_v26, 0.0004427343  ;;  %v4548_v13 = vmul.f32 1.442695, %v4518_v5 }
 0x2fc   : > { %7144 = vlog2.f32 %v4552_v61  ;;  %5808 = vperm.xlu0 %6622, %v5614_v56   ;;  %v4585_v61 = vand.u32 2147483647, %v10956_v38  ;;  %v11076_v56 = vpop.eup %7130  ;;  %v4584_v12 = vmul.f32 %v10956_v38, %v4583_v7  ;;  %v4558_v26 = vand.u32 2147483647, %v11026_v53 }
 0x2fd   : > { %7146 = vpow2.f32 %v4550_v40  ;;  %v4540_v40 = vmul.f32 1.442695, %v4514_v21  ;;  %5788 = vperm.xlu1 %6623, %v5610_v6   ;;  %v7133_v21 = vpop.eup %7132 }
 0x2fe   : > { %7148 = vpow2.f32 %v4536_v39  ;;  %v4569_v39 = vsel %vm11064_vm0, %v4566_v15, %v4563_v0  ;;  %v11080_v27 = vpop.permute.xlu1 %4802  ;;  %v11087_v6 = vpop.eup %7134  ;;  %vm11092_vm3 = vcmp.lt.f32.partialorder %v4585_v61, 0.0004427343  ;;  %v4544_v15 = vmul.f32 1.442695, %v4516_v28 }
 0x2ff   : > { %7150 = vlog2.f32 %v4633_v2  ;;  %v12761_v2 = vmax.f32 %v10776_v52, 0.0  ;;  %v4587_v38 = vsel %vm11092_vm3, %v4584_v12, %v4581_v29  ;;  %v4599_v7 = vmul.f32 0.6931472, %v7133_v21  ;;  %v11110_v24 = vpop.eup %7136 }
 0x300   : > { %7152 = vlog2.f32 %v4570_v34  ;;  %5813 = vperm.xlu0 %6622, %v10697_v43   ;;  %v4602_v28 = vmul.f32 %v10971_v25, %v4601_v16  ;;  %v4588_v5 = vadd.f32 1.0, %v11087_v6  ;;  %v7139_v29 = vpop.eup %7138  ;;  %v4556_v25 = vadd.f32 1.0, %v4555_v19 }
 0x301   : > { %v4697_v14 = vadd.f32 %v4569_v39, %v12761_v2  ;;  %5702 = vperm.xlu1 %6623, %v5628_v50   ;;  %7154 = vpow2.f32 %v4540_v40  ;;  %v4619_v39 = vadd.f32 1.0, %v4618_v23  ;;  %v4651_v2 = vadd.f32 1.0, %v11076_v56  ;;  %v12765_v50 = vld [vmem:[#allocation16_spill] sm:$0xff]  ;;  %v11116_v40 = vpop.permute.xlu0 %4837 }
 0x302   : > { %v11107_v61 = vpop.permute.xlu1 %4812  ;;  %12766 = vst [vmem:[#allocation16_spill] sm:$0xff] %v11116_v40  ;;  %7156 = vpow2.f32 %v4544_v15  ;;  %v4621_v23 = vand.u32 2147483647, %v11008_v10  ;;  %v12767_v0 = vmax.f32 %v10787_v33, 0.0  ;;  %v4573_v15 = vmul.f32 -0.5, %v11056_v41 }
 0x303   : > { %12764 = vst [vmem:[#allocation14_spill] sm:$0xff] %v11107_v61  ;;  %v4713_v12 = vsel %vm4457_vm1, %v10776_v52, %v4697_v14  ;;  %7158 = vpow2.f32 %v4548_v13  ;;  %v4605_v16 = vsel %vm11100_vm4, %v4602_v28, %v4599_v7  ;;  %v4669_v52 = vadd.f32 1.0, %v11110_v24  ;;  %v5630_v14 = vld [vmem:[%s7787_s28 + $0x20] sm:$0xff] }
 0x304   : > { %5818 = vperm.xlu0 %6622, %v12765_v50   ;;  %v4699_v50 = vadd.f32 %v4587_v38, %v12767_v0  ;;  %7160 = vlog2.f32 %v4588_v5  ;;  %v4620_v38 = vmul.f32 %v11008_v10, %v4619_v39  ;;  %vm11141_vm7 = vcmp.lt.f32.partialorder %v4558_v26, 0.0004427343  ;;  %v5618_v0 = vld [vmem:[%s7855_s12 + $0x40] sm:$0xff] }
 0x305   : > { %5707 = vperm.xlu1 %6623, %v5629_v47   ;;  %v4636_v34 = vmul.f32 -0.5, %v11048_v31  ;;  %7162 = vlog2.f32 %v4651_v2  ;;  %v4617_v28 = vmul.f32 0.6931472, %v7139_v29  ;;  %v12771_v39 = vmax.f32 %v10799_v22, 0.0 }
 0x306   : > { %v11137_v19 = vpop.permute.xlu1 %4822  ;;  %7164 = vlog2.f32 %v4713_v12  ;;  %v4715_v10 = vsel %vm4459_vm2, %v10787_v33, %v4699_v50  ;;  %v11160_v12 = vpop.permute.xlu0 %4968  ;;  %vm11164_vm9 = vcmp.lt.f32.partialorder %v4621_v23, 0.0004427343  ;;  %v4576_v33 = vand.u32 2147483647, %v11056_v41 }
 0x307   : > { %v7141_v21 = vpop.eup %7140  ;;  %12768 = vst [vmem:[#allocation18_spill] sm:$0xff] %v11137_v19  ;;  %v4701_v26 = vadd.f32 %v4605_v16, %v12771_v39  ;;  %7166 = vlog2.f32 %v4669_v52  ;;  %v4639_v39 = vand.u32 2147483647, %v11048_v31  ;;  %v4623_v47 = vsel %vm11164_vm9, %v4620_v38, %v4617_v28 }
 0x308   : > { %v11129_v43 = vpop.eup %7142  ;;  %4151 = vst [vmem:[%s8862_s13 + $0x4] sm:$0x1] %v7141_v21  ;;  %5823 = vperm.xlu0 %6622, %v10719_v54   ;;  %v4557_v21 = vmul.f32 %v11026_v53, %v4556_v25  ;;  %v4574_v54 = vadd.f32 1.0, %v4573_v15  ;;  %v5631_v25 = vld [vmem:[%s7787_s28 + $0x28] sm:$0xff]  ;;  %v12775_v15 = vmax.f32 %v10841_v59, 0.0  ;;  %v4591_v52 = vmul.f32 -0.5, %v11087_v6 }
 0x309   : > { %v7145_v13 = vpop.eup %7144  ;;  %v4606_v2 = vadd.f32 1.0, %v11129_v43  ;;  %5712 = vperm.xlu1 %6623, %v5630_v14   ;;  %vm4577_vm11 = vcmp.lt.f32.partialorder %v4576_v33, 0.0004427343  ;;  %v4654_v38 = vmul.f32 -0.5, %v11076_v56  ;;  %v12777_v33 = vmax.f32 %v10864_v9, 0.0 }
 0x30a   : > { %v11147_v7 = vpop.eup %7146  ;;  %v4554_v5 = vmul.f32 0.6931472, %v7145_v13  ;;  %v11171_v16 = vpop.permute.xlu1 %4832  ;;  %v4637_v13 = vadd.f32 1.0, %v4636_v34  ;;  %v4717_v34 = vsel %vm4461_vm5, %v10799_v22, %v4701_v26  ;;  %v12776_v26 = vmax.f32 %v10823_v51, 0.0 }
 0x30b   : > { %v11151_v40 = vpop.eup %7148  ;;  %12774 = vst [vmem:[#allocation19_spill] sm:$0xff] %v11171_v16  ;;  %7168 = vlog2.f32 %v4606_v2  ;;  %v4687_v28 = vadd.f32 1.0, %v11147_v7  ;;  %v5632_v2 = vld [vmem:[%s7787_s28 + $0x30] sm:$0xff]  ;;  %vm11220_vm13 = vcmp.lt.f32.partialorder %v4639_v39, 0.0004427343  ;;  %vm4462_vm2 = vcmp.ne.f32.partialorder %v10958_v4, %v10958_v4 }
 0x30c   : > { %v4560_v29 = vsel %vm11141_vm7, %v4557_v21, %v4554_v5  ;;  %v7151_v50 = vpop.eup %7150  ;;  %5828 = vperm.xlu0 %6622, %v5618_v0   ;;  %7170 = vlog2.f32 %v4715_v10  ;;  %v4575_v0 = vmul.f32 %v11056_v41, %v4574_v54  ;;  %v11191_v10 = vpop.permute.xlu0 %4983  ;;  %v4703_v53 = vadd.f32 %v4623_v47, %v12776_v26  ;;  %v5633_v26 = vld [vmem:[%s7787_s28 + $0x38] sm:$0xff] }
 0x30d   : > { %v4696_v14 = vadd.f32 %v4560_v29, %v12775_v15  ;;  %v7153_v23 = vpop.eup %7152  ;;  %5717 = vperm.xlu1 %6623, %v5631_v25   ;;  %v4638_v29 = vmul.f32 %v11048_v31, %v4637_v13  ;;  %v4592_v15 = vadd.f32 1.0, %v4591_v52  ;;  %v4657_v31 = vand.u32 2147483647, %v11076_v56 }
 0x30e   : > { %v4572_v21 = vmul.f32 0.6931472, %v7153_v23  ;;  %v11196_v22 = vpop.eup %7154  ;;  %v5620_v23 = vld [vmem:[%s7855_s12 + $0x50] sm:$0xff]  ;;  %v4624_v13 = vadd.f32 1.0, %v11151_v40  ;;  %vm4467_vm3 = vcmp.ne.f32.partialorder %v10896_v60, %v10896_v60  ;;  %vm4469_vm5 = vcmp.ne.f32.partialorder %v10937_v8, %v10937_v8 }
 0x30f   : > { %v4712_v5 = vsel %vm4456_vm6, %v10841_v59, %v4696_v14  ;;  %v4635_v59 = vmul.f32 0.6931472, %v7151_v50  ;;  %v11202_v54 = vpop.permute.xlu1 %4963  ;;  %v4672_v14 = vmul.f32 -0.5, %v11110_v24  ;;  %v4609_v50 = vmul.f32 -0.5, %v11129_v43 }
 0x310   : > { %7172 = vlog2.f32 %v4712_v5  ;;  %v4578_v41 = vsel %vm4577_vm11, %v4575_v0, %v4572_v21  ;;  %5833 = vperm.xlu0 %6622, %v10749_v42   ;;  %v11208_v5 = vpop.eup %7156  ;;  %v4594_v42 = vand.u32 2147483647, %v11087_v6  ;;  %v11216_v47 = vpop.permute.xlu0 %4993  ;;  %v4655_v0 = vadd.f32 1.0, %v4654_v38 }
 0x311   : > { %7174 = vlog2.f32 %v4717_v34  ;;  %v4698_v25 = vadd.f32 %v4578_v41, %v12777_v33  ;;  %5722 = vperm.xlu1 %6623, %v5632_v2   ;;  %v11218_v52 = vpop.eup %7158  ;;  %v4719_v2 = vsel %vm4463_vm8, %v10823_v51, %v4703_v53  ;;  %v4641_v39 = vsel %vm11220_vm13, %v4638_v29, %v4635_v59 }
 0x312   : > { %7176 = vlog2.f32 %v4687_v28  ;;  %v7161_v41 = vpop.eup %7160  ;;  %v4675_v33 = vand.u32 2147483647, %v11110_v24  ;;  %v4593_v38 = vmul.f32 %v11087_v6, %v4592_v15  ;;  %v4673_v28 = vadd.f32 1.0, %v4672_v14  ;;  %v5634_v14 = vld [vmem:[%s7787_s28 + $0x40] sm:$0xff] }
 0x313   : > { %v4714_v21 = vsel %vm4458_vm10, %v10864_v9, %v4698_v25  ;;  %v11236_v16 = vpop.permute.xlu1 %4973  ;;  %v7163_v19 = vpop.eup %7162  ;;  %v4590_v9 = vmul.f32 0.6931472, %v7161_v41  ;;  %vm11239_vm14 = vcmp.lt.f32.partialorder %v4657_v31, 0.0004427343  ;;  %vm4595_vm0 = vcmp.lt.f32.partialorder %v4594_v42, 0.0004427343 }
 0x314   : > { %7178 = vlog2.f32 %v4714_v21  ;;  %5838 = vperm.xlu0 %6622, %v5620_v23   ;;  %v7165_v25 = vpop.eup %7164  ;;  %v4610_v51 = vadd.f32 1.0, %v4609_v50  ;;  %v11245_v53 = vpop.permute.xlu0 %5003  ;;  %v12782_v59 = vmax.f32 %v10850_v63, 0.0  ;;  %v4612_v15 = vand.u32 2147483647, %v11129_v43 }
 0x315   : > { %7180 = vlog2.f32 %v4624_v13  ;;  %5727 = vperm.xlu1 %6623, %v5633_v26   ;;  %v4596_v6 = vsel %vm4595_vm0, %v4593_v38, %v4590_v9  ;;  %v7167_v23 = vpop.eup %7166  ;;  %v4653_v31 = vmul.f32 0.6931472, %v7163_v19  ;;  %v4656_v13 = vmul.f32 %v11076_v56, %v4655_v0  ;;  %v5622_v56 = vld [vmem:[%s7855_s12 + $0x60] sm:$0xff] }
 0x316   : > { %7182 = vlog2.f32 %v4719_v2  ;;  %v4705_v29 = vadd.f32 %v4641_v39, %v12782_v59  ;;  %v12783_v34 = vmax.f32 %v10917_v35, 0.0  ;;  %v4642_v50 = vadd.f32 1.0, %v11196_v22 }
 0x317   : > { %v11256_v21 = vpop.permute.xlu1 %4978  ;;  %v11258_v41 = vmul.f32 0.6931472, %v7165_v25  ;;  %v11261_v2 = vmul.f32 %v11110_v24, %v4673_v28  ;;  %vm11263_vm1 = vcmp.lt.f32.partialorder %v4675_v33, 0.0004427343  ;;  %v4611_v39 = vmul.f32 %v11129_v43, %v4610_v51  ;;  %v5635_v25 = vld [vmem:[%s7787_s28 + $0x48] sm:$0xff] }
 0x318   : > { %v4700_v42 = vadd.f32 %v4596_v6, %v12783_v34  ;;  %5843 = vperm.xlu0 %6622, %v10769_v11   ;;  %v7169_v26 = vpop.eup %7168  ;;  %v4627_v33 = vmul.f32 -0.5, %v11151_v40  ;;  %v11278_v9 = vpop.permute.xlu0 %5013  ;;  %v4721_v38 = vsel %vm4465_vm12, %v10850_v63, %v4705_v29  ;;  %vm4613_vm4 = vcmp.lt.f32.partialorder %v4612_v15, 0.0004427343 }
 0x319   : > { %v7171_v0 = vpop.eup %7170  ;;  %v4608_v24 = vmul.f32 0.6931472, %v7169_v26  ;;  %5732 = vperm.xlu1 %6623, %v5634_v14   ;;  %v4690_v28 = vmul.f32 -0.5, %v11147_v7  ;;  %v4671_v43 = vmul.f32 0.6931472, %v7167_v23  ;;  %v12786_v63 = vmax.f32 %v10958_v4, 0.0 }
 0x31a   : > { %v4716_v11 = vsel %vm4460_vm15, %v10917_v35, %v4700_v42  ;;  %v4659_v35 = vsel %vm11239_vm14, %v4656_v13, %v4653_v31  ;;  %v11290_v14 = vmul.f32 0.6931472, %v7171_v0  ;;  %v4693_v15 = vand.u32 2147483647, %v11147_v7 }
 0x31b   : > { %7184 = vlog2.f32 %v4716_v11  ;;  %v4614_v51 = vsel %vm4613_vm4, %v4611_v39, %v4608_v24  ;;  %v11288_v6 = vpop.permute.xlu1 %4988  ;;  %v4841_v61 = vsub.f32 %v11258_v41, %v10890_v18  ;;  %v4628_v23 = vadd.f32 1.0, %v4627_v33  ;;  %v5636_v41 = vld [vmem:[%s7787_s28 + $0x50] sm:$0xff] }
 0x31c   : > { %7186 = vlog2.f32 %v4642_v50  ;;  %5848 = vperm.xlu0 %6622, %v5622_v56   ;;  %v4702_v29 = vadd.f32 %v4614_v51, %v12786_v63  ;;  %v4630_v31 = vand.u32 2147483647, %v11151_v40  ;;  %v4660_v13 = vadd.f32 1.0, %v11208_v5  ;;  %v11301_v50 = vpop.permute.xlu0 %5023  ;;  %v5637_v63 = vld [vmem:[%s7787_s28 + $0x58] sm:$0xff] }
 0x31d   : > { %v7173_v59 = vpop.eup %7172  ;;  %5737 = vperm.xlu1 %6623, %v5635_v25   ;;  %7188 = vlog2.f32 %v4721_v38  ;;  %v12787_v26 = vmax.f32 %v10896_v60, 0.0  ;;  %vm4464_vm6 = vcmp.ne.f32.partialorder %v10981_v45, %v10981_v45  ;;  %v4677_v24 = vsel %vm11263_vm1, %v11261_v2, %v4671_v43 }
 0x31e   : > { %v4729_v34 = vmul.f32 0.6931472, %v7173_v59  ;;  %v7175_v42 = vpop.eup %7174  ;;  %v4718_v18 = vsel %vm4462_vm2, %v10958_v4, %v4702_v29  ;;  %v4691_v39 = vadd.f32 1.0, %v4690_v28  ;;  %v4843_v4 = vsub.f32 %v11290_v14, %v10919_v3  ;;  %v4947_v59 = vld [vmem:[%s8050_s29 + $0x10] sm:$0xff] }
 0x31f   : > { %v4707_v56 = vadd.f32 %v4659_v35, %v12787_v26  ;;  %v7177_v0 = vpop.eup %7176  ;;  %7190 = vlog2.f32 %v4718_v18  ;;  %v11317_v33 = vpop.permute.xlu1 %4998  ;;  %v11321_v25 = vmul.f32 0.6931472, %v7175_v42  ;;  %vm11323_vm7 = vcmp.lt.f32.partialorder %v4693_v15, 0.0004427343  ;;  %v4945_v18 = vld [vmem:[%s8050_s29] sm:$0xff] }
 0x320   : > { %v4840_v11 = vsub.f32 %v4729_v34, %v10997_v57  ;;  %5853 = vperm.xlu0 %6622, %v10791_v44   ;;  %7192 = vlog2.f32 %v4660_v13  ;;  %v5624_v57 = vld [vmem:[%s7855_s12 + $0x70] sm:$0xff]  ;;  %v4629_v28 = vmul.f32 %v11151_v40, %v4628_v23  ;;  %vm11329_vm8 = vcmp.lt.f32.partialorder %v4630_v31, 0.0004427343  ;;  %v11334_v3 = vpop.permute.xlu0 %5033 }
 0x321   : > { %v7179_v38 = vpop.eup %7178  ;;  %v4645_v35 = vmul.f32 -0.5, %v11196_v22  ;;  %5742 = vperm.xlu1 %6623, %v5636_v41   ;;  %v4723_v43 = vsel %vm4467_vm3, %v10896_v60, %v4707_v56  ;;  %v12792_v51 = vmax.f32 %v10937_v8, 0.0  ;;  %v4678_v40 = vadd.f32 1.0, %v11218_v52 }
 0x322   : > { %v7181_v2 = vpop.eup %7180  ;;  %v4733_v19 = vmul.f32 0.6931472, %v7179_v38  ;;  %v4856_v15 = vadd.f32 %v4841_v61, %v4840_v11  ;;  %v4689_v23 = vmul.f32 0.6931472, %v7177_v0  ;;  %v4663_v31 = vmul.f32 -0.5, %v11208_v5 }
 0x323   : > { %v4709_v14 = vadd.f32 %v4677_v24, %v12792_v51  ;;  %v4626_v34 = vmul.f32 0.6931472, %v7181_v2  ;;  %v7183_v29 = vpop.eup %7182  ;;  %v11346_v13 = vpop.permute.xlu1 %5008  ;;  %v4845_v60 = vsub.f32 %v11321_v25, %v10946_v1  ;;  %v4692_v26 = vmul.f32 %v11147_v7, %v4691_v39 }
 0x324   : > { %v4842_v42 = vsub.f32 %v4733_v19, %v11022_v58  ;;  %5858 = vperm.xlu0 %6622, %v5624_v57   ;;  %7194 = vlog2.f32 %v4678_v40  ;;  %v12793_v58 = vmax.f32 %v10981_v45, 0.0  ;;  %vm4466_vm9 = vcmp.ne.f32.partialorder %v11013_v49, %v11013_v49  ;;  %v5060_v24 = vpop.permute.xlu0 %5059  ;;  %v5638_v57 = vld [vmem:[%s7787_s28 + $0x60] sm:$0xff] }
 0x325   : > { %v4632_v56 = vsel %vm11329_vm8, %v4629_v28, %v4626_v34  ;;  %v4646_v0 = vadd.f32 1.0, %v4645_v35  ;;  %v4648_v11 = vand.u32 2147483647, %v11196_v22  ;;  %5747 = vperm.xlu1 %6623, %v5637_v63   ;;  %v11359_v38 = vmul.f32 0.6931472, %v7183_v29  ;;  %v7475_v40 = vld [vmem:[%s8055_s21] sm:$0xff] }
 0x326   : > { %v4857_v61 = vadd.f32 %v4856_v15, %v4842_v42  ;;  %v4704_v41 = vadd.f32 %v4632_v56, %v12793_v58  ;;  %7196 = vlog2.f32 %v4723_v43  ;;  %v4725_v7 = vsel %vm4469_vm5, %v10937_v8, %v4709_v14  ;;  %v7474_v43 = vld [vmem:[%s7855_s12 + $0x78] sm:$0xff]  ;;  %v5639_v56 = vld [vmem:[%s7787_s28 + $0x68] sm:$0xff] }
 0x327   : > { %v4666_v39 = vand.u32 2147483647, %v11208_v5  ;;  %v4695_v19 = vsel %vm11323_vm7, %v4692_v26, %v4689_v23  ;;  %v4664_v44 = vadd.f32 1.0, %v4663_v31  ;;  %v5041_v35 = vmin.f32 %v11202_v54, %v4945_v18  ;;  %v11375_v8 = vpop.permute.xlu1 %5018 }
 0x328   : > { %v7185_v2 = vpop.eup %7184  ;;  %v4720_v28 = vsel %vm4464_vm6, %v10981_v45, %v4704_v41  ;;  %5863 = vperm.xlu0 %6622, %v7474_v43   ;;  %v4858_v34 = vadd.f32 %v4857_v61, %v4843_v4  ;;  %vm4471_vm10 = vcmp.ne.f32.partialorder %v10975_v55, %v10975_v55  ;;  %v5137_v63 = vmax.f32 %v5060_v24, %v7475_v40  ;;  %v7477_v40 = vld [vmem:[%s7925_s10 + $0x18] sm:$0xff] }
 0x329   : > { %v7187_v51 = vpop.eup %7186  ;;  %v4737_v14 = vmul.f32 0.6931472, %v7185_v2  ;;  %7198 = vlog2.f32 %v4720_v28  ;;  %v4647_v45 = vmul.f32 %v11196_v22, %v4646_v0  ;;  %vm11382_vm11 = vcmp.lt.f32.partialorder %v4648_v11, 0.0004427343  ;;  %v5070_v42 = vpop.permute.xlu0 %5069  ;;  %5752 = vperm.xlu1 %6623, %v5638_v57  }
 0x32a   : > { %v4644_v29 = vmul.f32 0.6931472, %v7187_v51  ;;  %v4681_v15 = vmul.f32 -0.5, %v11218_v52  ;;  %v5045_v23 = vmin.f32 %v11191_v10, %v10871_v48  ;;  %v11390_v31 = vsub.f32 %v5041_v35, %v5137_v63  ;;  %v11394_v18 = vpop.eup %7188  ;;  %v5640_v51 = vld [vmem:[%s7787_s28 + $0x70] sm:$0xff] }
 0x32b   : > { %v4844_v4 = vsub.f32 %v4737_v14, %v11041_v30  ;;  %v5139_v26 = vmax.f32 %v5070_v42, %v10836_v37  ;;  %7200 = vlog2.f32 %v4725_v7  ;;  %v12796_v22 = vmax.f32 %v10975_v55, 0.0  ;;  %v7476_v30 = vld [vmem:[%s7925_s10 + $0x8] sm:$0xff]  ;;  %v11402_v0 = vpop.permute.xlu1 %5028 }
 0x32c   : > { %v4650_v58 = vsel %vm11382_vm11, %v4647_v45, %v4644_v29  ;;  %v5043_v41 = vmin.f32 %v11236_v16, %v4947_v59  ;;  %6225 = vperm.xlu0 %6622, %v7476_v30   ;;  %v7191_v48 = vpop.eup %7190  ;;  %v12797_v37 = vmax.f32 %v11013_v49, 0.0  ;;  %v4665_v24 = vmul.f32 %v11208_v5, %v4664_v44 }
 0x32d   : > { %v4711_v61 = vadd.f32 %v4695_v19, %v12796_v22  ;;  %v4859_v10 = vadd.f32 %v4858_v34, %v4844_v4  ;;  %vm11407_vm12 = vcmp.lt.f32.partialorder %v4666_v39, 0.0004427343  ;;  %v7193_v57 = vpop.eup %7192  ;;  %v4741_v2 = vmul.f32 0.6931472, %v7191_v48  ;;  %v5080_v35 = vpop.permute.xlu0 %5079  ;;  %5757 = vperm.xlu1 %6623, %v5639_v56   ;;  %v5641_v56 = vld [vmem:[%s7787_s28 + $0x78] sm:$0xff]  ;;  %s6506_s28 = sshll.u32 %s7579_s23, 1 }
 0x32e   : > { %v4706_v11 = vadd.f32 %v4650_v58, %v12797_v37  ;;  %v4682_v16 = vadd.f32 1.0, %v4681_v15  ;;  %v5217_v19 = vand.u32 2147483647, %v11390_v31  ;;  %v11412_v28 = vsub.f32 %v5043_v41, %v5139_v26  ;;  %v7479_v41 = vld [vmem:[%s8050_s29 + $0x30] sm:$0xff]  ;;  %v4953_v37 = vld [vmem:[%s8050_s29 + $0x40] sm:$0xff]  ;;  %s6351_s12 = sadd.s32 %s7583_s24, %s6506_s28  ;;  %s7491_s23 = sshll.u32 %s7605_s1, 4  ;;  %s7492_s23 = int_to_ptr.vmem [resolvable:$false] %s7491_s23 }
 0x32f   : > { %v4860_v43 = vadd.f32 %v4859_v10, %v4845_v60  ;;  %v4662_v39 = vmul.f32 0.6931472, %v7193_v57  ;;  %v5141_v44 = vmax.f32 %v5080_v35, %v10862_v46  ;;  %v4846_v14 = vsub.f32 %v4741_v2, %v11060_v20  ;;  %v11426_v63 = vpop.permute.xlu1 %5038  ;;  %v12802_v2 = vld [vmem:[#allocation9_spill] sm:$0xff]  ;;  %s7493_s24 = scalar_lea.vmem %s7492_s23, 256  ;;  %p7494_p8 = scmp.lt.s32.totalorder %s6356_s7, %s7492_s23 }
 0x330   : > { %v4722_v5 = vsel %vm4466_vm9, %v11013_v49, %v4706_v11  ;;  %v4684_v34 = vand.u32 2147483647, %v11218_v52  ;;  %v5233_v59 = vsub.f32 0.0, %v5217_v19  ;;  %6235 = vperm.xlu0 %6622, %v7477_v40   ;;  %vm4468_vm13 = vcmp.ne.f32.partialorder %v11031_v36, %v11031_v36  ;;  %v5642_v19 = vld [vmem:[%s7925_s10] sm:$0xff]  ;;  %p7495_p9 = scmp.lt.s32.totalorder %s7493_s24, %s7487_s0 }
 0x331   : > { %7202 = vlog2.f32 %v4722_v5  ;;  %v4668_v1 = vsel %vm11407_vm12, %v4665_v24, %v4662_v39  ;;  %v5219_v46 = vand.u32 2147483647, %v11412_v28  ;;  %v11433_v49 = vsub.f32 %v5045_v23, %v5141_v44  ;;  %v7195_v20 = vpop.eup %7194  ;;  %v5090_v15 = vpop.permute.xlu0 %5089  ;;  %5762 = vperm.xlu1 %6623, %v5640_v51   ;;  %v7480_v39 = vld [vmem:[%s7925_s10 + $0x38] sm:$0xff] }
 0x332   : > { %v4727_v25 = vsel %vm4471_vm10, %v10975_v55, %v4711_v61  ;;  %v12800_v60 = vmax.f32 %v11031_v36, 0.0  ;;  %v4683_v45 = vmul.f32 %v11218_v52, %v4682_v16  ;;  %v5249_v54 = vmul.f32 1.442695, %v5233_v59  ;;  %v7478_v61 = vld [vmem:[%s7925_s10 + $0x28] sm:$0xff]  ;;  %v4955_v59 = vld [vmem:[%s8050_s29 + $0x50] sm:$0xff]  ;;  %p7496_p10 = por %p7495_p9, %p7494_p8 }
 0x333   : > { %v4861_v42 = vadd.f32 %v4860_v43, %v4846_v14  ;;  %v4680_v4 = vmul.f32 0.6931472, %v7195_v20  ;;  %v5235_v23 = vsub.f32 0.0, %v5219_v46  ;;  %v5221_v26 = vand.u32 2147483647, %v11433_v49  ;;  %v7197_v22 = vpop.eup %7196  ;;  %v11451_v58 = vpop.permute.xlu1 %5064  ;;  %v11477_v46 = vld [vmem:[%s8055_s21 + $0x8] sm:$0xff] }
 0x334   : > { %v4708_v29 = vadd.f32 %v4668_v1, %v12800_v60  ;;  %v4847_v55 = vsub.f32 %v11359_v38, %v10978_v32  ;;  %vm4685_vm14 = vcmp.lt.f32.partialorder %v4684_v34, 0.0004427343  ;;  %7204 = vpow2.f32 %v5249_v54  ;;  %6245 = vperm.xlu0 %6622, %v7478_v61   ;;  %v5644_v20 = vld [vmem:[%s7925_s10 + $0x10] sm:$0xff]  ;;  %p7497_p11 = pnand %p7496_p10, %p7490_p6 }
 0x335   : > { %v5047_v30 = vmin.f32 %v11216_v47, %v7479_v41  ;;  %v4686_v48 = vsel %vm4685_vm14, %v4683_v45, %v4680_v4  ;;  %v5237_v10 = vsub.f32 0.0, %v5221_v26  ;;  %vm4470_vm15 = vcmp.ne.f32.partialorder %v11037_v17, %v11037_v17  ;;  %v5100_v24 = vpop.permute.xlu0 %5099  ;;  %5767 = vperm.xlu1 %6623, %v5641_v56   ;;  %v5646_v41 = vld [vmem:[%s7925_s10 + $0x20] sm:$0xff] }
 0x336   : > { %v4724_v52 = vsel %vm4468_vm13, %v11031_v36, %v4708_v29  ;;  %v7199_v32 = vpop.eup %7198  ;;  %v12801_v36 = vmax.f32 %v11037_v17, 0.0  ;;  %v5143_v11 = vmax.f32 %v5090_v15, %v10909_v62  ;;  %v4862_v57 = vadd.f32 %v4861_v42, %v4847_v55  ;;  %v12804_v29 = vld [vmem:[#allocation12_spill] sm:$0xff] }
 0x337   : > { %7206 = vlog2.f32 %v4724_v52  ;;  %v4745_v7 = vmul.f32 0.6931472, %v7199_v32  ;;  %v5253_v47 = vmul.f32 1.442695, %v5235_v23  ;;  %v5145_v16 = vmax.f32 %v5100_v24, %v12802_v2  ;;  %v11468_v62 = vpop.permute.xlu1 %5074 }
 0x338   : > { %7208 = vlog2.f32 %v4727_v25  ;;  %v4710_v38 = vadd.f32 %v4686_v48, %v12801_v36  ;;  %v4747_v35 = vmul.f32 0.6931472, %v11394_v18  ;;  %v11465_v5 = vsub.f32 %v5047_v30, %v5143_v11  ;;  %6255 = vperm.xlu0 %6622, %v7480_v39   ;;  %v7201_v44 = vpop.eup %7200  ;;  %v12803_v25 = vld [vmem:[#allocation17_spill] sm:$0xff]  ;;  %v7482_v30 = vld [vmem:[%s8050_s29 + $0x8] sm:$0xff]  ;;  %v11497_v36 = vld [vmem:[%s8055_s21 + $0x18] sm:$0xff] }
 0x339   : > { %v4848_v51 = vsub.f32 %v4745_v7, %v11080_v27  ;;  %v5049_v14 = vmin.f32 %v11245_v53, %v4953_v37  ;;  %v5257_v34 = vmul.f32 1.442695, %v5237_v10  ;;  %6220 = vperm.xlu1 %6623, %v5642_v19   ;;  %v7481_v53 = vld [vmem:[%s7925_s10 + $0x48] sm:$0xff]  ;;  %v5051_v42 = vmin.f32 %v11278_v9, %v4955_v59  ;;  %v12807_v11 = vld [vmem:[#allocation7_spill] sm:$0xff] }
 0x33a   : > { %v4726_v43 = vsel %vm4470_vm15, %v11037_v17, %v4710_v38  ;;  %v5223_v18 = vand.u32 2147483647, %v11465_v5  ;;  %v5110_v17 = vpop.permute.xlu0 %5109  ;;  %v4849_v60 = vsub.f32 %v4747_v35, %v12803_v25  ;;  %v4751_v4 = vmul.f32 0.6931472, %v7197_v22  ;;  %v12805_v10 = vld [vmem:[#allocation14_spill] sm:$0xff]  ;;  %v12806_v22 = vld [vmem:[#allocation15_spill] sm:$0xff] }
 0x33b   : > { %7210 = vlog2.f32 %v4726_v43  ;;  %v4863_v40 = vadd.f32 %v4862_v57, %v4848_v51  ;;  %v11474_v1 = vsub.f32 %v5049_v14, %v5145_v16  ;;  %v5147_v45 = vmax.f32 %v5110_v17, %v12804_v29  ;;  %v11483_v54 = vpop.permute.xlu1 %5084  ;;  %v11512_v39 = vld [vmem:[%s8055_s21 + $0x28] sm:$0xff]  ;;  %v7484_v29 = vld [vmem:[%s8050_s29 + $0x70] sm:$0xff] }
 0x33c   : > { %7212 = vpow2.f32 %v5253_v47  ;;  %v5239_v27 = vsub.f32 0.0, %v5223_v18  ;;  %6265 = vperm.xlu0 %6622, %v7481_v53   ;;  %v5138_v56 = vmax.f32 %v11451_v58, %v11477_v46  ;;  %v5042_v48 = vmin.f32 %v11160_v12, %v7482_v30  ;;  %v4948_v12 = vld [vmem:[%s8050_s29 + $0x18] sm:$0xff]  ;;  %v12809_v18 = vld [vmem:[#allocation10_spill] sm:$0xff]  ;;  %v5650_v30 = vld [vmem:[%s7925_s10 + $0x40] sm:$0xff] }
 0x33d   : > { %7214 = vpow2.f32 %v5257_v34  ;;  %v4864_v26 = vadd.f32 %v4863_v40, %v4849_v60  ;;  %6230 = vperm.xlu1 %6623, %v5644_v20   ;;  %v5225_v61 = vand.u32 2147483647, %v11474_v1  ;;  %v11493_v32 = vsub.f32 %v5051_v42, %v5147_v45  ;;  %v12808_v34 = vld [vmem:[#allocation8_spill] sm:$0xff]  ;;  %v12810_v20 = vld [vmem:[#allocation18_spill] sm:$0xff]  ;;  %v7483_v60 = vld [vmem:[%s8050_s29 + $0x60] sm:$0xff] }
 0x33e   : > { %v7203_v15 = vpop.eup %7202  ;;  %v5120_v55 = vpop.permute.xlu0 %5119  ;;  %v5261_v52 = vmul.f32 1.442695, %v5239_v27  ;;  %v4851_v24 = vsub.f32 %v4751_v4, %v12807_v11  ;;  %v4755_v7 = vmul.f32 0.6931472, %v7201_v44  ;;  %v11505_v47 = vsub.f32 %v5042_v48, %v5138_v56  ;;  %v5648_v44 = vld [vmem:[%s7925_s10 + $0x30] sm:$0xff]  ;;  %v4950_v53 = vld [vmem:[%s8050_s29 + $0x28] sm:$0xff] }
 0x33f   : > { %v4749_v23 = vmul.f32 0.6931472, %v7203_v15  ;;  %v11499_v58 = vpop.permute.xlu1 %5094  ;;  %v5241_v35 = vsub.f32 0.0, %v5225_v61  ;;  %v5140_v43 = vmax.f32 %v11468_v62, %v11497_v36  ;;  %v5227_v14 = vand.u32 2147483647, %v11493_v32  ;;  %v12811_v42 = vld [vmem:[#allocation11_spill] sm:$0xff] }
 0x340   : > { %6275 = vperm.xlu0 %6622, %v12806_v22   ;;  %7216 = vpow2.f32 %v5261_v52  ;;  %v5149_v59 = vmax.f32 %v5120_v55, %v12808_v34  ;;  %v5053_v62 = vmin.f32 %v11301_v50, %v7483_v60  ;;  %v5044_v27 = vmin.f32 %v11256_v21, %v4948_v12  ;;  %v12812_v22 = vld [vmem:[#allocation13_spill] sm:$0xff]  ;;  %v12813_v11 = vld [vmem:[#allocation19_spill] sm:$0xff]  ;;  %v11555_v12 = vld [vmem:[%s8050_s29 + $0x58] sm:$0xff] }
 0x341   : > { %v4850_v9 = vsub.f32 %v4749_v23, %v12805_v10  ;;  %v11501_v38 = vpop.eup %7204  ;;  %6240 = vperm.xlu1 %6623, %v5646_v41   ;;  %v5055_v45 = vmin.f32 %v11334_v3, %v7484_v29  ;;  %v4853_v4 = vsub.f32 %v4755_v7, %v12811_v42  ;;  %v5218_v56 = vand.u32 2147483647, %v11505_v47  ;;  %v11538_v3 = vld [vmem:[%s8050_s29 + $0x48] sm:$0xff]  ;;  %v11567_v34 = vld [vmem:[%s8055_s21 + $0x38] sm:$0xff] }
 0x342   : > { %v11507_v2 = vpop.permute.xlu0 %5129  ;;  %v5281_v17 = vadd.f32 1.0, %v11501_v38  ;;  %v5142_v55 = vmax.f32 %v11483_v54, %v11512_v39  ;;  %v5265_v61 = vmul.f32 1.442695, %v5241_v35  ;;  %v11540_v41 = vsub.f32 %v5044_v27, %v5140_v43  ;;  %v12814_v35 = vld [vmem:[#allocation16_spill] sm:$0xff] }
 0x343   : > { %v4865_v57 = vadd.f32 %v4864_v26, %v4850_v9  ;;  %v11519_v40 = vpop.permute.xlu1 %5104  ;;  %v11530_v26 = vld [vmem:[%s8050_s29 + $0x38] sm:$0xff]  ;;  %v5046_v10 = vmin.f32 %v11288_v6, %v4950_v53  ;;  %v5243_v9 = vsub.f32 0.0, %v5227_v14  ;;  %v11546_v54 = vsub.f32 %v5053_v62, %v5149_v59  ;;  %v7485_v6 = vld [vmem:[%s8055_s21 + $0x70] sm:$0xff]  ;;  %v11584_v53 = vld [vmem:[%s8050_s29 + $0x68] sm:$0xff] }
 0x344   : > { %v7207_v37 = vpop.eup %7206  ;;  %6285 = vperm.xlu0 %6622, %v12809_v18   ;;  %7218 = vlog2.f32 %v5281_v17  ;;  %v11574_v17 = vld [vmem:[%s8055_s21 + $0x48] sm:$0xff]  ;;  %v5144_v42 = vmax.f32 %v11499_v58, %v11567_v34  ;;  %v5654_v58 = vld [vmem:[%s7925_s10 + $0x60] sm:$0xff]  ;;  %vm5185_vm0 = vcmp.ne.f32.partialorder %v11390_v31, %v11390_v31  ;;  %vm5187_vm2 = vcmp.ne.f32.partialorder %v11412_v28, %v11412_v28 }
 0x345   : > { %v7209_v16 = vpop.eup %7208  ;;  %v4753_v19 = vmul.f32 0.6931472, %v7207_v37  ;;  %v4866_v51 = vadd.f32 %v4865_v57, %v4851_v24  ;;  %6250 = vperm.xlu1 %6623, %v5648_v44   ;;  %v5048_v57 = vmin.f32 %v11317_v33, %v11530_v26  ;;  %v5050_v44 = vmin.f32 %v11346_v13, %v11538_v3  ;;  %12815 = vst [vmem:[#allocation9_spill] sm:$0xff] %v11574_v17 }
 0x346   : > { %v4759_v23 = vmul.f32 0.6931472, %v7209_v16  ;;  %v11535_v52 = vpop.permute.xlu0 %5491  ;;  %v5151_v16 = vmax.f32 %v11507_v2, %v7485_v6  ;;  %v11564_v14 = vsub.f32 %v5046_v10, %v5142_v55  ;;  %7220 = vpow2.f32 %v5265_v61  ;;  %v11661_v61 = vld [vmem:[%s8055_s21 + $0x78] sm:$0xff] }
 0x347   : > { %v4852_v25 = vsub.f32 %v4753_v19, %v12810_v20  ;;  %v11549_v37 = vpop.permute.xlu1 %5114  ;;  %v5220_v2 = vand.u32 2147483647, %v11540_v41  ;;  %v5652_v20 = vld [vmem:[%s7925_s10 + $0x50] sm:$0xff]  ;;  %v5169_v13 = vmax.f32 %v11390_v31, 0.0  ;;  %v5269_v60 = vmul.f32 1.442695, %v5243_v9 }
 0x348   : > { %v7211_v15 = vpop.eup %7210  ;;  %6295 = vperm.xlu0 %6622, %v12812_v22   ;;  %v4855_v43 = vsub.f32 %v4759_v23, %v12814_v35  ;;  %v5229_v62 = vand.u32 2147483647, %v11546_v54  ;;  %v5222_v26 = vand.u32 2147483647, %v11564_v14  ;;  %12820 = vst [vmem:[#allocation14_spill] sm:$0xff] %v11661_v61  ;;  %vm5189_vm4 = vcmp.ne.f32.partialorder %v11433_v49, %v11433_v49 }
 0x349   : > { %v4867_v21 = vadd.f32 %v4866_v51, %v4852_v25  ;;  %v4757_v50 = vmul.f32 0.6931472, %v7211_v15  ;;  %v11543_v48 = vpop.eup %7212  ;;  %v5234_v51 = vsub.f32 0.0, %v5218_v56  ;;  %6260 = vperm.xlu1 %6623, %v5650_v30   ;;  %v5052_v25 = vmin.f32 %v11375_v8, %v11555_v12 }
 0x34a   : > { %v11559_v19 = vpop.eup %7214  ;;  %v11569_v33 = vpop.permute.xlu0 %5501  ;;  %v5299_v18 = vadd.f32 1.0, %v11543_v48  ;;  %v11586_v15 = vsub.f32 %v5055_v45, %v5151_v16  ;;  %v5146_v56 = vmax.f32 %v11519_v40, %v11574_v17  ;;  %v5284_v45 = vmul.f32 -0.5, %v11501_v38  ;;  %v11614_v16 = vld [vmem:[%s8050_s29 + $0x78] sm:$0xff] }
 0x34b   : > { %v4854_v24 = vsub.f32 %v4757_v50, %v12813_v11  ;;  %v4868_v7 = vadd.f32 %v4867_v21, %v4853_v4  ;;  %v11581_v27 = vpop.permute.xlu1 %5124  ;;  %v5317_v4 = vadd.f32 1.0, %v11559_v19  ;;  %v5251_v23 = vmul.f32 1.442695, %v5234_v51 }
 0x34c   : > { %7222 = vlog2.f32 %v5299_v18  ;;  %v5236_v50 = vsub.f32 0.0, %v5220_v2  ;;  %v5054_v30 = vmin.f32 %v11402_v0, %v11584_v53  ;;  %v5245_v40 = vsub.f32 0.0, %v5229_v62 }
 0x34d   : > { %v4869_v59 = vadd.f32 %v4868_v7, %v4854_v24  ;;  %6270 = vperm.xlu1 %6623, %v5652_v20   ;;  %7224 = vlog2.f32 %v5317_v4  ;;  %v11598_v3 = vpop.eup %7216  ;;  %v5231_v11 = vand.u32 2147483647, %v11586_v15  ;;  %v11607_v24 = vsub.f32 %v5048_v57, %v5144_v42  ;;  %v11610_v7 = vld [vmem:[%s8055_s21 + $0x58] sm:$0xff]  ;;  %v5656_v20 = vld [vmem:[%s7925_s10 + $0x70] sm:$0xff]  ;;  %s6507_s10 = sshll.u32 %s6351_s12, 7 }
 0x34e   : > { %v11594_v55 = vpop.permute.xlu0 %5511  ;;  %7226 = vpow2.f32 %v5269_v60  ;;  %12816 = vst [vmem:[#allocation17_spill] sm:$0xff] %v11610_v7  ;;  %v5238_v35 = vsub.f32 0.0, %v5222_v26  ;;  %v5255_v2 = vmul.f32 1.442695, %v5236_v50  ;;  %v5285_v18 = vadd.f32 1.0, %v5284_v45 }
 0x34f   : > { %v4870_v29 = vadd.f32 %v4869_v59, %v4855_v43  ;;  %v11603_v10 = vpop.permute.xlu1 %5134  ;;  %7228 = vpow2.f32 %v5251_v23  ;;  %v11616_v43 = vsub.f32 %v5050_v44, %v5146_v56  ;;  %v5335_v57 = vadd.f32 1.0, %v11598_v3 }
 0x350   : > { %v5273_v62 = vmul.f32 1.442695, %v5245_v40  ;;  %v5148_v42 = vmax.f32 %v11549_v37, %v11610_v7  ;;  %v5247_v26 = vsub.f32 0.0, %v5231_v11  ;;  %v5224_v56 = vand.u32 2147483647, %v11607_v24 }
 0x351   : > { %v4871_v21 = vrot.slane %v4870_v29, 4  ;;  %6280 = vperm.xlu1 %6623, %v5654_v58   ;;  %v7219_v4 = vpop.eup %7218  ;;  %7230 = vlog2.f32 %v5335_v57  ;;  %v5259_v45 = vmul.f32 1.442695, %v5238_v35  ;;  %v5226_v40 = vand.u32 2147483647, %v11616_v43 }
 0x352   : > { %v11618_v51 = vpop.permute.xlu0 %5521  ;;  %v5283_v58 = vmul.f32 0.6931472, %v7219_v4  ;;  %7232 = vpow2.f32 %v5255_v2  ;;  %v5302_v11 = vmul.f32 -0.5, %v11543_v48  ;;  %v5320_v57 = vmul.f32 -0.5, %v11559_v19 }
 0x353   : > { %v4872_v9 = vadd.f32 %v4871_v21, %v4870_v29  ;;  %v5287_v29 = vand.u32 2147483647, %v11501_v38  ;;  %v11626_v44 = vpop.permute.xlu1 %5496  ;;  %v11630_v21 = vld [vmem:[%s8055_s21 + $0x68] sm:$0xff]  ;;  %7234 = vpow2.f32 %v5273_v62  ;;  %v11651_v2 = vsub.f32 %v5052_v25, %v5148_v42 }
 0x354   : > { %12817 = vst [vmem:[#allocation12_spill] sm:$0xff] %v11630_v21  ;;  %v5240_v4 = vsub.f32 0.0, %v5224_v56  ;;  %v5150_v62 = vmax.f32 %v11581_v27, %v11630_v21  ;;  %v5277_v6 = vmul.f32 1.442695, %v5247_v26  ;;  %7236 = vpow2.f32 %v5259_v45 }
 0x355   : > { %v4873_v59 = vrot.slane %v4872_v9, 2  ;;  %6290 = vperm.xlu1 %6623, %v5656_v20   ;;  %vm11643_vm1 = vcmp.lt.f32.partialorder %v5287_v29, 0.0004427343  ;;  %v5242_v22 = vsub.f32 0.0, %v5226_v40  ;;  %v5303_v42 = vadd.f32 1.0, %v5302_v11 }
 0x356   : > { %v11635_v60 = vpop.permute.xlu0 %5531  ;;  %v5323_v26 = vand.u32 2147483647, %v11559_v19  ;;  %v5228_v45 = vand.u32 2147483647, %v11651_v2  ;;  %v5263_v35 = vmul.f32 1.442695, %v5240_v4  ;;  %vm5191_vm7 = vcmp.ne.f32.partialorder %v11465_v5, %v11465_v5 }
 0x357   : > { %v4874_v23 = vadd.f32 %v4873_v59, %v4872_v9  ;;  %v5286_v9 = vmul.f32 %v11501_v38, %v5285_v18  ;;  %v11641_v59 = vpop.eup %7220  ;;  %v11653_v20 = vpop.permute.xlu1 %5506  ;;  %v5267_v29 = vmul.f32 1.442695, %v5242_v22  ;;  %v5304_v4 = vmul.f32 %v11543_v48, %v5303_v42 }
 0x358   : > { %v5338_v0 = vmul.f32 -0.5, %v11598_v3  ;;  %vm11706_vm5 = vcmp.lt.f32.partialorder %v5323_v26, 0.0004427343  ;;  %vm5186_vm9 = vcmp.ne.f32.partialorder %v11505_v47, %v11505_v47  ;;  %vm5193_vm10 = vcmp.ne.f32.partialorder %v11474_v1, %v11474_v1 }
 0x359   : > { %v4875_v37 = vrot.slane %v4874_v23, 1  ;;  %v5289_v18 = vsel %vm11643_vm1, %v5286_v9, %v5283_v58  ;;  %v7223_v12 = vpop.eup %7222  ;;  %v5353_v58 = vadd.f32 1.0, %v11641_v59  ;;  %vm5195_vm13 = vcmp.ne.f32.partialorder %v11493_v32, %v11493_v32 }
 0x35a   : > { %v11663_v8 = vpop.permute.xlu0 %5541  ;;  %v7225_v56 = vpop.eup %7224  ;;  %v5425_v27 = vadd.f32 %v5289_v18, %v5169_v13  ;;  %v5301_v11 = vmul.f32 0.6931472, %v7223_v12  ;;  %vm5188_vm14 = vcmp.ne.f32.partialorder %v11540_v41, %v11540_v41  ;;  %vm5190_vm1 = vcmp.ne.f32.partialorder %v11564_v14, %v11564_v14 }
 0x35b   : > { %v4876_v38 = vadd.f32 %v4875_v37, %v4874_v23  ;;  %v5305_v23 = vand.u32 2147483647, %v11543_v48  ;;  %v5321_v37 = vadd.f32 1.0, %v5320_v57  ;;  %v11671_v40 = vpop.permute.xlu1 %5516  ;;  %v11673_v9 = vpop.eup %7226  ;;  %v5319_v13 = vmul.f32 0.6931472, %v7225_v56 }
 0x35c   : > { %v5152_v57 = vmax.f32 %v11603_v10, %v11661_v61  ;;  %v11684_v50 = vpop.eup %7228  ;;  %v5441_v53 = vsel %vm5185_vm0, %v11390_v31, %v5425_v27  ;;  %v5244_v10 = vsub.f32 0.0, %v5228_v45  ;;  %v5371_v48 = vadd.f32 1.0, %v11673_v9 }
 0x35d   : > { %v4878_v25 = vmul.f32 1.442695, %v4876_v38  ;;  %v11678_v38 = vsub.f32 %v5054_v30, %v5150_v62  ;;  %vm11689_vm3 = vcmp.lt.f32.partialorder %v5305_v23, 0.0004427343  ;;  %v5322_v30 = vmul.f32 %v11559_v19, %v5321_v37 }
 0x35e   : > { %v11682_v18 = vpop.permute.xlu0 %5551  ;;  %v12826_v23 = vmin.f32 %v11426_v63, %v11614_v16  ;;  %v5339_v37 = vadd.f32 1.0, %v5338_v0  ;;  %v5290_v26 = vadd.f32 1.0, %v11684_v50 }
 0x35f   : > { %7238 = vpow2.f32 %v4878_v25  ;;  %12821 = vst [vmem:[#allocation15_spill] sm:$0xff] %v11682_v18  ;;  %v11702_v22 = vpop.permute.xlu1 %5526  ;;  %v5230_v31 = vand.u32 2147483647, %v11678_v38  ;;  %v7231_v25 = vpop.eup %7230  ;;  %v5325_v19 = vsel %vm11706_vm5, %v5322_v30, %v5319_v13  ;;  %v5341_v13 = vand.u32 2147483647, %v11598_v3 }
 0x360   : > { %7240 = vpow2.f32 %v5277_v6  ;;  %v5307_v6 = vsel %vm11689_vm3, %v5304_v4, %v5301_v11  ;;  %v11723_v45 = vpop.eup %7232  ;;  %v5271_v11 = vmul.f32 1.442695, %v5244_v10  ;;  %v5337_v12 = vmul.f32 0.6931472, %v7231_v25 }
 0x361   : > { %7242 = vlog2.f32 %v5353_v58  ;;  %v11717_v58 = vsub.f32 %v12826_v23, %v5152_v57  ;;  %v11730_v16 = vpop.eup %7234  ;;  %v12829_v57 = vmax.f32 %v11433_v49, 0.0  ;;  %v5246_v0 = vsub.f32 0.0, %v5230_v31 }
 0x362   : > { %7244 = vpow2.f32 %v5263_v35  ;;  %v11719_v56 = vpop.permute.xlu0 %5561  ;;  %v11738_v62 = vpop.eup %7236  ;;  %v5340_v23 = vmul.f32 %v11598_v3, %v5339_v37  ;;  %v5308_v25 = vadd.f32 1.0, %v11723_v45  ;;  %vm11751_vm6 = vcmp.lt.f32.partialorder %v5341_v13, 0.0004427343 }
 0x363   : > { %7246 = vpow2.f32 %v5267_v29  ;;  %12827 = vst [vmem:[#allocation7_spill] sm:$0xff] %v11719_v56  ;;  %v12828_v29 = vmax.f32 %v11412_v28, 0.0  ;;  %v11728_v63 = vpop.permute.xlu1 %5536  ;;  %v5429_v4 = vadd.f32 %v5325_v19, %v12829_v57  ;;  %v5232_v10 = vand.u32 2147483647, %v11717_v58 }
 0x364   : > { %7248 = vlog2.f32 %v5441_v53  ;;  %v5359_v3 = vand.u32 2147483647, %v11641_v59  ;;  %v5395_v56 = vand.u32 2147483647, %v11730_v16  ;;  %v5332_v7 = vand.u32 2147483647, %v11738_v62 }
 0x365   : > { %v5427_v35 = vadd.f32 %v5307_v6, %v12828_v29  ;;  %7250 = vlog2.f32 %v5371_v48  ;;  %v5356_v29 = vmul.f32 -0.5, %v11641_v59  ;;  %v5445_v30 = vsel %vm5189_vm4, %v11433_v49, %v5429_v4 }
 0x366   : > { %7252 = vlog2.f32 %v5290_v26  ;;  %v5343_v48 = vsel %vm11751_vm6, %v5340_v23, %v5337_v12  ;;  %v5248_v13 = vsub.f32 0.0, %v5232_v10  ;;  %v5293_v26 = vmul.f32 -0.5, %v11684_v50 }
 0x367   : > { %v11744_v31 = vpop.permute.xlu0 %5692  ;;  %v5443_v19 = vsel %vm5187_vm2, %v11412_v28, %v5427_v35  ;;  %v11756_v37 = vpop.permute.xlu1 %5546  ;;  %7254 = vpow2.f32 %v5271_v11  ;;  %v5275_v28 = vmul.f32 1.442695, %v5246_v0  ;;  %v5357_v49 = vadd.f32 1.0, %v5356_v29 }
 0x368   : > { %12832 = vst [vmem:[#allocation8_spill] sm:$0xff] %v11756_v37  ;;  %7256 = vlog2.f32 %v5308_v25  ;;  %v5389_v11 = vadd.f32 1.0, %v11730_v16  ;;  %v12833_v0 = vmax.f32 %v11465_v5, 0.0  ;;  %vm11777_vm8 = vcmp.lt.f32.partialorder %v5359_v3, 0.0004427343 }
 0x369   : > { %7258 = vlog2.f32 %v5443_v19  ;;  %v5374_v29 = vmul.f32 -0.5, %v11673_v9  ;;  %v5377_v19 = vand.u32 2147483647, %v11673_v9  ;;  %v5294_v27 = vadd.f32 1.0, %v5293_v26 }
 0x36a   : > { %7260 = vlog2.f32 %v5445_v30  ;;  %v5431_v23 = vadd.f32 %v5343_v48, %v12833_v0  ;;  %v5279_v30 = vmul.f32 1.442695, %v5248_v13  ;;  %v5392_v48 = vmul.f32 -0.5, %v11730_v16 }
 0x36b   : > { %v11772_v4 = vpop.permute.xlu0 %5793  ;;  %v11781_v57 = vpop.permute.xlu1 %5556  ;;  %7262 = vpow2.f32 %v5275_v28  ;;  %v5326_v3 = vadd.f32 1.0, %v11738_v62  ;;  %v5358_v42 = vmul.f32 %v11641_v59, %v5357_v49  ;;  %v5311_v13 = vmul.f32 -0.5, %v11723_v45 }
 0x36c   : > { %v7239_v35 = vpop.eup %7238  ;;  %12836 = vst [vmem:[#allocation10_spill] sm:$0xff] %v11781_v57  ;;  %7264 = vlog2.f32 %v5389_v11  ;;  %v5447_v26 = vsel %vm5191_vm7, %v11465_v5, %v5431_v23  ;;  %v5375_v11 = vadd.f32 1.0, %v5374_v29  ;;  %vm11808_vm11 = vcmp.lt.f32.partialorder %v5377_v19, 0.0004427343 }
 0x36d   : > { %v11767_v53 = vpop.eup %7240  ;;  %4880 = vst [vmem:[%s8862_s13 + $0x5] sm:$0x1] %v7239_v35  ;;  %v5296_v35 = vand.u32 2147483647, %v11684_v50  ;;  %7266 = vlog2.f32 %v5326_v3  ;;  %v5295_v3 = vmul.f32 %v11684_v50, %v5294_v27  ;;  %v5312_v18 = vadd.f32 1.0, %v5311_v13 }
 0x36e   : > { %v7243_v12 = vpop.eup %7242  ;;  %v5407_v21 = vadd.f32 1.0, %v11767_v53  ;;  %7268 = vpow2.f32 %v5279_v30  ;;  %v5314_v37 = vand.u32 2147483647, %v11723_v45  ;;  %v5410_v27 = vmul.f32 -0.5, %v11767_v53 }
 0x36f   : > { %v11786_v6 = vpop.eup %7244  ;;  %v5355_v10 = vmul.f32 0.6931472, %v7243_v12  ;;  %v11795_v28 = vpop.permute.xlu0 %5798  ;;  %vm11812_vm12 = vcmp.lt.f32.partialorder %v5296_v35, 0.0004427343  ;;  %7270 = vlog2.f32 %v5447_v26  ;;  %v12843_v26 = vmax.f32 %v11505_v47, 0.0 }
 0x370   : > { %v11790_v0 = vpop.eup %7246  ;;  %v11803_v12 = vpop.permute.xlu1 %5566  ;;  %v5344_v19 = vadd.f32 1.0, %v11786_v6  ;;  %7272 = vlog2.f32 %v5407_v21  ;;  %v5329_v21 = vmul.f32 -0.5, %v11738_v62  ;;  %v5376_v5 = vmul.f32 %v11673_v9, %v5375_v11 }
 0x371   : > { %v7249_v61 = vpop.eup %7248  ;;  %12837 = vst [vmem:[#allocation18_spill] sm:$0xff] %v11803_v12  ;;  %v5393_v12 = vadd.f32 1.0, %v5392_v48  ;;  %v5361_v49 = vsel %vm11777_vm8, %v5358_v42, %v5355_v10  ;;  %v5362_v25 = vadd.f32 1.0, %v11790_v0  ;;  %v12842_v48 = vmax.f32 %v11474_v1, 0.0 }
 0x372   : > { %v7251_v59 = vpop.eup %7250  ;;  %v11823_v35 = vmul.f32 0.6931472, %v7249_v61  ;;  %7274 = vlog2.f32 %v5344_v19  ;;  %v5313_v9 = vmul.f32 %v11723_v45, %v5312_v18  ;;  %vm5315_vm15 = vcmp.lt.f32.partialorder %v5314_v37, 0.0004427343 }
 0x373   : > { %v7253_v23 = vpop.eup %7252  ;;  %v11821_v57 = vpop.permute.xlu0 %5803  ;;  %v5373_v30 = vmul.f32 0.6931472, %v7251_v59  ;;  %v5433_v61 = vadd.f32 %v5361_v49, %v12842_v48  ;;  %7276 = vlog2.f32 %v5362_v25  ;;  %v5411_v11 = vadd.f32 1.0, %v5410_v27 }
 0x374   : > { %v5292_v29 = vmul.f32 0.6931472, %v7253_v23  ;;  %v11830_v42 = vpop.permute.xlu1 %5697  ;;  %v11832_v10 = vpop.eup %7254  ;;  %v11843_v23 = vmul.f32 %v11730_v16, %v5393_v12  ;;  %vm11866_vm0 = vcmp.lt.f32.partialorder %v5395_v56, 0.0004427343  ;;  %v5330_v45 = vadd.f32 1.0, %v5329_v21 }
 0x375   : > { %v7257_v59 = vpop.eup %7256  ;;  %v5379_v12 = vsel %vm11808_vm11, %v5376_v5, %v5373_v30  ;;  %v12846_v37 = vmax.f32 %v11540_v41, 0.0  ;;  %vm5333_vm2 = vcmp.lt.f32.partialorder %v5332_v7, 0.0004427343  ;;  %vm5192_vm4 = vcmp.ne.f32.partialorder %v11607_v24, %v11607_v24 }
 0x376   : > { %v5298_v50 = vsel %vm11812_vm12, %v5295_v3, %v5292_v29  ;;  %v7259_v3 = vpop.eup %7258  ;;  %vm5197_vm5 = vcmp.ne.f32.partialorder %v11546_v54, %v11546_v54  ;;  %vm5194_vm6 = vcmp.ne.f32.partialorder %v11616_v43, %v11616_v43  ;;  %v5383_v29 = vmul.f32 -0.5, %v11832_v10 }
 0x377   : > { %v5426_v13 = vadd.f32 %v5298_v50, %v12843_v26  ;;  %v11847_v49 = vpop.permute.xlu0 %5808  ;;  %v5310_v50 = vmul.f32 0.6931472, %v7257_v59  ;;  %v7261_v16 = vpop.eup %7260  ;;  %v5449_v26 = vsel %vm5193_vm10, %v11474_v1, %v5433_v61  ;;  %v11871_v30 = vmul.f32 0.6931472, %v7259_v3 }
 0x378   : > { %v11858_v25 = vpop.permute.xlu1 %5788  ;;  %v11860_v48 = vpop.eup %7262  ;;  %v5347_v59 = vmul.f32 -0.5, %v11786_v6  ;;  %v12847_v1 = vmax.f32 %v11493_v32, 0.0  ;;  %v5380_v61 = vadd.f32 1.0, %v11832_v10  ;;  %vm5196_vm10 = vcmp.ne.f32.partialorder %v11651_v2, %v11651_v2 }
 0x379   : > { %v5442_v19 = vsel %vm5186_vm9, %v11505_v47, %v5426_v13  ;;  %v5316_v18 = vsel %vm5315_vm15, %v5313_v9, %v5310_v50  ;;  %v5413_v13 = vand.u32 2147483647, %v11767_v53  ;;  %v7265_v5 = vpop.eup %7264  ;;  %v11889_v50 = vmul.f32 %v11767_v53, %v5411_v11 }
 0x37a   : > { %7278 = vlog2.f32 %v5442_v19  ;;  %v5428_v27 = vadd.f32 %v5316_v18, %v12846_v37  ;;  %v11877_v19 = vmul.f32 0.6931472, %v7261_v16  ;;  %v5435_v56 = vadd.f32 %v5379_v12, %v12847_v1  ;;  %v7267_v21 = vpop.eup %7266 }
 0x37b   : > { %7280 = vlog2.f32 %v5449_v26  ;;  %v5365_v9 = vmul.f32 -0.5, %v11790_v0  ;;  %v11892_v16 = vpop.permute.xlu0 %5813  ;;  %v5328_v18 = vmul.f32 0.6931472, %v7267_v21  ;;  %v5331_v37 = vmul.f32 %v11738_v62, %v5330_v45  ;;  %v11897_v26 = vpop.eup %7268 }
 0x37c   : > { %v5444_v3 = vsel %vm5188_vm14, %v11540_v41, %v5428_v27  ;;  %v11894_v12 = vpop.permute.xlu1 %5702  ;;  %v5391_v41 = vmul.f32 0.6931472, %v7265_v5  ;;  %vm11901_vm3 = vcmp.lt.f32.partialorder %v5413_v13, 0.0004427343  ;;  %v5348_v11 = vadd.f32 1.0, %v5347_v59  ;;  %v7271_v27 = vpop.eup %7270 }
 0x37d   : > { %7282 = vlog2.f32 %v5444_v3  ;;  %v5451_v62 = vsel %vm5195_vm13, %v11493_v32, %v5435_v56  ;;  %v5334_v45 = vsel %vm5333_vm2, %v5331_v37, %v5328_v18  ;;  %v5398_v7 = vadd.f32 1.0, %v11860_v48  ;;  %v7273_v13 = vpop.eup %7272 }
 0x37e   : > { %7284 = vlog2.f32 %v5380_v61  ;;  %v12850_v59 = vmax.f32 %v11564_v14, 0.0  ;;  %v5350_v61 = vand.u32 2147483647, %v11786_v6  ;;  %v5867_v21 = vmax.f32 %v11772_v4, %v11477_v46 }
 0x37f   : > { %v5366_v3 = vadd.f32 1.0, %v5365_v9  ;;  %v5368_v56 = vand.u32 2147483647, %v11790_v0  ;;  %7286 = vlog2.f32 %v5398_v7  ;;  %v5416_v18 = vadd.f32 1.0, %v11897_v26  ;;  %v7275_v37 = vpop.eup %7274  ;;  %v11935_v9 = vpop.permute.xlu0 %5818 }
 0x380   : > { %v5430_v5 = vadd.f32 %v5334_v45, %v12850_v59  ;;  %v11921_v32 = vpop.permute.xlu1 %5707  ;;  %7288 = vlog2.f32 %v5451_v62  ;;  %v5397_v45 = vsel %vm11866_vm0, %v11843_v23, %v5391_v41  ;;  %v5349_v4 = vmul.f32 %v11786_v6, %v5348_v11  ;;  %12851 = vst [vmem:[#allocation11_spill] sm:$0xff] %v11935_v9  ;;  %v7277_v59 = vpop.eup %7276  ;;  %v5675_v62 = vld [vmem:[%s8050_s29 + $0x8] sm:$0xff] }
 0x381   : > { %v5409_v1 = vmul.f32 0.6931472, %v7273_v13  ;;  %v5346_v7 = vmul.f32 0.6931472, %v7275_v37  ;;  %vm5351_vm7 = vcmp.lt.f32.partialorder %v5350_v61, 0.0004427343  ;;  %v5367_v23 = vmul.f32 %v11790_v0, %v5366_v3 }
 0x382   : > { %v5446_v46 = vsel %vm5190_vm1, %v11564_v14, %v5430_v5  ;;  %v5364_v17 = vmul.f32 0.6931472, %v7277_v59  ;;  %v12852_v14 = vmax.f32 %v11546_v54, 0.0  ;;  %vm5369_vm8 = vcmp.lt.f32.partialorder %v5368_v56, 0.0004427343 }
 0x383   : > { %7290 = vlog2.f32 %v5446_v46  ;;  %v5352_v11 = vsel %vm5351_vm7, %v5349_v4, %v5346_v7  ;;  %v5401_v13 = vmul.f32 -0.5, %v11860_v48  ;;  %v12853_v37 = vmax.f32 %v11607_v24, 0.0  ;;  %v11965_v4 = vpop.permute.xlu0 %5823 }
 0x384   : > { %7292 = vlog2.f32 %v5416_v18  ;;  %v11940_v47 = vpop.permute.xlu1 %5712  ;;  %v5437_v6 = vadd.f32 %v5397_v45, %v12852_v14  ;;  %v5370_v9 = vsel %vm5369_vm8, %v5367_v23, %v5364_v17  ;;  %v5771_v61 = vmin.f32 %v11830_v42, %v5675_v62 }
 0x385   : > { %v5432_v46 = vadd.f32 %v5352_v11, %v12853_v37  ;;  %v11948_v59 = vmul.f32 0.6931472, %v7271_v27  ;;  %vm5199_vm9 = vcmp.ne.f32.partialorder %v11586_v15, %v11586_v15  ;;  %v5415_v0 = vsel %vm11901_vm3, %v11889_v50, %v5409_v1  ;;  %v5677_v37 = vld [vmem:[%s8050_s29 + $0x18] sm:$0xff] }
 0x386   : > { %v12854_v3 = vmax.f32 %v11616_v43, 0.0  ;;  %v5384_v18 = vadd.f32 1.0, %v5383_v29  ;;  %v5419_v42 = vmul.f32 -0.5, %v11897_v26  ;;  %v11963_v27 = vsub.f32 %v5771_v61, %v5867_v21 }
 0x387   : > { %v7279_v41 = vpop.eup %7278  ;;  %v5448_v17 = vsel %vm5192_vm4, %v11607_v24, %v5432_v46  ;;  %v5453_v29 = vsel %vm5197_vm5, %v11546_v54, %v5437_v6  ;;  %v12855_v53 = vsub.f32 %v11823_v35, %v11535_v52  ;;  %v5575_v54 = vsub.f32 %v11948_v59, %v11618_v51  ;;  %v5681_v59 = vld [vmem:[%s8050_s29 + $0x38] sm:$0xff] }
 0x388   : > { %v5460_v5 = vmul.f32 0.6931472, %v7279_v41  ;;  %v5434_v56 = vadd.f32 %v5370_v9, %v12854_v3  ;;  %v11967_v7 = vpop.permute.xlu1 %5717  ;;  %v7281_v50 = vpop.eup %7280  ;;  %7294 = vlog2.f32 %v5448_v17  ;;  %v5402_v9 = vadd.f32 1.0, %v5401_v13 }
 0x389   : > { %v5947_v62 = vand.u32 2147483647, %v11963_v27  ;;  %v12856_v14 = vmax.f32 %v11586_v15, 0.0  ;;  %v5385_v6 = vmul.f32 %v11832_v10, %v5384_v18  ;;  %v12857_v11 = vsub.f32 %v11871_v30, %v11569_v33 }
 0x38a   : > { %v5570_v45 = vsub.f32 %v5460_v5, %v11626_v44  ;;  %v5450_v24 = vsel %vm5194_vm6, %v11616_v43, %v5434_v56  ;;  %v5386_v44 = vand.u32 2147483647, %v11832_v10  ;;  %v7283_v1 = vpop.eup %7282  ;;  %v5404_v35 = vand.u32 2147483647, %v11860_v48  ;;  %v11999_v56 = vpop.permute.xlu0 %5828 }
 0x38b   : > { %7296 = vlog2.f32 %v5450_v24  ;;  %v7285_v23 = vpop.eup %7284  ;;  %v5464_v41 = vmul.f32 0.6931472, %v7283_v1  ;;  %v5439_v43 = vadd.f32 %v5415_v0, %v12856_v14  ;;  %v5420_v13 = vadd.f32 1.0, %v5419_v42 }
 0x38c   : > { %v5585_v21 = vadd.f32 %v5570_v45, %v12855_v53  ;;  %v5382_v52 = vmul.f32 0.6931472, %v7285_v23  ;;  %v11992_v46 = vpop.permute.xlu1 %5722  ;;  %7298 = vlog2.f32 %v5453_v29  ;;  %vm5387_vm11 = vcmp.lt.f32.partialorder %v5386_v44, 0.0004427343  ;;  %v7287_v0 = vpop.eup %7286 }
 0x38d   : > { %v5572_v61 = vsub.f32 %v5464_v41, %v11653_v20  ;;  %v5403_v3 = vmul.f32 %v11860_v48, %v5402_v9  ;;  %v5422_v33 = vand.u32 2147483647, %v11897_v26  ;;  %v5963_v30 = vsub.f32 0.0, %v5947_v62  ;;  %v7289_v18 = vpop.eup %7288 }
 0x38e   : > { %v5586_v5 = vadd.f32 %v5585_v21, %v12857_v11  ;;  %v5388_v10 = vsel %vm5387_vm11, %v5385_v6, %v5382_v52  ;;  %v12858_v17 = vmax.f32 %v11651_v2, 0.0  ;;  %v5400_v29 = vmul.f32 0.6931472, %v7287_v0  ;;  %v12029_v11 = vpop.permute.xlu0 %5833 }
 0x38f   : > { %v5773_v20 = vmin.f32 %v11921_v32, %v5677_v37  ;;  %v5455_v44 = vsel %vm5199_vm9, %v11586_v15, %v5439_v43  ;;  %v5869_v48 = vmax.f32 %v11821_v57, %v11497_v36  ;;  %vm5405_vm12 = vcmp.lt.f32.partialorder %v5404_v35, 0.0004427343  ;;  %v5676_v37 = vld [vmem:[%s8050_s29 + $0x10] sm:$0xff] }
 0x390   : > { %v5587_v45 = vadd.f32 %v5586_v5, %v5572_v61  ;;  %v5436_v42 = vadd.f32 %v5388_v10, %v12858_v17  ;;  %v7291_v24 = vpop.eup %7290  ;;  %v5421_v1 = vmul.f32 %v11897_v26, %v5420_v13  ;;  %v12011_v53 = vpop.permute.xlu1 %5727  ;;  %v12859_v32 = vsub.f32 %v11877_v19, %v11594_v55  ;;  %v5658_v55 = vld [vmem:[%s8055_s21] sm:$0xff]  ;;  %v5679_v5 = vld [vmem:[%s8050_s29 + $0x28] sm:$0xff] }
 0x391   : > { %v7293_v21 = vpop.eup %7292  ;;  %v5468_v9 = vmul.f32 0.6931472, %v7291_v24  ;;  %v5406_v23 = vsel %vm5405_vm12, %v5403_v3, %v5400_v29  ;;  %v12860_v36 = vmax.f32 %v11678_v38, 0.0  ;;  %v5980_v41 = vmul.f32 1.442695, %v5963_v30  ;;  %v5660_v30 = vld [vmem:[%s8055_s21 + $0x10] sm:$0xff] }
 0x392   : > { %v5588_v62 = vadd.f32 %v5587_v45, %v12859_v32  ;;  %v5452_v15 = vsel %vm5196_vm10, %v11651_v2, %v5436_v42  ;;  %v5418_v26 = vmul.f32 0.6931472, %v7293_v21  ;;  %vm5198_vm13 = vcmp.ne.f32.partialorder %v11678_v38, %v11678_v38  ;;  %v7486_v29 = vld [vmem:[%s8050_s29] sm:$0xff] }
 0x393   : > { %7300 = vlog2.f32 %v5452_v15  ;;  %v5438_v57 = vadd.f32 %v5406_v23, %v12860_v36  ;;  %v5574_v14 = vsub.f32 %v5468_v9, %v11671_v40  ;;  %vm5423_vm14 = vcmp.lt.f32.partialorder %v5422_v33, 0.0004427343 }
 0x394   : > { %v12026_v19 = vsub.f32 %v5773_v20, %v5869_v48  ;;  %v5474_v43 = vmul.f32 0.6931472, %v7281_v50  ;;  %7302 = vlog2.f32 %v5455_v44  ;;  %v5424_v6 = vsel %vm5423_vm14, %v5421_v1, %v5418_v26  ;;  %v12032_v52 = vpop.permute.xlu1 %5732  ;;  %v12059_v1 = vpop.permute.xlu0 %5838 }
 0x395   : > { %v5454_v2 = vsel %vm5198_vm13, %v11678_v38, %v5438_v57  ;;  %v5589_v40 = vadd.f32 %v5588_v62, %v5574_v14  ;;  %vm5200_vm15 = vcmp.ne.f32.partialorder %v11717_v58, %v11717_v58  ;;  %v12861_v35 = vmax.f32 %v11717_v58, 0.0  ;;  %v7295_v50 = vpop.eup %7294 }
 0x396   : > { %7304 = vlog2.f32 %v5454_v2  ;;  %v5871_v38 = vmax.f32 %v11892_v16, %v11512_v39  ;;  %v5866_v61 = vmax.f32 %v11858_v25, %v5658_v55  ;;  %v5949_v0 = vand.u32 2147483647, %v12026_v19 }
 0x397   : > { %v5440_v13 = vadd.f32 %v5424_v6, %v12861_v35  ;;  %7306 = vpow2.f32 %v5980_v41  ;;  %v5472_v3 = vmul.f32 0.6931472, %v7295_v50  ;;  %v5590_v33 = vadd.f32 %v5589_v40, %v5575_v54  ;;  %v12862_v35 = vld [vmem:[#allocation9_spill] sm:$0xff]  ;;  %v12863_v50 = vld [vmem:[#allocation8_spill] sm:$0xff] }
 0x398   : > { %v7297_v10 = vpop.eup %7296  ;;  %v5775_v17 = vmin.f32 %v11967_v7, %v5679_v5  ;;  %v5772_v39 = vmin.f32 %v11894_v12, %v5676_v37  ;;  %v5965_v25 = vsub.f32 0.0, %v5949_v0  ;;  %v5738_v16 = vpop.permute.xlu1 %5737  ;;  %v5770_v20 = vmin.f32 %v11744_v31, %v7486_v29  ;;  %v5678_v12 = vld [vmem:[%s8050_s29 + $0x20] sm:$0xff] }
 0x399   : > { %v5456_v45 = vsel %vm5200_vm15, %v11717_v58, %v5440_v13  ;;  %v5476_v42 = vmul.f32 0.6931472, %v7297_v10  ;;  %v5576_v24 = vsub.f32 %v5472_v3, %v11702_v22  ;;  %v7299_v54 = vpop.eup %7298  ;;  %v5577_v58 = vsub.f32 %v5474_v43, %v11635_v60  ;;  %v5662_v31 = vld [vmem:[%s8055_s21 + $0x20] sm:$0xff]  ;;  %v5844_v5 = vpop.permute.xlu0 %5843  ;;  %v12864_v3 = vld [vmem:[#allocation15_spill] sm:$0xff] }
 0x39a   : > { %7308 = vlog2.f32 %v5456_v45  ;;  %v12053_v51 = vsub.f32 %v5775_v17, %v5871_v38  ;;  %v5478_v7 = vmul.f32 0.6931472, %v7289_v18  ;;  %v5868_v44 = vmax.f32 %v11795_v28, %v5660_v30  ;;  %v5683_v28 = vld [vmem:[%s8050_s29 + $0x48] sm:$0xff]  ;;  %v5680_v45 = vld [vmem:[%s8050_s29 + $0x30] sm:$0xff] }
 0x39b   : > { %v5984_v48 = vmul.f32 1.442695, %v5965_v25  ;;  %v5591_v21 = vadd.f32 %v5590_v33, %v5576_v24  ;;  %v5578_v9 = vsub.f32 %v5476_v42, %v11728_v63  ;;  %v12063_v32 = vsub.f32 %v5770_v20, %v5866_v61  ;;  %v5664_v25 = vld [vmem:[%s8055_s21 + $0x30] sm:$0xff]  ;;  %v12865_v20 = vld [vmem:[#allocation10_spill] sm:$0xff] }
 0x39c   : > { %v5951_v22 = vand.u32 2147483647, %v12053_v51  ;;  %v5873_v62 = vmax.f32 %v11965_v4, %v11567_v34  ;;  %v12068_v15 = vsub.f32 %v5772_v39, %v5868_v44  ;;  %v5777_v60 = vmin.f32 %v12011_v53, %v5681_v59  ;;  %v12072_v18 = vpop.permute.xlu1 %5742 }
 0x39d   : > { %7310 = vpow2.f32 %v5984_v48  ;;  %v5592_v23 = vadd.f32 %v5591_v21, %v5577_v58  ;;  %v5774_v36 = vmin.f32 %v11940_v47, %v5678_v12  ;;  %v5579_v57 = vsub.f32 %v5478_v7, %v11663_v8  ;;  %v12098_v12 = vpop.permute.xlu0 %5848 }
 0x39e   : > { %v5967_v63 = vsub.f32 0.0, %v5951_v22  ;;  %v5482_v26 = vmul.f32 0.6931472, %v7299_v54  ;;  %v5870_v41 = vmax.f32 %v11847_v49, %v5662_v31  ;;  %v12077_v14 = vsub.f32 %v5777_v60, %v5873_v62  ;;  %v5685_v60 = vld [vmem:[%s8050_s29 + $0x58] sm:$0xff] }
 0x39f   : > { %v5593_v4 = vadd.f32 %v5592_v23, %v5578_v9  ;;  %v5946_v55 = vand.u32 2147483647, %v12063_v32  ;;  %v5779_v53 = vmin.f32 %v5738_v16, %v5683_v28  ;;  %v5948_v6 = vand.u32 2147483647, %v12068_v15  ;;  %v12866_v9 = vld [vmem:[#allocation11_spill] sm:$0xff] }
 0x3a0   : > { %v7301_v34 = vpop.eup %7300  ;;  %v5988_v43 = vmul.f32 1.442695, %v5967_v63  ;;  %v5953_v47 = vand.u32 2147483647, %v12077_v14  ;;  %v5875_v49 = vmax.f32 %v12029_v11, %v12862_v35  ;;  %v12084_v13 = vsub.f32 %v5774_v36, %v5870_v41  ;;  %v5748_v0 = vpop.permute.xlu1 %5747  ;;  %v12867_v28 = vld [vmem:[#allocation7_spill] sm:$0xff]  ;;  %v12868_v63 = vld [vmem:[#allocation18_spill] sm:$0xff] }
 0x3a1   : > { %v5480_v2 = vmul.f32 0.6931472, %v7301_v34  ;;  %v7303_v40 = vpop.eup %7302  ;;  %v5594_v8 = vadd.f32 %v5593_v4, %v5579_v57  ;;  %v5581_v33 = vsub.f32 %v5482_v26, %v12864_v3  ;;  %v5962_v11 = vsub.f32 0.0, %v5946_v55  ;;  %v5682_v41 = vld [vmem:[%s8050_s29 + $0x40] sm:$0xff]  ;;  %v5854_v3 = vpop.permute.xlu0 %5853 }
 0x3a2   : > { %7312 = vpow2.f32 %v5988_v43  ;;  %v5969_v61 = vsub.f32 0.0, %v5953_v47  ;;  %v12091_v17 = vsub.f32 %v5779_v53, %v5875_v49  ;;  %v5486_v42 = vmul.f32 0.6931472, %v7303_v40  ;;  %v5666_v55 = vld [vmem:[%s8055_s21 + $0x40] sm:$0xff] }
 0x3a3   : > { %v7305_v37 = vpop.eup %7304  ;;  %v5580_v38 = vsub.f32 %v5480_v2, %v12863_v50  ;;  %v5964_v59 = vsub.f32 0.0, %v5948_v6  ;;  %v5950_v54 = vand.u32 2147483647, %v12084_v13  ;;  %v5776_v48 = vmin.f32 %v11992_v46, %v5680_v45  ;;  %v12869_v6 = vld [vmem:[#allocation17_spill] sm:$0xff] }
 0x3a4   : > { %v12087_v10 = vpop.eup %7306  ;;  %v5484_v30 = vmul.f32 0.6931472, %v7305_v37  ;;  %v5992_v16 = vmul.f32 1.442695, %v5969_v61  ;;  %v5955_v58 = vand.u32 2147483647, %v12091_v17  ;;  %v5872_v31 = vmax.f32 %v12866_v9, %v5664_v25  ;;  %v12107_v46 = vpop.permute.xlu1 %5752 }
 0x3a5   : > { %v5595_v39 = vadd.f32 %v5594_v8, %v5580_v38  ;;  %v5899_v21 = vmax.f32 %v11963_v27, 0.0  ;;  %v6019_v62 = vadd.f32 1.0, %v12087_v10  ;;  %v5583_v23 = vsub.f32 %v5486_v42, %v12867_v28  ;;  %v5668_v61 = vld [vmem:[%s8055_s21 + $0x50] sm:$0xff]  ;;  %v5670_v45 = vld [vmem:[%s8055_s21 + $0x60] sm:$0xff] }
 0x3a6   : > { %v5582_v24 = vsub.f32 %v5484_v30, %v12865_v20  ;;  %7314 = vpow2.f32 %v5992_v16  ;;  %v5971_v22 = vsub.f32 0.0, %v5955_v58  ;;  %v5978_v26 = vmul.f32 1.442695, %v5962_v11  ;;  %v5684_v25 = vld [vmem:[%s8050_s29 + $0x50] sm:$0xff] }
 0x3a7   : > { %v7309_v29 = vpop.eup %7308  ;;  %v5596_v7 = vadd.f32 %v5595_v39, %v5581_v33  ;;  %v5982_v4 = vmul.f32 1.442695, %v5964_v59  ;;  %v5966_v43 = vsub.f32 0.0, %v5950_v54  ;;  %7316 = vlog2.f32 %v6019_v62  ;;  %v5686_v62 = vld [vmem:[%s8050_s29 + $0x60] sm:$0xff] }
 0x3a8   : > { %v5488_v44 = vmul.f32 0.6931472, %v7309_v29  ;;  %v5996_v53 = vmul.f32 1.442695, %v5971_v22  ;;  %v5877_v47 = vmax.f32 %v5844_v5, %v12869_v6  ;;  %v12113_v40 = vsub.f32 %v5776_v48, %v5872_v31  ;;  %v5758_v11 = vpop.permute.xlu1 %5757  ;;  %v12870_v31 = vld [vmem:[#allocation12_spill] sm:$0xff] }
 0x3a9   : > { %v5597_v36 = vadd.f32 %v5596_v7, %v5582_v24  ;;  %v5781_v8 = vmin.f32 %v5748_v0, %v5685_v60  ;;  %v5898_v35 = vmax.f32 %v12063_v32, 0.0  ;;  %v5778_v49 = vmin.f32 %v12032_v52, %v5682_v41 }
 0x3aa   : > { %v5584_v57 = vsub.f32 %v5488_v44, %v12868_v63  ;;  %v12109_v34 = vpop.eup %7310  ;;  %7318 = vpow2.f32 %v5996_v53  ;;  %v5874_v38 = vmax.f32 %v11999_v56, %v5666_v55  ;;  %v5900_v5 = vmax.f32 %v12068_v15, 0.0  ;;  %v5687_v44 = vld [vmem:[%s8050_s29 + $0x68] sm:$0xff]  ;;  %v5672_v55 = vld [vmem:[%s8055_s21 + $0x70] sm:$0xff]  ;;  %s12470_s21 = scalar_lea.hbm %s12530_s5, %s6507_s10 }
 0x3ab   : > { %v5598_v2 = vadd.f32 %v5597_v36, %v5583_v23  ;;  %v6037_v37 = vadd.f32 1.0, %v12109_v34  ;;  %7320 = vpow2.f32 %v5978_v26  ;;  %v12120_v33 = vsub.f32 %v5781_v8, %v5877_v47  ;;  %v5859_v23 = vpop.permute.xlu0 %5858 }
 0x3ac   : > { %v5901_v0 = vmax.f32 %v12026_v19, 0.0  ;;  %v5986_v30 = vmul.f32 1.442695, %v5966_v43  ;;  %v5952_v39 = vand.u32 2147483647, %v12113_v40  ;;  %v5902_v16 = vmax.f32 %v12084_v13, 0.0  ;;  %v5763_v53 = vpop.permute.xlu1 %5762 }
 0x3ad   : > { %v5599_v50 = vadd.f32 %v5598_v2, %v5584_v57  ;;  %7322 = vlog2.f32 %v6037_v37  ;;  %v5957_v56 = vand.u32 2147483647, %v12120_v33  ;;  %v5876_v29 = vmax.f32 %v12059_v1, %v5668_v61 }
 0x3ae   : > { %7324 = vpow2.f32 %v5982_v4  ;;  %v12132_v20 = vsub.f32 %v5778_v49, %v5874_v38  ;;  %v6022_v24 = vmul.f32 -0.5, %v12087_v10  ;;  %v5878_v54 = vmax.f32 %v12098_v12, %v5670_v45 }
 0x3af   : > { %v12125_v52 = vpop.eup %7312  ;;  %v5600_v42 = vrot.slane %v5599_v50, 4  ;;  %v5973_v58 = vsub.f32 0.0, %v5957_v56  ;;  %v5903_v48 = vmax.f32 %v12053_v51, 0.0  ;;  %v5904_v9 = vmax.f32 %v12113_v40, 0.0 }
 0x3b0   : > { %v6055_v7 = vadd.f32 1.0, %v12125_v52  ;;  %v5879_v22 = vmax.f32 %v5854_v3, %v12870_v31  ;;  %v5780_v1 = vmin.f32 %v12072_v18, %v5684_v25  ;;  %7326 = vpow2.f32 %v5986_v30  ;;  %v5688_v30 = vld [vmem:[%s8050_s29 + $0x70] sm:$0xff]  ;;  %v5864_v25 = vpop.permute.xlu0 %5863 }
 0x3b1   : > { %v5601_v59 = vadd.f32 %v5600_v42, %v5599_v50  ;;  %v5968_v28 = vsub.f32 0.0, %v5952_v39  ;;  %v6000_v36 = vmul.f32 1.442695, %v5973_v58  ;;  %v5905_v63 = vmax.f32 %v12077_v14, 0.0 }
 0x3b2   : > { %v5954_v57 = vand.u32 2147483647, %v12132_v20  ;;  %v6023_v26 = vadd.f32 1.0, %v6022_v24  ;;  %v5783_v41 = vmin.f32 %v5758_v11, %v5687_v44  ;;  %v5782_v43 = vmin.f32 %v12107_v46, %v5686_v62  ;;  %v5689_v62 = vld [vmem:[%s8050_s29 + $0x78] sm:$0xff] }
 0x3b3   : > { %v5602_v60 = vrot.slane %v5601_v59, 2  ;;  %v12143_v12 = vpop.eup %7314  ;;  %7328 = vlog2.f32 %v6055_v7  ;;  %v12150_v2 = vsub.f32 %v5780_v1, %v5876_v29  ;;  %v6025_v6 = vand.u32 2147483647, %v12087_v10 }
 0x3b4   : > { %v6073_v18 = vadd.f32 1.0, %v12143_v12  ;;  %7330 = vpow2.f32 %v6000_v36  ;;  %v12153_v47 = vsub.f32 %v5783_v41, %v5879_v22  ;;  %v7317_v8 = vpop.eup %7316  ;;  %v5990_v37 = vmul.f32 1.442695, %v5968_v28  ;;  %v12873_v28 = vld [vmem:[#allocation14_spill] sm:$0xff] }
 0x3b5   : > { %v5603_v4 = vadd.f32 %v5602_v60, %v5601_v59  ;;  %v5906_v50 = vmax.f32 %v12132_v20, 0.0  ;;  %v6040_v38 = vmul.f32 -0.5, %v12109_v34  ;;  %v5880_v46 = vmax.f32 %v5859_v23, %v5672_v55 }
 0x3b6   : > { %v6021_v61 = vmul.f32 0.6931472, %v7317_v8  ;;  %v5959_v3 = vand.u32 2147483647, %v12153_v47  ;;  %7332 = vlog2.f32 %v6073_v18  ;;  %v5970_v39 = vsub.f32 0.0, %v5954_v57 }
 0x3b7   : > { %v5604_v49 = vrot.slane %v5603_v4, 1  ;;  %v12159_v45 = vpop.eup %7318  ;;  %v6024_v56 = vmul.f32 %v12087_v10, %v6023_v26  ;;  %v12162_v11 = vsub.f32 %v5782_v43, %v5878_v54  ;;  %v5956_v24 = vand.u32 2147483647, %v12150_v2  ;;  %v5768_v54 = vpop.permute.xlu1 %5767 }
 0x3b8   : > { %v12164_v29 = vpop.eup %7320  ;;  %vm12167_vm0 = vcmp.lt.f32.partialorder %v6025_v6, 0.0004427343  ;;  %v5975_v58 = vsub.f32 0.0, %v5959_v3  ;;  %v6091_v7 = vadd.f32 1.0, %v12159_v45  ;;  %v6041_v1 = vadd.f32 1.0, %v6040_v38 }
 0x3b9   : > { %v5605_v42 = vadd.f32 %v5604_v49, %v5603_v4  ;;  %v6027_v22 = vsel %vm12167_vm0, %v6024_v56, %v6021_v61  ;;  %v5784_v10 = vmin.f32 %v5763_v53, %v5688_v30  ;;  %7334 = vpow2.f32 %v5990_v37 }
 0x3ba   : > { %v7323_v44 = vpop.eup %7322  ;;  %v5881_v23 = vmax.f32 %v5864_v25, %v12873_v28  ;;  %v6043_v36 = vand.u32 2147483647, %v12109_v34  ;;  %v6004_v57 = vmul.f32 1.442695, %v5975_v58  ;;  %v5994_v26 = vmul.f32 1.442695, %v5970_v39 }
 0x3bb   : > { %v5607_v31 = vmul.f32 1.442695, %v5605_v42  ;;  %v12175_v60 = vpop.eup %7324  ;;  %v6039_v41 = vmul.f32 0.6931472, %v7323_v44  ;;  %v5958_v4 = vand.u32 2147483647, %v12162_v11  ;;  %v6155_v43 = vadd.f32 %v6027_v22, %v5899_v21 }
 0x3bc   : > { %v5972_v55 = vsub.f32 0.0, %v5956_v24  ;;  %v5785_v18 = vmin.f32 %v5768_v54, %v5689_v62  ;;  %v5907_v53 = vmax.f32 %v12091_v17, 0.0  ;;  %v6042_v6 = vmul.f32 %v12109_v34, %v6041_v1 }
 0x3bd   : > { %7336 = vpow2.f32 %v5607_v31  ;;  %v12184_v8 = vsub.f32 %v5784_v10, %v5880_v46  ;;  %v12186_v49 = vpop.eup %7326  ;;  %vm5915_vm1 = vcmp.ne.f32.partialorder %v11963_v27, %v11963_v27  ;;  %vm12190_vm2 = vcmp.lt.f32.partialorder %v6043_v36, 0.0004427343 }
 0x3be   : > { %7338 = vlog2.f32 %v6091_v7  ;;  %v6058_v21 = vmul.f32 -0.5, %v12125_v52  ;;  %v12195_v38 = vsub.f32 %v5785_v18, %v5881_v23  ;;  %v6045_v61 = vsel %vm12190_vm2, %v6042_v6, %v6039_v41 }
 0x3bf   : > { %7340 = vpow2.f32 %v6004_v57  ;;  %v5974_v34 = vsub.f32 0.0, %v5958_v4  ;;  %v6076_v46 = vmul.f32 -0.5, %v12143_v12  ;;  %v6010_v3 = vadd.f32 1.0, %v12164_v29 }
 0x3c0   : > { %v7329_v30 = vpop.eup %7328  ;;  %7342 = vpow2.f32 %v5994_v26  ;;  %v5998_v42 = vmul.f32 1.442695, %v5972_v55  ;;  %v6171_v39 = vsel %vm5915_vm1, %v11963_v27, %v6155_v43  ;;  %v5961_v25 = vand.u32 2147483647, %v12195_v38 }
 0x3c1   : > { %v12203_v56 = vpop.eup %7330  ;;  %v5908_v24 = vmax.f32 %v12150_v2, 0.0  ;;  %vm5917_vm3 = vcmp.ne.f32.partialorder %v12026_v19, %v12026_v19  ;;  %v6061_v59 = vand.u32 2147483647, %v12125_v52  ;;  %v5960_v58 = vand.u32 2147483647, %v12184_v8 }
 0x3c2   : > { %v6157_v7 = vadd.f32 %v6045_v61, %v5901_v0  ;;  %v6059_v44 = vadd.f32 1.0, %v6058_v21  ;;  %v5977_v31 = vsub.f32 0.0, %v5961_v25  ;;  %7344 = vlog2.f32 %v6010_v3 }
 0x3c3   : > { %v7333_v27 = vpop.eup %7332  ;;  %7346 = vlog2.f32 %v6171_v39  ;;  %v6002_v22 = vmul.f32 1.442695, %v5974_v34  ;;  %v6077_v1 = vadd.f32 1.0, %v6076_v46  ;;  %v6079_v10 = vand.u32 2147483647, %v12143_v12 }
 0x3c4   : > { %7348 = vpow2.f32 %v5998_v42  ;;  %v6057_v54 = vmul.f32 0.6931472, %v7329_v30  ;;  %v6008_v62 = vmul.f32 1.442695, %v5977_v31  ;;  %v6109_v28 = vadd.f32 1.0, %v12203_v56 }
 0x3c5   : > { %v5909_v23 = vmax.f32 %v12120_v33, 0.0  ;;  %vm12215_vm4 = vcmp.lt.f32.partialorder %v6061_v59, 0.0004427343  ;;  %v5976_v0 = vsub.f32 0.0, %v5960_v58  ;;  %v6094_v57 = vmul.f32 -0.5, %v12159_v45 }
 0x3c6   : > { %v6173_v26 = vsel %vm5917_vm3, %v12026_v19, %v6157_v7  ;;  %vm5919_vm5 = vcmp.ne.f32.partialorder %v12053_v51, %v12053_v51  ;;  %v6060_v41 = vmul.f32 %v12125_v52, %v6059_v44  ;;  %v6075_v4 = vmul.f32 0.6931472, %v7333_v27  ;;  %v12227_v55 = vpop.eup %7334 }
 0x3c7   : > { %7350 = vpow2.f32 %v6008_v62  ;;  %v6078_v43 = vmul.f32 %v12143_v12, %v6077_v1  ;;  %vm12230_vm6 = vcmp.lt.f32.partialorder %v6079_v10, 0.0004427343  ;;  %v6028_v6 = vadd.f32 1.0, %v12175_v60 }
 0x3c8   : > { %7352 = vpow2.f32 %v6002_v22  ;;  %v6063_v37 = vsel %vm12215_vm4, %v6060_v41, %v6057_v54  ;;  %v6013_v52 = vmul.f32 -0.5, %v12164_v29  ;;  %v6046_v21 = vadd.f32 1.0, %v12186_v49 }
 0x3c9   : > { %7354 = vlog2.f32 %v6109_v28  ;;  %v6006_v34 = vmul.f32 1.442695, %v5976_v0  ;;  %v6095_v12 = vadd.f32 1.0, %v6094_v57  ;;  %v6097_v46 = vand.u32 2147483647, %v12159_v45 }
 0x3ca   : > { %v7337_v19 = vpop.eup %7336  ;;  %7356 = vlog2.f32 %v6173_v26  ;;  %v5910_v30 = vmax.f32 %v12162_v11, 0.0  ;;  %v6081_v42 = vsel %vm12230_vm6, %v6078_v43, %v6075_v4  ;;  %v6112_v39 = vmul.f32 -0.5, %v12203_v56 }
 0x3cb   : > { %v7339_v61 = vpop.eup %7338  ;;  %5609 = vst [vmem:[%s8862_s13 + $0x6] sm:$0x1] %v7337_v19  ;;  %7358 = vlog2.f32 %v6028_v6  ;;  %v6159_v25 = vadd.f32 %v6063_v37, %v5903_v48  ;;  %v5911_v59 = vmax.f32 %v12153_v47, 0.0  ;;  %vm5921_vm7 = vcmp.ne.f32.partialorder %v12077_v14, %v12077_v14 }
 0x3cc   : > { %v12241_v3 = vpop.eup %7340  ;;  %v6093_v7 = vmul.f32 0.6931472, %v7339_v61  ;;  %v6014_v44 = vadd.f32 1.0, %v6013_v52  ;;  %v6016_v31 = vand.u32 2147483647, %v12164_v29  ;;  %7360 = vlog2.f32 %v6046_v21 }
 0x3cd   : > { %v6127_v58 = vadd.f32 1.0, %v12241_v3  ;;  %v12254_v27 = vpop.eup %7342  ;;  %v6161_v22 = vadd.f32 %v6081_v42, %v5905_v63  ;;  %7362 = vpow2.f32 %v6006_v34  ;;  %v6096_v48 = vmul.f32 %v12159_v45, %v6095_v12 }
 0x3ce   : > { %vm12259_vm8 = vcmp.lt.f32.partialorder %v6097_v46, 0.0004427343  ;;  %vm5923_vm9 = vcmp.ne.f32.partialorder %v12091_v17, %v12091_v17  ;;  %v5913_v10 = vmax.f32 %v12195_v38, 0.0  ;;  %v6113_v54 = vadd.f32 1.0, %v6112_v39 }
 0x3cf   : > { %vm5914_vm10 = vcmp.ne.f32.partialorder %v12063_v32, %v12063_v32  ;;  %7364 = vlog2.f32 %v6127_v58  ;;  %v7345_v62 = vpop.eup %7344  ;;  %v6175_v63 = vsel %vm5919_vm5, %v12053_v51, %v6159_v25  ;;  %v6115_v45 = vand.u32 2147483647, %v12203_v56  ;;  %v12313_v58 = vpop.permute.xlu0 %6225 }
 0x3d0   : > { %v6031_v28 = vmul.f32 -0.5, %v12175_v60  ;;  %v6064_v36 = vadd.f32 1.0, %v12227_v55  ;;  %v7347_v0 = vpop.eup %7346  ;;  %v6099_v57 = vsel %vm12259_vm8, %v6096_v48, %v6093_v7  ;;  %v6012_v26 = vmul.f32 0.6931472, %v7345_v62 }
 0x3d1   : > { %v6015_v41 = vmul.f32 %v12164_v29, %v6014_v44  ;;  %vm6017_vm11 = vcmp.lt.f32.partialorder %v6016_v31, 0.0004427343  ;;  %v12278_v4 = vpop.eup %7348  ;;  %v6177_v51 = vsel %vm5921_vm7, %v12077_v14, %v6161_v22  ;;  %v6049_v43 = vmul.f32 -0.5, %v12186_v49 }
 0x3d2   : > { %7366 = vlog2.f32 %v6064_v36  ;;  %v6082_v18 = vadd.f32 1.0, %v12254_v27  ;;  %v12287_v6 = vmul.f32 %v12203_v56, %v6113_v54  ;;  %v6034_v29 = vand.u32 2147483647, %v12175_v60 }
 0x3d3   : > { %7368 = vlog2.f32 %v6175_v63  ;;  %v6018_v19 = vsel %vm6017_vm11, %v6015_v41, %v6012_v26  ;;  %v12292_v52 = vmul.f32 0.6931472, %v7347_v0  ;;  %v6163_v21 = vadd.f32 %v6099_v57, %v5907_v53 }
 0x3d4   : > { %v12290_v37 = vpop.eup %7350  ;;  %vm12296_vm12 = vcmp.lt.f32.partialorder %v6115_v45, 0.0004427343  ;;  %v6154_v61 = vadd.f32 %v6018_v19, %v5898_v35  ;;  %v6032_v34 = vadd.f32 1.0, %v6031_v28  ;;  %7370 = vlog2.f32 %v6177_v51  ;;  %v12346_v19 = vpop.permute.xlu1 %6220 }
 0x3d5   : > { %v12302_v56 = vpop.eup %7352  ;;  %v6130_v12 = vmul.f32 -0.5, %v12241_v3  ;;  %vm5916_vm13 = vcmp.ne.f32.partialorder %v12068_v15, %v12068_v15  ;;  %v6145_v46 = vadd.f32 1.0, %v12290_v37  ;;  %v6133_v39 = vand.u32 2147483647, %v12241_v3 }
 0x3d6   : > { %v7355_v42 = vpop.eup %7354  ;;  %v6170_v53 = vsel %vm5914_vm10, %v12063_v32, %v6154_v61  ;;  %v6050_v35 = vadd.f32 1.0, %v6049_v43  ;;  %7372 = vlog2.f32 %v6082_v18  ;;  %vm12315_vm14 = vcmp.lt.f32.partialorder %v6034_v29, 0.0004427343 }
 0x3d7   : > { %v7357_v25 = vpop.eup %7356  ;;  %7374 = vlog2.f32 %v6170_v53  ;;  %vm5918_vm15 = vcmp.ne.f32.partialorder %v12084_v13, %v12084_v13  ;;  %v6067_v44 = vmul.f32 -0.5, %v12227_v55  ;;  %v6299_v32 = vsub.f32 %v12292_v52, %v12313_v58 }
 0x3d8   : > { %v7359_v31 = vpop.eup %7358  ;;  %v6179_v22 = vsel %vm5923_vm9, %v12091_v17, %v6163_v21  ;;  %v6033_v48 = vmul.f32 %v12175_v60, %v6032_v34  ;;  %v6052_v1 = vand.u32 2147483647, %v12186_v49  ;;  %v6111_v54 = vmul.f32 0.6931472, %v7355_v42 }
 0x3d9   : > { %v6131_v62 = vadd.f32 1.0, %v6130_v12  ;;  %v6030_v63 = vmul.f32 0.6931472, %v7359_v31  ;;  %7376 = vlog2.f32 %v6145_v46  ;;  %v7361_v45 = vpop.eup %7360  ;;  %v12330_v28 = vmul.f32 0.6931472, %v7357_v25  ;;  %v12373_v25 = vpop.permute.xlu0 %6235 }
 0x3da   : > { %vm12332_vm0 = vcmp.lt.f32.partialorder %v6133_v39, 0.0004427343  ;;  %v6051_v0 = vmul.f32 %v12186_v49, %v6050_v35  ;;  %v6070_v57 = vand.u32 2147483647, %v12227_v55  ;;  %v6100_v17 = vadd.f32 1.0, %v12278_v4  ;;  %v12339_v60 = vpop.eup %7362 }
 0x3db   : > { %vm5925_vm1 = vcmp.ne.f32.partialorder %v12120_v33, %v12120_v33  ;;  %v6036_v26 = vsel %vm12315_vm14, %v6033_v48, %v6030_v63  ;;  %v6048_v41 = vmul.f32 0.6931472, %v7361_v45  ;;  %v6068_v51 = vadd.f32 1.0, %v6067_v44 }
 0x3dc   : > { %v6118_v43 = vadd.f32 1.0, %v12302_v56  ;;  %v7365_v18 = vpop.eup %7364  ;;  %v6156_v49 = vadd.f32 %v6036_v26, %v5900_v5  ;;  %vm6053_vm2 = vcmp.lt.f32.partialorder %v6052_v1, 0.0004427343  ;;  %v6085_v29 = vmul.f32 -0.5, %v12254_v27 }
 0x3dd   : > { %7378 = vlog2.f32 %v6100_v17  ;;  %v6117_v21 = vsel %vm12296_vm12, %v12287_v6, %v6111_v54  ;;  %v6148_v61 = vmul.f32 -0.5, %v12290_v37  ;;  %v6054_v34 = vsel %vm6053_vm2, %v6051_v0, %v6048_v41 }
 0x3de   : > { %7380 = vlog2.f32 %v6118_v43  ;;  %v6132_v12 = vmul.f32 %v12241_v3, %v6131_v62  ;;  %v6172_v5 = vsel %vm5916_vm13, %v12068_v15, %v6156_v49  ;;  %v6158_v46 = vadd.f32 %v6054_v34, %v5902_v16 }
 0x3df   : > { %7382 = vlog2.f32 %v6179_v22  ;;  %v7367_v42 = vpop.eup %7366  ;;  %v6129_v53 = vmul.f32 0.6931472, %v7365_v18  ;;  %v6069_v6 = vmul.f32 %v12227_v55, %v6068_v51  ;;  %vm12363_vm3 = vcmp.lt.f32.partialorder %v6070_v57, 0.0004427343  ;;  %v12383_v22 = vpop.permute.xlu1 %6230 }
 0x3e0   : > { %7384 = vlog2.f32 %v6172_v5  ;;  %v7369_v39 = vpop.eup %7368  ;;  %v6165_v3 = vadd.f32 %v6117_v21, %v5909_v23  ;;  %v6174_v15 = vsel %vm5918_vm15, %v12084_v13, %v6158_v46  ;;  %v6066_v35 = vmul.f32 0.6931472, %v7367_v42 }
 0x3e1   : > { %v6086_v16 = vadd.f32 1.0, %v6085_v29  ;;  %v6149_v7 = vadd.f32 1.0, %v6148_v61  ;;  %7386 = vlog2.f32 %v6174_v15  ;;  %v6088_v55 = vand.u32 2147483647, %v12254_v27  ;;  %v12377_v31 = vpop.eup %7370 }
 0x3e2   : > { %v6136_v44 = vadd.f32 1.0, %v12339_v60  ;;  %v6301_v23 = vsub.f32 %v12330_v28, %v12373_v25  ;;  %vm5927_vm4 = vcmp.ne.f32.partialorder %v12153_v47, %v12153_v47  ;;  %vm5920_vm5 = vcmp.ne.f32.partialorder %v12113_v40, %v12113_v40 }
 0x3e3   : > { %v6072_v13 = vsel %vm12363_vm3, %v6069_v6, %v6066_v35  ;;  %v6103_v48 = vmul.f32 -0.5, %v12278_v4  ;;  %v7373_v1 = vpop.eup %7372  ;;  %v6135_v54 = vsel %vm12332_vm0, %v6132_v12, %v6129_v53  ;;  %v6121_v63 = vmul.f32 -0.5, %v12302_v56  ;;  %v6241_v21 = vpop.permute.xlu1 %6240 }
 0x3e4   : > { %v6160_v62 = vadd.f32 %v6072_v13, %v5904_v9  ;;  %7388 = vlog2.f32 %v6136_v44  ;;  %v7375_v45 = vpop.eup %7374  ;;  %v6181_v0 = vsel %vm5925_vm1, %v12120_v33, %v6165_v3  ;;  %v6151_v57 = vand.u32 2147483647, %v12290_v37  ;;  %v12418_v12 = vpop.permute.xlu0 %6245 }
 0x3e5   : > { %v6084_v17 = vmul.f32 0.6931472, %v7373_v1  ;;  %v6087_v26 = vmul.f32 %v12254_v27, %v6086_v16  ;;  %v6150_v36 = vmul.f32 %v12290_v37, %v6149_v7  ;;  %vm6089_vm6 = vcmp.lt.f32.partialorder %v6088_v55, 0.0004427343 }
 0x3e6   : > { %v6176_v41 = vsel %vm5920_vm5, %v12113_v40, %v6160_v62  ;;  %v6106_v9 = vand.u32 2147483647, %v12278_v4  ;;  %v7377_v51 = vpop.eup %7376  ;;  %v6167_v43 = vadd.f32 %v6135_v54, %v5911_v59  ;;  %v6104_v49 = vadd.f32 1.0, %v6103_v48 }
 0x3e7   : > { %7390 = vlog2.f32 %v6176_v41  ;;  %v6090_v18 = vsel %vm6089_vm6, %v6087_v26, %v6084_v17  ;;  %v6187_v33 = vmul.f32 0.6931472, %v7375_v45  ;;  %vm5929_vm7 = vcmp.ne.f32.partialorder %v12195_v38, %v12195_v38 }
 0x3e8   : > { %v6147_v29 = vmul.f32 0.6931472, %v7377_v51  ;;  %v6162_v27 = vadd.f32 %v6090_v18, %v5906_v50  ;;  %v6122_v37 = vadd.f32 1.0, %v6121_v63  ;;  %vm12410_vm8 = vcmp.lt.f32.partialorder %v6151_v57, 0.0004427343  ;;  %v6256_v48 = vpop.permute.xlu0 %6255 }
 0x3e9   : > { %vm5922_vm9 = vcmp.ne.f32.partialorder %v12132_v20, %v12132_v20  ;;  %v6124_v59 = vand.u32 2147483647, %v12302_v56  ;;  %v6139_v61 = vmul.f32 -0.5, %v12339_v60  ;;  %v12420_v5 = vmul.f32 0.6931472, %v7369_v39 }
 0x3ea   : > { %v7379_v34 = vpop.eup %7378  ;;  %7392 = vlog2.f32 %v6181_v0  ;;  %v6153_v50 = vsel %vm12410_vm8, %v6150_v36, %v6147_v29  ;;  %v6178_v46 = vsel %vm5922_vm9, %v12132_v20, %v6162_v27  ;;  %v6105_v6 = vmul.f32 %v12278_v4, %v6104_v49 }
 0x3eb   : > { %v7381_v42 = vpop.eup %7380  ;;  %7394 = vlog2.f32 %v6178_v46  ;;  %v6102_v53 = vmul.f32 0.6931472, %v7379_v34  ;;  %vm6107_vm10 = vcmp.lt.f32.partialorder %v6106_v9, 0.0004427343  ;;  %v6298_v3 = vsub.f32 %v6187_v33, %v12346_v19 }
 0x3ec   : > { %v7383_v14 = vpop.eup %7382  ;;  %v6183_v39 = vsel %vm5927_vm4, %v12153_v47, %v6167_v43  ;;  %v6120_v15 = vmul.f32 0.6931472, %v7381_v42  ;;  %v6123_v35 = vmul.f32 %v12302_v56, %v6122_v37  ;;  %v6169_v20 = vadd.f32 %v6153_v50, %v5913_v10  ;;  %v6251_v47 = vpop.permute.xlu1 %6250 }
 0x3ed   : > { %v7385_v16 = vpop.eup %7384  ;;  %v6108_v7 = vsel %vm6107_vm10, %v6105_v6, %v6102_v53  ;;  %vm6125_vm11 = vcmp.lt.f32.partialorder %v6124_v59, 0.0004427343  ;;  %v6140_v55 = vadd.f32 1.0, %v6139_v61  ;;  %vm5924_vm12 = vcmp.ne.f32.partialorder %v12150_v2, %v12150_v2  ;;  %v6266_v41 = vpop.permute.xlu0 %6265 }
 0x3ee   : > { %v6191_v4 = vmul.f32 0.6931472, %v7385_v16  ;;  %v6164_v19 = vadd.f32 %v6108_v7, %v5908_v24  ;;  %v6126_v44 = vsel %vm6125_vm11, %v6123_v35, %v6120_v15  ;;  %v7387_v13 = vpop.eup %7386  ;;  %7396 = vlog2.f32 %v6183_v39 }
 0x3ef   : > { %vm5926_vm13 = vcmp.ne.f32.partialorder %v12162_v11, %v12162_v11  ;;  %v6166_v10 = vadd.f32 %v6126_v44, %v5910_v30  ;;  %v6142_v56 = vand.u32 2147483647, %v12339_v60  ;;  %v6314_v1 = vadd.f32 %v6299_v32, %v6298_v3 }
 0x3f0   : > { %v6300_v54 = vsub.f32 %v6191_v4, %v12383_v22  ;;  %v6195_v24 = vmul.f32 0.6931472, %v7387_v13  ;;  %v6180_v62 = vsel %vm5924_vm12, %v12150_v2, %v6164_v19  ;;  %v6185_v45 = vsel %vm5929_vm7, %v12195_v38, %v6169_v20  ;;  %v6261_v26 = vpop.permute.xlu1 %6260 }
 0x3f1   : > { %v7389_v63 = vpop.eup %7388  ;;  %7398 = vlog2.f32 %v6180_v62  ;;  %v6182_v30 = vsel %vm5926_vm13, %v12162_v11, %v6166_v10  ;;  %v6141_v0 = vmul.f32 %v12339_v60, %v6140_v55  ;;  %v5912_v58 = vmax.f32 %v12184_v8, 0.0  ;;  %v6276_v40 = vpop.permute.xlu0 %6275 }
 0x3f2   : > { %v6315_v57 = vadd.f32 %v6314_v1, %v6300_v54  ;;  %v6302_v17 = vsub.f32 %v6195_v24, %v6241_v21  ;;  %7400 = vlog2.f32 %v6182_v30  ;;  %v6138_v52 = vmul.f32 0.6931472, %v7389_v63 }
 0x3f3   : > { %vm6143_vm14 = vcmp.lt.f32.partialorder %v6142_v56, 0.0004427343  ;;  %v6303_v2 = vsub.f32 %v12420_v5, %v12418_v12  ;;  %v6201_v22 = vmul.f32 0.6931472, %v12377_v31  ;;  %7402 = vlog2.f32 %v6185_v45 }
 0x3f4   : > { %v7391_v32 = vpop.eup %7390  ;;  %v6316_v38 = vadd.f32 %v6315_v57, %v6301_v23  ;;  %v6144_v11 = vsel %vm6143_vm14, %v6141_v0, %v6138_v52  ;;  %vm5928_vm15 = vcmp.ne.f32.partialorder %v12184_v8, %v12184_v8  ;;  %v6205_v28 = vmul.f32 0.6931472, %v7383_v14  ;;  %v6271_v27 = vpop.permute.xlu1 %6270 }
 0x3f5   : > { %v6199_v60 = vmul.f32 0.6931472, %v7391_v32  ;;  %v6168_v36 = vadd.f32 %v6144_v11, %v5912_v58  ;;  %v6305_v31 = vsub.f32 %v6201_v22, %v6256_v48  ;;  %v6286_v39 = vpop.permute.xlu0 %6285 }
 0x3f6   : > { %v6317_v9 = vadd.f32 %v6316_v38, %v6302_v17  ;;  %v6307_v59 = vsub.f32 %v6205_v28, %v6266_v41 }
 0x3f7   : > { %v7393_v51 = vpop.eup %7392  ;;  %v6304_v43 = vsub.f32 %v6199_v60, %v6251_v47  ;;  %v6184_v18 = vsel %vm5928_vm15, %v12184_v8, %v6168_v36 }
 0x3f8   : > { %v7395_v49 = vpop.eup %7394  ;;  %v6318_v33 = vadd.f32 %v6317_v9, %v6303_v2  ;;  %7404 = vlog2.f32 %v6184_v18  ;;  %v6209_v61 = vmul.f32 0.6931472, %v7393_v51  ;;  %v6281_v3 = vpop.permute.xlu1 %6280 }
 0x3f9   : > { %v6203_v25 = vmul.f32 0.6931472, %v7395_v49  ;;  %v6296_v13 = vpop.permute.xlu0 %6295 }
 0x3fa   : > { %v6319_v23 = vadd.f32 %v6318_v33, %v6304_v43  ;;  %v6309_v8 = vsub.f32 %v6209_v61, %v6276_v40 }
 0x3fb   : > { %v6306_v29 = vsub.f32 %v6203_v25, %v6261_v26  ;;  %v7397_v37 = vpop.eup %7396 }
 0x3fc   : > { %v6320_v21 = vadd.f32 %v6319_v23, %v6305_v31  ;;  %v6213_v42 = vmul.f32 0.6931472, %v7397_v37  ;;  %v6291_v44 = vpop.permute.xlu1 %6290 }
 0x3fe   : > { %v7399_v34 = vpop.eup %7398  ;;  %v6321_v5 = vadd.f32 %v6320_v21, %v6306_v29  ;;  %v6311_v20 = vsub.f32 %v6213_v42, %v6286_v39 }
 0x3ff   : > { %v7401_v12 = vpop.eup %7400  ;;  %v6207_v50 = vmul.f32 0.6931472, %v7399_v34 }
 0x400   : > { %v6211_v46 = vmul.f32 0.6931472, %v7401_v12  ;;  %v6322_v6 = vadd.f32 %v6321_v5, %v6307_v59  ;;  %v7403_v14 = vpop.eup %7402 }
 0x401   : > { %v6308_v53 = vsub.f32 %v6207_v50, %v6271_v27  ;;  %v6217_v7 = vmul.f32 0.6931472, %v7403_v14 }
 0x402   : > { %v6310_v35 = vsub.f32 %v6211_v46, %v6281_v3 }
 0x403   : > { %v6323_v15 = vadd.f32 %v6322_v6, %v6308_v53  ;;  %v6313_v10 = vsub.f32 %v6217_v7, %v6296_v13 }
 0x405   : > { %v7405_v16 = vpop.eup %7404  ;;  %v6324_v55 = vadd.f32 %v6323_v15, %v6309_v8 }
 0x406   : > { %v6215_v4 = vmul.f32 0.6931472, %v7405_v16 }
 0x407   : > { %v6325_v19 = vadd.f32 %v6324_v55, %v6310_v35 }
 0x408   : > { %v6312_v47 = vsub.f32 %v6215_v4, %v6291_v44 }
 0x409   : > { %v6326_v56 = vadd.f32 %v6325_v19, %v6311_v20 }
 0x40b   : > { %v6327_v48 = vadd.f32 %v6326_v56, %v6312_v47 }
 0x40d   : > { %v6328_v1 = vadd.f32 %v6327_v48, %v6313_v10 }
 0x40f   : > { %v6329_v54 = vrot.slane %v6328_v1, 4 }
 0x411   : > { %v6330_v24 = vadd.f32 %v6329_v54, %v6328_v1 }
 0x413   : > { %v6331_v62 = vrot.slane %v6330_v24, 2 }
 0x415   : > { %v6332_v63 = vadd.f32 %v6331_v62, %v6330_v24 }
 0x417   : > { %v6333_v45 = vrot.slane %v6332_v63, 1 }
 0x419   : > { %v6334_v30 = vadd.f32 %v6333_v45, %v6332_v63 }
 0x41b   : > { %v6336_v0 = vmul.f32 1.442695, %v6334_v30 }
 0x41d   : > { %7406 = vpow2.f32 %v6336_v0 }
 0x42a   : > { %v7407_v57 = vpop.eup %7406 }
 0x42b   : > { %6338 = vst [vmem:[%s8862_s13 + $0x7] sm:$0x1] %v7407_v57 }
 0x42c   : > { %7500 = shalt.err (!%p7497_p11)
}
 0x42d   : > { %s7501_s13 = scalar_lea.hbm %s12470_s21, 128  ;;  %s7505_s1 = scalar_lea.hbm %s12530_s5, 512 }
 0x42e   : > { %p7502_p13 = scmp.ne.s32.totalorder %s12470_s21, %s7501_s13  ;;  %p7506_p2 = scmp.lt.s32.totalorder %s12470_s21, %s12530_s5 }
 0x42f   : > { %p7507_p3 = scmp.lt.s32.totalorder %s7505_s1, %s7501_s13 }
 0x430   : > { %p7503_p0 = pnand %p7502_p13, %p7708_p7 }
 0x431   : > { %p7508_p4 = por %p7507_p3, %p7506_p2 }
 0x432   : > { %p7504_p1 = pneg %p7503_p0 }
 0x434   : > { %p7509_p5 = pnand %p7508_p4, %p7504_p1 }
 0x436   : > { %7512 = shalt.err (!%p7509_p5)
}
 0x437   : > { %6513 = dma.vmem_to_hbm [thread:$0]  (%p7708_p7), %s6356_s7, 128, %s12470_s21, %s6340_s8  }
 0x438 PF: > { %p6519_p6 = scmp.ge.s32.totalorder %s7595_s27, 2  ;;  %s6367_s0 = sand.u32 1, %s7559_s18  }
 0x439   : > { %s6368_s17 = scalar_lea.sflag [#allocation5], %s6367_s0 }
 0x43a   : > { %p6516_p8 = pnand %p6519_p6, %p7716_p12 }
 0x43c   : > { %p6517_p9 = pneg %p6516_p8 }
 0x43e   : > { %7554 = dma.done.wait (%p6517_p9), %s6368_s17, 128  }
 0x43f   : > { %7556 = vsyncadd (%p6517_p9), %s6368_s17, 4294967168  ;;  %s18_s27 = sadd.s32 1, %s7595_s27   ;;  %s12892_s18 = smov %s7563_s19 }
 0x440   : > { %p15_p10 = scmp.ge.s32.totalorder %s18_s27, 6   ;;  %s12893_s19 = smov %s7567_s20 }
 0x441   : > { %s12894_s20 = smov %s7724_s16  ;;  %s12895_s21 = smov %s7575_s22 }
 0x442   : > { %s12896_s22 = smov %s7721_s15  ;;  %s12897_s23 = smov %s7587_s25 }
 0x443   : > { %s12898_s24 = smov %s7591_s26  ;;  %s12899_s25 = smov %s12902_s30 }
 0x444   : > { %s12900_s26 = smov %s12906_s6  ;;  %17 = sbr.rel (!%p15_p10) target bundleno = 9 (0x9), region = 173 }
 0x449   :  { %6373 = vsyncpa [#allocation5], 1 }
 0x44a   :  { %6375 = vsyncpa [#allocation5 + $0x1], 1 }

</bundles_post_ra>
